<compile_context>
chip_gen: v7x
topology: tpu7x:2x2x1
jax: 0.10.0
libtpu: 0.0.40
codegen_flags: <defaults>
</compile_context>

<pallas_src>
import functools

import jax
import jax.numpy as jnp
from jax.experimental import pallas as pl
from jax.experimental.pallas import tpu as pltpu

LOG_STD_MIN = -20.0
LOG_STD_MAX = 2.0
NEG_SLOPE = 0.01  # torch leaky_relu / nn.LeakyReLU default

# (cout, kernel, stride) for big_conv
CONV_CFG = [(32, 8, 2), (32, 4, 2), (32, 4, 2), (32, 4, 1)]


def _leaky(y):
    return jnp.where(y >= 0, y, NEG_SLOPE * y)


# ---------------- Pallas kernels ----------------

def _gemm_bias_lrelu_kernel(x_ref, w_ref, b_ref, o_ref):
    """o = leaky_relu(x @ w + b); x is int8 (conv1 patches) or bf16, w is bf16,
    accumulation + bias + leaky in f32, output stored bf16."""
    x = x_ref[...]
    w = w_ref[...]
    if x.dtype != w.dtype:
        x = x.astype(w.dtype)                 # int8 -> bf16 (exact) at the MXU input
    y = jnp.dot(x, w, preferred_element_type=jnp.float32) + b_ref[...]
    o_ref[...] = _leaky(y).astype(o_ref.dtype)


def _tail_kernel(p3_ref, vec_ref, w3_ref, b3_ref, w4_ref, b4_ref,
                 w1c_ref, w1v_ref, b1_ref, w2h_ref, w2v_ref, b2_ref,
                 wh_ref, bh_ref, out_ref, *, oh3, ow3, k4, act_dim):
    """Fused: conv3 GEMM + conv4 (static tap accumulation) + lin1 + lin2 + merged
    TanhNormal heads.  Everything is VMEM-resident for the current batch block."""
    n3 = oh3 * ow3                    # conv3 output positions (5*5 = 25)
    oh4 = oh3 - k4 + 1                # conv4 output spatial (stride 1) -> 2
    ow4 = ow3 - k4 + 1

    # conv3: per spatial position p, y3[p] = leaky(p3[p] @ w3 + b3)  -> (b_blk, 32) bf16
    w3 = w3_ref[...]
    b3 = b3_ref[...]
    y3 = []
    for p in range(n3):
        y = jnp.dot(p3_ref[p], w3, preferred_element_type=jnp.float32) + b3
        y3.append(_leaky(y).astype(jnp.bfloat16))

    vec = vec_ref[...].astype(jnp.bfloat16)
    # lin1 vec-part + bias (concat folded into a row split of lin1's weight)
    h1 = jnp.dot(vec, w1v_ref[...], preferred_element_type=jnp.float32) + b1_ref[...]

    # conv4 (4x4, stride 1 on the 5x5 conv3 map) as 16 static taps per output position,
    # immediately consumed by lin1's conv-part (NCHW flatten folded into w1c offline).
    b4 = b4_ref[...]
    for a in range(oh4):
        for b in range(ow4):
            acc = b4
            for ki in range(k4):
                for kj in range(k4):
                    row = (a + ki) * ow3 + (b + kj)
                    tap = ki * k4 + kj
                    acc = acc + jnp.dot(y3[row], w4_ref[tap],
                                        preferred_element_type=jnp.float32)
            y4 = _leaky(acc).astype(jnp.bfloat16)          # (b_blk, c4)
            h1 = h1 + jnp.dot(y4, w1c_ref[a * ow4 + b],
                              preferred_element_type=jnp.float32)
    h1 = _leaky(h1).astype(jnp.bfloat16)

    # lin2 = leaky(h1 @ W2a + vec @ W2b + b2)   (concat folded into row split)
    h2 = (jnp.dot(h1, w2h_ref[...], preferred_element_type=jnp.float32)
          + jnp.dot(vec, w2v_ref[...], preferred_element_type=jnp.float32)
          + b2_ref[...])
    h2 = _leaky(h2).astype(jnp.bfloat16)

    # Merged mean/std heads: one (hidden, 2A) GEMM, then per-column select:
    # first A columns = mean, last A columns = exp(clip(log_std)).
    y = jnp.dot(h2, wh_ref[...], preferred_element_type=jnp.float32) + bh_ref[...]
    col = jax.lax.broadcasted_iota(jnp.int32, y.shape, 1)
    std = jnp.exp(jnp.clip(y, LOG_STD_MIN, LOG_STD_MAX))
    out_ref[...] = jnp.where(col < act_dim, y, std)


# ---------------- Pallas wrappers ----------------

def conv_gemm(patches, wmat, bias, row_block=2048):
    """leaky_relu(patches @ wmat + bias) -> bf16. Large row tiles (ragged last block is
    handled by Pallas store masking), parallel row grid."""
    M, K = patches.shape
    N = wmat.shape[1]
    tm = min(M, row_block)
    steps = pl.cdiv(M, tm)
    flops = 2 * M * K * N
    bytes_accessed = (M * K * patches.dtype.itemsize + K * N * wmat.dtype.itemsize
                      + N * 4 + M * N * 2)
    return pl.pallas_call(
        _gemm_bias_lrelu_kernel,
        out_shape=jax.ShapeDtypeStruct((M, N), jnp.bfloat16),
        grid=(steps,),
        in_specs=[pl.BlockSpec((tm, K), lambda i: (i, 0)),
                  pl.BlockSpec((K, N), lambda i: (0, 0)),
                  pl.BlockSpec((1, N), lambda i: (0, 0))],
        out_specs=pl.BlockSpec((tm, N), lambda i: (i, 0)),
        compiler_params=pltpu.CompilerParams(dimension_semantics=("parallel",)),
        cost_estimate=pl.CostEstimate(flops=flops, transcendentals=0,
                                      bytes_accessed=bytes_accessed),
    )(patches, wmat, bias.reshape(1, N))


def tail_forward(p3, vec, params, *, oh3, ow3):
    """conv3 + conv4 + lin1 + lin2 + policy heads in ONE pallas_call, batch-parallel."""
    n3, B, K3 = p3.shape
    Dv = vec.shape[1]
    c3 = params["conv_w"][2].shape[1]
    c4 = params["conv_w"][3].shape[2]
    H = params["w1c"].shape[2]
    A = params["wh"].shape[1] // 2
    k4 = CONV_CFG[3][1]

    # Batch blocking: whole batch when small; 512-row blocks (and a "parallel" grid axis
    # so v7x's two TensorCores split the work) otherwise.
    b_blk = B if B <= 512 else 512
    steps = pl.cdiv(B, b_blk)

    kernel = functools.partial(_tail_kernel, oh3=oh3, ow3=ow3, k4=k4, act_dim=A)

    def fullspec(shape):
        nd = len(shape)
        return pl.BlockSpec(shape, lambda i: (0,) * nd)

    args = (p3, vec,
            params["conv_w"][2], params["conv_b"][2].reshape(1, c3),
            params["conv_w"][3], params["conv_b"][3].reshape(1, c4),
            params["w1c"], params["w1v"], params["b1"].reshape(1, H),
            params["w2h"], params["w2v"], params["b2"].reshape(1, H),
            params["wh"], params["bh"].reshape(1, 2 * A))

    in_specs = ([pl.BlockSpec((n3, b_blk, K3), lambda i: (0, i, 0)),
                 pl.BlockSpec((b_blk, Dv), lambda i: (i, 0))]
                + [fullspec(a.shape) for a in args[2:]])

    out = pl.pallas_call(
        kernel,
        out_shape=jax.ShapeDtypeStruct((B, 2 * A), jnp.float32),
        grid=(steps,),
        in_specs=in_specs,
        out_specs=pl.BlockSpec((b_blk, 2 * A), lambda i: (i, 0)),
        compiler_params=pltpu.CompilerParams(dimension_semantics=("parallel",)),
    )(*args)
    return out


# ---------------- JAX glue ----------------

def _im2col(x, K, S):
    """x: (N, H, W, C) -> patches (N*OH*OW, K*K*C); patch column order (kh, kw, cin)."""
    N, H, W, C = x.shape
    OH = (H - K) // S + 1
    OW = (W - K) // S + 1
    cols = []
    for ki in range(K):
        for kj in range(K):
            sl = jax.lax.slice(
                x, (0, ki, kj, 0),
                (N, ki + (OH - 1) * S + 1, kj + (OW - 1) * S + 1, C),
                (1, S, S, 1))
            cols.append(sl)                      # (N, OH, OW, C)
    patches = jnp.stack(cols, axis=3)            # (N, OH, OW, K*K, C)
    return patches.reshape(N * OH * OW, K * K * C), OH, OW


def init_torch_params(key, img_channels, img_hw, vec_dim, hidden_units, action_dim):
    """Deterministic synthetic params in PyTorch's native layouts:
    Conv2d (Cout,Cin,KH,KW); Linear (out,in); lin1's conv rows in NCHW-flatten order."""
    keys = iter(jax.random.split(key, 10))
    conv = []
    cin = img_channels
    h = w = img_hw
    for cout, k, s in CONV_CFG:
        fan_in = cin * k * k
        wgt = jax.random.normal(next(keys), (cout, cin, k, k), jnp.float32) / jnp.sqrt(fan_in)
        conv.append((wgt, jnp.zeros((cout,), jnp.float32)))
        h = (h - k) // s + 1
        w = (w - k) // s + 1
        cin = cout
    conv_size = cin * h * w
    d1 = conv_size + vec_dim
    lin1 = (jax.random.normal(next(keys), (hidden_units, d1), jnp.float32) / jnp.sqrt(d1),
            jnp.zeros((hidden_units,), jnp.float32))
    d2 = hidden_units + vec_dim
    lin2 = (jax.random.normal(next(keys), (hidden_units, d2), jnp.float32) / jnp.sqrt(d2),
            jnp.zeros((hidden_units,), jnp.float32))
    out_mean = (jax.random.normal(next(keys), (action_dim, hidden_units), jnp.float32)
                / jnp.sqrt(hidden_units),
                jnp.zeros((action_dim,), jnp.float32))
    # TanhNormalLayer inits its std head with uniform(-1e-3, 1e-3)
    out_std = (jax.random.uniform(next(keys), (action_dim, hidden_units), jnp.float32, -1e-3, 1e-3),
               jax.random.uniform(next(keys), (action_dim,), jnp.float32, -1e-3, 1e-3))
    raw = {"conv": conv, "lin1": lin1, "lin2": lin2,
           "out_mean": out_mean, "out_std": out_std}
    return raw, (h, w, cin), conv_size


def prepare_params(raw, conv_out_shape):
    """Offline re-layout / algebraic folding of torch-convention params:
      * conv1..conv3 weights -> (KH*KW*Cin, Cout) im2col matrices (bf16)
      * conv4 weight -> (KH*KW, Cin, Cout) tap-major tensor for in-kernel taps (bf16)
      * x/255 - 0.5 (with the int8 x-128 shift) folded into conv1's weight & bias
      * lin1/lin2 split into feature-part and vec-part (removes runtime concats)
      * lin1 feature rows permuted from torch's NCHW-flatten to NHWC-flatten order and
        reshaped (n_pos4, C4, hidden) for per-position in-kernel accumulation
      * mean/std heads merged into one (hidden, 2A) GEMM
    All matmul operands stored bf16; biases stay f32.
    """
    OH4, OW4, C4 = conv_out_shape
    p = {"conv_w": [], "conv_b": []}
    for li, (w, b) in enumerate(raw["conv"]):
        cout, cin, k, _ = w.shape
        wmat = jnp.transpose(w, (2, 3, 1, 0)).reshape(k * k * cin, cout)   # (kh,kw,cin)->cout
        if li == 0:
            # x/255 - 0.5 with x = x_i8 + 128  =>  x_i8 @ (W/255) + (0.5/255)*sum(W) + b
            b = b + (0.5 / 255.0) * wmat.sum(axis=0)
            wmat = wmat / 255.0
        if li == 3:
            wmat = wmat.reshape(k * k, cin, cout)   # tap-major for in-kernel conv4
        p["conv_w"].append(wmat.astype(jnp.bfloat16))
        p["conv_b"].append(b.astype(jnp.float32))
    conv_size = OH4 * OW4 * C4

    w1, b1 = raw["lin1"]
    w1t = w1.T                                           # (conv_size + vec, hidden)
    w1c_nchw = w1t[:conv_size]
    # torch flatten row = c*OH*OW + oh*OW + ow ; kernel consumes NHWC order (oh, ow, c)
    ohh, oww, cc = jnp.meshgrid(jnp.arange(OH4), jnp.arange(OW4), jnp.arange(C4), indexing="ij")
    perm = (cc * OH4 * OW4 + ohh * OW4 + oww).reshape(-1)
    p["w1c"] = w1c_nchw[perm].reshape(OH4 * OW4, C4, -1).astype(jnp.bfloat16)
    p["w1v"] = w1t[conv_size:].astype(jnp.bfloat16)
    p["b1"] = b1
    w2, b2 = raw["lin2"]
    hidden = w2.shape[0]
    w2t = w2.T
    p["w2h"] = w2t[:hidden].astype(jnp.bfloat16)
    p["w2v"] = w2t[hidden:].astype(jnp.bfloat16)
    p["b2"] = b2

    (wm, bm), (ws, bs) = raw["out_mean"], raw["out_std"]
    p["wh"] = jnp.concatenate([wm.T, ws.T], axis=1).astype(jnp.bfloat16)   # (hidden, 2A)
    p["bh"] = jnp.concatenate([bm, bs])                                    # (2A,)
    return p


def conv_actor_forward(params, img_nchw, vec):
    """observation = ((img_nchw, vec),)  ->  (mean, std) of the policy head."""
    B = img_nchw.shape[0]
    # Normalization is folded into conv1; shift to int8 so the big conv1 patch matrix
    # stays 8-bit all the way to the in-kernel load/cast (widened only at the MXU input).
    x = (img_nchw.astype(jnp.int32) - 128).astype(jnp.int8)
    x = jnp.transpose(x, (0, 2, 3, 1))                   # NCHW -> NHWC (tiny, 8-bit)

    # conv1, conv2: im2col (JAX glue, int8 / bf16 streams) + fused Pallas GEMM/bias/LeakyReLU.
    # TODO(synk): a fully in-kernel K x K tap-accumulation conv (no im2col patch
    # materialization at all) needs in-kernel strided sublane gathers on the odd
    # 29x29 / 13x13 feature maps; kept as 8-bit/bf16 im2col + GEMM for robust Mosaic lowering.
    for li in range(2):
        cout, k, s = CONV_CFG[li]
        patches, OH, OW = _im2col(x, k, s)
        y = conv_gemm(patches, params["conv_w"][li], params["conv_b"][li])
        x = y.reshape(B, OH, OW, cout)                   # free (row-major) reshape, bf16

    # conv3 patches (bf16), reordered pos-major so the fused tail kernel can index them
    # with static leading-dim loads; conv4 is computed inside the tail (no extra im2col).
    _, k3, s3 = CONV_CFG[2]
    p3, OH3, OW3 = _im2col(x, k3, s3)                    # (B*25, 512), rows ordered (b, oh, ow)
    n3 = OH3 * OW3
    K3 = p3.shape[1]
    p3 = p3.reshape(B, n3, K3).transpose(1, 0, 2)        # (n3, B, K3), tiny bf16 tensor

    out = tail_forward(p3, vec, params, oh3=OH3, ow3=OW3)
    A = params["wh"].shape[1] // 2
    # TODO(synk): torch returns a TanhNormal distribution object; we return its (mean, std).
    return out[:, :A], out[:, A:]


if __name__ == "__main__":
    B, C, HW = 2, 4, 64          # big_conv needs spatial >= ~50; use 64
    VEC_DIM, HIDDEN, ACT_DIM = 8, 32, 2

    key = jax.random.PRNGKey(0)
    k_img, k_vec, k_par = jax.random.split(key, 3)
    img = jax.random.randint(k_img, (B, C, HW, HW), 0, 256, dtype=jnp.int32).astype(jnp.uint8)
    vec = jax.random.normal(k_vec, (B, VEC_DIM), jnp.float32)

    raw, conv_out_shape, conv_size = init_torch_params(k_par, C, HW, VEC_DIM, HIDDEN, ACT_DIM)
    params = prepare_params(raw, conv_out_shape)

    fwd = jax.jit(conv_actor_forward)
    mean, std = fwd(params, img, vec)
    jax.block_until_ready((mean, std))

    assert mean.shape == (B, ACT_DIM) and std.shape == (B, ACT_DIM)
    assert bool(jnp.all(std > 0))
    assert bool(jnp.all(jnp.isfinite(mean))) and bool(jnp.all(jnp.isfinite(std)))
    print("KERNEL_OK")
</pallas_src>

<mosaic_0001>
module attributes {stable_mosaic.version = 11 : i64} {
  func.func @_gemm_bias_lrelu_kernel(%arg0: i32, %arg1: memref<1682x256xi8, #tpu.memory_space<vmem>>, %arg2: memref<256x32xbf16, #tpu.memory_space<vmem>>, %arg3: memref<1x32xf32, #tpu.memory_space<vmem>>, %arg4: memref<1682x32xbf16, #tpu.memory_space<vmem>>) attributes {dimension_semantics = [#tpu.dimension_semantics<parallel>], iteration_bounds = array<i64: 1>, scalar_prefetch = 0 : i64, scratch_operands = 0 : i64, tpu.core_type = #tpu.core_type<tc>, window_params = [{transform_indices = @transform_0, window_bounds = array<i64: 1682, 256>}, {pipeline_mode = #tpu.pipeline_mode<synchronous>, transform_indices = @transform_1, window_bounds = array<i64: 256, 32>}, {pipeline_mode = #tpu.pipeline_mode<synchronous>, transform_indices = @transform_2, window_bounds = array<i64: 1, 32>}, {transform_indices = @transform_3, window_bounds = array<i64: 1682, 32>}]} {
    %c0 = arith.constant 0 : index
    %c0_0 = arith.constant 0 : index
    %0 = vector.load %arg1[%c0, %c0_0] : memref<1682x256xi8, #tpu.memory_space<vmem>>, vector<1682x256xi8>
    %c0_1 = arith.constant 0 : index
    %c0_2 = arith.constant 0 : index
    %1 = vector.load %arg2[%c0_1, %c0_2] : memref<256x32xbf16, #tpu.memory_space<vmem>>, vector<256x32xbf16>
    %2 = arith.sitofp %0 : vector<1682x256xi8> to vector<1682x256xbf16>
    %cst = arith.constant dense<0.000000e+00> : vector<1682x32xf32>
    %3 = tpu.matmul %2, %1, %cst {dimension_numbers = #tpu.dot_dimension_numbers<[1], [0], [0], [1], [0, 0, 1, 1], [], []>} : vector<1682x256xbf16>, vector<256x32xbf16>, vector<1682x32xf32> -> vector<1682x32xf32>
    %c0_3 = arith.constant 0 : index
    %c0_4 = arith.constant 0 : index
    %4 = vector.load %arg3[%c0_3, %c0_4] : memref<1x32xf32, #tpu.memory_space<vmem>>, vector<1x32xf32>
    %5 = vector.broadcast %4 : vector<1x32xf32> to vector<1682x32xf32>
    %6 = arith.addf %3, %5 : vector<1682x32xf32>
    %cst_5 = arith.constant 0.000000e+00 : f32
    %7 = vector.broadcast %cst_5 : f32 to vector<1682x32xf32>
    %8 = arith.cmpf oge, %6, %7 : vector<1682x32xf32>
    %cst_6 = arith.constant 0.00999999977 : f32
    %9 = vector.broadcast %cst_6 : f32 to vector<1682x32xf32>
    %10 = arith.mulf %9, %6 : vector<1682x32xf32>
    %11 = arith.select %8, %6, %10 : vector<1682x32xi1>, vector<1682x32xf32>
    %12 = arith.truncf %11 : vector<1682x32xf32> to vector<1682x32xbf16>
    %c0_7 = arith.constant 0 : index
    %c0_8 = arith.constant 0 : index
    %13 = vector.load %arg4[%c0_7, %c0_8] : memref<1682x32xbf16, #tpu.memory_space<vmem>>, vector<1682x32xbf16>
    tpu.vector_store %arg4[%c0_7, %c0_8], %12 {strides = array<i32>} : memref<1682x32xbf16, #tpu.memory_space<vmem>>, vector<1682x32xbf16>,
    return
  }
  func.func @transform_0(%arg0: i32) -> (i32, i32) {
    %c0_i32 = arith.constant 0 : i32
    %c0_i32_0 = arith.constant 0 : i32
    return %arg0, %c0_i32 : i32, i32
  }
  func.func @transform_1(%arg0: i32) -> (i32, i32) {
    %c0_i32 = arith.constant 0 : i32
    %c0_i32_0 = arith.constant 0 : i32
    %c0_i32_1 = arith.constant 0 : i32
    return %c0_i32, %c0_i32_0 : i32, i32
  }
  func.func @transform_2(%arg0: i32) -> (i32, i32) {
    %c0_i32 = arith.constant 0 : i32
    %c0_i32_0 = arith.constant 0 : i32
    %c0_i32_1 = arith.constant 0 : i32
    return %c0_i32, %c0_i32_0 : i32, i32
  }
  func.func @transform_3(%arg0: i32) -> (i32, i32) {
    %c0_i32 = arith.constant 0 : i32
    %c0_i32_0 = arith.constant 0 : i32
    return %arg0, %c0_i32 : i32, i32
  }
}

module attributes {stable_mosaic.version = 11 : i64} {
  func.func @_gemm_bias_lrelu_kernel(%arg0: i32, %arg1: memref<338x512xbf16, #tpu.memory_space<vmem>>, %arg2: memref<512x32xbf16, #tpu.memory_space<vmem>>, %arg3: memref<1x32xf32, #tpu.memory_space<vmem>>, %arg4: memref<338x32xbf16, #tpu.memory_space<vmem>>) attributes {dimension_semantics = [#tpu.dimension_semantics<parallel>], iteration_bounds = array<i64: 1>, scalar_prefetch = 0 : i64, scratch_operands = 0 : i64, tpu.core_type = #tpu.core_type<tc>, window_params = [{transform_indices = @transform_0, window_bounds = array<i64: 338, 512>}, {pipeline_mode = #tpu.pipeline_mode<synchronous>, transform_indices = @transform_1, window_bounds = array<i64: 512, 32>}, {pipeline_mode = #tpu.pipeline_mode<synchronous>, transform_indices = @transform_2, window_bounds = array<i64: 1, 32>}, {transform_indices = @transform_3, window_bounds = array<i64: 338, 32>}]} {
    %c0 = arith.constant 0 : index
    %c0_0 = arith.constant 0 : index
    %0 = vector.load %arg1[%c0, %c0_0] : memref<338x512xbf16, #tpu.memory_space<vmem>>, vector<338x512xbf16>
    %c0_1 = arith.constant 0 : index
    %c0_2 = arith.constant 0 : index
    %1 = vector.load %arg2[%c0_1, %c0_2] : memref<512x32xbf16, #tpu.memory_space<vmem>>, vector<512x32xbf16>
    %cst = arith.constant dense<0.000000e+00> : vector<338x32xf32>
    %2 = tpu.matmul %0, %1, %cst {dimension_numbers = #tpu.dot_dimension_numbers<[1], [0], [0], [1], [0, 0, 1, 1], [], []>} : vector<338x512xbf16>, vector<512x32xbf16>, vector<338x32xf32> -> vector<338x32xf32>
    %c0_3 = arith.constant 0 : index
    %c0_4 = arith.constant 0 : index
    %3 = vector.load %arg3[%c0_3, %c0_4] : memref<1x32xf32, #tpu.memory_space<vmem>>, vector<1x32xf32>
    %4 = vector.broadcast %3 : vector<1x32xf32> to vector<338x32xf32>
    %5 = arith.addf %2, %4 : vector<338x32xf32>
    %cst_5 = arith.constant 0.000000e+00 : f32
    %6 = vector.broadcast %cst_5 : f32 to vector<338x32xf32>
    %7 = arith.cmpf oge, %5, %6 : vector<338x32xf32>
    %cst_6 = arith.constant 0.00999999977 : f32
    %8 = vector.broadcast %cst_6 : f32 to vector<338x32xf32>
    %9 = arith.mulf %8, %5 : vector<338x32xf32>
    %10 = arith.select %7, %5, %9 : vector<338x32xi1>, vector<338x32xf32>
    %11 = arith.truncf %10 : vector<338x32xf32> to vector<338x32xbf16>
    %c0_7 = arith.constant 0 : index
    %c0_8 = arith.constant 0 : index
    %12 = vector.load %arg4[%c0_7, %c0_8] : memref<338x32xbf16, #tpu.memory_space<vmem>>, vector<338x32xbf16>
    tpu.vector_store %arg4[%c0_7, %c0_8], %11 {strides = array<i32>} : memref<338x32xbf16, #tpu.memory_space<vmem>>, vector<338x32xbf16>,
    return
  }
  func.func @transform_0(%arg0: i32) -> (i32, i32) {
    %c0_i32 = arith.constant 0 : i32
    %c0_i32_0 = arith.constant 0 : i32
    return %arg0, %c0_i32 : i32, i32
  }
  func.func @transform_1(%arg0: i32) -> (i32, i32) {
    %c0_i32 = arith.constant 0 : i32
    %c0_i32_0 = arith.constant 0 : i32
    %c0_i32_1 = arith.constant 0 : i32
    return %c0_i32, %c0_i32_0 : i32, i32
  }
  func.func @transform_2(%arg0: i32) -> (i32, i32) {
    %c0_i32 = arith.constant 0 : i32
    %c0_i32_0 = arith.constant 0 : i32
    %c0_i32_1 = arith.constant 0 : i32
    return %c0_i32, %c0_i32_0 : i32, i32
  }
  func.func @transform_3(%arg0: i32) -> (i32, i32) {
    %c0_i32 = arith.constant 0 : i32
    %c0_i32_0 = arith.constant 0 : i32
    return %arg0, %c0_i32 : i32, i32
  }
}

module attributes {stable_mosaic.version = 11 : i64} {
  func.func @_tail_kernel(%arg0: i32, %arg1: memref<25x2x512xbf16, #tpu.memory_space<vmem>>, %arg2: memref<2x8xf32, #tpu.memory_space<vmem>>, %arg3: memref<512x32xbf16, #tpu.memory_space<vmem>>, %arg4: memref<1x32xf32, #tpu.memory_space<vmem>>, %arg5: memref<16x32x32xbf16, #tpu.memory_space<vmem>>, %arg6: memref<1x32xf32, #tpu.memory_space<vmem>>, %arg7: memref<4x32x32xbf16, #tpu.memory_space<vmem>>, %arg8: memref<8x32xbf16, #tpu.memory_space<vmem>>, %arg9: memref<1x32xf32, #tpu.memory_space<vmem>>, %arg10: memref<32x32xbf16, #tpu.memory_space<vmem>>, %arg11: memref<8x32xbf16, #tpu.memory_space<vmem>>, %arg12: memref<1x32xf32, #tpu.memory_space<vmem>>, %arg13: memref<32x4xbf16, #tpu.memory_space<vmem>>, %arg14: memref<1x4xf32, #tpu.memory_space<vmem>>, %arg15: memref<2x4xf32, #tpu.memory_space<vmem>>) attributes {dimension_semantics = [#tpu.dimension_semantics<parallel>], iteration_bounds = array<i64: 1>, scalar_prefetch = 0 : i64, scratch_operands = 0 : i64, tpu.core_type = #tpu.core_type<tc>, window_params = [{transform_indices = @transform_0, window_bounds = array<i64: 25, 2, 512>}, {transform_indices = @transform_1, window_bounds = array<i64: 2, 8>}, {pipeline_mode = #tpu.pipeline_mode<synchronous>, transform_indices = @transform_2, window_bounds = array<i64: 512, 32>}, {pipeline_mode = #tpu.pipeline_mode<synchronous>, transform_indices = @transform_3, window_bounds = array<i64: 1, 32>}, {pipeline_mode = #tpu.pipeline_mode<synchronous>, transform_indices = @transform_4, window_bounds = array<i64: 16, 32, 32>}, {pipeline_mode = #tpu.pipeline_mode<synchronous>, transform_indices = @transform_5, window_bounds = array<i64: 1, 32>}, {pipeline_mode = #tpu.pipeline_mode<synchronous>, transform_indices = @transform_6, window_bounds = array<i64: 4, 32, 32>}, {pipeline_mode = #tpu.pipeline_mode<synchronous>, transform_indices = @transform_7, window_bounds = array<i64: 8, 32>}, {pipeline_mode = #tpu.pipeline_mode<synchronous>, transform_indices = @transform_8, window_bounds = array<i64: 1, 32>}, {pipeline_mode = #tpu.pipeline_mode<synchronous>, transform_indices = @transform_9, window_bounds = array<i64: 32, 32>}, {pipeline_mode = #tpu.pipeline_mode<synchronous>, transform_indices = @transform_10, window_bounds = array<i64: 8, 32>}, {pipeline_mode = #tpu.pipeline_mode<synchronous>, transform_indices = @transform_11, window_bounds = array<i64: 1, 32>}, {pipeline_mode = #tpu.pipeline_mode<synchronous>, transform_indices = @transform_12, window_bounds = array<i64: 32, 4>}, {pipeline_mode = #tpu.pipeline_mode<synchronous>, transform_indices = @transform_13, window_bounds = array<i64: 1, 4>}, {transform_indices = @transform_14, window_bounds = array<i64: 2, 4>}]} {
    %c0 = arith.constant 0 : index
    %c0_0 = arith.constant 0 : index
    %0 = vector.load %arg3[%c0, %c0_0] : memref<512x32xbf16, #tpu.memory_space<vmem>>, vector<512x32xbf16>
    %c0_1 = arith.constant 0 : index
    %c0_2 = arith.constant 0 : index
    %1 = vector.load %arg4[%c0_1, %c0_2] : memref<1x32xf32, #tpu.memory_space<vmem>>, vector<1x32xf32>
    %c0_3 = arith.constant 0 : index
    %c0_4 = arith.constant 0 : index
    %c0_5 = arith.constant 0 : index
    %2 = vector.load %arg1[%c0_3, %c0_4, %c0_5] : memref<25x2x512xbf16, #tpu.memory_space<vmem>>, vector<1x2x512xbf16>
    %3 = vector.shape_cast %2 : vector<1x2x512xbf16> to vector<2x512xbf16>
    %cst = arith.constant dense<0.000000e+00> : vector<2x32xf32>
    %4 = tpu.matmul %3, %0, %cst {dimension_numbers = #tpu.dot_dimension_numbers<[1], [0], [0], [1], [0, 0, 1, 1], [], []>} : vector<2x512xbf16>, vector<512x32xbf16>, vector<2x32xf32> -> vector<2x32xf32>
    %5 = vector.broadcast %1 : vector<1x32xf32> to vector<2x32xf32>
    %6 = arith.addf %4, %5 : vector<2x32xf32>
    %cst_6 = arith.constant 0.000000e+00 : f32
    %7 = vector.broadcast %cst_6 : f32 to vector<2x32xf32>
    %8 = arith.cmpf oge, %6, %7 : vector<2x32xf32>
    %cst_7 = arith.constant 0.00999999977 : f32
    %9 = vector.broadcast %cst_7 : f32 to vector<2x32xf32>
    %10 = arith.mulf %9, %6 : vector<2x32xf32>
    %11 = arith.select %8, %6, %10 : vector<2x32xi1>, vector<2x32xf32>
    %12 = arith.truncf %11 : vector<2x32xf32> to vector<2x32xbf16>
    %c1 = arith.constant 1 : index
    %c0_8 = arith.constant 0 : index
    %c0_9 = arith.constant 0 : index
    %13 = vector.load %arg1[%c1, %c0_8, %c0_9] : memref<25x2x512xbf16, #tpu.memory_space<vmem>>, vector<1x2x512xbf16>
    %14 = vector.shape_cast %13 : vector<1x2x512xbf16> to vector<2x512xbf16>
    %cst_10 = arith.constant dense<0.000000e+00> : vector<2x32xf32>
    %15 = tpu.matmul %14, %0, %cst_10 {dimension_numbers = #tpu.dot_dimension_numbers<[1], [0], [0], [1], [0, 0, 1, 1], [], []>} : vector<2x512xbf16>, vector<512x32xbf16>, vector<2x32xf32> -> vector<2x32xf32>
    %16 = vector.broadcast %1 : vector<1x32xf32> to vector<2x32xf32>
    %17 = arith.addf %15, %16 : vector<2x32xf32>
    %cst_11 = arith.constant 0.000000e+00 : f32
    %18 = vector.broadcast %cst_11 : f32 to vector<2x32xf32>
    %19 = arith.cmpf oge, %17, %18 : vector<2x32xf32>
    %cst_12 = arith.constant 0.00999999977 : f32
    %20 = vector.broadcast %cst_12 : f32 to vector<2x32xf32>
    %21 = arith.mulf %20, %17 : vector<2x32xf32>
    %22 = arith.select %19, %17, %21 : vector<2x32xi1>, vector<2x32xf32>
    %23 = arith.truncf %22 : vector<2x32xf32> to vector<2x32xbf16>
    %c2 = arith.constant 2 : index
    %c0_13 = arith.constant 0 : index
    %c0_14 = arith.constant 0 : index
    %24 = vector.load %arg1[%c2, %c0_13, %c0_14] : memref<25x2x512xbf16, #tpu.memory_space<vmem>>, vector<1x2x512xbf16>
    %25 = vector.shape_cast %24 : vector<1x2x512xbf16> to vector<2x512xbf16>
    %cst_15 = arith.constant dense<0.000000e+00> : vector<2x32xf32>
    %26 = tpu.matmul %25, %0, %cst_15 {dimension_numbers = #tpu.dot_dimension_numbers<[1], [0], [0], [1], [0, 0, 1, 1], [], []>} : vector<2x512xbf16>, vector<512x32xbf16>, vector<2x32xf32> -> vector<2x32xf32>
    %27 = vector.broadcast %1 : vector<1x32xf32> to vector<2x32xf32>
    %28 = arith.addf %26, %27 : vector<2x32xf32>
    %cst_16 = arith.constant 0.000000e+00 : f32
    %29 = vector.broadcast %cst_16 : f32 to vector<2x32xf32>
    %30 = arith.cmpf oge, %28, %29 : vector<2x32xf32>
    %cst_17 = arith.constant 0.00999999977 : f32
    %31 = vector.broadcast %cst_17 : f32 to vector<2x32xf32>
    %32 = arith.mulf %31, %28 : vector<2x32xf32>
    %33 = arith.select %30, %28, %32 : vector<2x32xi1>, vector<2x32xf32>
    %34 = arith.truncf %33 : vector<2x32xf32> to vector<2x32xbf16>
    %c3 = arith.constant 3 : index
    %c0_18 = arith.constant 0 : index
    %c0_19 = arith.constant 0 : index
    %35 = vector.load %arg1[%c3, %c0_18, %c0_19] : memref<25x2x512xbf16, #tpu.memory_space<vmem>>, vector<1x2x512xbf16>
    %36 = vector.shape_cast %35 : vector<1x2x512xbf16> to vector<2x512xbf16>
    %cst_20 = arith.constant dense<0.000000e+00> : vector<2x32xf32>
    %37 = tpu.matmul %36, %0, %cst_20 {dimension_numbers = #tpu.dot_dimension_numbers<[1], [0], [0], [1], [0, 0, 1, 1], [], []>} : vector<2x512xbf16>, vector<512x32xbf16>, vector<2x32xf32> -> vector<2x32xf32>
    %38 = vector.broadcast %1 : vector<1x32xf32> to vector<2x32xf32>
    %39 = arith.addf %37, %38 : vector<2x32xf32>
    %cst_21 = arith.constant 0.000000e+00 : f32
    %40 = vector.broadcast %cst_21 : f32 to vector<2x32xf32>
    %41 = arith.cmpf oge, %39, %40 : vector<2x32xf32>
    %cst_22 = arith.constant 0.00999999977 : f32
    %42 = vector.broadcast %cst_22 : f32 to vector<2x32xf32>
    %43 = arith.mulf %42, %39 : vector<2x32xf32>
    %44 = arith.select %41, %39, %43 : vector<2x32xi1>, vector<2x32xf32>
    %45 = arith.truncf %44 : vector<2x32xf32> to vector<2x32xbf16>
    %c4 = arith.constant 4 : index
    %c0_23 = arith.constant 0 : index
    %c0_24 = arith.constant 0 : index
    %46 = vector.load %arg1[%c4, %c0_23, %c0_24] : memref<25x2x512xbf16, #tpu.memory_space<vmem>>, vector<1x2x512xbf16>
    %47 = vector.shape_cast %46 : vector<1x2x512xbf16> to vector<2x512xbf16>
    %cst_25 = arith.constant dense<0.000000e+00> : vector<2x32xf32>
    %48 = tpu.matmul %47, %0, %cst_25 {dimension_numbers = #tpu.dot_dimension_numbers<[1], [0], [0], [1], [0, 0, 1, 1], [], []>} : vector<2x512xbf16>, vector<512x32xbf16>, vector<2x32xf32> -> vector<2x32xf32>
    %49 = vector.broadcast %1 : vector<1x32xf32> to vector<2x32xf32>
    %50 = arith.addf %48, %49 : vector<2x32xf32>
    %cst_26 = arith.constant 0.000000e+00 : f32
    %51 = vector.broadcast %cst_26 : f32 to vector<2x32xf32>
    %52 = arith.cmpf oge, %50, %51 : vector<2x32xf32>
    %cst_27 = arith.constant 0.00999999977 : f32
    %53 = vector.broadcast %cst_27 : f32 to vector<2x32xf32>
    %54 = arith.mulf %53, %50 : vector<2x32xf32>
    %55 = arith.select %52, %50, %54 : vector<2x32xi1>, vector<2x32xf32>
    %56 = arith.truncf %55 : vector<2x32xf32> to vector<2x32xbf16>
    %c5 = arith.constant 5 : index
    %c0_28 = arith.constant 0 : index
    %c0_29 = arith.constant 0 : index
    %57 = vector.load %arg1[%c5, %c0_28, %c0_29] : memref<25x2x512xbf16, #tpu.memory_space<vmem>>, vector<1x2x512xbf16>
    %58 = vector.shape_cast %57 : vector<1x2x512xbf16> to vector<2x512xbf16>
    %cst_30 = arith.constant dense<0.000000e+00> : vector<2x32xf32>
    %59 = tpu.matmul %58, %0, %cst_30 {dimension_numbers = #tpu.dot_dimension_numbers<[1], [0], [0], [1], [0, 0, 1, 1], [], []>} : vector<2x512xbf16>, vector<512x32xbf16>, vector<2x32xf32> -> vector<2x32xf32>
    %60 = vector.broadcast %1 : vector<1x32xf32> to vector<2x32xf32>
    %61 = arith.addf %59, %60 : vector<2x32xf32>
    %cst_31 = arith.constant 0.000000e+00 : f32
    %62 = vector.broadcast %cst_31 : f32 to vector<2x32xf32>
    %63 = arith.cmpf oge, %61, %62 : vector<2x32xf32>
    %cst_32 = arith.constant 0.00999999977 : f32
    %64 = vector.broadcast %cst_32 : f32 to vector<2x32xf32>
    %65 = arith.mulf %64, %61 : vector<2x32xf32>
    %66 = arith.select %63, %61, %65 : vector<2x32xi1>, vector<2x32xf32>
    %67 = arith.truncf %66 : vector<2x32xf32> to vector<2x32xbf16>
    %c6 = arith.constant 6 : index
    %c0_33 = arith.constant 0 : index
    %c0_34 = arith.constant 0 : index
    %68 = vector.load %arg1[%c6, %c0_33, %c0_34] : memref<25x2x512xbf16, #tpu.memory_space<vmem>>, vector<1x2x512xbf16>
    %69 = vector.shape_cast %68 : vector<1x2x512xbf16> to vector<2x512xbf16>
    %cst_35 = arith.constant dense<0.000000e+00> : vector<2x32xf32>
    %70 = tpu.matmul %69, %0, %cst_35 {dimension_numbers = #tpu.dot_dimension_numbers<[1], [0], [0], [1], [0, 0, 1, 1], [], []>} : vector<2x512xbf16>, vector<512x32xbf16>, vector<2x32xf32> -> vector<2x32xf32>
    %71 = vector.broadcast %1 : vector<1x32xf32> to vector<2x32xf32>
    %72 = arith.addf %70, %71 : vector<2x32xf32>
    %cst_36 = arith.constant 0.000000e+00 : f32
    %73 = vector.broadcast %cst_36 : f32 to vector<2x32xf32>
    %74 = arith.cmpf oge, %72, %73 : vector<2x32xf32>
    %cst_37 = arith.constant 0.00999999977 : f32
    %75 = vector.broadcast %cst_37 : f32 to vector<2x32xf32>
    %76 = arith.mulf %75, %72 : vector<2x32xf32>
    %77 = arith.select %74, %72, %76 : vector<2x32xi1>, vector<2x32xf32>
    %78 = arith.truncf %77 : vector<2x32xf32> to vector<2x32xbf16>
    %c7 = arith.constant 7 : index
    %c0_38 = arith.constant 0 : index
    %c0_39 = arith.constant 0 : index
    %79 = vector.load %arg1[%c7, %c0_38, %c0_39] : memref<25x2x512xbf16, #tpu.memory_space<vmem>>, vector<1x2x512xbf16>
    %80 = vector.shape_cast %79 : vector<1x2x512xbf16> to vector<2x512xbf16>
    %cst_40 = arith.constant dense<0.000000e+00> : vector<2x32xf32>
    %81 = tpu.matmul %80, %0, %cst_40 {dimension_numbers = #tpu.dot_dimension_numbers<[1], [0], [0], [1], [0, 0, 1, 1], [], []>} : vector<2x512xbf16>, vector<512x32xbf16>, vector<2x32xf32> -> vector<2x32xf32>
    %82 = vector.broadcast %1 : vector<1x32xf32> to vector<2x32xf32>
    %83 = arith.addf %81, %82 : vector<2x32xf32>
    %cst_41 = arith.constant 0.000000e+00 : f32
    %84 = vector.broadcast %cst_41 : f32 to vector<2x32xf32>
    %85 = arith.cmpf oge, %83, %84 : vector<2x32xf32>
    %cst_42 = arith.constant 0.00999999977 : f32
    %86 = vector.broadcast %cst_42 : f32 to vector<2x32xf32>
    %87 = arith.mulf %86, %83 : vector<2x32xf32>
    %88 = arith.select %85, %83, %87 : vector<2x32xi1>, vector<2x32xf32>
    %89 = arith.truncf %88 : vector<2x32xf32> to vector<2x32xbf16>
    %c8 = arith.constant 8 : index
    %c0_43 = arith.constant 0 : index
    %c0_44 = arith.constant 0 : index
    %90 = vector.load %arg1[%c8, %c0_43, %c0_44] : memref<25x2x512xbf16, #tpu.memory_space<vmem>>, vector<1x2x512xbf16>
    %91 = vector.shape_cast %90 : vector<1x2x512xbf16> to vector<2x512xbf16>
    %cst_45 = arith.constant dense<0.000000e+00> : vector<2x32xf32>
    %92 = tpu.matmul %91, %0, %cst_45 {dimension_numbers = #tpu.dot_dimension_numbers<[1], [0], [0], [1], [0, 0, 1, 1], [], []>} : vector<2x512xbf16>, vector<512x32xbf16>, vector<2x32xf32> -> vector<2x32xf32>
    %93 = vector.broadcast %1 : vector<1x32xf32> to vector<2x32xf32>
    %94 = arith.addf %92, %93 : vector<2x32xf32>
    %cst_46 = arith.constant 0.000000e+00 : f32
    %95 = vector.broadcast %cst_46 : f32 to vector<2x32xf32>
    %96 = arith.cmpf oge, %94, %95 : vector<2x32xf32>
    %cst_47 = arith.constant 0.00999999977 : f32
    %97 = vector.broadcast %cst_47 : f32 to vector<2x32xf32>
    %98 = arith.mulf %97, %94 : vector<2x32xf32>
    %99 = arith.select %96, %94, %98 : vector<2x32xi1>, vector<2x32xf32>
    %100 = arith.truncf %99 : vector<2x32xf32> to vector<2x32xbf16>
    %c9 = arith.constant 9 : index
    %c0_48 = arith.constant 0 : index
    %c0_49 = arith.constant 0 : index
    %101 = vector.load %arg1[%c9, %c0_48, %c0_49] : memref<25x2x512xbf16, #tpu.memory_space<vmem>>, vector<1x2x512xbf16>
    %102 = vector.shape_cast %101 : vector<1x2x512xbf16> to vector<2x512xbf16>
    %cst_50 = arith.constant dense<0.000000e+00> : vector<2x32xf32>
    %103 = tpu.matmul %102, %0, %cst_50 {dimension_numbers = #tpu.dot_dimension_numbers<[1], [0], [0], [1], [0, 0, 1, 1], [], []>} : vector<2x512xbf16>, vector<512x32xbf16>, vector<2x32xf32> -> vector<2x32xf32>
    %104 = vector.broadcast %1 : vector<1x32xf32> to vector<2x32xf32>
    %105 = arith.addf %103, %104 : vector<2x32xf32>
    %cst_51 = arith.constant 0.000000e+00 : f32
    %106 = vector.broadcast %cst_51 : f32 to vector<2x32xf32>
    %107 = arith.cmpf oge, %105, %106 : vector<2x32xf32>
    %cst_52 = arith.constant 0.00999999977 : f32
    %108 = vector.broadcast %cst_52 : f32 to vector<2x32xf32>
    %109 = arith.mulf %108, %105 : vector<2x32xf32>
    %110 = arith.select %107, %105, %109 : vector<2x32xi1>, vector<2x32xf32>
    %111 = arith.truncf %110 : vector<2x32xf32> to vector<2x32xbf16>
    %c10 = arith.constant 10 : index
    %c0_53 = arith.constant 0 : index
    %c0_54 = arith.constant 0 : index
    %112 = vector.load %arg1[%c10, %c0_53, %c0_54] : memref<25x2x512xbf16, #tpu.memory_space<vmem>>, vector<1x2x512xbf16>
    %113 = vector.shape_cast %112 : vector<1x2x512xbf16> to vector<2x512xbf16>
    %cst_55 = arith.constant dense<0.000000e+00> : vector<2x32xf32>
    %114 = tpu.matmul %113, %0, %cst_55 {dimension_numbers = #tpu.dot_dimension_numbers<[1], [0], [0], [1], [0, 0, 1, 1], [], []>} : vector<2x512xbf16>, vector<512x32xbf16>, vector<2x32xf32> -> vector<2x32xf32>
    %115 = vector.broadcast %1 : vector<1x32xf32> to vector<2x32xf32>
    %116 = arith.addf %114, %115 : vector<2x32xf32>
    %cst_56 = arith.constant 0.000000e+00 : f32
    %117 = vector.broadcast %cst_56 : f32 to vector<2x32xf32>
    %118 = arith.cmpf oge, %116, %117 : vector<2x32xf32>
    %cst_57 = arith.constant 0.00999999977 : f32
    %119 = vector.broadcast %cst_57 : f32 to vector<2x32xf32>
    %120 = arith.mulf %119, %116 : vector<2x32xf32>
    %121 = arith.select %118, %116, %120 : vector<2x32xi1>, vector<2x32xf32>
    %122 = arith.truncf %121 : vector<2x32xf32> to vector<2x32xbf16>
    %c11 = arith.constant 11 : index
    %c0_58 = arith.constant 0 : index
    %c0_59 = arith.constant 0 : index
    %123 = vector.load %arg1[%c11, %c0_58, %c0_59] : memref<25x2x512xbf16, #tpu.memory_space<vmem>>, vector<1x2x512xbf16>
    %124 = vector.shape_cast %123 : vector<1x2x512xbf16> to vector<2x512xbf16>
    %cst_60 = arith.constant dense<0.000000e+00> : vector<2x32xf32>
    %125 = tpu.matmul %124, %0, %cst_60 {dimension_numbers = #tpu.dot_dimension_numbers<[1], [0], [0], [1], [0, 0, 1, 1], [], []>} : vector<2x512xbf16>, vector<512x32xbf16>, vector<2x32xf32> -> vector<2x32xf32>
    %126 = vector.broadcast %1 : vector<1x32xf32> to vector<2x32xf32>
    %127 = arith.addf %125, %126 : vector<2x32xf32>
    %cst_61 = arith.constant 0.000000e+00 : f32
    %128 = vector.broadcast %cst_61 : f32 to vector<2x32xf32>
    %129 = arith.cmpf oge, %127, %128 : vector<2x32xf32>
    %cst_62 = arith.constant 0.00999999977 : f32
    %130 = vector.broadcast %cst_62 : f32 to vector<2x32xf32>
    %131 = arith.mulf %130, %127 : vector<2x32xf32>
    %132 = arith.select %129, %127, %131 : vector<2x32xi1>, vector<2x32xf32>
    %133 = arith.truncf %132 : vector<2x32xf32> to vector<2x32xbf16>
    %c12 = arith.constant 12 : index
    %c0_63 = arith.constant 0 : index
    %c0_64 = arith.constant 0 : index
    %134 = vector.load %arg1[%c12, %c0_63, %c0_64] : memref<25x2x512xbf16, #tpu.memory_space<vmem>>, vector<1x2x512xbf16>
    %135 = vector.shape_cast %134 : vector<1x2x512xbf16> to vector<2x512xbf16>
    %cst_65 = arith.constant dense<0.000000e+00> : vector<2x32xf32>
    %136 = tpu.matmul %135, %0, %cst_65 {dimension_numbers = #tpu.dot_dimension_numbers<[1], [0], [0], [1], [0, 0, 1, 1], [], []>} : vector<2x512xbf16>, vector<512x32xbf16>, vector<2x32xf32> -> vector<2x32xf32>
    %137 = vector.broadcast %1 : vector<1x32xf32> to vector<2x32xf32>
    %138 = arith.addf %136, %137 : vector<2x32xf32>
    %cst_66 = arith.constant 0.000000e+00 : f32
    %139 = vector.broadcast %cst_66 : f32 to vector<2x32xf32>
    %140 = arith.cmpf oge, %138, %139 : vector<2x32xf32>
    %cst_67 = arith.constant 0.00999999977 : f32
    %141 = vector.broadcast %cst_67 : f32 to vector<2x32xf32>
    %142 = arith.mulf %141, %138 : vector<2x32xf32>
    %143 = arith.select %140, %138, %142 : vector<2x32xi1>, vector<2x32xf32>
    %144 = arith.truncf %143 : vector<2x32xf32> to vector<2x32xbf16>
    %c13 = arith.constant 13 : index
    %c0_68 = arith.constant 0 : index
    %c0_69 = arith.constant 0 : index
    %145 = vector.load %arg1[%c13, %c0_68, %c0_69] : memref<25x2x512xbf16, #tpu.memory_space<vmem>>, vector<1x2x512xbf16>
    %146 = vector.shape_cast %145 : vector<1x2x512xbf16> to vector<2x512xbf16>
    %cst_70 = arith.constant dense<0.000000e+00> : vector<2x32xf32>
    %147 = tpu.matmul %146, %0, %cst_70 {dimension_numbers = #tpu.dot_dimension_numbers<[1], [0], [0], [1], [0, 0, 1, 1], [], []>} : vector<2x512xbf16>, vector<512x32xbf16>, vector<2x32xf32> -> vector<2x32xf32>
    %148 = vector.broadcast %1 : vector<1x32xf32> to vector<2x32xf32>
    %149 = arith.addf %147, %148 : vector<2x32xf32>
    %cst_71 = arith.constant 0.000000e+00 : f32
    %150 = vector.broadcast %cst_71 : f32 to vector<2x32xf32>
    %151 = arith.cmpf oge, %149, %150 : vector<2x32xf32>
    %cst_72 = arith.constant 0.00999999977 : f32
    %152 = vector.broadcast %cst_72 : f32 to vector<2x32xf32>
    %153 = arith.mulf %152, %149 : vector<2x32xf32>
    %154 = arith.select %151, %149, %153 : vector<2x32xi1>, vector<2x32xf32>
    %155 = arith.truncf %154 : vector<2x32xf32> to vector<2x32xbf16>
    %c14 = arith.constant 14 : index
    %c0_73 = arith.constant 0 : index
    %c0_74 = arith.constant 0 : index
    %156 = vector.load %arg1[%c14, %c0_73, %c0_74] : memref<25x2x512xbf16, #tpu.memory_space<vmem>>, vector<1x2x512xbf16>
    %157 = vector.shape_cast %156 : vector<1x2x512xbf16> to vector<2x512xbf16>
    %cst_75 = arith.constant dense<0.000000e+00> : vector<2x32xf32>
    %158 = tpu.matmul %157, %0, %cst_75 {dimension_numbers = #tpu.dot_dimension_numbers<[1], [0], [0], [1], [0, 0, 1, 1], [], []>} : vector<2x512xbf16>, vector<512x32xbf16>, vector<2x32xf32> -> vector<2x32xf32>
    %159 = vector.broadcast %1 : vector<1x32xf32> to vector<2x32xf32>
    %160 = arith.addf %158, %159 : vector<2x32xf32>
    %cst_76 = arith.constant 0.000000e+00 : f32
    %161 = vector.broadcast %cst_76 : f32 to vector<2x32xf32>
    %162 = arith.cmpf oge, %160, %161 : vector<2x32xf32>
    %cst_77 = arith.constant 0.00999999977 : f32
    %163 = vector.broadcast %cst_77 : f32 to vector<2x32xf32>
    %164 = arith.mulf %163, %160 : vector<2x32xf32>
    %165 = arith.select %162, %160, %164 : vector<2x32xi1>, vector<2x32xf32>
    %166 = arith.truncf %165 : vector<2x32xf32> to vector<2x32xbf16>
    %c15 = arith.constant 15 : index
    %c0_78 = arith.constant 0 : index
    %c0_79 = arith.constant 0 : index
    %167 = vector.load %arg1[%c15, %c0_78, %c0_79] : memref<25x2x512xbf16, #tpu.memory_space<vmem>>, vector<1x2x512xbf16>
    %168 = vector.shape_cast %167 : vector<1x2x512xbf16> to vector<2x512xbf16>
    %cst_80 = arith.constant dense<0.000000e+00> : vector<2x32xf32>
    %169 = tpu.matmul %168, %0, %cst_80 {dimension_numbers = #tpu.dot_dimension_numbers<[1], [0], [0], [1], [0, 0, 1, 1], [], []>} : vector<2x512xbf16>, vector<512x32xbf16>, vector<2x32xf32> -> vector<2x32xf32>
    %170 = vector.broadcast %1 : vector<1x32xf32> to vector<2x32xf32>
    %171 = arith.addf %169, %170 : vector<2x32xf32>
    %cst_81 = arith.constant 0.000000e+00 : f32
    %172 = vector.broadcast %cst_81 : f32 to vector<2x32xf32>
    %173 = arith.cmpf oge, %171, %172 : vector<2x32xf32>
    %cst_82 = arith.constant 0.00999999977 : f32
    %174 = vector.broadcast %cst_82 : f32 to vector<2x32xf32>
    %175 = arith.mulf %174, %171 : vector<2x32xf32>
    %176 = arith.select %173, %171, %175 : vector<2x32xi1>, vector<2x32xf32>
    %177 = arith.truncf %176 : vector<2x32xf32> to vector<2x32xbf16>
    %c16 = arith.constant 16 : index
    %c0_83 = arith.constant 0 : index
    %c0_84 = arith.constant 0 : index
    %178 = vector.load %arg1[%c16, %c0_83, %c0_84] : memref<25x2x512xbf16, #tpu.memory_space<vmem>>, vector<1x2x512xbf16>
    %179 = vector.shape_cast %178 : vector<1x2x512xbf16> to vector<2x512xbf16>
    %cst_85 = arith.constant dense<0.000000e+00> : vector<2x32xf32>
    %180 = tpu.matmul %179, %0, %cst_85 {dimension_numbers = #tpu.dot_dimension_numbers<[1], [0], [0], [1], [0, 0, 1, 1], [], []>} : vector<2x512xbf16>, vector<512x32xbf16>, vector<2x32xf32> -> vector<2x32xf32>
    %181 = vector.broadcast %1 : vector<1x32xf32> to vector<2x32xf32>
    %182 = arith.addf %180, %181 : vector<2x32xf32>
    %cst_86 = arith.constant 0.000000e+00 : f32
    %183 = vector.broadcast %cst_86 : f32 to vector<2x32xf32>
    %184 = arith.cmpf oge, %182, %183 : vector<2x32xf32>
    %cst_87 = arith.constant 0.00999999977 : f32
    %185 = vector.broadcast %cst_87 : f32 to vector<2x32xf32>
    %186 = arith.mulf %185, %182 : vector<2x32xf32>
    %187 = arith.select %184, %182, %186 : vector<2x32xi1>, vector<2x32xf32>
    %188 = arith.truncf %187 : vector<2x32xf32> to vector<2x32xbf16>
    %c17 = arith.constant 17 : index
    %c0_88 = arith.constant 0 : index
    %c0_89 = arith.constant 0 : index
    %189 = vector.load %arg1[%c17, %c0_88, %c0_89] : memref<25x2x512xbf16, #tpu.memory_space<vmem>>, vector<1x2x512xbf16>
    %190 = vector.shape_cast %189 : vector<1x2x512xbf16> to vector<2x512xbf16>
    %cst_90 = arith.constant dense<0.000000e+00> : vector<2x32xf32>
    %191 = tpu.matmul %190, %0, %cst_90 {dimension_numbers = #tpu.dot_dimension_numbers<[1], [0], [0], [1], [0, 0, 1, 1], [], []>} : vector<2x512xbf16>, vector<512x32xbf16>, vector<2x32xf32> -> vector<2x32xf32>
    %192 = vector.broadcast %1 : vector<1x32xf32> to vector<2x32xf32>
    %193 = arith.addf %191, %192 : vector<2x32xf32>
    %cst_91 = arith.constant 0.000000e+00 : f32
    %194 = vector.broadcast %cst_91 : f32 to vector<2x32xf32>
    %195 = arith.cmpf oge, %193, %194 : vector<2x32xf32>
    %cst_92 = arith.constant 0.00999999977 : f32
    %196 = vector.broadcast %cst_92 : f32 to vector<2x32xf32>
    %197 = arith.mulf %196, %193 : vector<2x32xf32>
    %198 = arith.select %195, %193, %197 : vector<2x32xi1>, vector<2x32xf32>
    %199 = arith.truncf %198 : vector<2x32xf32> to vector<2x32xbf16>
    %c18 = arith.constant 18 : index
    %c0_93 = arith.constant 0 : index
    %c0_94 = arith.constant 0 : index
    %200 = vector.load %arg1[%c18, %c0_93, %c0_94] : memref<25x2x512xbf16, #tpu.memory_space<vmem>>, vector<1x2x512xbf16>
    %201 = vector.shape_cast %200 : vector<1x2x512xbf16> to vector<2x512xbf16>
    %cst_95 = arith.constant dense<0.000000e+00> : vector<2x32xf32>
    %202 = tpu.matmul %201, %0, %cst_95 {dimension_numbers = #tpu.dot_dimension_numbers<[1], [0], [0], [1], [0, 0, 1, 1], [], []>} : vector<2x512xbf16>, vector<512x32xbf16>, vector<2x32xf32> -> vector<2x32xf32>
    %203 = vector.broadcast %1 : vector<1x32xf32> to vector<2x32xf32>
    %204 = arith.addf %202, %203 : vector<2x32xf32>
    %cst_96 = arith.constant 0.000000e+00 : f32
    %205 = vector.broadcast %cst_96 : f32 to vector<2x32xf32>
    %206 = arith.cmpf oge, %204, %205 : vector<2x32xf32>
    %cst_97 = arith.constant 0.00999999977 : f32
    %207 = vector.broadcast %cst_97 : f32 to vector<2x32xf32>
    %208 = arith.mulf %207, %204 : vector<2x32xf32>
    %209 = arith.select %206, %204, %208 : vector<2x32xi1>, vector<2x32xf32>
    %210 = arith.truncf %209 : vector<2x32xf32> to vector<2x32xbf16>
    %c19 = arith.constant 19 : index
    %c0_98 = arith.constant 0 : index
    %c0_99 = arith.constant 0 : index
    %211 = vector.load %arg1[%c19, %c0_98, %c0_99] : memref<25x2x512xbf16, #tpu.memory_space<vmem>>, vector<1x2x512xbf16>
    %212 = vector.shape_cast %211 : vector<1x2x512xbf16> to vector<2x512xbf16>
    %cst_100 = arith.constant dense<0.000000e+00> : vector<2x32xf32>
    %213 = tpu.matmul %212, %0, %cst_100 {dimension_numbers = #tpu.dot_dimension_numbers<[1], [0], [0], [1], [0, 0, 1, 1], [], []>} : vector<2x512xbf16>, vector<512x32xbf16>, vector<2x32xf32> -> vector<2x32xf32>
    %214 = vector.broadcast %1 : vector<1x32xf32> to vector<2x32xf32>
    %215 = arith.addf %213, %214 : vector<2x32xf32>
    %cst_101 = arith.constant 0.000000e+00 : f32
    %216 = vector.broadcast %cst_101 : f32 to vector<2x32xf32>
    %217 = arith.cmpf oge, %215, %216 : vector<2x32xf32>
    %cst_102 = arith.constant 0.00999999977 : f32
    %218 = vector.broadcast %cst_102 : f32 to vector<2x32xf32>
    %219 = arith.mulf %218, %215 : vector<2x32xf32>
    %220 = arith.select %217, %215, %219 : vector<2x32xi1>, vector<2x32xf32>
    %221 = arith.truncf %220 : vector<2x32xf32> to vector<2x32xbf16>
    %c20 = arith.constant 20 : index
    %c0_103 = arith.constant 0 : index
    %c0_104 = arith.constant 0 : index
    %222 = vector.load %arg1[%c20, %c0_103, %c0_104] : memref<25x2x512xbf16, #tpu.memory_space<vmem>>, vector<1x2x512xbf16>
    %223 = vector.shape_cast %222 : vector<1x2x512xbf16> to vector<2x512xbf16>
    %cst_105 = arith.constant dense<0.000000e+00> : vector<2x32xf32>
    %224 = tpu.matmul %223, %0, %cst_105 {dimension_numbers = #tpu.dot_dimension_numbers<[1], [0], [0], [1], [0, 0, 1, 1], [], []>} : vector<2x512xbf16>, vector<512x32xbf16>, vector<2x32xf32> -> vector<2x32xf32>
    %225 = vector.broadcast %1 : vector<1x32xf32> to vector<2x32xf32>
    %226 = arith.addf %224, %225 : vector<2x32xf32>
    %cst_106 = arith.constant 0.000000e+00 : f32
    %227 = vector.broadcast %cst_106 : f32 to vector<2x32xf32>
    %228 = arith.cmpf oge, %226, %227 : vector<2x32xf32>
    %cst_107 = arith.constant 0.00999999977 : f32
    %229 = vector.broadcast %cst_107 : f32 to vector<2x32xf32>
    %230 = arith.mulf %229, %226 : vector<2x32xf32>
    %231 = arith.select %228, %226, %230 : vector<2x32xi1>, vector<2x32xf32>
    %232 = arith.truncf %231 : vector<2x32xf32> to vector<2x32xbf16>
    %c21 = arith.constant 21 : index
    %c0_108 = arith.constant 0 : index
    %c0_109 = arith.constant 0 : index
    %233 = vector.load %arg1[%c21, %c0_108, %c0_109] : memref<25x2x512xbf16, #tpu.memory_space<vmem>>, vector<1x2x512xbf16>
    %234 = vector.shape_cast %233 : vector<1x2x512xbf16> to vector<2x512xbf16>
    %cst_110 = arith.constant dense<0.000000e+00> : vector<2x32xf32>
    %235 = tpu.matmul %234, %0, %cst_110 {dimension_numbers = #tpu.dot_dimension_numbers<[1], [0], [0], [1], [0, 0, 1, 1], [], []>} : vector<2x512xbf16>, vector<512x32xbf16>, vector<2x32xf32> -> vector<2x32xf32>
    %236 = vector.broadcast %1 : vector<1x32xf32> to vector<2x32xf32>
    %237 = arith.addf %235, %236 : vector<2x32xf32>
    %cst_111 = arith.constant 0.000000e+00 : f32
    %238 = vector.broadcast %cst_111 : f32 to vector<2x32xf32>
    %239 = arith.cmpf oge, %237, %238 : vector<2x32xf32>
    %cst_112 = arith.constant 0.00999999977 : f32
    %240 = vector.broadcast %cst_112 : f32 to vector<2x32xf32>
    %241 = arith.mulf %240, %237 : vector<2x32xf32>
    %242 = arith.select %239, %237, %241 : vector<2x32xi1>, vector<2x32xf32>
    %243 = arith.truncf %242 : vector<2x32xf32> to vector<2x32xbf16>
    %c22 = arith.constant 22 : index
    %c0_113 = arith.constant 0 : index
    %c0_114 = arith.constant 0 : index
    %244 = vector.load %arg1[%c22, %c0_113, %c0_114] : memref<25x2x512xbf16, #tpu.memory_space<vmem>>, vector<1x2x512xbf16>
    %245 = vector.shape_cast %244 : vector<1x2x512xbf16> to vector<2x512xbf16>
    %cst_115 = arith.constant dense<0.000000e+00> : vector<2x32xf32>
    %246 = tpu.matmul %245, %0, %cst_115 {dimension_numbers = #tpu.dot_dimension_numbers<[1], [0], [0], [1], [0, 0, 1, 1], [], []>} : vector<2x512xbf16>, vector<512x32xbf16>, vector<2x32xf32> -> vector<2x32xf32>
    %247 = vector.broadcast %1 : vector<1x32xf32> to vector<2x32xf32>
    %248 = arith.addf %246, %247 : vector<2x32xf32>
    %cst_116 = arith.constant 0.000000e+00 : f32
    %249 = vector.broadcast %cst_116 : f32 to vector<2x32xf32>
    %250 = arith.cmpf oge, %248, %249 : vector<2x32xf32>
    %cst_117 = arith.constant 0.00999999977 : f32
    %251 = vector.broadcast %cst_117 : f32 to vector<2x32xf32>
    %252 = arith.mulf %251, %248 : vector<2x32xf32>
    %253 = arith.select %250, %248, %252 : vector<2x32xi1>, vector<2x32xf32>
    %254 = arith.truncf %253 : vector<2x32xf32> to vector<2x32xbf16>
    %c23 = arith.constant 23 : index
    %c0_118 = arith.constant 0 : index
    %c0_119 = arith.constant 0 : index
    %255 = vector.load %arg1[%c23, %c0_118, %c0_119] : memref<25x2x512xbf16, #tpu.memory_space<vmem>>, vector<1x2x512xbf16>
    %256 = vector.shape_cast %255 : vector<1x2x512xbf16> to vector<2x512xbf16>
    %cst_120 = arith.constant dense<0.000000e+00> : vector<2x32xf32>
    %257 = tpu.matmul %256, %0, %cst_120 {dimension_numbers = #tpu.dot_dimension_numbers<[1], [0], [0], [1], [0, 0, 1, 1], [], []>} : vector<2x512xbf16>, vector<512x32xbf16>, vector<2x32xf32> -> vector<2x32xf32>
    %258 = vector.broadcast %1 : vector<1x32xf32> to vector<2x32xf32>
    %259 = arith.addf %257, %258 : vector<2x32xf32>
    %cst_121 = arith.constant 0.000000e+00 : f32
    %260 = vector.broadcast %cst_121 : f32 to vector<2x32xf32>
    %261 = arith.cmpf oge, %259, %260 : vector<2x32xf32>
    %cst_122 = arith.constant 0.00999999977 : f32
    %262 = vector.broadcast %cst_122 : f32 to vector<2x32xf32>
    %263 = arith.mulf %262, %259 : vector<2x32xf32>
    %264 = arith.select %261, %259, %263 : vector<2x32xi1>, vector<2x32xf32>
    %265 = arith.truncf %264 : vector<2x32xf32> to vector<2x32xbf16>
    %c24 = arith.constant 24 : index
    %c0_123 = arith.constant 0 : index
    %c0_124 = arith.constant 0 : index
    %266 = vector.load %arg1[%c24, %c0_123, %c0_124] : memref<25x2x512xbf16, #tpu.memory_space<vmem>>, vector<1x2x512xbf16>
    %267 = vector.shape_cast %266 : vector<1x2x512xbf16> to vector<2x512xbf16>
    %cst_125 = arith.constant dense<0.000000e+00> : vector<2x32xf32>
    %268 = tpu.matmul %267, %0, %cst_125 {dimension_numbers = #tpu.dot_dimension_numbers<[1], [0], [0], [1], [0, 0, 1, 1], [], []>} : vector<2x512xbf16>, vector<512x32xbf16>, vector<2x32xf32> -> vector<2x32xf32>
    %269 = vector.broadcast %1 : vector<1x32xf32> to vector<2x32xf32>
    %270 = arith.addf %268, %269 : vector<2x32xf32>
    %cst_126 = arith.constant 0.000000e+00 : f32
    %271 = vector.broadcast %cst_126 : f32 to vector<2x32xf32>
    %272 = arith.cmpf oge, %270, %271 : vector<2x32xf32>
    %cst_127 = arith.constant 0.00999999977 : f32
    %273 = vector.broadcast %cst_127 : f32 to vector<2x32xf32>
    %274 = arith.mulf %273, %270 : vector<2x32xf32>
    %275 = arith.select %272, %270, %274 : vector<2x32xi1>, vector<2x32xf32>
    %276 = arith.truncf %275 : vector<2x32xf32> to vector<2x32xbf16>
    %c0_128 = arith.constant 0 : index
    %c0_129 = arith.constant 0 : index
    %277 = vector.load %arg2[%c0_128, %c0_129] : memref<2x8xf32, #tpu.memory_space<vmem>>, vector<2x8xf32>
    %278 = arith.truncf %277 : vector<2x8xf32> to vector<2x8xbf16>
    %c0_130 = arith.constant 0 : index
    %c0_131 = arith.constant 0 : index
    %279 = vector.load %arg8[%c0_130, %c0_131] : memref<8x32xbf16, #tpu.memory_space<vmem>>, vector<8x32xbf16>
    %cst_132 = arith.constant dense<0.000000e+00> : vector<2x32xf32>
    %280 = tpu.matmul %278, %279, %cst_132 {dimension_numbers = #tpu.dot_dimension_numbers<[1], [0], [0], [1], [0, 0, 1, 1], [], []>} : vector<2x8xbf16>, vector<8x32xbf16>, vector<2x32xf32> -> vector<2x32xf32>
    %c0_133 = arith.constant 0 : index
    %c0_134 = arith.constant 0 : index
    %281 = vector.load %arg9[%c0_133, %c0_134] : memref<1x32xf32, #tpu.memory_space<vmem>>, vector<1x32xf32>
    %282 = vector.broadcast %281 : vector<1x32xf32> to vector<2x32xf32>
    %283 = arith.addf %280, %282 : vector<2x32xf32>
    %c0_135 = arith.constant 0 : index
    %c0_136 = arith.constant 0 : index
    %284 = vector.load %arg6[%c0_135, %c0_136] : memref<1x32xf32, #tpu.memory_space<vmem>>, vector<1x32xf32>
    %c0_137 = arith.constant 0 : index
    %c0_138 = arith.constant 0 : index
    %c0_139 = arith.constant 0 : index
    %285 = vector.load %arg5[%c0_137, %c0_138, %c0_139] : memref<16x32x32xbf16, #tpu.memory_space<vmem>>, vector<1x32x32xbf16>
    %286 = vector.shape_cast %285 : vector<1x32x32xbf16> to vector<32x32xbf16>
    %cst_140 = arith.constant dense<0.000000e+00> : vector<2x32xf32>
    %287 = tpu.matmul %12, %286, %cst_140 {dimension_numbers = #tpu.dot_dimension_numbers<[1], [0], [0], [1], [0, 0, 1, 1], [], []>} : vector<2x32xbf16>, vector<32x32xbf16>, vector<2x32xf32> -> vector<2x32xf32>
    %288 = vector.broadcast %284 : vector<1x32xf32> to vector<2x32xf32>
    %289 = arith.addf %288, %287 : vector<2x32xf32>
    %c1_141 = arith.constant 1 : index
    %c0_142 = arith.constant 0 : index
    %c0_143 = arith.constant 0 : index
    %290 = vector.load %arg5[%c1_141, %c0_142, %c0_143] : memref<16x32x32xbf16, #tpu.memory_space<vmem>>, vector<1x32x32xbf16>
    %291 = vector.shape_cast %290 : vector<1x32x32xbf16> to vector<32x32xbf16>
    %cst_144 = arith.constant dense<0.000000e+00> : vector<2x32xf32>
    %292 = tpu.matmul %23, %291, %cst_144 {dimension_numbers = #tpu.dot_dimension_numbers<[1], [0], [0], [1], [0, 0, 1, 1], [], []>} : vector<2x32xbf16>, vector<32x32xbf16>, vector<2x32xf32> -> vector<2x32xf32>
    %293 = arith.addf %289, %292 : vector<2x32xf32>
    %c2_145 = arith.constant 2 : index
    %c0_146 = arith.constant 0 : index
    %c0_147 = arith.constant 0 : index
    %294 = vector.load %arg5[%c2_145, %c0_146, %c0_147] : memref<16x32x32xbf16, #tpu.memory_space<vmem>>, vector<1x32x32xbf16>
    %295 = vector.shape_cast %294 : vector<1x32x32xbf16> to vector<32x32xbf16>
    %cst_148 = arith.constant dense<0.000000e+00> : vector<2x32xf32>
    %296 = tpu.matmul %34, %295, %cst_148 {dimension_numbers = #tpu.dot_dimension_numbers<[1], [0], [0], [1], [0, 0, 1, 1], [], []>} : vector<2x32xbf16>, vector<32x32xbf16>, vector<2x32xf32> -> vector<2x32xf32>
    %297 = arith.addf %293, %296 : vector<2x32xf32>
    %c3_149 = arith.constant 3 : index
    %c0_150 = arith.constant 0 : index
    %c0_151 = arith.constant 0 : index
    %298 = vector.load %arg5[%c3_149, %c0_150, %c0_151] : memref<16x32x32xbf16, #tpu.memory_space<vmem>>, vector<1x32x32xbf16>
    %299 = vector.shape_cast %298 : vector<1x32x32xbf16> to vector<32x32xbf16>
    %cst_152 = arith.constant dense<0.000000e+00> : vector<2x32xf32>
    %300 = tpu.matmul %45, %299, %cst_152 {dimension_numbers = #tpu.dot_dimension_numbers<[1], [0], [0], [1], [0, 0, 1, 1], [], []>} : vector<2x32xbf16>, vector<32x32xbf16>, vector<2x32xf32> -> vector<2x32xf32>
    %301 = arith.addf %297, %300 : vector<2x32xf32>
    %c4_153 = arith.constant 4 : index
    %c0_154 = arith.constant 0 : index
    %c0_155 = arith.constant 0 : index
    %302 = vector.load %arg5[%c4_153, %c0_154, %c0_155] : memref<16x32x32xbf16, #tpu.memory_space<vmem>>, vector<1x32x32xbf16>
    %303 = vector.shape_cast %302 : vector<1x32x32xbf16> to vector<32x32xbf16>
    %cst_156 = arith.constant dense<0.000000e+00> : vector<2x32xf32>
    %304 = tpu.matmul %67, %303, %cst_156 {dimension_numbers = #tpu.dot_dimension_numbers<[1], [0], [0], [1], [0, 0, 1, 1], [], []>} : vector<2x32xbf16>, vector<32x32xbf16>, vector<2x32xf32> -> vector<2x32xf32>
    %305 = arith.addf %301, %304 : vector<2x32xf32>
    %c5_157 = arith.constant 5 : index
    %c0_158 = arith.constant 0 : index
    %c0_159 = arith.constant 0 : index
    %306 = vector.load %arg5[%c5_157, %c0_158, %c0_159] : memref<16x32x32xbf16, #tpu.memory_space<vmem>>, vector<1x32x32xbf16>
    %307 = vector.shape_cast %306 : vector<1x32x32xbf16> to vector<32x32xbf16>
    %cst_160 = arith.constant dense<0.000000e+00> : vector<2x32xf32>
    %308 = tpu.matmul %78, %307, %cst_160 {dimension_numbers = #tpu.dot_dimension_numbers<[1], [0], [0], [1], [0, 0, 1, 1], [], []>} : vector<2x32xbf16>, vector<32x32xbf16>, vector<2x32xf32> -> vector<2x32xf32>
    %309 = arith.addf %305, %308 : vector<2x32xf32>
    %c6_161 = arith.constant 6 : index
    %c0_162 = arith.constant 0 : index
    %c0_163 = arith.constant 0 : index
    %310 = vector.load %arg5[%c6_161, %c0_162, %c0_163] : memref<16x32x32xbf16, #tpu.memory_space<vmem>>, vector<1x32x32xbf16>
    %311 = vector.shape_cast %310 : vector<1x32x32xbf16> to vector<32x32xbf16>
    %cst_164 = arith.constant dense<0.000000e+00> : vector<2x32xf32>
    %312 = tpu.matmul %89, %311, %cst_164 {dimension_numbers = #tpu.dot_dimension_numbers<[1], [0], [0], [1], [0, 0, 1, 1], [], []>} : vector<2x32xbf16>, vector<32x32xbf16>, vector<2x32xf32> -> vector<2x32xf32>
    %313 = arith.addf %309, %312 : vector<2x32xf32>
    %c7_165 = arith.constant 7 : index
    %c0_166 = arith.constant 0 : index
    %c0_167 = arith.constant 0 : index
    %314 = vector.load %arg5[%c7_165, %c0_166, %c0_167] : memref<16x32x32xbf16, #tpu.memory_space<vmem>>, vector<1x32x32xbf16>
    %315 = vector.shape_cast %314 : vector<1x32x32xbf16> to vector<32x32xbf16>
    %cst_168 = arith.constant dense<0.000000e+00> : vector<2x32xf32>
    %316 = tpu.matmul %100, %315, %cst_168 {dimension_numbers = #tpu.dot_dimension_numbers<[1], [0], [0], [1], [0, 0, 1, 1], [], []>} : vector<2x32xbf16>, vector<32x32xbf16>, vector<2x32xf32> -> vector<2x32xf32>
    %317 = arith.addf %313, %316 : vector<2x32xf32>
    %c8_169 = arith.constant 8 : index
    %c0_170 = arith.constant 0 : index
    %c0_171 = arith.constant 0 : index
    %318 = vector.load %arg5[%c8_169, %c0_170, %c0_171] : memref<16x32x32xbf16, #tpu.memory_space<vmem>>, vector<1x32x32xbf16>
    %319 = vector.shape_cast %318 : vector<1x32x32xbf16> to vector<32x32xbf16>
    %cst_172 = arith.constant dense<0.000000e+00> : vector<2x32xf32>
    %320 = tpu.matmul %122, %319, %cst_172 {dimension_numbers = #tpu.dot_dimension_numbers<[1], [0], [0], [1], [0, 0, 1, 1], [], []>} : vector<2x32xbf16>, vector<32x32xbf16>, vector<2x32xf32> -> vector<2x32xf32>
    %321 = arith.addf %317, %320 : vector<2x32xf32>
    %c9_173 = arith.constant 9 : index
    %c0_174 = arith.constant 0 : index
    %c0_175 = arith.constant 0 : index
    %322 = vector.load %arg5[%c9_173, %c0_174, %c0_175] : memref<16x32x32xbf16, #tpu.memory_space<vmem>>, vector<1x32x32xbf16>
    %323 = vector.shape_cast %322 : vector<1x32x32xbf16> to vector<32x32xbf16>
    %cst_176 = arith.constant dense<0.000000e+00> : vector<2x32xf32>
    %324 = tpu.matmul %133, %323, %cst_176 {dimension_numbers = #tpu.dot_dimension_numbers<[1], [0], [0], [1], [0, 0, 1, 1], [], []>} : vector<2x32xbf16>, vector<32x32xbf16>, vector<2x32xf32> -> vector<2x32xf32>
    %325 = arith.addf %321, %324 : vector<2x32xf32>
    %c10_177 = arith.constant 10 : index
    %c0_178 = arith.constant 0 : index
    %c0_179 = arith.constant 0 : index
    %326 = vector.load %arg5[%c10_177, %c0_178, %c0_179] : memref<16x32x32xbf16, #tpu.memory_space<vmem>>, vector<1x32x32xbf16>
    %327 = vector.shape_cast %326 : vector<1x32x32xbf16> to vector<32x32xbf16>
    %cst_180 = arith.constant dense<0.000000e+00> : vector<2x32xf32>
    %328 = tpu.matmul %144, %327, %cst_180 {dimension_numbers = #tpu.dot_dimension_numbers<[1], [0], [0], [1], [0, 0, 1, 1], [], []>} : vector<2x32xbf16>, vector<32x32xbf16>, vector<2x32xf32> -> vector<2x32xf32>
    %329 = arith.addf %325, %328 : vector<2x32xf32>
    %c11_181 = arith.constant 11 : index
    %c0_182 = arith.constant 0 : index
    %c0_183 = arith.constant 0 : index
    %330 = vector.load %arg5[%c11_181, %c0_182, %c0_183] : memref<16x32x32xbf16, #tpu.memory_space<vmem>>, vector<1x32x32xbf16>
    %331 = vector.shape_cast %330 : vector<1x32x32xbf16> to vector<32x32xbf16>
    %cst_184 = arith.constant dense<0.000000e+00> : vector<2x32xf32>
    %332 = tpu.matmul %155, %331, %cst_184 {dimension_numbers = #tpu.dot_dimension_numbers<[1], [0], [0], [1], [0, 0, 1, 1], [], []>} : vector<2x32xbf16>, vector<32x32xbf16>, vector<2x32xf32> -> vector<2x32xf32>
    %333 = arith.addf %329, %332 : vector<2x32xf32>
    %c12_185 = arith.constant 12 : index
    %c0_186 = arith.constant 0 : index
    %c0_187 = arith.constant 0 : index
    %334 = vector.load %arg5[%c12_185, %c0_186, %c0_187] : memref<16x32x32xbf16, #tpu.memory_space<vmem>>, vector<1x32x32xbf16>
    %335 = vector.shape_cast %334 : vector<1x32x32xbf16> to vector<32x32xbf16>
    %cst_188 = arith.constant dense<0.000000e+00> : vector<2x32xf32>
    %336 = tpu.matmul %177, %335, %cst_188 {dimension_numbers = #tpu.dot_dimension_numbers<[1], [0], [0], [1], [0, 0, 1, 1], [], []>} : vector<2x32xbf16>, vector<32x32xbf16>, vector<2x32xf32> -> vector<2x32xf32>
    %337 = arith.addf %333, %336 : vector<2x32xf32>
    %c13_189 = arith.constant 13 : index
    %c0_190 = arith.constant 0 : index
    %c0_191 = arith.constant 0 : index
    %338 = vector.load %arg5[%c13_189, %c0_190, %c0_191] : memref<16x32x32xbf16, #tpu.memory_space<vmem>>, vector<1x32x32xbf16>
    %339 = vector.shape_cast %338 : vector<1x32x32xbf16> to vector<32x32xbf16>
    %cst_192 = arith.constant dense<0.000000e+00> : vector<2x32xf32>
    %340 = tpu.matmul %188, %339, %cst_192 {dimension_numbers = #tpu.dot_dimension_numbers<[1], [0], [0], [1], [0, 0, 1, 1], [], []>} : vector<2x32xbf16>, vector<32x32xbf16>, vector<2x32xf32> -> vector<2x32xf32>
    %341 = arith.addf %337, %340 : vector<2x32xf32>
    %c14_193 = arith.constant 14 : index
    %c0_194 = arith.constant 0 : index
    %c0_195 = arith.constant 0 : index
    %342 = vector.load %arg5[%c14_193, %c0_194, %c0_195] : memref<16x32x32xbf16, #tpu.memory_space<vmem>>, vector<1x32x32xbf16>
    %343 = vector.shape_cast %342 : vector<1x32x32xbf16> to vector<32x32xbf16>
    %cst_196 = arith.constant dense<0.000000e+00> : vector<2x32xf32>
    %344 = tpu.matmul %199, %343, %cst_196 {dimension_numbers = #tpu.dot_dimension_numbers<[1], [0], [0], [1], [0, 0, 1, 1], [], []>} : vector<2x32xbf16>, vector<32x32xbf16>, vector<2x32xf32> -> vector<2x32xf32>
    %345 = arith.addf %341, %344 : vector<2x32xf32>
    %c15_197 = arith.constant 15 : index
    %c0_198 = arith.constant 0 : index
    %c0_199 = arith.constant 0 : index
    %346 = vector.load %arg5[%c15_197, %c0_198, %c0_199] : memref<16x32x32xbf16, #tpu.memory_space<vmem>>, vector<1x32x32xbf16>
    %347 = vector.shape_cast %346 : vector<1x32x32xbf16> to vector<32x32xbf16>
    %cst_200 = arith.constant dense<0.000000e+00> : vector<2x32xf32>
    %348 = tpu.matmul %210, %347, %cst_200 {dimension_numbers = #tpu.dot_dimension_numbers<[1], [0], [0], [1], [0, 0, 1, 1], [], []>} : vector<2x32xbf16>, vector<32x32xbf16>, vector<2x32xf32> -> vector<2x32xf32>
    %349 = arith.addf %345, %348 : vector<2x32xf32>
    %cst_201 = arith.constant 0.000000e+00 : f32
    %350 = vector.broadcast %cst_201 : f32 to vector<2x32xf32>
    %351 = arith.cmpf oge, %349, %350 : vector<2x32xf32>
    %cst_202 = arith.constant 0.00999999977 : f32
    %352 = vector.broadcast %cst_202 : f32 to vector<2x32xf32>
    %353 = arith.mulf %352, %349 : vector<2x32xf32>
    %354 = arith.select %351, %349, %353 : vector<2x32xi1>, vector<2x32xf32>
    %355 = arith.truncf %354 : vector<2x32xf32> to vector<2x32xbf16>
    %c0_203 = arith.constant 0 : index
    %c0_204 = arith.constant 0 : index
    %c0_205 = arith.constant 0 : index
    %356 = vector.load %arg7[%c0_203, %c0_204, %c0_205] : memref<4x32x32xbf16, #tpu.memory_space<vmem>>, vector<1x32x32xbf16>
    %357 = vector.shape_cast %356 : vector<1x32x32xbf16> to vector<32x32xbf16>
    %cst_206 = arith.constant dense<0.000000e+00> : vector<2x32xf32>
    %358 = tpu.matmul %355, %357, %cst_206 {dimension_numbers = #tpu.dot_dimension_numbers<[1], [0], [0], [1], [0, 0, 1, 1], [], []>} : vector<2x32xbf16>, vector<32x32xbf16>, vector<2x32xf32> -> vector<2x32xf32>
    %359 = arith.addf %283, %358 : vector<2x32xf32>
    %c0_207 = arith.constant 0 : index
    %c0_208 = arith.constant 0 : index
    %c0_209 = arith.constant 0 : index
    %360 = vector.load %arg5[%c0_207, %c0_208, %c0_209] : memref<16x32x32xbf16, #tpu.memory_space<vmem>>, vector<1x32x32xbf16>
    %361 = vector.shape_cast %360 : vector<1x32x32xbf16> to vector<32x32xbf16>
    %cst_210 = arith.constant dense<0.000000e+00> : vector<2x32xf32>
    %362 = tpu.matmul %23, %361, %cst_210 {dimension_numbers = #tpu.dot_dimension_numbers<[1], [0], [0], [1], [0, 0, 1, 1], [], []>} : vector<2x32xbf16>, vector<32x32xbf16>, vector<2x32xf32> -> vector<2x32xf32>
    %363 = vector.broadcast %284 : vector<1x32xf32> to vector<2x32xf32>
    %364 = arith.addf %363, %362 : vector<2x32xf32>
    %c1_211 = arith.constant 1 : index
    %c0_212 = arith.constant 0 : index
    %c0_213 = arith.constant 0 : index
    %365 = vector.load %arg5[%c1_211, %c0_212, %c0_213] : memref<16x32x32xbf16, #tpu.memory_space<vmem>>, vector<1x32x32xbf16>
    %366 = vector.shape_cast %365 : vector<1x32x32xbf16> to vector<32x32xbf16>
    %cst_214 = arith.constant dense<0.000000e+00> : vector<2x32xf32>
    %367 = tpu.matmul %34, %366, %cst_214 {dimension_numbers = #tpu.dot_dimension_numbers<[1], [0], [0], [1], [0, 0, 1, 1], [], []>} : vector<2x32xbf16>, vector<32x32xbf16>, vector<2x32xf32> -> vector<2x32xf32>
    %368 = arith.addf %364, %367 : vector<2x32xf32>
    %c2_215 = arith.constant 2 : index
    %c0_216 = arith.constant 0 : index
    %c0_217 = arith.constant 0 : index
    %369 = vector.load %arg5[%c2_215, %c0_216, %c0_217] : memref<16x32x32xbf16, #tpu.memory_space<vmem>>, vector<1x32x32xbf16>
    %370 = vector.shape_cast %369 : vector<1x32x32xbf16> to vector<32x32xbf16>
    %cst_218 = arith.constant dense<0.000000e+00> : vector<2x32xf32>
    %371 = tpu.matmul %45, %370, %cst_218 {dimension_numbers = #tpu.dot_dimension_numbers<[1], [0], [0], [1], [0, 0, 1, 1], [], []>} : vector<2x32xbf16>, vector<32x32xbf16>, vector<2x32xf32> -> vector<2x32xf32>
    %372 = arith.addf %368, %371 : vector<2x32xf32>
    %c3_219 = arith.constant 3 : index
    %c0_220 = arith.constant 0 : index
    %c0_221 = arith.constant 0 : index
    %373 = vector.load %arg5[%c3_219, %c0_220, %c0_221] : memref<16x32x32xbf16, #tpu.memory_space<vmem>>, vector<1x32x32xbf16>
    %374 = vector.shape_cast %373 : vector<1x32x32xbf16> to vector<32x32xbf16>
    %cst_222 = arith.constant dense<0.000000e+00> : vector<2x32xf32>
    %375 = tpu.matmul %56, %374, %cst_222 {dimension_numbers = #tpu.dot_dimension_numbers<[1], [0], [0], [1], [0, 0, 1, 1], [], []>} : vector<2x32xbf16>, vector<32x32xbf16>, vector<2x32xf32> -> vector<2x32xf32>
    %376 = arith.addf %372, %375 : vector<2x32xf32>
    %c4_223 = arith.constant 4 : index
    %c0_224 = arith.constant 0 : index
    %c0_225 = arith.constant 0 : index
    %377 = vector.load %arg5[%c4_223, %c0_224, %c0_225] : memref<16x32x32xbf16, #tpu.memory_space<vmem>>, vector<1x32x32xbf16>
    %378 = vector.shape_cast %377 : vector<1x32x32xbf16> to vector<32x32xbf16>
    %cst_226 = arith.constant dense<0.000000e+00> : vector<2x32xf32>
    %379 = tpu.matmul %78, %378, %cst_226 {dimension_numbers = #tpu.dot_dimension_numbers<[1], [0], [0], [1], [0, 0, 1, 1], [], []>} : vector<2x32xbf16>, vector<32x32xbf16>, vector<2x32xf32> -> vector<2x32xf32>
    %380 = arith.addf %376, %379 : vector<2x32xf32>
    %c5_227 = arith.constant 5 : index
    %c0_228 = arith.constant 0 : index
    %c0_229 = arith.constant 0 : index
    %381 = vector.load %arg5[%c5_227, %c0_228, %c0_229] : memref<16x32x32xbf16, #tpu.memory_space<vmem>>, vector<1x32x32xbf16>
    %382 = vector.shape_cast %381 : vector<1x32x32xbf16> to vector<32x32xbf16>
    %cst_230 = arith.constant dense<0.000000e+00> : vector<2x32xf32>
    %383 = tpu.matmul %89, %382, %cst_230 {dimension_numbers = #tpu.dot_dimension_numbers<[1], [0], [0], [1], [0, 0, 1, 1], [], []>} : vector<2x32xbf16>, vector<32x32xbf16>, vector<2x32xf32> -> vector<2x32xf32>
    %384 = arith.addf %380, %383 : vector<2x32xf32>
    %c6_231 = arith.constant 6 : index
    %c0_232 = arith.constant 0 : index
    %c0_233 = arith.constant 0 : index
    %385 = vector.load %arg5[%c6_231, %c0_232, %c0_233] : memref<16x32x32xbf16, #tpu.memory_space<vmem>>, vector<1x32x32xbf16>
    %386 = vector.shape_cast %385 : vector<1x32x32xbf16> to vector<32x32xbf16>
    %cst_234 = arith.constant dense<0.000000e+00> : vector<2x32xf32>
    %387 = tpu.matmul %100, %386, %cst_234 {dimension_numbers = #tpu.dot_dimension_numbers<[1], [0], [0], [1], [0, 0, 1, 1], [], []>} : vector<2x32xbf16>, vector<32x32xbf16>, vector<2x32xf32> -> vector<2x32xf32>
    %388 = arith.addf %384, %387 : vector<2x32xf32>
    %c7_235 = arith.constant 7 : index
    %c0_236 = arith.constant 0 : index
    %c0_237 = arith.constant 0 : index
    %389 = vector.load %arg5[%c7_235, %c0_236, %c0_237] : memref<16x32x32xbf16, #tpu.memory_space<vmem>>, vector<1x32x32xbf16>
    %390 = vector.shape_cast %389 : vector<1x32x32xbf16> to vector<32x32xbf16>
    %cst_238 = arith.constant dense<0.000000e+00> : vector<2x32xf32>
    %391 = tpu.matmul %111, %390, %cst_238 {dimension_numbers = #tpu.dot_dimension_numbers<[1], [0], [0], [1], [0, 0, 1, 1], [], []>} : vector<2x32xbf16>, vector<32x32xbf16>, vector<2x32xf32> -> vector<2x32xf32>
    %392 = arith.addf %388, %391 : vector<2x32xf32>
    %c8_239 = arith.constant 8 : index
    %c0_240 = arith.constant 0 : index
    %c0_241 = arith.constant 0 : index
    %393 = vector.load %arg5[%c8_239, %c0_240, %c0_241] : memref<16x32x32xbf16, #tpu.memory_space<vmem>>, vector<1x32x32xbf16>
    %394 = vector.shape_cast %393 : vector<1x32x32xbf16> to vector<32x32xbf16>
    %cst_242 = arith.constant dense<0.000000e+00> : vector<2x32xf32>
    %395 = tpu.matmul %133, %394, %cst_242 {dimension_numbers = #tpu.dot_dimension_numbers<[1], [0], [0], [1], [0, 0, 1, 1], [], []>} : vector<2x32xbf16>, vector<32x32xbf16>, vector<2x32xf32> -> vector<2x32xf32>
    %396 = arith.addf %392, %395 : vector<2x32xf32>
    %c9_243 = arith.constant 9 : index
    %c0_244 = arith.constant 0 : index
    %c0_245 = arith.constant 0 : index
    %397 = vector.load %arg5[%c9_243, %c0_244, %c0_245] : memref<16x32x32xbf16, #tpu.memory_space<vmem>>, vector<1x32x32xbf16>
    %398 = vector.shape_cast %397 : vector<1x32x32xbf16> to vector<32x32xbf16>
    %cst_246 = arith.constant dense<0.000000e+00> : vector<2x32xf32>
    %399 = tpu.matmul %144, %398, %cst_246 {dimension_numbers = #tpu.dot_dimension_numbers<[1], [0], [0], [1], [0, 0, 1, 1], [], []>} : vector<2x32xbf16>, vector<32x32xbf16>, vector<2x32xf32> -> vector<2x32xf32>
    %400 = arith.addf %396, %399 : vector<2x32xf32>
    %c10_247 = arith.constant 10 : index
    %c0_248 = arith.constant 0 : index
    %c0_249 = arith.constant 0 : index
    %401 = vector.load %arg5[%c10_247, %c0_248, %c0_249] : memref<16x32x32xbf16, #tpu.memory_space<vmem>>, vector<1x32x32xbf16>
    %402 = vector.shape_cast %401 : vector<1x32x32xbf16> to vector<32x32xbf16>
    %cst_250 = arith.constant dense<0.000000e+00> : vector<2x32xf32>
    %403 = tpu.matmul %155, %402, %cst_250 {dimension_numbers = #tpu.dot_dimension_numbers<[1], [0], [0], [1], [0, 0, 1, 1], [], []>} : vector<2x32xbf16>, vector<32x32xbf16>, vector<2x32xf32> -> vector<2x32xf32>
    %404 = arith.addf %400, %403 : vector<2x32xf32>
    %c11_251 = arith.constant 11 : index
    %c0_252 = arith.constant 0 : index
    %c0_253 = arith.constant 0 : index
    %405 = vector.load %arg5[%c11_251, %c0_252, %c0_253] : memref<16x32x32xbf16, #tpu.memory_space<vmem>>, vector<1x32x32xbf16>
    %406 = vector.shape_cast %405 : vector<1x32x32xbf16> to vector<32x32xbf16>
    %cst_254 = arith.constant dense<0.000000e+00> : vector<2x32xf32>
    %407 = tpu.matmul %166, %406, %cst_254 {dimension_numbers = #tpu.dot_dimension_numbers<[1], [0], [0], [1], [0, 0, 1, 1], [], []>} : vector<2x32xbf16>, vector<32x32xbf16>, vector<2x32xf32> -> vector<2x32xf32>
    %408 = arith.addf %404, %407 : vector<2x32xf32>
    %c12_255 = arith.constant 12 : index
    %c0_256 = arith.constant 0 : index
    %c0_257 = arith.constant 0 : index
    %409 = vector.load %arg5[%c12_255, %c0_256, %c0_257] : memref<16x32x32xbf16, #tpu.memory_space<vmem>>, vector<1x32x32xbf16>
    %410 = vector.shape_cast %409 : vector<1x32x32xbf16> to vector<32x32xbf16>
    %cst_258 = arith.constant dense<0.000000e+00> : vector<2x32xf32>
    %411 = tpu.matmul %188, %410, %cst_258 {dimension_numbers = #tpu.dot_dimension_numbers<[1], [0], [0], [1], [0, 0, 1, 1], [], []>} : vector<2x32xbf16>, vector<32x32xbf16>, vector<2x32xf32> -> vector<2x32xf32>
    %412 = arith.addf %408, %411 : vector<2x32xf32>
    %c13_259 = arith.constant 13 : index
    %c0_260 = arith.constant 0 : index
    %c0_261 = arith.constant 0 : index
    %413 = vector.load %arg5[%c13_259, %c0_260, %c0_261] : memref<16x32x32xbf16, #tpu.memory_space<vmem>>, vector<1x32x32xbf16>
    %414 = vector.shape_cast %413 : vector<1x32x32xbf16> to vector<32x32xbf16>
    %cst_262 = arith.constant dense<0.000000e+00> : vector<2x32xf32>
    %415 = tpu.matmul %199, %414, %cst_262 {dimension_numbers = #tpu.dot_dimension_numbers<[1], [0], [0], [1], [0, 0, 1, 1], [], []>} : vector<2x32xbf16>, vector<32x32xbf16>, vector<2x32xf32> -> vector<2x32xf32>
    %416 = arith.addf %412, %415 : vector<2x32xf32>
    %c14_263 = arith.constant 14 : index
    %c0_264 = arith.constant 0 : index
    %c0_265 = arith.constant 0 : index
    %417 = vector.load %arg5[%c14_263, %c0_264, %c0_265] : memref<16x32x32xbf16, #tpu.memory_space<vmem>>, vector<1x32x32xbf16>
    %418 = vector.shape_cast %417 : vector<1x32x32xbf16> to vector<32x32xbf16>
    %cst_266 = arith.constant dense<0.000000e+00> : vector<2x32xf32>
    %419 = tpu.matmul %210, %418, %cst_266 {dimension_numbers = #tpu.dot_dimension_numbers<[1], [0], [0], [1], [0, 0, 1, 1], [], []>} : vector<2x32xbf16>, vector<32x32xbf16>, vector<2x32xf32> -> vector<2x32xf32>
    %420 = arith.addf %416, %419 : vector<2x32xf32>
    %c15_267 = arith.constant 15 : index
    %c0_268 = arith.constant 0 : index
    %c0_269 = arith.constant 0 : index
    %421 = vector.load %arg5[%c15_267, %c0_268, %c0_269] : memref<16x32x32xbf16, #tpu.memory_space<vmem>>, vector<1x32x32xbf16>
    %422 = vector.shape_cast %421 : vector<1x32x32xbf16> to vector<32x32xbf16>
    %cst_270 = arith.constant dense<0.000000e+00> : vector<2x32xf32>
    %423 = tpu.matmul %221, %422, %cst_270 {dimension_numbers = #tpu.dot_dimension_numbers<[1], [0], [0], [1], [0, 0, 1, 1], [], []>} : vector<2x32xbf16>, vector<32x32xbf16>, vector<2x32xf32> -> vector<2x32xf32>
    %424 = arith.addf %420, %423 : vector<2x32xf32>
    %cst_271 = arith.constant 0.000000e+00 : f32
    %425 = vector.broadcast %cst_271 : f32 to vector<2x32xf32>
    %426 = arith.cmpf oge, %424, %425 : vector<2x32xf32>
    %cst_272 = arith.constant 0.00999999977 : f32
    %427 = vector.broadcast %cst_272 : f32 to vector<2x32xf32>
    %428 = arith.mulf %427, %424 : vector<2x32xf32>
    %429 = arith.select %426, %424, %428 : vector<2x32xi1>, vector<2x32xf32>
    %430 = arith.truncf %429 : vector<2x32xf32> to vector<2x32xbf16>
    %c1_273 = arith.constant 1 : index
    %c0_274 = arith.constant 0 : index
    %c0_275 = arith.constant 0 : index
    %431 = vector.load %arg7[%c1_273, %c0_274, %c0_275] : memref<4x32x32xbf16, #tpu.memory_space<vmem>>, vector<1x32x32xbf16>
    %432 = vector.shape_cast %431 : vector<1x32x32xbf16> to vector<32x32xbf16>
    %cst_276 = arith.constant dense<0.000000e+00> : vector<2x32xf32>
    %433 = tpu.matmul %430, %432, %cst_276 {dimension_numbers = #tpu.dot_dimension_numbers<[1], [0], [0], [1], [0, 0, 1, 1], [], []>} : vector<2x32xbf16>, vector<32x32xbf16>, vector<2x32xf32> -> vector<2x32xf32>
    %434 = arith.addf %359, %433 : vector<2x32xf32>
    %c0_277 = arith.constant 0 : index
    %c0_278 = arith.constant 0 : index
    %c0_279 = arith.constant 0 : index
    %435 = vector.load %arg5[%c0_277, %c0_278, %c0_279] : memref<16x32x32xbf16, #tpu.memory_space<vmem>>, vector<1x32x32xbf16>
    %436 = vector.shape_cast %435 : vector<1x32x32xbf16> to vector<32x32xbf16>
    %cst_280 = arith.constant dense<0.000000e+00> : vector<2x32xf32>
    %437 = tpu.matmul %67, %436, %cst_280 {dimension_numbers = #tpu.dot_dimension_numbers<[1], [0], [0], [1], [0, 0, 1, 1], [], []>} : vector<2x32xbf16>, vector<32x32xbf16>, vector<2x32xf32> -> vector<2x32xf32>
    %438 = vector.broadcast %284 : vector<1x32xf32> to vector<2x32xf32>
    %439 = arith.addf %438, %437 : vector<2x32xf32>
    %c1_281 = arith.constant 1 : index
    %c0_282 = arith.constant 0 : index
    %c0_283 = arith.constant 0 : index
    %440 = vector.load %arg5[%c1_281, %c0_282, %c0_283] : memref<16x32x32xbf16, #tpu.memory_space<vmem>>, vector<1x32x32xbf16>
    %441 = vector.shape_cast %440 : vector<1x32x32xbf16> to vector<32x32xbf16>
    %cst_284 = arith.constant dense<0.000000e+00> : vector<2x32xf32>
    %442 = tpu.matmul %78, %441, %cst_284 {dimension_numbers = #tpu.dot_dimension_numbers<[1], [0], [0], [1], [0, 0, 1, 1], [], []>} : vector<2x32xbf16>, vector<32x32xbf16>, vector<2x32xf32> -> vector<2x32xf32>
    %443 = arith.addf %439, %442 : vector<2x32xf32>
    %c2_285 = arith.constant 2 : index
    %c0_286 = arith.constant 0 : index
    %c0_287 = arith.constant 0 : index
    %444 = vector.load %arg5[%c2_285, %c0_286, %c0_287] : memref<16x32x32xbf16, #tpu.memory_space<vmem>>, vector<1x32x32xbf16>
    %445 = vector.shape_cast %444 : vector<1x32x32xbf16> to vector<32x32xbf16>
    %cst_288 = arith.constant dense<0.000000e+00> : vector<2x32xf32>
    %446 = tpu.matmul %89, %445, %cst_288 {dimension_numbers = #tpu.dot_dimension_numbers<[1], [0], [0], [1], [0, 0, 1, 1], [], []>} : vector<2x32xbf16>, vector<32x32xbf16>, vector<2x32xf32> -> vector<2x32xf32>
    %447 = arith.addf %443, %446 : vector<2x32xf32>
    %c3_289 = arith.constant 3 : index
    %c0_290 = arith.constant 0 : index
    %c0_291 = arith.constant 0 : index
    %448 = vector.load %arg5[%c3_289, %c0_290, %c0_291] : memref<16x32x32xbf16, #tpu.memory_space<vmem>>, vector<1x32x32xbf16>
    %449 = vector.shape_cast %448 : vector<1x32x32xbf16> to vector<32x32xbf16>
    %cst_292 = arith.constant dense<0.000000e+00> : vector<2x32xf32>
    %450 = tpu.matmul %100, %449, %cst_292 {dimension_numbers = #tpu.dot_dimension_numbers<[1], [0], [0], [1], [0, 0, 1, 1], [], []>} : vector<2x32xbf16>, vector<32x32xbf16>, vector<2x32xf32> -> vector<2x32xf32>
    %451 = arith.addf %447, %450 : vector<2x32xf32>
    %c4_293 = arith.constant 4 : index
    %c0_294 = arith.constant 0 : index
    %c0_295 = arith.constant 0 : index
    %452 = vector.load %arg5[%c4_293, %c0_294, %c0_295] : memref<16x32x32xbf16, #tpu.memory_space<vmem>>, vector<1x32x32xbf16>
    %453 = vector.shape_cast %452 : vector<1x32x32xbf16> to vector<32x32xbf16>
    %cst_296 = arith.constant dense<0.000000e+00> : vector<2x32xf32>
    %454 = tpu.matmul %122, %453, %cst_296 {dimension_numbers = #tpu.dot_dimension_numbers<[1], [0], [0], [1], [0, 0, 1, 1], [], []>} : vector<2x32xbf16>, vector<32x32xbf16>, vector<2x32xf32> -> vector<2x32xf32>
    %455 = arith.addf %451, %454 : vector<2x32xf32>
    %c5_297 = arith.constant 5 : index
    %c0_298 = arith.constant 0 : index
    %c0_299 = arith.constant 0 : index
    %456 = vector.load %arg5[%c5_297, %c0_298, %c0_299] : memref<16x32x32xbf16, #tpu.memory_space<vmem>>, vector<1x32x32xbf16>
    %457 = vector.shape_cast %456 : vector<1x32x32xbf16> to vector<32x32xbf16>
    %cst_300 = arith.constant dense<0.000000e+00> : vector<2x32xf32>
    %458 = tpu.matmul %133, %457, %cst_300 {dimension_numbers = #tpu.dot_dimension_numbers<[1], [0], [0], [1], [0, 0, 1, 1], [], []>} : vector<2x32xbf16>, vector<32x32xbf16>, vector<2x32xf32> -> vector<2x32xf32>
    %459 = arith.addf %455, %458 : vector<2x32xf32>
    %c6_301 = arith.constant 6 : index
    %c0_302 = arith.constant 0 : index
    %c0_303 = arith.constant 0 : index
    %460 = vector.load %arg5[%c6_301, %c0_302, %c0_303] : memref<16x32x32xbf16, #tpu.memory_space<vmem>>, vector<1x32x32xbf16>
    %461 = vector.shape_cast %460 : vector<1x32x32xbf16> to vector<32x32xbf16>
    %cst_304 = arith.constant dense<0.000000e+00> : vector<2x32xf32>
    %462 = tpu.matmul %144, %461, %cst_304 {dimension_numbers = #tpu.dot_dimension_numbers<[1], [0], [0], [1], [0, 0, 1, 1], [], []>} : vector<2x32xbf16>, vector<32x32xbf16>, vector<2x32xf32> -> vector<2x32xf32>
    %463 = arith.addf %459, %462 : vector<2x32xf32>
    %c7_305 = arith.constant 7 : index
    %c0_306 = arith.constant 0 : index
    %c0_307 = arith.constant 0 : index
    %464 = vector.load %arg5[%c7_305, %c0_306, %c0_307] : memref<16x32x32xbf16, #tpu.memory_space<vmem>>, vector<1x32x32xbf16>
    %465 = vector.shape_cast %464 : vector<1x32x32xbf16> to vector<32x32xbf16>
    %cst_308 = arith.constant dense<0.000000e+00> : vector<2x32xf32>
    %466 = tpu.matmul %155, %465, %cst_308 {dimension_numbers = #tpu.dot_dimension_numbers<[1], [0], [0], [1], [0, 0, 1, 1], [], []>} : vector<2x32xbf16>, vector<32x32xbf16>, vector<2x32xf32> -> vector<2x32xf32>
    %467 = arith.addf %463, %466 : vector<2x32xf32>
    %c8_309 = arith.constant 8 : index
    %c0_310 = arith.constant 0 : index
    %c0_311 = arith.constant 0 : index
    %468 = vector.load %arg5[%c8_309, %c0_310, %c0_311] : memref<16x32x32xbf16, #tpu.memory_space<vmem>>, vector<1x32x32xbf16>
    %469 = vector.shape_cast %468 : vector<1x32x32xbf16> to vector<32x32xbf16>
    %cst_312 = arith.constant dense<0.000000e+00> : vector<2x32xf32>
    %470 = tpu.matmul %177, %469, %cst_312 {dimension_numbers = #tpu.dot_dimension_numbers<[1], [0], [0], [1], [0, 0, 1, 1], [], []>} : vector<2x32xbf16>, vector<32x32xbf16>, vector<2x32xf32> -> vector<2x32xf32>
    %471 = arith.addf %467, %470 : vector<2x32xf32>
    %c9_313 = arith.constant 9 : index
    %c0_314 = arith.constant 0 : index
    %c0_315 = arith.constant 0 : index
    %472 = vector.load %arg5[%c9_313, %c0_314, %c0_315] : memref<16x32x32xbf16, #tpu.memory_space<vmem>>, vector<1x32x32xbf16>
    %473 = vector.shape_cast %472 : vector<1x32x32xbf16> to vector<32x32xbf16>
    %cst_316 = arith.constant dense<0.000000e+00> : vector<2x32xf32>
    %474 = tpu.matmul %188, %473, %cst_316 {dimension_numbers = #tpu.dot_dimension_numbers<[1], [0], [0], [1], [0, 0, 1, 1], [], []>} : vector<2x32xbf16>, vector<32x32xbf16>, vector<2x32xf32> -> vector<2x32xf32>
    %475 = arith.addf %471, %474 : vector<2x32xf32>
    %c10_317 = arith.constant 10 : index
    %c0_318 = arith.constant 0 : index
    %c0_319 = arith.constant 0 : index
    %476 = vector.load %arg5[%c10_317, %c0_318, %c0_319] : memref<16x32x32xbf16, #tpu.memory_space<vmem>>, vector<1x32x32xbf16>
    %477 = vector.shape_cast %476 : vector<1x32x32xbf16> to vector<32x32xbf16>
    %cst_320 = arith.constant dense<0.000000e+00> : vector<2x32xf32>
    %478 = tpu.matmul %199, %477, %cst_320 {dimension_numbers = #tpu.dot_dimension_numbers<[1], [0], [0], [1], [0, 0, 1, 1], [], []>} : vector<2x32xbf16>, vector<32x32xbf16>, vector<2x32xf32> -> vector<2x32xf32>
    %479 = arith.addf %475, %478 : vector<2x32xf32>
    %c11_321 = arith.constant 11 : index
    %c0_322 = arith.constant 0 : index
    %c0_323 = arith.constant 0 : index
    %480 = vector.load %arg5[%c11_321, %c0_322, %c0_323] : memref<16x32x32xbf16, #tpu.memory_space<vmem>>, vector<1x32x32xbf16>
    %481 = vector.shape_cast %480 : vector<1x32x32xbf16> to vector<32x32xbf16>
    %cst_324 = arith.constant dense<0.000000e+00> : vector<2x32xf32>
    %482 = tpu.matmul %210, %481, %cst_324 {dimension_numbers = #tpu.dot_dimension_numbers<[1], [0], [0], [1], [0, 0, 1, 1], [], []>} : vector<2x32xbf16>, vector<32x32xbf16>, vector<2x32xf32> -> vector<2x32xf32>
    %483 = arith.addf %479, %482 : vector<2x32xf32>
    %c12_325 = arith.constant 12 : index
    %c0_326 = arith.constant 0 : index
    %c0_327 = arith.constant 0 : index
    %484 = vector.load %arg5[%c12_325, %c0_326, %c0_327] : memref<16x32x32xbf16, #tpu.memory_space<vmem>>, vector<1x32x32xbf16>
    %485 = vector.shape_cast %484 : vector<1x32x32xbf16> to vector<32x32xbf16>
    %cst_328 = arith.constant dense<0.000000e+00> : vector<2x32xf32>
    %486 = tpu.matmul %232, %485, %cst_328 {dimension_numbers = #tpu.dot_dimension_numbers<[1], [0], [0], [1], [0, 0, 1, 1], [], []>} : vector<2x32xbf16>, vector<32x32xbf16>, vector<2x32xf32> -> vector<2x32xf32>
    %487 = arith.addf %483, %486 : vector<2x32xf32>
    %c13_329 = arith.constant 13 : index
    %c0_330 = arith.constant 0 : index
    %c0_331 = arith.constant 0 : index
    %488 = vector.load %arg5[%c13_329, %c0_330, %c0_331] : memref<16x32x32xbf16, #tpu.memory_space<vmem>>, vector<1x32x32xbf16>
    %489 = vector.shape_cast %488 : vector<1x32x32xbf16> to vector<32x32xbf16>
    %cst_332 = arith.constant dense<0.000000e+00> : vector<2x32xf32>
    %490 = tpu.matmul %243, %489, %cst_332 {dimension_numbers = #tpu.dot_dimension_numbers<[1], [0], [0], [1], [0, 0, 1, 1], [], []>} : vector<2x32xbf16>, vector<32x32xbf16>, vector<2x32xf32> -> vector<2x32xf32>
    %491 = arith.addf %487, %490 : vector<2x32xf32>
    %c14_333 = arith.constant 14 : index
    %c0_334 = arith.constant 0 : index
    %c0_335 = arith.constant 0 : index
    %492 = vector.load %arg5[%c14_333, %c0_334, %c0_335] : memref<16x32x32xbf16, #tpu.memory_space<vmem>>, vector<1x32x32xbf16>
    %493 = vector.shape_cast %492 : vector<1x32x32xbf16> to vector<32x32xbf16>
    %cst_336 = arith.constant dense<0.000000e+00> : vector<2x32xf32>
    %494 = tpu.matmul %254, %493, %cst_336 {dimension_numbers = #tpu.dot_dimension_numbers<[1], [0], [0], [1], [0, 0, 1, 1], [], []>} : vector<2x32xbf16>, vector<32x32xbf16>, vector<2x32xf32> -> vector<2x32xf32>
    %495 = arith.addf %491, %494 : vector<2x32xf32>
    %c15_337 = arith.constant 15 : index
    %c0_338 = arith.constant 0 : index
    %c0_339 = arith.constant 0 : index
    %496 = vector.load %arg5[%c15_337, %c0_338, %c0_339] : memref<16x32x32xbf16, #tpu.memory_space<vmem>>, vector<1x32x32xbf16>
    %497 = vector.shape_cast %496 : vector<1x32x32xbf16> to vector<32x32xbf16>
    %cst_340 = arith.constant dense<0.000000e+00> : vector<2x32xf32>
    %498 = tpu.matmul %265, %497, %cst_340 {dimension_numbers = #tpu.dot_dimension_numbers<[1], [0], [0], [1], [0, 0, 1, 1], [], []>} : vector<2x32xbf16>, vector<32x32xbf16>, vector<2x32xf32> -> vector<2x32xf32>
    %499 = arith.addf %495, %498 : vector<2x32xf32>
    %cst_341 = arith.constant 0.000000e+00 : f32
    %500 = vector.broadcast %cst_341 : f32 to vector<2x32xf32>
    %501 = arith.cmpf oge, %499, %500 : vector<2x32xf32>
    %cst_342 = arith.constant 0.00999999977 : f32
    %502 = vector.broadcast %cst_342 : f32 to vector<2x32xf32>
    %503 = arith.mulf %502, %499 : vector<2x32xf32>
    %504 = arith.select %501, %499, %503 : vector<2x32xi1>, vector<2x32xf32>
    %505 = arith.truncf %504 : vector<2x32xf32> to vector<2x32xbf16>
    %c2_343 = arith.constant 2 : index
    %c0_344 = arith.constant 0 : index
    %c0_345 = arith.constant 0 : index
    %506 = vector.load %arg7[%c2_343, %c0_344, %c0_345] : memref<4x32x32xbf16, #tpu.memory_space<vmem>>, vector<1x32x32xbf16>
    %507 = vector.shape_cast %506 : vector<1x32x32xbf16> to vector<32x32xbf16>
    %cst_346 = arith.constant dense<0.000000e+00> : vector<2x32xf32>
    %508 = tpu.matmul %505, %507, %cst_346 {dimension_numbers = #tpu.dot_dimension_numbers<[1], [0], [0], [1], [0, 0, 1, 1], [], []>} : vector<2x32xbf16>, vector<32x32xbf16>, vector<2x32xf32> -> vector<2x32xf32>
    %509 = arith.addf %434, %508 : vector<2x32xf32>
    %c0_347 = arith.constant 0 : index
    %c0_348 = arith.constant 0 : index
    %c0_349 = arith.constant 0 : index
    %510 = vector.load %arg5[%c0_347, %c0_348, %c0_349] : memref<16x32x32xbf16, #tpu.memory_space<vmem>>, vector<1x32x32xbf16>
    %511 = vector.shape_cast %510 : vector<1x32x32xbf16> to vector<32x32xbf16>
    %cst_350 = arith.constant dense<0.000000e+00> : vector<2x32xf32>
    %512 = tpu.matmul %78, %511, %cst_350 {dimension_numbers = #tpu.dot_dimension_numbers<[1], [0], [0], [1], [0, 0, 1, 1], [], []>} : vector<2x32xbf16>, vector<32x32xbf16>, vector<2x32xf32> -> vector<2x32xf32>
    %513 = vector.broadcast %284 : vector<1x32xf32> to vector<2x32xf32>
    %514 = arith.addf %513, %512 : vector<2x32xf32>
    %c1_351 = arith.constant 1 : index
    %c0_352 = arith.constant 0 : index
    %c0_353 = arith.constant 0 : index
    %515 = vector.load %arg5[%c1_351, %c0_352, %c0_353] : memref<16x32x32xbf16, #tpu.memory_space<vmem>>, vector<1x32x32xbf16>
    %516 = vector.shape_cast %515 : vector<1x32x32xbf16> to vector<32x32xbf16>
    %cst_354 = arith.constant dense<0.000000e+00> : vector<2x32xf32>
    %517 = tpu.matmul %89, %516, %cst_354 {dimension_numbers = #tpu.dot_dimension_numbers<[1], [0], [0], [1], [0, 0, 1, 1], [], []>} : vector<2x32xbf16>, vector<32x32xbf16>, vector<2x32xf32> -> vector<2x32xf32>
    %518 = arith.addf %514, %517 : vector<2x32xf32>
    %c2_355 = arith.constant 2 : index
    %c0_356 = arith.constant 0 : index
    %c0_357 = arith.constant 0 : index
    %519 = vector.load %arg5[%c2_355, %c0_356, %c0_357] : memref<16x32x32xbf16, #tpu.memory_space<vmem>>, vector<1x32x32xbf16>
    %520 = vector.shape_cast %519 : vector<1x32x32xbf16> to vector<32x32xbf16>
    %cst_358 = arith.constant dense<0.000000e+00> : vector<2x32xf32>
    %521 = tpu.matmul %100, %520, %cst_358 {dimension_numbers = #tpu.dot_dimension_numbers<[1], [0], [0], [1], [0, 0, 1, 1], [], []>} : vector<2x32xbf16>, vector<32x32xbf16>, vector<2x32xf32> -> vector<2x32xf32>
    %522 = arith.addf %518, %521 : vector<2x32xf32>
    %c3_359 = arith.constant 3 : index
    %c0_360 = arith.constant 0 : index
    %c0_361 = arith.constant 0 : index
    %523 = vector.load %arg5[%c3_359, %c0_360, %c0_361] : memref<16x32x32xbf16, #tpu.memory_space<vmem>>, vector<1x32x32xbf16>
    %524 = vector.shape_cast %523 : vector<1x32x32xbf16> to vector<32x32xbf16>
    %cst_362 = arith.constant dense<0.000000e+00> : vector<2x32xf32>
    %525 = tpu.matmul %111, %524, %cst_362 {dimension_numbers = #tpu.dot_dimension_numbers<[1], [0], [0], [1], [0, 0, 1, 1], [], []>} : vector<2x32xbf16>, vector<32x32xbf16>, vector<2x32xf32> -> vector<2x32xf32>
    %526 = arith.addf %522, %525 : vector<2x32xf32>
    %c4_363 = arith.constant 4 : index
    %c0_364 = arith.constant 0 : index
    %c0_365 = arith.constant 0 : index
    %527 = vector.load %arg5[%c4_363, %c0_364, %c0_365] : memref<16x32x32xbf16, #tpu.memory_space<vmem>>, vector<1x32x32xbf16>
    %528 = vector.shape_cast %527 : vector<1x32x32xbf16> to vector<32x32xbf16>
    %cst_366 = arith.constant dense<0.000000e+00> : vector<2x32xf32>
    %529 = tpu.matmul %133, %528, %cst_366 {dimension_numbers = #tpu.dot_dimension_numbers<[1], [0], [0], [1], [0, 0, 1, 1], [], []>} : vector<2x32xbf16>, vector<32x32xbf16>, vector<2x32xf32> -> vector<2x32xf32>
    %530 = arith.addf %526, %529 : vector<2x32xf32>
    %c5_367 = arith.constant 5 : index
    %c0_368 = arith.constant 0 : index
    %c0_369 = arith.constant 0 : index
    %531 = vector.load %arg5[%c5_367, %c0_368, %c0_369] : memref<16x32x32xbf16, #tpu.memory_space<vmem>>, vector<1x32x32xbf16>
    %532 = vector.shape_cast %531 : vector<1x32x32xbf16> to vector<32x32xbf16>
    %cst_370 = arith.constant dense<0.000000e+00> : vector<2x32xf32>
    %533 = tpu.matmul %144, %532, %cst_370 {dimension_numbers = #tpu.dot_dimension_numbers<[1], [0], [0], [1], [0, 0, 1, 1], [], []>} : vector<2x32xbf16>, vector<32x32xbf16>, vector<2x32xf32> -> vector<2x32xf32>
    %534 = arith.addf %530, %533 : vector<2x32xf32>
    %c6_371 = arith.constant 6 : index
    %c0_372 = arith.constant 0 : index
    %c0_373 = arith.constant 0 : index
    %535 = vector.load %arg5[%c6_371, %c0_372, %c0_373] : memref<16x32x32xbf16, #tpu.memory_space<vmem>>, vector<1x32x32xbf16>
    %536 = vector.shape_cast %535 : vector<1x32x32xbf16> to vector<32x32xbf16>
    %cst_374 = arith.constant dense<0.000000e+00> : vector<2x32xf32>
    %537 = tpu.matmul %155, %536, %cst_374 {dimension_numbers = #tpu.dot_dimension_numbers<[1], [0], [0], [1], [0, 0, 1, 1], [], []>} : vector<2x32xbf16>, vector<32x32xbf16>, vector<2x32xf32> -> vector<2x32xf32>
    %538 = arith.addf %534, %537 : vector<2x32xf32>
    %c7_375 = arith.constant 7 : index
    %c0_376 = arith.constant 0 : index
    %c0_377 = arith.constant 0 : index
    %539 = vector.load %arg5[%c7_375, %c0_376, %c0_377] : memref<16x32x32xbf16, #tpu.memory_space<vmem>>, vector<1x32x32xbf16>
    %540 = vector.shape_cast %539 : vector<1x32x32xbf16> to vector<32x32xbf16>
    %cst_378 = arith.constant dense<0.000000e+00> : vector<2x32xf32>
    %541 = tpu.matmul %166, %540, %cst_378 {dimension_numbers = #tpu.dot_dimension_numbers<[1], [0], [0], [1], [0, 0, 1, 1], [], []>} : vector<2x32xbf16>, vector<32x32xbf16>, vector<2x32xf32> -> vector<2x32xf32>
    %542 = arith.addf %538, %541 : vector<2x32xf32>
    %c8_379 = arith.constant 8 : index
    %c0_380 = arith.constant 0 : index
    %c0_381 = arith.constant 0 : index
    %543 = vector.load %arg5[%c8_379, %c0_380, %c0_381] : memref<16x32x32xbf16, #tpu.memory_space<vmem>>, vector<1x32x32xbf16>
    %544 = vector.shape_cast %543 : vector<1x32x32xbf16> to vector<32x32xbf16>
    %cst_382 = arith.constant dense<0.000000e+00> : vector<2x32xf32>
    %545 = tpu.matmul %188, %544, %cst_382 {dimension_numbers = #tpu.dot_dimension_numbers<[1], [0], [0], [1], [0, 0, 1, 1], [], []>} : vector<2x32xbf16>, vector<32x32xbf16>, vector<2x32xf32> -> vector<2x32xf32>
    %546 = arith.addf %542, %545 : vector<2x32xf32>
    %c9_383 = arith.constant 9 : index
    %c0_384 = arith.constant 0 : index
    %c0_385 = arith.constant 0 : index
    %547 = vector.load %arg5[%c9_383, %c0_384, %c0_385] : memref<16x32x32xbf16, #tpu.memory_space<vmem>>, vector<1x32x32xbf16>
    %548 = vector.shape_cast %547 : vector<1x32x32xbf16> to vector<32x32xbf16>
    %cst_386 = arith.constant dense<0.000000e+00> : vector<2x32xf32>
    %549 = tpu.matmul %199, %548, %cst_386 {dimension_numbers = #tpu.dot_dimension_numbers<[1], [0], [0], [1], [0, 0, 1, 1], [], []>} : vector<2x32xbf16>, vector<32x32xbf16>, vector<2x32xf32> -> vector<2x32xf32>
    %550 = arith.addf %546, %549 : vector<2x32xf32>
    %c10_387 = arith.constant 10 : index
    %c0_388 = arith.constant 0 : index
    %c0_389 = arith.constant 0 : index
    %551 = vector.load %arg5[%c10_387, %c0_388, %c0_389] : memref<16x32x32xbf16, #tpu.memory_space<vmem>>, vector<1x32x32xbf16>
    %552 = vector.shape_cast %551 : vector<1x32x32xbf16> to vector<32x32xbf16>
    %cst_390 = arith.constant dense<0.000000e+00> : vector<2x32xf32>
    %553 = tpu.matmul %210, %552, %cst_390 {dimension_numbers = #tpu.dot_dimension_numbers<[1], [0], [0], [1], [0, 0, 1, 1], [], []>} : vector<2x32xbf16>, vector<32x32xbf16>, vector<2x32xf32> -> vector<2x32xf32>
    %554 = arith.addf %550, %553 : vector<2x32xf32>
    %c11_391 = arith.constant 11 : index
    %c0_392 = arith.constant 0 : index
    %c0_393 = arith.constant 0 : index
    %555 = vector.load %arg5[%c11_391, %c0_392, %c0_393] : memref<16x32x32xbf16, #tpu.memory_space<vmem>>, vector<1x32x32xbf16>
    %556 = vector.shape_cast %555 : vector<1x32x32xbf16> to vector<32x32xbf16>
    %cst_394 = arith.constant dense<0.000000e+00> : vector<2x32xf32>
    %557 = tpu.matmul %221, %556, %cst_394 {dimension_numbers = #tpu.dot_dimension_numbers<[1], [0], [0], [1], [0, 0, 1, 1], [], []>} : vector<2x32xbf16>, vector<32x32xbf16>, vector<2x32xf32> -> vector<2x32xf32>
    %558 = arith.addf %554, %557 : vector<2x32xf32>
    %c12_395 = arith.constant 12 : index
    %c0_396 = arith.constant 0 : index
    %c0_397 = arith.constant 0 : index
    %559 = vector.load %arg5[%c12_395, %c0_396, %c0_397] : memref<16x32x32xbf16, #tpu.memory_space<vmem>>, vector<1x32x32xbf16>
    %560 = vector.shape_cast %559 : vector<1x32x32xbf16> to vector<32x32xbf16>
    %cst_398 = arith.constant dense<0.000000e+00> : vector<2x32xf32>
    %561 = tpu.matmul %243, %560, %cst_398 {dimension_numbers = #tpu.dot_dimension_numbers<[1], [0], [0], [1], [0, 0, 1, 1], [], []>} : vector<2x32xbf16>, vector<32x32xbf16>, vector<2x32xf32> -> vector<2x32xf32>
    %562 = arith.addf %558, %561 : vector<2x32xf32>
    %c13_399 = arith.constant 13 : index
    %c0_400 = arith.constant 0 : index
    %c0_401 = arith.constant 0 : index
    %563 = vector.load %arg5[%c13_399, %c0_400, %c0_401] : memref<16x32x32xbf16, #tpu.memory_space<vmem>>, vector<1x32x32xbf16>
    %564 = vector.shape_cast %563 : vector<1x32x32xbf16> to vector<32x32xbf16>
    %cst_402 = arith.constant dense<0.000000e+00> : vector<2x32xf32>
    %565 = tpu.matmul %254, %564, %cst_402 {dimension_numbers = #tpu.dot_dimension_numbers<[1], [0], [0], [1], [0, 0, 1, 1], [], []>} : vector<2x32xbf16>, vector<32x32xbf16>, vector<2x32xf32> -> vector<2x32xf32>
    %566 = arith.addf %562, %565 : vector<2x32xf32>
    %c14_403 = arith.constant 14 : index
    %c0_404 = arith.constant 0 : index
    %c0_405 = arith.constant 0 : index
    %567 = vector.load %arg5[%c14_403, %c0_404, %c0_405] : memref<16x32x32xbf16, #tpu.memory_space<vmem>>, vector<1x32x32xbf16>
    %568 = vector.shape_cast %567 : vector<1x32x32xbf16> to vector<32x32xbf16>
    %cst_406 = arith.constant dense<0.000000e+00> : vector<2x32xf32>
    %569 = tpu.matmul %265, %568, %cst_406 {dimension_numbers = #tpu.dot_dimension_numbers<[1], [0], [0], [1], [0, 0, 1, 1], [], []>} : vector<2x32xbf16>, vector<32x32xbf16>, vector<2x32xf32> -> vector<2x32xf32>
    %570 = arith.addf %566, %569 : vector<2x32xf32>
    %c15_407 = arith.constant 15 : index
    %c0_408 = arith.constant 0 : index
    %c0_409 = arith.constant 0 : index
    %571 = vector.load %arg5[%c15_407, %c0_408, %c0_409] : memref<16x32x32xbf16, #tpu.memory_space<vmem>>, vector<1x32x32xbf16>
    %572 = vector.shape_cast %571 : vector<1x32x32xbf16> to vector<32x32xbf16>
    %cst_410 = arith.constant dense<0.000000e+00> : vector<2x32xf32>
    %573 = tpu.matmul %276, %572, %cst_410 {dimension_numbers = #tpu.dot_dimension_numbers<[1], [0], [0], [1], [0, 0, 1, 1], [], []>} : vector<2x32xbf16>, vector<32x32xbf16>, vector<2x32xf32> -> vector<2x32xf32>
    %574 = arith.addf %570, %573 : vector<2x32xf32>
    %cst_411 = arith.constant 0.000000e+00 : f32
    %575 = vector.broadcast %cst_411 : f32 to vector<2x32xf32>
    %576 = arith.cmpf oge, %574, %575 : vector<2x32xf32>
    %cst_412 = arith.constant 0.00999999977 : f32
    %577 = vector.broadcast %cst_412 : f32 to vector<2x32xf32>
    %578 = arith.mulf %577, %574 : vector<2x32xf32>
    %579 = arith.select %576, %574, %578 : vector<2x32xi1>, vector<2x32xf32>
    %580 = arith.truncf %579 : vector<2x32xf32> to vector<2x32xbf16>
    %c3_413 = arith.constant 3 : index
    %c0_414 = arith.constant 0 : index
    %c0_415 = arith.constant 0 : index
    %581 = vector.load %arg7[%c3_413, %c0_414, %c0_415] : memref<4x32x32xbf16, #tpu.memory_space<vmem>>, vector<1x32x32xbf16>
    %582 = vector.shape_cast %581 : vector<1x32x32xbf16> to vector<32x32xbf16>
    %cst_416 = arith.constant dense<0.000000e+00> : vector<2x32xf32>
    %583 = tpu.matmul %580, %582, %cst_416 {dimension_numbers = #tpu.dot_dimension_numbers<[1], [0], [0], [1], [0, 0, 1, 1], [], []>} : vector<2x32xbf16>, vector<32x32xbf16>, vector<2x32xf32> -> vector<2x32xf32>
    %584 = arith.addf %509, %583 : vector<2x32xf32>
    %cst_417 = arith.constant 0.000000e+00 : f32
    %585 = vector.broadcast %cst_417 : f32 to vector<2x32xf32>
    %586 = arith.cmpf oge, %584, %585 : vector<2x32xf32>
    %cst_418 = arith.constant 0.00999999977 : f32
    %587 = vector.broadcast %cst_418 : f32 to vector<2x32xf32>
    %588 = arith.mulf %587, %584 : vector<2x32xf32>
    %589 = arith.select %586, %584, %588 : vector<2x32xi1>, vector<2x32xf32>
    %590 = arith.truncf %589 : vector<2x32xf32> to vector<2x32xbf16>
    %c0_419 = arith.constant 0 : index
    %c0_420 = arith.constant 0 : index
    %591 = vector.load %arg10[%c0_419, %c0_420] : memref<32x32xbf16, #tpu.memory_space<vmem>>, vector<32x32xbf16>
    %cst_421 = arith.constant dense<0.000000e+00> : vector<2x32xf32>
    %592 = tpu.matmul %590, %591, %cst_421 {dimension_numbers = #tpu.dot_dimension_numbers<[1], [0], [0], [1], [0, 0, 1, 1], [], []>} : vector<2x32xbf16>, vector<32x32xbf16>, vector<2x32xf32> -> vector<2x32xf32>
    %c0_422 = arith.constant 0 : index
    %c0_423 = arith.constant 0 : index
    %593 = vector.load %arg11[%c0_422, %c0_423] : memref<8x32xbf16, #tpu.memory_space<vmem>>, vector<8x32xbf16>
    %cst_424 = arith.constant dense<0.000000e+00> : vector<2x32xf32>
    %594 = tpu.matmul %278, %593, %cst_424 {dimension_numbers = #tpu.dot_dimension_numbers<[1], [0], [0], [1], [0, 0, 1, 1], [], []>} : vector<2x8xbf16>, vector<8x32xbf16>, vector<2x32xf32> -> vector<2x32xf32>
    %595 = arith.addf %592, %594 : vector<2x32xf32>
    %c0_425 = arith.constant 0 : index
    %c0_426 = arith.constant 0 : index
    %596 = vector.load %arg12[%c0_425, %c0_426] : memref<1x32xf32, #tpu.memory_space<vmem>>, vector<1x32xf32>
    %597 = vector.broadcast %596 : vector<1x32xf32> to vector<2x32xf32>
    %598 = arith.addf %595, %597 : vector<2x32xf32>
    %cst_427 = arith.constant 0.000000e+00 : f32
    %599 = vector.broadcast %cst_427 : f32 to vector<2x32xf32>
    %600 = arith.cmpf oge, %598, %599 : vector<2x32xf32>
    %cst_428 = arith.constant 0.00999999977 : f32
    %601 = vector.broadcast %cst_428 : f32 to vector<2x32xf32>
    %602 = arith.mulf %601, %598 : vector<2x32xf32>
    %603 = arith.select %600, %598, %602 : vector<2x32xi1>, vector<2x32xf32>
    %604 = arith.truncf %603 : vector<2x32xf32> to vector<2x32xbf16>
    %c0_429 = arith.constant 0 : index
    %c0_430 = arith.constant 0 : index
    %605 = vector.load %arg13[%c0_429, %c0_430] : memref<32x4xbf16, #tpu.memory_space<vmem>>, vector<32x4xbf16>
    %cst_431 = arith.constant dense<0.000000e+00> : vector<2x4xf32>
    %606 = tpu.matmul %604, %605, %cst_431 {dimension_numbers = #tpu.dot_dimension_numbers<[1], [0], [0], [1], [0, 0, 1, 1], [], []>} : vector<2x32xbf16>, vector<32x4xbf16>, vector<2x4xf32> -> vector<2x4xf32>
    %c0_432 = arith.constant 0 : index
    %c0_433 = arith.constant 0 : index
    %607 = vector.load %arg14[%c0_432, %c0_433] : memref<1x4xf32, #tpu.memory_space<vmem>>, vector<1x4xf32>
    %608 = vector.broadcast %607 : vector<1x4xf32> to vector<2x4xf32>
    %609 = arith.addf %606, %608 : vector<2x4xf32>
    %610 = tpu.iota {dimensions = array<i32: 1>} : vector<2x4xi32>
    %cst_434 = arith.constant -2.000000e+01 : f32
    %cst_435 = arith.constant 2.000000e+00 : f32
    %611 = vector.broadcast %cst_434 : f32 to vector<2x4xf32>
    %612 = arith.maximumf %611, %609 : vector<2x4xf32>
    %613 = vector.broadcast %cst_435 : f32 to vector<2x4xf32>
    %614 = arith.minimumf %613, %612 : vector<2x4xf32>
    %615 = math.exp %614 : vector<2x4xf32>
    %c2_i32 = arith.constant 2 : i32
    %616 = vector.broadcast %c2_i32 : i32 to vector<2x4xi32>
    %617 = arith.cmpi slt, %610, %616 : vector<2x4xi32>
    %618 = arith.select %617, %609, %615 : vector<2x4xi1>, vector<2x4xf32>
    %c0_436 = arith.constant 0 : index
    %c0_437 = arith.constant 0 : index
    %619 = vector.load %arg15[%c0_436, %c0_437] : memref<2x4xf32, #tpu.memory_space<vmem>>, vector<2x4xf32>
    tpu.vector_store %arg15[%c0_436, %c0_437], %618 {strides = array<i32>} : memref<2x4xf32, #tpu.memory_space<vmem>>, vector<2x4xf32>,
    return
  }
  func.func @transform_0(%arg0: i32) -> (i32, i32, i32) {
    %c0_i32 = arith.constant 0 : i32
    %c0_i32_0 = arith.constant 0 : i32
    %c0_i32_1 = arith.constant 0 : i32
    return %c0_i32, %arg0, %c0_i32_0 : i32, i32, i32
  }
  func.func @transform_1(%arg0: i32) -> (i32, i32) {
    %c0_i32 = arith.constant 0 : i32
    %c0_i32_0 = arith.constant 0 : i32
    return %arg0, %c0_i32 : i32, i32
  }
  func.func @transform_2(%arg0: i32) -> (i32, i32) {
    %c0_i32 = arith.constant 0 : i32
    %c0_i32_0 = arith.constant 0 : i32
    %c0_i32_1 = arith.constant 0 : i32
    return %c0_i32, %c0_i32_0 : i32, i32
  }
  func.func @transform_3(%arg0: i32) -> (i32, i32) {
    %c0_i32 = arith.constant 0 : i32
    %c0_i32_0 = arith.constant 0 : i32
    %c0_i32_1 = arith.constant 0 : i32
    return %c0_i32, %c0_i32_0 : i32, i32
  }
  func.func @transform_4(%arg0: i32) -> (i32, i32, i32) {
    %c0_i32 = arith.constant 0 : i32
    %c0_i32_0 = arith.constant 0 : i32
    %c0_i32_1 = arith.constant 0 : i32
    %c0_i32_2 = arith.constant 0 : i32
    return %c0_i32, %c0_i32_0, %c0_i32_1 : i32, i32, i32
  }
  func.func @transform_5(%arg0: i32) -> (i32, i32) {
    %c0_i32 = arith.constant 0 : i32
    %c0_i32_0 = arith.constant 0 : i32
    %c0_i32_1 = arith.constant 0 : i32
    return %c0_i32, %c0_i32_0 : i32, i32
  }
  func.func @transform_6(%arg0: i32) -> (i32, i32, i32) {
    %c0_i32 = arith.constant 0 : i32
    %c0_i32_0 = arith.constant 0 : i32
    %c0_i32_1 = arith.constant 0 : i32
    %c0_i32_2 = arith.constant 0 : i32
    return %c0_i32, %c0_i32_0, %c0_i32_1 : i32, i32, i32
  }
  func.func @transform_7(%arg0: i32) -> (i32, i32) {
    %c0_i32 = arith.constant 0 : i32
    %c0_i32_0 = arith.constant 0 : i32
    %c0_i32_1 = arith.constant 0 : i32
    return %c0_i32, %c0_i32_0 : i32, i32
  }
  func.func @transform_8(%arg0: i32) -> (i32, i32) {
    %c0_i32 = arith.constant 0 : i32
    %c0_i32_0 = arith.constant 0 : i32
    %c0_i32_1 = arith.constant 0 : i32
    return %c0_i32, %c0_i32_0 : i32, i32
  }
  func.func @transform_9(%arg0: i32) -> (i32, i32) {
    %c0_i32 = arith.constant 0 : i32
    %c0_i32_0 = arith.constant 0 : i32
    %c0_i32_1 = arith.constant 0 : i32
    return %c0_i32, %c0_i32_0 : i32, i32
  }
  func.func @transform_10(%arg0: i32) -> (i32, i32) {
    %c0_i32 = arith.constant 0 : i32
    %c0_i32_0 = arith.constant 0 : i32
    %c0_i32_1 = arith.constant 0 : i32
    return %c0_i32, %c0_i32_0 : i32, i32
  }
  func.func @transform_11(%arg0: i32) -> (i32, i32) {
    %c0_i32 = arith.constant 0 : i32
    %c0_i32_0 = arith.constant 0 : i32
    %c0_i32_1 = arith.constant 0 : i32
    return %c0_i32, %c0_i32_0 : i32, i32
  }
  func.func @transform_12(%arg0: i32) -> (i32, i32) {
    %c0_i32 = arith.constant 0 : i32
    %c0_i32_0 = arith.constant 0 : i32
    %c0_i32_1 = arith.constant 0 : i32
    return %c0_i32, %c0_i32_0 : i32, i32
  }
  func.func @transform_13(%arg0: i32) -> (i32, i32) {
    %c0_i32 = arith.constant 0 : i32
    %c0_i32_0 = arith.constant 0 : i32
    %c0_i32_1 = arith.constant 0 : i32
    return %c0_i32, %c0_i32_0 : i32, i32
  }
  func.func @transform_14(%arg0: i32) -> (i32, i32) {
    %c0_i32 = arith.constant 0 : i32
    %c0_i32_0 = arith.constant 0 : i32
    return %arg0, %c0_i32 : i32, i32
  }
}

</mosaic_0001>

<bundles_post_ra>
// kernel: conv_actor_forward.3
= control target key start
LH: loop header
LB: loop body
LE: loop exit
PB: predicated region body
PF: predicated region fallthrough
CT: control target
= control target key end

     0   :  { %v4907_v0 = vmov 0   ;;  %vm3987_vm0 = vcmask 257024   ;;  %s6810_s1 = inlined_call_operand.vmem [shape: bf16[256,32], index: 1, kind: input, shape index: {}]   ;;  %s6811_s0 = inlined_call_operand.vmem [shape: s8[1682,256], index: 0, kind: input, shape index: {}]   ;;  %s6812_s2 = inlined_call_operand.vmem [shape: f32[1,32], index: 2, kind: input, shape index: {}]   ;;  %s6813_s3 = inlined_call_operand.vmem [shape: bf16[1682,32], index: 3, kind: output, shape index: {}]  }
   0x1   :  { %1629 = vmatprep.subr.bf16.mxu0 %v4907_v0  ;;  %4855 = vmatprep.subr.bf16.mxu1 %v4907_v0  ;;  %v4888_v1 = vld [vmem:[%s6810_s1] sm:$0xff]   ;;  %v4889_v2 = vld [vmem:[%s6810_s1 + $0x8] sm:$0xff]   ;;  %v4890_v3 = vld [vmem:[%s6810_s1 + $0x10] sm:$0xff]  }
   0x2   :  { %1630 = vmatpush1.bf16.msra.mxu0 %v4888_v1  ;;  %4871 = vmatpush1.bf16.msra.mxu1 %v4888_v1  ;;  %v4891_v4 = vld [vmem:[%s6810_s1 + $0x18] sm:$0xff]   ;;  %v4892_v5 = vld [vmem:[%s6810_s1 + $0x20] sm:$0xff]   ;;  %v4961_v7 = vld [vmem:[%s6811_s0 + $0x1a8] sm:$0xff]  }
   0x3   :  { %1631 = vmatprep.subr.bf16.mxu0 %v4907_v0  ;;  %4856 = vmatprep.subr.bf16.mxu1 %v4907_v0  ;;  %v4956_v6 = vld [vmem:[%s6811_s0] sm:$0xff]   ;;  %v364_v10 = vunpack.c.l.s8.bf16 %v4961_v7  ;;  %v365_v11 = vunpack.c.h.s8.bf16 %v4961_v7  ;;  %v4893_v12 = vld [vmem:[%s6810_s1 + $0x28] sm:$0xff]   ;;  %v4894_v15 = vld [vmem:[%s6810_s1 + $0x30] sm:$0xff]  }
   0x4   :  { %v258_v8 = vunpack.c.l.s8.bf16 %v4956_v6  ;;  %v259_v9 = vunpack.c.h.s8.bf16 %v4956_v6  ;;  %v4895_v16 = vld [vmem:[%s6810_s1 + $0x38] sm:$0xff]   ;;  %v4896_v17 = vld [vmem:[%s6810_s1 + $0x40] sm:$0xff]   ;;  %v4897_v18 = vld [vmem:[%s6810_s1 + $0x48] sm:$0xff]  }
   0x5   :  { %v4312_v14 = vcombine.high %v364_v10, %v365_v11  ;;  %v4898_v19 = vld [vmem:[%s6810_s1 + $0x50] sm:$0xff]   ;;  %v4899_v20 = vld [vmem:[%s6810_s1 + $0x58] sm:$0xff]   ;;  %v4900_v21 = vld [vmem:[%s6810_s1 + $0x60] sm:$0xff]   ;;  %v4311_v32 = vcombine.low %v364_v10, %v365_v11 }
   0x6   :  { %1632 = vmatpush1.bf16.msra.mxu0 %v4889_v2  ;;  %4872 = vmatpush1.bf16.msra.mxu1 %v4889_v2  ;;  %v4206_v13 = vcombine.high %v258_v8, %v259_v9  ;;  %v4901_v22 = vld [vmem:[%s6810_s1 + $0x68] sm:$0xff]   ;;  %v4902_v23 = vld [vmem:[%s6810_s1 + $0x70] sm:$0xff]   ;;  %v4903_v26 = vld [vmem:[%s6810_s1 + $0x78] sm:$0xff]   ;;  %v4205_v31 = vcombine.low %v258_v8, %v259_v9 }
   0x7   :  { %1633 = vmatprep.subr.bf16.mxu0 %v4907_v0  ;;  %4857 = vmatprep.subr.bf16.mxu1 %v4907_v0  ;;  %v17_v24 = vld [vmem:[%s6811_s0 + $0x8] sm:$0xff]   ;;  %v123_v25 = vld [vmem:[%s6811_s0 + $0x1b0] sm:$0xff]   ;;  %v125_v36 = vld [vmem:[%s6811_s0 + $0x1b8] sm:$0xff]  }
   0x8   :  { %1661 = vmatprep.mubr.bf16.mxu0 %v4206_v13  ;;  %2085 = vmatprep.mubr.bf16.mxu1 %v4312_v14  ;;  %v260_v27 = vunpack.c.l.s8.bf16 %v17_v24  ;;  %v261_v28 = vunpack.c.h.s8.bf16 %v17_v24  ;;  %v366_v29 = vunpack.c.l.s8.bf16 %v123_v25  ;;  %v367_v30 = vunpack.c.h.s8.bf16 %v123_v25  ;;  %v19_v35 = vld [vmem:[%s6811_s0 + $0x10] sm:$0xff]   ;;  %v21_v45 = vld [vmem:[%s6811_s0 + $0x18] sm:$0xff]   ;;  %v127_v46 = vld [vmem:[%s6811_s0 + $0x1c0] sm:$0xff]  }
   0x9   :  { %v262_v37 = vunpack.c.l.s8.bf16 %v19_v35  ;;  %v263_v38 = vunpack.c.h.s8.bf16 %v19_v35  ;;  %v368_v39 = vunpack.c.l.s8.bf16 %v125_v36  ;;  %v369_v40 = vunpack.c.h.s8.bf16 %v125_v36  ;;  %v23_v55 = vld [vmem:[%s6811_s0 + $0x20] sm:$0xff]   ;;  %v129_v56 = vld [vmem:[%s6811_s0 + $0x1c8] sm:$0xff]   ;;  %v131_v2 = vld [vmem:[%s6811_s0 + $0x1d0] sm:$0xff]  }
   0xa   :  { %1634 = vmatpush1.bf16.msra.mxu0 %v4890_v3  ;;  %4873 = vmatpush1.bf16.msra.mxu1 %v4890_v3  ;;  %v4208_v33 = vcombine.high %v260_v27, %v261_v28  ;;  %v4314_v34 = vcombine.high %v366_v29, %v367_v30  ;;  %v4207_v41 = vcombine.low %v260_v27, %v261_v28  ;;  %v264_v47 = vunpack.c.l.s8.bf16 %v21_v45  ;;  %v25_v1 = vld [vmem:[%s6811_s0 + $0x28] sm:$0xff]   ;;  %v27_v11 = vld [vmem:[%s6811_s0 + $0x30] sm:$0xff]  }
   0xb   :  { %1635 = vmatprep.subr.bf16.mxu0 %v4907_v0  ;;  %4858 = vmatprep.subr.bf16.mxu1 %v4907_v0  ;;  %v4313_v42 = vcombine.low %v366_v29, %v367_v30  ;;  %v4210_v43 = vcombine.high %v262_v37, %v263_v38  ;;  %v4316_v44 = vcombine.high %v368_v39, %v369_v40  ;;  %v265_v48 = vunpack.c.h.s8.bf16 %v21_v45 }
   0xc   :  { %v370_v49 = vunpack.c.l.s8.bf16 %v127_v46  ;;  %v371_v50 = vunpack.c.h.s8.bf16 %v127_v46  ;;  %v4209_v51 = vcombine.low %v262_v37, %v263_v38  ;;  %v4315_v52 = vcombine.low %v368_v39, %v369_v40 }
   0xd   :  { %v4212_v53 = vcombine.high %v264_v47, %v265_v48  ;;  %v266_v57 = vunpack.c.l.s8.bf16 %v23_v55  ;;  %v267_v58 = vunpack.c.h.s8.bf16 %v23_v55  ;;  %v372_v59 = vunpack.c.l.s8.bf16 %v129_v56 }
   0xe   :  { %1636 = vmatpush1.bf16.msra.mxu0 %v4891_v4  ;;  %4874 = vmatpush1.bf16.msra.mxu1 %v4891_v4  ;;  %v4318_v54 = vcombine.high %v370_v49, %v371_v50  ;;  %v373_v60 = vunpack.c.h.s8.bf16 %v129_v56  ;;  %v4211_v61 = vcombine.low %v264_v47, %v265_v48  ;;  %v4317_v62 = vcombine.low %v370_v49, %v371_v50 }
   0xf   :  { %1637 = vmatprep.subr.bf16.mxu0 %v4907_v0  ;;  %4859 = vmatprep.subr.bf16.mxu1 %v4907_v0  ;;  %v4214_v63 = vcombine.high %v266_v57, %v267_v58  ;;  %v268_v3 = vunpack.c.l.s8.bf16 %v25_v1  ;;  %v269_v4 = vunpack.c.h.s8.bf16 %v25_v1  ;;  %v375_v6 = vunpack.c.h.s8.bf16 %v131_v2 }
  0x10   :  { %v4213_v7 = vcombine.low %v266_v57, %v267_v58  ;;  %v4319_v8 = vcombine.low %v372_v59, %v373_v60  ;;  %v270_v13 = vunpack.c.l.s8.bf16 %v27_v11  ;;  %v271_v14 = vunpack.c.h.s8.bf16 %v27_v11 }
  0x11   :  { %v4216_v9 = vcombine.high %v268_v3, %v269_v4 }
  0x12   :  { %1638 = vmatpush1.bf16.msra.mxu0 %v4892_v5  ;;  %4875 = vmatpush1.bf16.msra.mxu1 %v4892_v5  ;;  %v374_v5 = vunpack.c.l.s8.bf16 %v131_v2  ;;  %v4217_v27 = vcombine.low %v270_v13, %v271_v14 }
  0x13   :  { %1639 = vmatprep.subr.bf16.mxu0 %v4907_v0  ;;  %4860 = vmatprep.subr.bf16.mxu1 %v4907_v0 }
  0x14   :  { %v4322_v10 = vcombine.high %v374_v5, %v375_v6 }
  0x16   :  { %1640 = vmatpush1.bf16.msra.mxu0 %v4893_v12  ;;  %4876 = vmatpush1.bf16.msra.mxu1 %v4893_v12  ;;  %v133_v12 = vld [vmem:[%s6811_s0 + $0x1d8] sm:$0xff]  }
  0x17   :  { %1641 = vmatprep.subr.bf16.mxu0 %v4907_v0  ;;  %4861 = vmatprep.subr.bf16.mxu1 %v4907_v0 }
  0x1a   :  { %1642 = vmatpush1.bf16.msra.mxu0 %v4894_v15  ;;  %4877 = vmatpush1.bf16.msra.mxu1 %v4894_v15  ;;  %v376_v15 = vunpack.c.l.s8.bf16 %v133_v12 }
  0x1b   :  { %1643 = vmatprep.subr.bf16.mxu0 %v4907_v0  ;;  %4862 = vmatprep.subr.bf16.mxu1 %v4907_v0 }
  0x1e   :  { %1644 = vmatpush1.bf16.msra.mxu0 %v4895_v16  ;;  %4878 = vmatpush1.bf16.msra.mxu1 %v4895_v16  ;;  %v377_v16 = vunpack.c.h.s8.bf16 %v133_v12 }
  0x1f   :  { %1645 = vmatprep.subr.bf16.mxu0 %v4907_v0  ;;  %4863 = vmatprep.subr.bf16.mxu1 %v4907_v0 }
  0x20   :  { %v4323_v28 = vcombine.low %v376_v15, %v377_v16 }
  0x22   :  { %1646 = vmatpush1.bf16.msra.mxu0 %v4896_v17  ;;  %4879 = vmatpush1.bf16.msra.mxu1 %v4896_v17  ;;  %v4215_v17 = vcombine.low %v268_v3, %v269_v4 }
  0x23   :  { %1647 = vmatprep.subr.bf16.mxu0 %v4907_v0  ;;  %4864 = vmatprep.subr.bf16.mxu1 %v4907_v0 }
  0x26   :  { %1648 = vmatpush1.bf16.msra.mxu0 %v4897_v18  ;;  %4880 = vmatpush1.bf16.msra.mxu1 %v4897_v18  ;;  %v4321_v18 = vcombine.low %v374_v5, %v375_v6 }
  0x27   :  { %1649 = vmatprep.subr.bf16.mxu0 %v4907_v0  ;;  %4865 = vmatprep.subr.bf16.mxu1 %v4907_v0 }
  0x2a   :  { %1650 = vmatpush1.bf16.msra.mxu0 %v4898_v19  ;;  %4881 = vmatpush1.bf16.msra.mxu1 %v4898_v19  ;;  %v4218_v19 = vcombine.high %v270_v13, %v271_v14 }
  0x2b   :  { %1651 = vmatprep.subr.bf16.mxu0 %v4907_v0  ;;  %4866 = vmatprep.subr.bf16.mxu1 %v4907_v0 }
  0x2e   :  { %1652 = vmatpush1.bf16.msra.mxu0 %v4899_v20  ;;  %4882 = vmatpush1.bf16.msra.mxu1 %v4899_v20  ;;  %v4324_v20 = vcombine.high %v376_v15, %v377_v16 }
  0x2f   :  { %1653 = vmatprep.subr.bf16.mxu0 %v4907_v0  ;;  %4867 = vmatprep.subr.bf16.mxu1 %v4907_v0 }
  0x32   :  { %1654 = vmatpush1.bf16.msra.mxu0 %v4900_v21  ;;  %4883 = vmatpush1.bf16.msra.mxu1 %v4900_v21  ;;  %v29_v21 = vld [vmem:[%s6811_s0 + $0x38] sm:$0xff]  }
  0x33   :  { %1655 = vmatprep.subr.bf16.mxu0 %v4907_v0  ;;  %4868 = vmatprep.subr.bf16.mxu1 %v4907_v0  ;;  %v273_v24 = vunpack.c.h.s8.bf16 %v29_v21 }
  0x36   :  { %1656 = vmatpush1.bf16.msra.mxu0 %v4901_v22  ;;  %4884 = vmatpush1.bf16.msra.mxu1 %v4901_v22  ;;  %v135_v22 = vld [vmem:[%s6811_s0 + $0x1e0] sm:$0xff]  }
  0x37   :  { %1657 = vmatprep.subr.bf16.mxu0 %v4907_v0  ;;  %4869 = vmatprep.subr.bf16.mxu1 %v4907_v0  ;;  %v378_v25 = vunpack.c.l.s8.bf16 %v135_v22 }
  0x3a   :  { %1658 = vmatpush1.bf16.msra.mxu0 %v4902_v23  ;;  %4885 = vmatpush1.bf16.msra.mxu1 %v4902_v23  ;;  %v272_v23 = vunpack.c.l.s8.bf16 %v29_v21 }
  0x3b   :  { %1659 = vmatprep.subr.bf16.mxu0 %v4907_v0  ;;  %4870 = vmatprep.subr.bf16.mxu1 %v4907_v0  ;;  %v4320_v0 = vcombine.high %v372_v59, %v373_v60 }
  0x3c   :  { %v4220_v29 = vcombine.high %v272_v23, %v273_v24  ;;  %v4219_v37 = vcombine.low %v272_v23, %v273_v24 }
  0x3e   :  { %1660 = vmatpush1.bf16.msra.mxu0 %v4903_v26  ;;  %4886 = vmatpush1.bf16.msra.mxu1 %v4903_v26  ;;  %v379_v26 = vunpack.c.h.s8.bf16 %v135_v22 }
  0x40   :  { %v4326_v30 = vcombine.high %v378_v25, %v379_v26  ;;  %v4325_v38 = vcombine.low %v378_v25, %v379_v26 }
  0x41   :  { %1662 = vmatmul.mubr.bf16.vlgmr.msra.gmra.mrb[0].mxu0 %v4205_v31  ;;  %2086 = vmatmul.mubr.bf16.vlgmr.msra.gmra.mrb[0].mxu1 %v4311_v32  ;;  %v31_v31 = vld [vmem:[%s6811_s0 + $0x40] sm:$0xff]   ;;  %v137_v32 = vld [vmem:[%s6811_s0 + $0x1e8] sm:$0xff]  }
  0x42   :  { %1669 = vmatprep.mubr.bf16.mxu0 %v4208_v33  ;;  %2093 = vmatprep.mubr.bf16.mxu1 %v4314_v34  ;;  %v274_v33 = vunpack.c.l.s8.bf16 %v31_v31  ;;  %v275_v34 = vunpack.c.h.s8.bf16 %v31_v31  ;;  %v380_v35 = vunpack.c.l.s8.bf16 %v137_v32  ;;  %v381_v36 = vunpack.c.h.s8.bf16 %v137_v32 }
  0x44   :  { %v4222_v39 = vcombine.high %v274_v33, %v275_v34  ;;  %v4328_v40 = vcombine.high %v380_v35, %v381_v36  ;;  %v4221_v47 = vcombine.low %v274_v33, %v275_v34  ;;  %v4327_v48 = vcombine.low %v380_v35, %v381_v36 }
  0x49   :  { %1670 = vmatmul.mubr.bf16.gmra.mrb[4].mxu0 %v4207_v41  ;;  %2094 = vmatmul.mubr.bf16.gmra.mrb[4].mxu1 %v4313_v42  ;;  %v33_v41 = vld [vmem:[%s6811_s0 + $0x48] sm:$0xff]   ;;  %v139_v42 = vld [vmem:[%s6811_s0 + $0x1f0] sm:$0xff]  }
  0x4a   :  { %1677 = vmatprep.mubr.bf16.mxu0 %v4210_v43  ;;  %2101 = vmatprep.mubr.bf16.mxu1 %v4316_v44  ;;  %v276_v43 = vunpack.c.l.s8.bf16 %v33_v41  ;;  %v277_v44 = vunpack.c.h.s8.bf16 %v33_v41  ;;  %v382_v45 = vunpack.c.l.s8.bf16 %v139_v42  ;;  %v383_v46 = vunpack.c.h.s8.bf16 %v139_v42 }
  0x4c   :  { %v4224_v49 = vcombine.high %v276_v43, %v277_v44  ;;  %v4330_v50 = vcombine.high %v382_v45, %v383_v46  ;;  %v4223_v57 = vcombine.low %v276_v43, %v277_v44  ;;  %v4329_v58 = vcombine.low %v382_v45, %v383_v46 }
  0x51   :  { %1678 = vmatmul.mubr.bf16.gmra.mrb[8].mxu0 %v4209_v51  ;;  %2102 = vmatmul.mubr.bf16.gmra.mrb[8].mxu1 %v4315_v52  ;;  %v35_v51 = vld [vmem:[%s6811_s0 + $0x50] sm:$0xff]   ;;  %v141_v52 = vld [vmem:[%s6811_s0 + $0x1f8] sm:$0xff]  }
  0x52   :  { %1685 = vmatprep.mubr.bf16.mxu0 %v4212_v53  ;;  %2109 = vmatprep.mubr.bf16.mxu1 %v4318_v54  ;;  %v278_v53 = vunpack.c.l.s8.bf16 %v35_v51  ;;  %v279_v54 = vunpack.c.h.s8.bf16 %v35_v51  ;;  %v384_v55 = vunpack.c.l.s8.bf16 %v141_v52  ;;  %v385_v56 = vunpack.c.h.s8.bf16 %v141_v52 }
  0x54   :  { %v4226_v59 = vcombine.high %v278_v53, %v279_v54  ;;  %v4332_v60 = vcombine.high %v384_v55, %v385_v56  ;;  %v4225_v3 = vcombine.low %v278_v53, %v279_v54  ;;  %v4331_v4 = vcombine.low %v384_v55, %v385_v56 }
  0x59   :  { %1686 = vmatmul.mubr.bf16.gmra.mrb[12].mxu0 %v4211_v61  ;;  %2110 = vmatmul.mubr.bf16.gmra.mrb[12].mxu1 %v4317_v62  ;;  %v37_v61 = vld [vmem:[%s6811_s0 + $0x58] sm:$0xff]   ;;  %v143_v62 = vld [vmem:[%s6811_s0 + $0x200] sm:$0xff]  }
  0x5a   :  { %1693 = vmatprep.mubr.bf16.mxu0 %v4214_v63  ;;  %2117 = vmatprep.mubr.bf16.mxu1 %v4320_v0  ;;  %v280_v63 = vunpack.c.l.s8.bf16 %v37_v61  ;;  %v281_v0 = vunpack.c.h.s8.bf16 %v37_v61  ;;  %v386_v1 = vunpack.c.l.s8.bf16 %v143_v62  ;;  %v387_v2 = vunpack.c.h.s8.bf16 %v143_v62 }
  0x5c   :  { %v4228_v5 = vcombine.high %v280_v63, %v281_v0  ;;  %v4334_v6 = vcombine.high %v386_v1, %v387_v2  ;;  %v4227_v13 = vcombine.low %v280_v63, %v281_v0  ;;  %v4333_v14 = vcombine.low %v386_v1, %v387_v2 }
  0x61   :  { %1694 = vmatmul.mubr.bf16.gmra.mrb[16].mxu0 %v4213_v7  ;;  %2118 = vmatmul.mubr.bf16.gmra.mrb[16].mxu1 %v4319_v8  ;;  %v39_v7 = vld [vmem:[%s6811_s0 + $0x60] sm:$0xff]   ;;  %v145_v8 = vld [vmem:[%s6811_s0 + $0x208] sm:$0xff]  }
  0x62   :  { %1701 = vmatprep.mubr.bf16.mxu0 %v4216_v9  ;;  %2125 = vmatprep.mubr.bf16.mxu1 %v4322_v10  ;;  %v282_v9 = vunpack.c.l.s8.bf16 %v39_v7  ;;  %v283_v10 = vunpack.c.h.s8.bf16 %v39_v7  ;;  %v388_v11 = vunpack.c.l.s8.bf16 %v145_v8  ;;  %v389_v12 = vunpack.c.h.s8.bf16 %v145_v8 }
  0x64   :  { %v4230_v15 = vcombine.high %v282_v9, %v283_v10  ;;  %v4336_v16 = vcombine.high %v388_v11, %v389_v12  ;;  %v4229_v23 = vcombine.low %v282_v9, %v283_v10  ;;  %v4335_v24 = vcombine.low %v388_v11, %v389_v12 }
  0x69   :  { %1702 = vmatmul.mubr.bf16.gmra.mrb[20].mxu0 %v4215_v17  ;;  %2126 = vmatmul.mubr.bf16.gmra.mrb[20].mxu1 %v4321_v18  ;;  %v41_v17 = vld [vmem:[%s6811_s0 + $0x68] sm:$0xff]   ;;  %v147_v18 = vld [vmem:[%s6811_s0 + $0x210] sm:$0xff]  }
  0x6a   :  { %1709 = vmatprep.mubr.bf16.mxu0 %v4218_v19  ;;  %2133 = vmatprep.mubr.bf16.mxu1 %v4324_v20  ;;  %v284_v19 = vunpack.c.l.s8.bf16 %v41_v17  ;;  %v285_v20 = vunpack.c.h.s8.bf16 %v41_v17  ;;  %v390_v21 = vunpack.c.l.s8.bf16 %v147_v18  ;;  %v391_v22 = vunpack.c.h.s8.bf16 %v147_v18 }
  0x6c   :  { %v4232_v25 = vcombine.high %v284_v19, %v285_v20  ;;  %v4338_v26 = vcombine.high %v390_v21, %v391_v22  ;;  %v4231_v33 = vcombine.low %v284_v19, %v285_v20  ;;  %v4337_v34 = vcombine.low %v390_v21, %v391_v22 }
  0x71   :  { %1710 = vmatmul.mubr.bf16.gmra.mrb[24].mxu0 %v4217_v27  ;;  %2134 = vmatmul.mubr.bf16.gmra.mrb[24].mxu1 %v4323_v28  ;;  %v43_v27 = vld [vmem:[%s6811_s0 + $0x70] sm:$0xff]   ;;  %v149_v28 = vld [vmem:[%s6811_s0 + $0x218] sm:$0xff]  }
  0x72   :  { %1717 = vmatprep.mubr.bf16.mxu0 %v4220_v29  ;;  %2141 = vmatprep.mubr.bf16.mxu1 %v4326_v30  ;;  %v286_v29 = vunpack.c.l.s8.bf16 %v43_v27  ;;  %v287_v30 = vunpack.c.h.s8.bf16 %v43_v27  ;;  %v392_v31 = vunpack.c.l.s8.bf16 %v149_v28  ;;  %v393_v32 = vunpack.c.h.s8.bf16 %v149_v28 }
  0x74   :  { %v4234_v35 = vcombine.high %v286_v29, %v287_v30  ;;  %v4340_v36 = vcombine.high %v392_v31, %v393_v32  ;;  %v4233_v43 = vcombine.low %v286_v29, %v287_v30  ;;  %v4339_v44 = vcombine.low %v392_v31, %v393_v32 }
  0x79   :  { %1718 = vmatmul.mubr.bf16.gmra.mrb[28].mxu0 %v4219_v37  ;;  %2142 = vmatmul.mubr.bf16.gmra.mrb[28].mxu1 %v4325_v38  ;;  %v45_v37 = vld [vmem:[%s6811_s0 + $0x78] sm:$0xff]   ;;  %v151_v38 = vld [vmem:[%s6811_s0 + $0x220] sm:$0xff]  }
  0x7a   :  { %1725 = vmatprep.mubr.bf16.mxu0 %v4222_v39  ;;  %2149 = vmatprep.mubr.bf16.mxu1 %v4328_v40  ;;  %v288_v39 = vunpack.c.l.s8.bf16 %v45_v37  ;;  %v289_v40 = vunpack.c.h.s8.bf16 %v45_v37  ;;  %v394_v41 = vunpack.c.l.s8.bf16 %v151_v38  ;;  %v395_v42 = vunpack.c.h.s8.bf16 %v151_v38 }
  0x7c   :  { %v4236_v45 = vcombine.high %v288_v39, %v289_v40  ;;  %v4342_v46 = vcombine.high %v394_v41, %v395_v42  ;;  %v4235_v53 = vcombine.low %v288_v39, %v289_v40  ;;  %v4341_v54 = vcombine.low %v394_v41, %v395_v42 }
  0x81   :  { %1726 = vmatmul.mubr.bf16.gmra.mrb[32].mxu0 %v4221_v47  ;;  %2150 = vmatmul.mubr.bf16.gmra.mrb[32].mxu1 %v4327_v48  ;;  %v47_v47 = vld [vmem:[%s6811_s0 + $0x80] sm:$0xff]   ;;  %v153_v48 = vld [vmem:[%s6811_s0 + $0x228] sm:$0xff]  }
  0x82   :  { %1733 = vmatprep.mubr.bf16.mxu0 %v4224_v49  ;;  %2157 = vmatprep.mubr.bf16.mxu1 %v4330_v50  ;;  %v290_v49 = vunpack.c.l.s8.bf16 %v47_v47  ;;  %v291_v50 = vunpack.c.h.s8.bf16 %v47_v47  ;;  %v396_v51 = vunpack.c.l.s8.bf16 %v153_v48  ;;  %v397_v52 = vunpack.c.h.s8.bf16 %v153_v48 }
  0x84   :  { %v4238_v55 = vcombine.high %v290_v49, %v291_v50  ;;  %v4344_v56 = vcombine.high %v396_v51, %v397_v52  ;;  %v4237_v63 = vcombine.low %v290_v49, %v291_v50  ;;  %v4343_v0 = vcombine.low %v396_v51, %v397_v52 }
  0x89   :  { %1734 = vmatmul.mubr.bf16.gmra.mrb[36].mxu0 %v4223_v57  ;;  %2158 = vmatmul.mubr.bf16.gmra.mrb[36].mxu1 %v4329_v58  ;;  %v49_v57 = vld [vmem:[%s6811_s0 + $0x88] sm:$0xff]   ;;  %v155_v58 = vld [vmem:[%s6811_s0 + $0x230] sm:$0xff]  }
  0x8a   :  { %1741 = vmatprep.mubr.bf16.mxu0 %v4226_v59  ;;  %2165 = vmatprep.mubr.bf16.mxu1 %v4332_v60  ;;  %v292_v59 = vunpack.c.l.s8.bf16 %v49_v57  ;;  %v293_v60 = vunpack.c.h.s8.bf16 %v49_v57  ;;  %v398_v61 = vunpack.c.l.s8.bf16 %v155_v58  ;;  %v399_v62 = vunpack.c.h.s8.bf16 %v155_v58 }
  0x8c   :  { %v4240_v1 = vcombine.high %v292_v59, %v293_v60  ;;  %v4346_v2 = vcombine.high %v398_v61, %v399_v62  ;;  %v4239_v9 = vcombine.low %v292_v59, %v293_v60  ;;  %v4345_v10 = vcombine.low %v398_v61, %v399_v62 }
  0x91   :  { %1742 = vmatmul.mubr.bf16.gmra.mrb[40].mxu0 %v4225_v3  ;;  %2166 = vmatmul.mubr.bf16.gmra.mrb[40].mxu1 %v4331_v4  ;;  %v51_v3 = vld [vmem:[%s6811_s0 + $0x90] sm:$0xff]   ;;  %v157_v4 = vld [vmem:[%s6811_s0 + $0x238] sm:$0xff]  }
  0x92   :  { %1749 = vmatprep.mubr.bf16.mxu0 %v4228_v5  ;;  %2173 = vmatprep.mubr.bf16.mxu1 %v4334_v6  ;;  %v294_v5 = vunpack.c.l.s8.bf16 %v51_v3  ;;  %v295_v6 = vunpack.c.h.s8.bf16 %v51_v3  ;;  %v400_v7 = vunpack.c.l.s8.bf16 %v157_v4  ;;  %v401_v8 = vunpack.c.h.s8.bf16 %v157_v4 }
  0x94   :  { %v4242_v11 = vcombine.high %v294_v5, %v295_v6  ;;  %v4348_v12 = vcombine.high %v400_v7, %v401_v8  ;;  %v4241_v19 = vcombine.low %v294_v5, %v295_v6  ;;  %v4347_v20 = vcombine.low %v400_v7, %v401_v8 }
  0x99   :  { %1750 = vmatmul.mubr.bf16.gmra.mrb[44].mxu0 %v4227_v13  ;;  %2174 = vmatmul.mubr.bf16.gmra.mrb[44].mxu1 %v4333_v14  ;;  %v53_v13 = vld [vmem:[%s6811_s0 + $0x98] sm:$0xff]   ;;  %v159_v14 = vld [vmem:[%s6811_s0 + $0x240] sm:$0xff]  }
  0x9a   :  { %1757 = vmatprep.mubr.bf16.mxu0 %v4230_v15  ;;  %2181 = vmatprep.mubr.bf16.mxu1 %v4336_v16  ;;  %v296_v15 = vunpack.c.l.s8.bf16 %v53_v13  ;;  %v297_v16 = vunpack.c.h.s8.bf16 %v53_v13  ;;  %v402_v17 = vunpack.c.l.s8.bf16 %v159_v14  ;;  %v403_v18 = vunpack.c.h.s8.bf16 %v159_v14 }
  0x9c   :  { %v4244_v21 = vcombine.high %v296_v15, %v297_v16  ;;  %v4350_v22 = vcombine.high %v402_v17, %v403_v18  ;;  %v4243_v29 = vcombine.low %v296_v15, %v297_v16  ;;  %v4349_v30 = vcombine.low %v402_v17, %v403_v18 }
  0xa1   :  { %1758 = vmatmul.mubr.bf16.gmra.mrb[48].mxu0 %v4229_v23  ;;  %2182 = vmatmul.mubr.bf16.gmra.mrb[48].mxu1 %v4335_v24  ;;  %v55_v23 = vld [vmem:[%s6811_s0 + $0xa0] sm:$0xff]   ;;  %v161_v24 = vld [vmem:[%s6811_s0 + $0x248] sm:$0xff]  }
  0xa2   :  { %1765 = vmatprep.mubr.bf16.mxu0 %v4232_v25  ;;  %2189 = vmatprep.mubr.bf16.mxu1 %v4338_v26  ;;  %v298_v25 = vunpack.c.l.s8.bf16 %v55_v23  ;;  %v299_v26 = vunpack.c.h.s8.bf16 %v55_v23  ;;  %v404_v27 = vunpack.c.l.s8.bf16 %v161_v24  ;;  %v405_v28 = vunpack.c.h.s8.bf16 %v161_v24 }
  0xa4   :  { %v4246_v31 = vcombine.high %v298_v25, %v299_v26  ;;  %v4352_v32 = vcombine.high %v404_v27, %v405_v28  ;;  %v4245_v39 = vcombine.low %v298_v25, %v299_v26  ;;  %v4351_v40 = vcombine.low %v404_v27, %v405_v28 }
  0xa9   :  { %1766 = vmatmul.mubr.bf16.gmra.mrb[52].mxu0 %v4231_v33  ;;  %2190 = vmatmul.mubr.bf16.gmra.mrb[52].mxu1 %v4337_v34  ;;  %v57_v33 = vld [vmem:[%s6811_s0 + $0xa8] sm:$0xff]   ;;  %v163_v34 = vld [vmem:[%s6811_s0 + $0x250] sm:$0xff]  }
  0xaa   :  { %1773 = vmatprep.mubr.bf16.mxu0 %v4234_v35  ;;  %2197 = vmatprep.mubr.bf16.mxu1 %v4340_v36  ;;  %v300_v35 = vunpack.c.l.s8.bf16 %v57_v33  ;;  %v301_v36 = vunpack.c.h.s8.bf16 %v57_v33  ;;  %v406_v37 = vunpack.c.l.s8.bf16 %v163_v34  ;;  %v407_v38 = vunpack.c.h.s8.bf16 %v163_v34 }
  0xac   :  { %v4248_v41 = vcombine.high %v300_v35, %v301_v36  ;;  %v4354_v42 = vcombine.high %v406_v37, %v407_v38  ;;  %v4247_v49 = vcombine.low %v300_v35, %v301_v36  ;;  %v4353_v50 = vcombine.low %v406_v37, %v407_v38 }
  0xb1   :  { %1774 = vmatmul.mubr.bf16.gmra.mrb[56].mxu0 %v4233_v43  ;;  %2198 = vmatmul.mubr.bf16.gmra.mrb[56].mxu1 %v4339_v44  ;;  %v59_v43 = vld [vmem:[%s6811_s0 + $0xb0] sm:$0xff]   ;;  %v165_v44 = vld [vmem:[%s6811_s0 + $0x258] sm:$0xff]  }
  0xb2   :  { %1781 = vmatprep.mubr.bf16.mxu0 %v4236_v45  ;;  %2205 = vmatprep.mubr.bf16.mxu1 %v4342_v46  ;;  %v302_v45 = vunpack.c.l.s8.bf16 %v59_v43  ;;  %v303_v46 = vunpack.c.h.s8.bf16 %v59_v43  ;;  %v408_v47 = vunpack.c.l.s8.bf16 %v165_v44  ;;  %v409_v48 = vunpack.c.h.s8.bf16 %v165_v44 }
  0xb4   :  { %v4250_v51 = vcombine.high %v302_v45, %v303_v46  ;;  %v4356_v52 = vcombine.high %v408_v47, %v409_v48  ;;  %v4249_v59 = vcombine.low %v302_v45, %v303_v46  ;;  %v4355_v60 = vcombine.low %v408_v47, %v409_v48 }
  0xb9   :  { %1782 = vmatmul.mubr.bf16.gmra.mrb[60].mxu0 %v4235_v53  ;;  %2206 = vmatmul.mubr.bf16.gmra.mrb[60].mxu1 %v4341_v54  ;;  %v61_v53 = vld [vmem:[%s6811_s0 + $0xb8] sm:$0xff]   ;;  %v167_v54 = vld [vmem:[%s6811_s0 + $0x260] sm:$0xff]  }
  0xba   :  { %1789 = vmatprep.mubr.bf16.mxu0 %v4238_v55  ;;  %2213 = vmatprep.mubr.bf16.mxu1 %v4344_v56  ;;  %v304_v55 = vunpack.c.l.s8.bf16 %v61_v53  ;;  %v305_v56 = vunpack.c.h.s8.bf16 %v61_v53  ;;  %v410_v57 = vunpack.c.l.s8.bf16 %v167_v54  ;;  %v411_v58 = vunpack.c.h.s8.bf16 %v167_v54  ;;  %v5216_v54 = vld [vmem:[%s6811_s0 + $0xe8] sm:$0xff]  }
  0xbc   :  { %v4252_v61 = vcombine.high %v304_v55, %v305_v56  ;;  %v4358_v62 = vcombine.high %v410_v57, %v411_v58  ;;  %v4251_v5 = vcombine.low %v304_v55, %v305_v56  ;;  %v4357_v6 = vcombine.low %v410_v57, %v411_v58 }
  0xc1   :  { %1790 = vmatmul.mubr.bf16.gmra.mrb[64].mxu0 %v4237_v63  ;;  %2214 = vmatmul.mubr.bf16.gmra.mrb[64].mxu1 %v4343_v0  ;;  %v63_v63 = vld [vmem:[%s6811_s0 + $0xc0] sm:$0xff]   ;;  %v169_v0 = vld [vmem:[%s6811_s0 + $0x268] sm:$0xff]  }
  0xc2   :  { %1797 = vmatprep.mubr.bf16.mxu0 %v4240_v1  ;;  %2221 = vmatprep.mubr.bf16.mxu1 %v4346_v2  ;;  %v306_v1 = vunpack.c.l.s8.bf16 %v63_v63  ;;  %v307_v2 = vunpack.c.h.s8.bf16 %v63_v63  ;;  %v412_v3 = vunpack.c.l.s8.bf16 %v169_v0  ;;  %v413_v4 = vunpack.c.h.s8.bf16 %v169_v0 }
  0xc4   :  { %v4254_v7 = vcombine.high %v306_v1, %v307_v2  ;;  %v4360_v8 = vcombine.high %v412_v3, %v413_v4  ;;  %v4253_v15 = vcombine.low %v306_v1, %v307_v2  ;;  %v4359_v16 = vcombine.low %v412_v3, %v413_v4 }
  0xc5   :  { %v316_v2 = vunpack.c.l.s8.bf16 %v5216_v54  ;;  %v317_v3 = vunpack.c.h.s8.bf16 %v5216_v54 }
  0xc9   :  { %1798 = vmatmul.mubr.bf16.gmra.mrb[68].mxu0 %v4239_v9  ;;  %2222 = vmatmul.mubr.bf16.gmra.mrb[68].mxu1 %v4345_v10  ;;  %v65_v9 = vld [vmem:[%s6811_s0 + $0xc8] sm:$0xff]   ;;  %v171_v10 = vld [vmem:[%s6811_s0 + $0x270] sm:$0xff]  }
  0xca   :  { %1805 = vmatprep.mubr.bf16.mxu0 %v4242_v11  ;;  %2229 = vmatprep.mubr.bf16.mxu1 %v4348_v12  ;;  %v308_v11 = vunpack.c.l.s8.bf16 %v65_v9  ;;  %v309_v12 = vunpack.c.h.s8.bf16 %v65_v9  ;;  %v414_v13 = vunpack.c.l.s8.bf16 %v171_v10  ;;  %v415_v14 = vunpack.c.h.s8.bf16 %v171_v10 }
  0xcc   :  { %v4256_v17 = vcombine.high %v308_v11, %v309_v12  ;;  %v4362_v18 = vcombine.high %v414_v13, %v415_v14  ;;  %v4255_v25 = vcombine.low %v308_v11, %v309_v12  ;;  %v4361_v26 = vcombine.low %v414_v13, %v415_v14 }
  0xd1   :  { %1806 = vmatmul.mubr.bf16.gmra.mrb[72].mxu0 %v4241_v19  ;;  %2230 = vmatmul.mubr.bf16.gmra.mrb[72].mxu1 %v4347_v20  ;;  %v67_v19 = vld [vmem:[%s6811_s0 + $0xd0] sm:$0xff]   ;;  %v173_v20 = vld [vmem:[%s6811_s0 + $0x278] sm:$0xff]  }
  0xd2   :  { %1813 = vmatprep.mubr.bf16.mxu0 %v4244_v21  ;;  %2237 = vmatprep.mubr.bf16.mxu1 %v4350_v22  ;;  %v310_v21 = vunpack.c.l.s8.bf16 %v67_v19  ;;  %v311_v22 = vunpack.c.h.s8.bf16 %v67_v19  ;;  %v416_v23 = vunpack.c.l.s8.bf16 %v173_v20  ;;  %v417_v24 = vunpack.c.h.s8.bf16 %v173_v20 }
  0xd4   :  { %v4258_v27 = vcombine.high %v310_v21, %v311_v22  ;;  %v4364_v28 = vcombine.high %v416_v23, %v417_v24  ;;  %v4257_v35 = vcombine.low %v310_v21, %v311_v22  ;;  %v4363_v36 = vcombine.low %v416_v23, %v417_v24  ;;  %v5242_v23 = vld [vmem:[%s6811_s0 + $0xf0] sm:$0xff]  }
  0xd9   :  { %1814 = vmatmul.mubr.bf16.gmra.mrb[76].mxu0 %v4243_v29  ;;  %2238 = vmatmul.mubr.bf16.gmra.mrb[76].mxu1 %v4349_v30  ;;  %v69_v29 = vld [vmem:[%s6811_s0 + $0xd8] sm:$0xff]   ;;  %v175_v30 = vld [vmem:[%s6811_s0 + $0x280] sm:$0xff]  }
  0xda   :  { %1821 = vmatprep.mubr.bf16.mxu0 %v4246_v31  ;;  %2245 = vmatprep.mubr.bf16.mxu1 %v4352_v32  ;;  %v312_v31 = vunpack.c.l.s8.bf16 %v69_v29  ;;  %v313_v32 = vunpack.c.h.s8.bf16 %v69_v29  ;;  %v418_v33 = vunpack.c.l.s8.bf16 %v175_v30  ;;  %v419_v34 = vunpack.c.h.s8.bf16 %v175_v30  ;;  %v5251_v29 = vld [vmem:[%s6811_s0 + $0x298] sm:$0xff]  }
  0xdc   :  { %v4260_v37 = vcombine.high %v312_v31, %v313_v32  ;;  %v4366_v38 = vcombine.high %v418_v33, %v419_v34  ;;  %v4365_v53 = vcombine.low %v418_v33, %v419_v34 }
  0xe1   :  { %1822 = vmatmul.mubr.bf16.gmra.mrb[80].mxu0 %v4245_v39  ;;  %2246 = vmatmul.mubr.bf16.gmra.mrb[80].mxu1 %v4351_v40  ;;  %v71_v39 = vld [vmem:[%s6811_s0 + $0xe0] sm:$0xff]   ;;  %v177_v40 = vld [vmem:[%s6811_s0 + $0x288] sm:$0xff]  }
  0xe2   :  { %1829 = vmatprep.mubr.bf16.mxu0 %v4248_v41  ;;  %2253 = vmatprep.mubr.bf16.mxu1 %v4354_v42  ;;  %v5209_v41 = vld [vmem:[%s6812_s2] ss:$0 sm:$0xff]  ;;  %v314_v42 = vunpack.c.l.s8.bf16 %v71_v39  ;;  %v315_v43 = vunpack.c.h.s8.bf16 %v71_v39  ;;  %v420_v44 = vunpack.c.l.s8.bf16 %v177_v40  ;;  %v421_v45 = vunpack.c.h.s8.bf16 %v177_v40 }
  0xe3   :  { %v424_v40 = vunpack.c.l.s8.bf16 %v5251_v29 }
  0xe4   :  { %v4262_v57 = vcombine.high %v314_v42, %v315_v43  ;;  %v4368_v58 = vcombine.high %v420_v44, %v421_v45 }
  0xe9   :  { %1830 = vmatmul.mubr.bf16.gmra.mrb[84].mxu0 %v4247_v49  ;;  %2254 = vmatmul.mubr.bf16.gmra.mrb[84].mxu1 %v4353_v50 }
  0xea   :  { %1837 = vmatprep.mubr.bf16.mxu0 %v4250_v51  ;;  %2261 = vmatprep.mubr.bf16.mxu1 %v4356_v52  ;;  %v4259_v52 = vcombine.low %v312_v31, %v313_v32 }
  0xf1   :  { %1838 = vmatmul.mubr.bf16.gmra.mrb[88].mxu0 %v4249_v59  ;;  %2262 = vmatmul.mubr.bf16.gmra.mrb[88].mxu1 %v4355_v60  ;;  %v5221_v59 = vld [vmem:[%s6811_s0 + $0x290] sm:$0xff]  }
  0xf2   :  { %1845 = vmatprep.mubr.bf16.mxu0 %v4252_v61  ;;  %2269 = vmatprep.mubr.bf16.mxu1 %v4358_v62 }
  0xf9   :  { %1846 = vmatmul.mubr.bf16.gmra.mrb[92].mxu0 %v4251_v5  ;;  %2270 = vmatmul.mubr.bf16.gmra.mrb[92].mxu1 %v4357_v6  ;;  %v422_v6 = vunpack.c.l.s8.bf16 %v5221_v59 }
  0xfa   :  { %1853 = vmatprep.mubr.bf16.mxu0 %v4254_v7  ;;  %2277 = vmatprep.mubr.bf16.mxu1 %v4360_v8  ;;  %v423_v7 = vunpack.c.h.s8.bf16 %v5221_v59  ;;  %v5284_v59 = vld [vmem:[%s6811_s0 + $0xf8] sm:$0xff]  }
 0x101   :  { %1854 = vmatmul.mubr.bf16.gmra.mrb[96].mxu0 %v4253_v15  ;;  %2278 = vmatmul.mubr.bf16.gmra.mrb[96].mxu1 %v4359_v16  ;;  %v4261_v15 = vcombine.low %v314_v42, %v315_v43  ;;  %v4367_v16 = vcombine.low %v420_v44, %v421_v45  ;;  %v425_v42 = vunpack.c.h.s8.bf16 %v5251_v29  ;;  %v5326_v29 = vld [vmem:[%s6811_s0 + $0x100] sm:$0xff]  }
 0x102   :  { %1861 = vmatprep.mubr.bf16.mxu0 %v4256_v17  ;;  %2285 = vmatprep.mubr.bf16.mxu1 %v4362_v18 }
 0x109   :  { %1862 = vmatmul.mubr.bf16.gmra.mrb[100].mxu0 %v4255_v25  ;;  %2286 = vmatmul.mubr.bf16.gmra.mrb[100].mxu1 %v4361_v26 }
 0x10a   :  { %1869 = vmatprep.mubr.bf16.mxu0 %v4258_v27  ;;  %2293 = vmatprep.mubr.bf16.mxu1 %v4364_v28  ;;  %v4264_v27 = vcombine.high %v316_v2, %v317_v3  ;;  %v4370_v28 = vcombine.high %v422_v6, %v423_v7 }
 0x111   :  { %1870 = vmatmul.mubr.bf16.gmra.mrb[104].mxu0 %v4257_v35  ;;  %2294 = vmatmul.mubr.bf16.gmra.mrb[104].mxu1 %v4363_v36  ;;  %v318_v36 = vunpack.c.l.s8.bf16 %v5242_v23 }
 0x112   :  { %1877 = vmatprep.mubr.bf16.mxu0 %v4260_v37  ;;  %2301 = vmatprep.mubr.bf16.mxu1 %v4366_v38  ;;  %v319_v37 = vunpack.c.h.s8.bf16 %v5242_v23 }
 0x114   :  { %v1663_v46 = vpop.f32.mrb[0].mxu0  ;;  %v2087_v47 = vpop.f32.mrb[0].mxu1  ;;  %v4266_v54 = vcombine.high %v318_v36, %v319_v37 }
 0x115   :  { %v1664_v48 = vadd.f32 %v5209_v41, %v1663_v46  ;;  %v2088_v49 = vadd.f32 %v5209_v41, %v2087_v47  ;;  %v1665_v50 = vpop.f32.mrb[1].mxu0  ;;  %v2089_v51 = vpop.f32.mrb[1].mxu1 }
 0x116   :  { %v1666_v55 = vpop.f32.mrb[2].mxu0  ;;  %v2090_v56 = vpop.f32.mrb[2].mxu1  ;;  %v4263_v50 = vcombine.low %v316_v2, %v317_v3  ;;  %v4369_v51 = vcombine.low %v422_v6, %v423_v7  ;;  %v320_v7 = vunpack.c.l.s8.bf16 %v5284_v59 }
 0x117   :  { %vm2509_vm1 = vcmp.ge.f32.partialorder %v1664_v48, 0.0  ;;  %v2720_v60 = vmul.f32 0.01, %v1664_v48  ;;  %vm2615_vm2 = vcmp.ge.f32.partialorder %v2088_v49, 0.0  ;;  %v2826_v61 = vmul.f32 0.01, %v2088_v49 }
 0x118   :  { %v1667_v62 = vadd.f32 %v5209_v41, %v1666_v55  ;;  %v2091_v63 = vadd.f32 %v5209_v41, %v2090_v56  ;;  %v1668_v0 = vpop.f32.mrb[3].mxu0  ;;  %v2092_v1 = vpop.f32.mrb[3].mxu1 }
 0x119   :  { %v2931_v4 = vsel %vm2509_vm1, %v1664_v48, %v2720_v60  ;;  %v3037_v5 = vsel %vm2615_vm2, %v2088_v49, %v2826_v61  ;;  %1878 = vmatmul.mubr.bf16.gmra.mrb[108].mxu0 %v4259_v52  ;;  %2302 = vmatmul.mubr.bf16.gmra.mrb[108].mxu1 %v4365_v53  ;;  %v5293_v0 = vld [vmem:[%s6811_s0 + $0x2a0] sm:$0xff]  }
 0x11a   :  { %v4644_v8 = vpack.c.bf16 %v2931_v4, %v2931_v4  ;;  %v4750_v9 = vpack.c.bf16 %v3037_v5, %v3037_v5  ;;  %vm2510_vm3 = vcmp.ge.f32.partialorder %v1667_v62, 0.0  ;;  %v2721_v10 = vmul.f32 0.01, %v1667_v62  ;;  %1885 = vmatprep.mubr.bf16.mxu0 %v4262_v57  ;;  %2309 = vmatprep.mubr.bf16.mxu1 %v4368_v58 }
 0x11b   :  { %vm2616_vm4 = vcmp.ge.f32.partialorder %v2091_v63, 0.0  ;;  %v2827_v11 = vmul.f32 0.01, %v2091_v63 }
 0x11c   :  { %3988 = vst.msk [vmem:[%s6813_s3] sm:$0xf] %vm3987_vm0, %v4644_v8  ;;  %4094 = vst.msk [vmem:[%s6813_s3 + $0x1a8] sm:$0xf] %vm3987_vm0, %v4750_v9  ;;  %v2932_v12 = vsel %vm2510_vm3, %v1667_v62, %v2721_v10  ;;  %v1671_v13 = vpop.f32.mrb[4].mxu0  ;;  %v2095_v14 = vpop.f32.mrb[4].mxu1  ;;  %v321_v8 = vunpack.c.h.s8.bf16 %v5284_v59 }
 0x11d   :  { %v4645_v17 = vpack.c.bf16 %v2932_v12, %v2932_v12  ;;  %v3038_v18 = vsel %vm2616_vm4, %v2091_v63, %v2827_v11  ;;  %v1672_v19 = vadd.f32 %v5209_v41, %v1671_v13  ;;  %v2096_v20 = vadd.f32 %v5209_v41, %v2095_v14  ;;  %v1673_v21 = vpop.f32.mrb[5].mxu0  ;;  %v2097_v22 = vpop.f32.mrb[5].mxu1 }
 0x11e   :  { %v4751_v24 = vpack.c.bf16 %v3038_v18, %v3038_v18  ;;  %v1674_v25 = vpop.f32.mrb[6].mxu0  ;;  %v2098_v26 = vpop.f32.mrb[6].mxu1  ;;  %v4372_v63 = vcombine.high %v424_v40, %v425_v42  ;;  %v426_v11 = vunpack.c.l.s8.bf16 %v5293_v0  ;;  %v427_v12 = vunpack.c.h.s8.bf16 %v5293_v0  ;;  %v5368_v0 = vld [vmem:[%s6811_s0 + $0x108] sm:$0xff]  }
 0x11f   :  { %3989 = vst.msk [vmem:[%s6813_s3 + $0x4] sm:$0xf] %vm3987_vm0, %v4645_v17  ;;  %vm2511_vm5 = vcmp.ge.f32.partialorder %v1672_v19, 0.0  ;;  %v2722_v30 = vmul.f32 0.01, %v1672_v19  ;;  %vm2617_vm6 = vcmp.ge.f32.partialorder %v2096_v20, 0.0  ;;  %v1675_v32 = vadd.f32 %v5209_v41, %v1674_v25 }
 0x120   :  { %v2828_v31 = vmul.f32 0.01, %v2096_v20  ;;  %4095 = vst.msk [vmem:[%s6813_s3 + $0x1ac] sm:$0xf] %vm3987_vm0, %v4751_v24  ;;  %v2099_v33 = vadd.f32 %v5209_v41, %v2098_v26  ;;  %v1676_v34 = vpop.f32.mrb[7].mxu0  ;;  %v2100_v35 = vpop.f32.mrb[7].mxu1  ;;  %v4371_v21 = vcombine.low %v424_v40, %v425_v42  ;;  %v4268_v23 = vcombine.high %v320_v7, %v321_v8 }
 0x121   :  { %v2933_v38 = vsel %vm2511_vm5, %v1672_v19, %v2722_v30  ;;  %1886 = vmatmul.mubr.bf16.gmra.mrb[112].mxu0 %v4261_v15  ;;  %2310 = vmatmul.mubr.bf16.gmra.mrb[112].mxu1 %v4367_v16  ;;  %vm2512_vm7 = vcmp.ge.f32.partialorder %v1675_v32, 0.0  ;;  %v2723_v45 = vmul.f32 0.01, %v1675_v32  ;;  %v5335_v34 = vld [vmem:[%s6811_s0 + $0x2a8] sm:$0xff]   ;;  %v322_v42 = vunpack.c.l.s8.bf16 %v5326_v29 }
 0x122   :  { %v3039_v39 = vsel %vm2617_vm6, %v2096_v20, %v2828_v31  ;;  %v4646_v43 = vpack.c.bf16 %v2933_v38, %v2933_v38  ;;  %1893 = vmatprep.mubr.bf16.mxu0 %v4264_v27  ;;  %2317 = vmatprep.mubr.bf16.mxu1 %v4370_v28  ;;  %vm2618_vm8 = vcmp.ge.f32.partialorder %v2099_v33, 0.0  ;;  %v2829_v46 = vmul.f32 0.01, %v2099_v33 }
 0x123   :  { %v4752_v44 = vpack.c.bf16 %v3039_v39, %v3039_v39  ;;  %v2934_v47 = vsel %vm2512_vm7, %v1675_v32, %v2723_v45  ;;  %v4265_v20 = vcombine.low %v318_v36, %v319_v37 }
 0x124   :  { %3990 = vst.msk [vmem:[%s6813_s3 + $0x8] sm:$0xf] %vm3987_vm0, %v4646_v43  ;;  %v1679_v48 = vpop.f32.mrb[8].mxu0  ;;  %v2103_v49 = vpop.f32.mrb[8].mxu1  ;;  %v4647_v52 = vpack.c.bf16 %v2934_v47, %v2934_v47  ;;  %v3040_v53 = vsel %vm2618_vm8, %v2099_v33, %v2829_v46  ;;  %v4374_v33 = vcombine.high %v426_v11, %v427_v12  ;;  %v323_v43 = vunpack.c.h.s8.bf16 %v5326_v29 }
 0x125   :  { %4096 = vst.msk [vmem:[%s6813_s3 + $0x1b0] sm:$0xf] %vm3987_vm0, %v4752_v44  ;;  %v1680_v55 = vadd.f32 %v5209_v41, %v1679_v48  ;;  %v2104_v56 = vadd.f32 %v5209_v41, %v2103_v49  ;;  %v1681_v57 = vpop.f32.mrb[9].mxu0  ;;  %v2105_v58 = vpop.f32.mrb[9].mxu1  ;;  %v4753_v60 = vpack.c.bf16 %v3040_v53, %v3040_v53  ;;  %v428_v46 = vunpack.c.l.s8.bf16 %v5335_v34 }
 0x126   :  { %v1682_v61 = vpop.f32.mrb[10].mxu0  ;;  %v2106_v62 = vpop.f32.mrb[10].mxu1  ;;  %3991 = vst.msk [vmem:[%s6813_s3 + $0xc] sm:$0xf] %vm3987_vm0, %v4647_v52  ;;  %v429_v47 = vunpack.c.h.s8.bf16 %v5335_v34  ;;  %v4373_v57 = vcombine.low %v426_v11, %v427_v12  ;;  %v4270_v59 = vcombine.high %v322_v42, %v323_v43  ;;  %v324_v12 = vunpack.c.l.s8.bf16 %v5368_v0  ;;  %v5410_v34 = vld [vmem:[%s6811_s0 + $0x110] sm:$0xff]  }
 0x127   :  { %vm2513_vm9 = vcmp.ge.f32.partialorder %v1680_v55, 0.0  ;;  %v2724_v1 = vmul.f32 0.01, %v1680_v55  ;;  %vm2619_vm10 = vcmp.ge.f32.partialorder %v2104_v56, 0.0  ;;  %v2830_v2 = vmul.f32 0.01, %v2104_v56 }
 0x128   :  { %4097 = vst.msk [vmem:[%s6813_s3 + $0x1b4] sm:$0xf] %vm3987_vm0, %v4753_v60  ;;  %v1683_v3 = vadd.f32 %v5209_v41, %v1682_v61  ;;  %v2107_v4 = vadd.f32 %v5209_v41, %v2106_v62  ;;  %v1684_v5 = vpop.f32.mrb[11].mxu0  ;;  %v2108_v6 = vpop.f32.mrb[11].mxu1 }
 0x129   :  { %v2935_v9 = vsel %vm2513_vm9, %v1680_v55, %v2724_v1  ;;  %v3041_v10 = vsel %vm2619_vm10, %v2104_v56, %v2830_v2  ;;  %1894 = vmatmul.mubr.bf16.gmra.mrb[116].mxu0 %v4263_v50  ;;  %2318 = vmatmul.mubr.bf16.gmra.mrb[116].mxu1 %v4369_v51  ;;  %v4267_v56 = vcombine.low %v320_v7, %v321_v8  ;;  %v5377_v5 = vld [vmem:[%s6811_s0 + $0x2b0] sm:$0xff]  }
 0x12a   :  { %v4648_v13 = vpack.c.bf16 %v2935_v9, %v2935_v9  ;;  %v4754_v14 = vpack.c.bf16 %v3041_v10, %v3041_v10  ;;  %vm2514_vm11 = vcmp.ge.f32.partialorder %v1683_v3, 0.0  ;;  %v2725_v15 = vmul.f32 0.01, %v1683_v3  ;;  %1901 = vmatprep.mubr.bf16.mxu0 %v4266_v54  ;;  %2325 = vmatprep.mubr.bf16.mxu1 %v4372_v63 }
 0x12b   :  { %vm2620_vm12 = vcmp.ge.f32.partialorder %v2107_v4, 0.0  ;;  %v2831_v16 = vmul.f32 0.01, %v2107_v4 }
 0x12c   :  { %3992 = vst.msk [vmem:[%s6813_s3 + $0x10] sm:$0xf] %vm3987_vm0, %v4648_v13  ;;  %4098 = vst.msk [vmem:[%s6813_s3 + $0x1b8] sm:$0xf] %vm3987_vm0, %v4754_v14  ;;  %v2936_v17 = vsel %vm2514_vm11, %v1683_v3, %v2725_v15  ;;  %v1687_v18 = vpop.f32.mrb[12].mxu0  ;;  %v2111_v19 = vpop.f32.mrb[12].mxu1  ;;  %v325_v13 = vunpack.c.h.s8.bf16 %v5368_v0 }
 0x12d   :  { %v4649_v22 = vpack.c.bf16 %v2936_v17, %v2936_v17  ;;  %v3042_v24 = vsel %vm2620_vm12, %v2107_v4, %v2831_v16  ;;  %v1688_v25 = vadd.f32 %v5209_v41, %v1687_v18  ;;  %v2112_v26 = vadd.f32 %v5209_v41, %v2111_v19  ;;  %v1689_v27 = vpop.f32.mrb[13].mxu0  ;;  %v2113_v28 = vpop.f32.mrb[13].mxu1 }
 0x12e   :  { %v4755_v30 = vpack.c.bf16 %v3042_v24, %v3042_v24  ;;  %v1690_v31 = vpop.f32.mrb[14].mxu0  ;;  %v2114_v32 = vpop.f32.mrb[14].mxu1  ;;  %v4376_v4 = vcombine.high %v428_v46, %v429_v47  ;;  %v430_v16 = vunpack.c.l.s8.bf16 %v5377_v5  ;;  %v431_v17 = vunpack.c.h.s8.bf16 %v5377_v5  ;;  %v5452_v5 = vld [vmem:[%s6811_s0 + $0x118] sm:$0xff]  }
 0x12f   :  { %3993 = vst.msk [vmem:[%s6813_s3 + $0x14] sm:$0xf] %vm3987_vm0, %v4649_v22  ;;  %vm2515_vm13 = vcmp.ge.f32.partialorder %v1688_v25, 0.0  ;;  %v2726_v35 = vmul.f32 0.01, %v1688_v25  ;;  %vm2621_vm14 = vcmp.ge.f32.partialorder %v2112_v26, 0.0  ;;  %v1691_v37 = vadd.f32 %v5209_v41, %v1690_v31 }
 0x130   :  { %v2832_v36 = vmul.f32 0.01, %v2112_v26  ;;  %4099 = vst.msk [vmem:[%s6813_s3 + $0x1bc] sm:$0xf] %vm3987_vm0, %v4755_v30  ;;  %v2115_v38 = vadd.f32 %v5209_v41, %v2114_v32  ;;  %v1692_v39 = vpop.f32.mrb[15].mxu0  ;;  %v2116_v40 = vpop.f32.mrb[15].mxu1  ;;  %v4375_v27 = vcombine.low %v428_v46, %v429_v47  ;;  %v4272_v29 = vcombine.high %v324_v12, %v325_v13 }
 0x131   :  { %v2937_v44 = vsel %vm2515_vm13, %v1688_v25, %v2726_v35  ;;  %1902 = vmatmul.mubr.bf16.gmra.mrb[120].mxu0 %v4265_v20  ;;  %2326 = vmatmul.mubr.bf16.gmra.mrb[120].mxu1 %v4371_v21  ;;  %vm2516_vm15 = vcmp.ge.f32.partialorder %v1691_v37, 0.0  ;;  %v2727_v50 = vmul.f32 0.01, %v1691_v37  ;;  %v5419_v39 = vld [vmem:[%s6811_s0 + $0x2b8] sm:$0xff]   ;;  %v326_v47 = vunpack.c.l.s8.bf16 %v5410_v34 }
 0x132   :  { %v3043_v45 = vsel %vm2621_vm14, %v2112_v26, %v2832_v36  ;;  %v4650_v48 = vpack.c.bf16 %v2937_v44, %v2937_v44  ;;  %1909 = vmatprep.mubr.bf16.mxu0 %v4268_v23  ;;  %2333 = vmatprep.mubr.bf16.mxu1 %v4374_v33  ;;  %vm2622_vm1 = vcmp.ge.f32.partialorder %v2115_v38, 0.0  ;;  %v2833_v51 = vmul.f32 0.01, %v2115_v38 }
 0x133   :  { %v4756_v49 = vpack.c.bf16 %v3043_v45, %v3043_v45  ;;  %v2938_v52 = vsel %vm2516_vm15, %v1691_v37, %v2727_v50  ;;  %v4269_v26 = vcombine.low %v322_v42, %v323_v43 }
 0x134   :  { %3994 = vst.msk [vmem:[%s6813_s3 + $0x18] sm:$0xf] %vm3987_vm0, %v4650_v48  ;;  %v1695_v53 = vpop.f32.mrb[16].mxu0  ;;  %v2119_v55 = vpop.f32.mrb[16].mxu1  ;;  %v4651_v58 = vpack.c.bf16 %v2938_v52, %v2938_v52  ;;  %v3044_v60 = vsel %vm2622_vm1, %v2115_v38, %v2833_v51  ;;  %v4378_v38 = vcombine.high %v430_v16, %v431_v17  ;;  %v327_v48 = vunpack.c.h.s8.bf16 %v5410_v34 }
 0x135   :  { %4100 = vst.msk [vmem:[%s6813_s3 + $0x1c0] sm:$0xf] %vm3987_vm0, %v4756_v49  ;;  %v1696_v61 = vadd.f32 %v5209_v41, %v1695_v53  ;;  %v2120_v62 = vadd.f32 %v5209_v41, %v2119_v55  ;;  %v1697_v54 = vpop.f32.mrb[17].mxu0  ;;  %v2121_v63 = vpop.f32.mrb[17].mxu1  ;;  %v4757_v1 = vpack.c.bf16 %v3044_v60, %v3044_v60  ;;  %v432_v51 = vunpack.c.l.s8.bf16 %v5419_v39 }
 0x136   :  { %v1698_v2 = vpop.f32.mrb[18].mxu0  ;;  %v2122_v3 = vpop.f32.mrb[18].mxu1  ;;  %3995 = vst.msk [vmem:[%s6813_s3 + $0x1c] sm:$0xf] %vm3987_vm0, %v4651_v58  ;;  %v433_v52 = vunpack.c.h.s8.bf16 %v5419_v39  ;;  %v4377_v54 = vcombine.low %v430_v16, %v431_v17  ;;  %v4274_v0 = vcombine.high %v326_v47, %v327_v48  ;;  %v328_v17 = vunpack.c.l.s8.bf16 %v5452_v5  ;;  %v5494_v39 = vld [vmem:[%s6811_s0 + $0x120] sm:$0xff]  }
 0x137   :  { %vm2517_vm2 = vcmp.ge.f32.partialorder %v1696_v61, 0.0  ;;  %v2728_v6 = vmul.f32 0.01, %v1696_v61  ;;  %vm2623_vm3 = vcmp.ge.f32.partialorder %v2120_v62, 0.0  ;;  %v2834_v7 = vmul.f32 0.01, %v2120_v62 }
 0x138   :  { %4101 = vst.msk [vmem:[%s6813_s3 + $0x1c4] sm:$0xf] %vm3987_vm0, %v4757_v1  ;;  %v1699_v8 = vadd.f32 %v5209_v41, %v1698_v2  ;;  %v2123_v9 = vadd.f32 %v5209_v41, %v2122_v3  ;;  %v1700_v10 = vpop.f32.mrb[19].mxu0  ;;  %v2124_v11 = vpop.f32.mrb[19].mxu1 }
 0x139   :  { %v2939_v14 = vsel %vm2517_vm2, %v1696_v61, %v2728_v6  ;;  %v3045_v15 = vsel %vm2623_vm3, %v2120_v62, %v2834_v7  ;;  %1910 = vmatmul.mubr.bf16.gmra.mrb[124].mxu0 %v4267_v56  ;;  %2334 = vmatmul.mubr.bf16.gmra.mrb[124].mxu1 %v4373_v57  ;;  %v4271_v62 = vcombine.low %v324_v12, %v325_v13  ;;  %v5461_v10 = vld [vmem:[%s6811_s0 + $0x2c0] sm:$0xff]  }
 0x13a   :  { %v4652_v18 = vpack.c.bf16 %v2939_v14, %v2939_v14  ;;  %v4758_v19 = vpack.c.bf16 %v3045_v15, %v3045_v15  ;;  %vm2518_vm4 = vcmp.ge.f32.partialorder %v1699_v8, 0.0  ;;  %v2729_v20 = vmul.f32 0.01, %v1699_v8  ;;  %1917 = vmatprep.mubr.bf16.mxu0 %v4270_v59  ;;  %2341 = vmatprep.mubr.bf16.mxu1 %v4376_v4 }
 0x13b   :  { %vm2624_vm5 = vcmp.ge.f32.partialorder %v2123_v9, 0.0  ;;  %v2835_v21 = vmul.f32 0.01, %v2123_v9 }
 0x13c   :  { %3996 = vst.msk [vmem:[%s6813_s3 + $0x20] sm:$0xf] %vm3987_vm0, %v4652_v18  ;;  %4102 = vst.msk [vmem:[%s6813_s3 + $0x1c8] sm:$0xf] %vm3987_vm0, %v4758_v19  ;;  %v2940_v22 = vsel %vm2518_vm4, %v1699_v8, %v2729_v20  ;;  %v1703_v24 = vpop.f32.mrb[20].mxu0  ;;  %v2127_v25 = vpop.f32.mrb[20].mxu1  ;;  %v329_v18 = vunpack.c.h.s8.bf16 %v5452_v5 }
 0x13d   :  { %v4653_v28 = vpack.c.bf16 %v2940_v22, %v2940_v22  ;;  %v3046_v30 = vsel %vm2624_vm5, %v2123_v9, %v2835_v21  ;;  %v1704_v31 = vadd.f32 %v5209_v41, %v1703_v24  ;;  %v2128_v32 = vadd.f32 %v5209_v41, %v2127_v25  ;;  %v1705_v23 = vpop.f32.mrb[21].mxu0  ;;  %v2129_v33 = vpop.f32.mrb[21].mxu1 }
 0x13e   :  { %v4759_v35 = vpack.c.bf16 %v3046_v30, %v3046_v30  ;;  %v1706_v36 = vpop.f32.mrb[22].mxu0  ;;  %v2130_v37 = vpop.f32.mrb[22].mxu1  ;;  %v4380_v9 = vcombine.high %v432_v51, %v433_v52  ;;  %v434_v21 = vunpack.c.l.s8.bf16 %v5461_v10  ;;  %v435_v22 = vunpack.c.h.s8.bf16 %v5461_v10  ;;  %v5536_v10 = vld [vmem:[%s6811_s0 + $0x128] sm:$0xff]  }
 0x13f   :  { %3997 = vst.msk [vmem:[%s6813_s3 + $0x24] sm:$0xf] %vm3987_vm0, %v4653_v28  ;;  %vm2519_vm6 = vcmp.ge.f32.partialorder %v1704_v31, 0.0  ;;  %v2730_v40 = vmul.f32 0.01, %v1704_v31  ;;  %vm2625_vm7 = vcmp.ge.f32.partialorder %v2128_v32, 0.0  ;;  %v1707_v43 = vadd.f32 %v5209_v41, %v1706_v36 }
 0x140   :  { %v2836_v42 = vmul.f32 0.01, %v2128_v32  ;;  %4103 = vst.msk [vmem:[%s6813_s3 + $0x1cc] sm:$0xf] %vm3987_vm0, %v4759_v35  ;;  %v2131_v44 = vadd.f32 %v5209_v41, %v2130_v37  ;;  %v1708_v45 = vpop.f32.mrb[23].mxu0  ;;  %v2132_v46 = vpop.f32.mrb[23].mxu1  ;;  %v4379_v23 = vcombine.low %v432_v51, %v433_v52  ;;  %v4276_v34 = vcombine.high %v328_v17, %v329_v18 }
 0x141   :  { %v2941_v49 = vsel %vm2519_vm6, %v1704_v31, %v2730_v40  ;;  %1918 = vmatmul.mubr.bf16.gmra.mrb[128].mxu0 %v4269_v26  ;;  %2342 = vmatmul.mubr.bf16.gmra.mrb[128].mxu1 %v4375_v27  ;;  %vm2520_vm8 = vcmp.ge.f32.partialorder %v1707_v43, 0.0  ;;  %v2731_v56 = vmul.f32 0.01, %v1707_v43  ;;  %v5503_v45 = vld [vmem:[%s6811_s0 + $0x2c8] sm:$0xff]   ;;  %v330_v52 = vunpack.c.l.s8.bf16 %v5494_v39 }
 0x142   :  { %v3047_v50 = vsel %vm2625_vm7, %v2128_v32, %v2836_v42  ;;  %v4654_v53 = vpack.c.bf16 %v2941_v49, %v2941_v49  ;;  %1925 = vmatprep.mubr.bf16.mxu0 %v4272_v29  ;;  %2349 = vmatprep.mubr.bf16.mxu1 %v4378_v38  ;;  %vm2626_vm9 = vcmp.ge.f32.partialorder %v2131_v44, 0.0  ;;  %v2837_v57 = vmul.f32 0.01, %v2131_v44 }
 0x143   :  { %v4760_v55 = vpack.c.bf16 %v3047_v50, %v3047_v50  ;;  %v2942_v58 = vsel %vm2520_vm8, %v1707_v43, %v2731_v56  ;;  %v4273_v32 = vcombine.low %v326_v47, %v327_v48 }
 0x144   :  { %3998 = vst.msk [vmem:[%s6813_s3 + $0x28] sm:$0xf] %vm3987_vm0, %v4654_v53  ;;  %v1711_v60 = vpop.f32.mrb[24].mxu0  ;;  %v2135_v61 = vpop.f32.mrb[24].mxu1  ;;  %v4655_v63 = vpack.c.bf16 %v2942_v58, %v2942_v58  ;;  %v3048_v1 = vsel %vm2626_vm9, %v2131_v44, %v2837_v57  ;;  %v4382_v44 = vcombine.high %v434_v21, %v435_v22  ;;  %v331_v53 = vunpack.c.h.s8.bf16 %v5494_v39 }
 0x145   :  { %4104 = vst.msk [vmem:[%s6813_s3 + $0x1d0] sm:$0xf] %vm3987_vm0, %v4760_v55  ;;  %v1712_v2 = vadd.f32 %v5209_v41, %v1711_v60  ;;  %v2136_v3 = vadd.f32 %v5209_v41, %v2135_v61  ;;  %v1713_v59 = vpop.f32.mrb[25].mxu0  ;;  %v2137_v4 = vpop.f32.mrb[25].mxu1  ;;  %v4761_v6 = vpack.c.bf16 %v3048_v1, %v3048_v1  ;;  %v436_v57 = vunpack.c.l.s8.bf16 %v5503_v45 }
 0x146   :  { %v1714_v7 = vpop.f32.mrb[26].mxu0  ;;  %v2138_v8 = vpop.f32.mrb[26].mxu1  ;;  %3999 = vst.msk [vmem:[%s6813_s3 + $0x2c] sm:$0xf] %vm3987_vm0, %v4655_v63  ;;  %v437_v58 = vunpack.c.h.s8.bf16 %v5503_v45  ;;  %v4381_v59 = vcombine.low %v434_v21, %v435_v22  ;;  %v4278_v5 = vcombine.high %v330_v52, %v331_v53  ;;  %v332_v22 = vunpack.c.l.s8.bf16 %v5536_v10  ;;  %v5578_v45 = vld [vmem:[%s6811_s0 + $0x130] sm:$0xff]  }
 0x147   :  { %vm2521_vm10 = vcmp.ge.f32.partialorder %v1712_v2, 0.0  ;;  %v2732_v11 = vmul.f32 0.01, %v1712_v2  ;;  %vm2627_vm11 = vcmp.ge.f32.partialorder %v2136_v3, 0.0  ;;  %v2838_v12 = vmul.f32 0.01, %v2136_v3 }
 0x148   :  { %4105 = vst.msk [vmem:[%s6813_s3 + $0x1d4] sm:$0xf] %vm3987_vm0, %v4761_v6  ;;  %v1715_v13 = vadd.f32 %v5209_v41, %v1714_v7  ;;  %v2139_v14 = vadd.f32 %v5209_v41, %v2138_v8  ;;  %v1716_v15 = vpop.f32.mrb[27].mxu0  ;;  %v2140_v16 = vpop.f32.mrb[27].mxu1 }
 0x149   :  { %v2943_v19 = vsel %vm2521_vm10, %v1712_v2, %v2732_v11  ;;  %v3049_v20 = vsel %vm2627_vm11, %v2136_v3, %v2838_v12  ;;  %1926 = vmatmul.mubr.bf16.gmra.mrb[132].mxu0 %v4271_v62  ;;  %2350 = vmatmul.mubr.bf16.gmra.mrb[132].mxu1 %v4377_v54  ;;  %v4275_v3 = vcombine.low %v328_v17, %v329_v18  ;;  %v5545_v15 = vld [vmem:[%s6811_s0 + $0x2d0] sm:$0xff]  }
 0x14a   :  { %v4656_v24 = vpack.c.bf16 %v2943_v19, %v2943_v19  ;;  %v4762_v25 = vpack.c.bf16 %v3049_v20, %v3049_v20  ;;  %vm2522_vm12 = vcmp.ge.f32.partialorder %v1715_v13, 0.0  ;;  %v2733_v26 = vmul.f32 0.01, %v1715_v13  ;;  %1933 = vmatprep.mubr.bf16.mxu0 %v4274_v0  ;;  %2357 = vmatprep.mubr.bf16.mxu1 %v4380_v9 }
 0x14b   :  { %vm2628_vm13 = vcmp.ge.f32.partialorder %v2139_v14, 0.0  ;;  %v2839_v27 = vmul.f32 0.01, %v2139_v14 }
 0x14c   :  { %4000 = vst.msk [vmem:[%s6813_s3 + $0x30] sm:$0xf] %vm3987_vm0, %v4656_v24  ;;  %4106 = vst.msk [vmem:[%s6813_s3 + $0x1d8] sm:$0xf] %vm3987_vm0, %v4762_v25  ;;  %v2944_v28 = vsel %vm2522_vm12, %v1715_v13, %v2733_v26  ;;  %v1719_v30 = vpop.f32.mrb[28].mxu0  ;;  %v2143_v31 = vpop.f32.mrb[28].mxu1  ;;  %v333_v24 = vunpack.c.h.s8.bf16 %v5536_v10 }
 0x14d   :  { %v4657_v33 = vpack.c.bf16 %v2944_v28, %v2944_v28  ;;  %v3050_v35 = vsel %vm2628_vm13, %v2139_v14, %v2839_v27  ;;  %v1720_v36 = vadd.f32 %v5209_v41, %v1719_v30  ;;  %v2144_v37 = vadd.f32 %v5209_v41, %v2143_v31  ;;  %v1721_v29 = vpop.f32.mrb[29].mxu0  ;;  %v2145_v38 = vpop.f32.mrb[29].mxu1 }
 0x14e   :  { %v4763_v40 = vpack.c.bf16 %v3050_v35, %v3050_v35  ;;  %v1722_v42 = vpop.f32.mrb[30].mxu0  ;;  %v2146_v43 = vpop.f32.mrb[30].mxu1  ;;  %v4384_v14 = vcombine.high %v436_v57, %v437_v58  ;;  %v438_v27 = vunpack.c.l.s8.bf16 %v5545_v15  ;;  %v439_v28 = vunpack.c.h.s8.bf16 %v5545_v15  ;;  %v5620_v15 = vld [vmem:[%s6811_s0 + $0x138] sm:$0xff]  }
 0x14f   :  { %4001 = vst.msk [vmem:[%s6813_s3 + $0x34] sm:$0xf] %vm3987_vm0, %v4657_v33  ;;  %vm2523_vm14 = vcmp.ge.f32.partialorder %v1720_v36, 0.0  ;;  %v2734_v46 = vmul.f32 0.01, %v1720_v36  ;;  %vm2629_vm15 = vcmp.ge.f32.partialorder %v2144_v37, 0.0  ;;  %v1723_v48 = vadd.f32 %v5209_v41, %v1722_v42 }
 0x150   :  { %v2840_v47 = vmul.f32 0.01, %v2144_v37  ;;  %4107 = vst.msk [vmem:[%s6813_s3 + $0x1dc] sm:$0xf] %vm3987_vm0, %v4763_v40  ;;  %v2147_v49 = vadd.f32 %v5209_v41, %v2146_v43  ;;  %v1724_v50 = vpop.f32.mrb[31].mxu0  ;;  %v2148_v51 = vpop.f32.mrb[31].mxu1  ;;  %v4383_v29 = vcombine.low %v436_v57, %v437_v58  ;;  %v4280_v39 = vcombine.high %v332_v22, %v333_v24 }
 0x151   :  { %v2945_v55 = vsel %vm2523_vm14, %v1720_v36, %v2734_v46  ;;  %1934 = vmatmul.mubr.bf16.gmra.mrb[136].mxu0 %v4273_v32  ;;  %2358 = vmatmul.mubr.bf16.gmra.mrb[136].mxu1 %v4379_v23  ;;  %vm2524_vm1 = vcmp.ge.f32.partialorder %v1723_v48, 0.0  ;;  %v2735_v62 = vmul.f32 0.01, %v1723_v48  ;;  %v5587_v50 = vld [vmem:[%s6811_s0 + $0x2d8] sm:$0xff]   ;;  %v334_v58 = vunpack.c.l.s8.bf16 %v5578_v45 }
 0x152   :  { %v3051_v56 = vsel %vm2629_vm15, %v2144_v37, %v2840_v47  ;;  %v4658_v60 = vpack.c.bf16 %v2945_v55, %v2945_v55  ;;  %1941 = vmatprep.mubr.bf16.mxu0 %v4276_v34  ;;  %2365 = vmatprep.mubr.bf16.mxu1 %v4382_v44  ;;  %vm2630_vm2 = vcmp.ge.f32.partialorder %v2147_v49, 0.0  ;;  %v2841_v54 = vmul.f32 0.01, %v2147_v49 }
 0x153   :  { %v4764_v61 = vpack.c.bf16 %v3051_v56, %v3051_v56  ;;  %v2946_v63 = vsel %vm2524_vm1, %v1723_v48, %v2735_v62  ;;  %v4277_v37 = vcombine.low %v330_v52, %v331_v53 }
 0x154   :  { %4002 = vst.msk [vmem:[%s6813_s3 + $0x38] sm:$0xf] %vm3987_vm0, %v4658_v60  ;;  %v1727_v1 = vpop.f32.mrb[32].mxu0  ;;  %v2151_v2 = vpop.f32.mrb[32].mxu1  ;;  %v4659_v4 = vpack.c.bf16 %v2946_v63, %v2946_v63  ;;  %v3052_v6 = vsel %vm2630_vm2, %v2147_v49, %v2841_v54  ;;  %v4386_v49 = vcombine.high %v438_v27, %v439_v28  ;;  %v335_v60 = vunpack.c.h.s8.bf16 %v5578_v45 }
 0x155   :  { %4108 = vst.msk [vmem:[%s6813_s3 + $0x1e0] sm:$0xf] %vm3987_vm0, %v4764_v61  ;;  %v1728_v7 = vadd.f32 %v5209_v41, %v1727_v1  ;;  %v2152_v8 = vadd.f32 %v5209_v41, %v2151_v2  ;;  %v1729_v0 = vpop.f32.mrb[33].mxu0  ;;  %v2153_v9 = vpop.f32.mrb[33].mxu1  ;;  %v4765_v11 = vpack.c.bf16 %v3052_v6, %v3052_v6  ;;  %v440_v54 = vunpack.c.l.s8.bf16 %v5587_v50 }
 0x156   :  { %v1730_v12 = vpop.f32.mrb[34].mxu0  ;;  %v2154_v13 = vpop.f32.mrb[34].mxu1  ;;  %4003 = vst.msk [vmem:[%s6813_s3 + $0x3c] sm:$0xf] %vm3987_vm0, %v4659_v4  ;;  %v441_v63 = vunpack.c.h.s8.bf16 %v5587_v50  ;;  %v4385_v0 = vcombine.low %v438_v27, %v439_v28  ;;  %v4282_v10 = vcombine.high %v334_v58, %v335_v60  ;;  %v336_v28 = vunpack.c.l.s8.bf16 %v5620_v15  ;;  %v5667_v50 = vld [vmem:[%s6811_s0 + $0x140] sm:$0xff]  }
 0x157   :  { %vm2525_vm3 = vcmp.ge.f32.partialorder %v1728_v7, 0.0  ;;  %v2736_v16 = vmul.f32 0.01, %v1728_v7  ;;  %vm2631_vm4 = vcmp.ge.f32.partialorder %v2152_v8, 0.0  ;;  %v2842_v17 = vmul.f32 0.01, %v2152_v8 }
 0x158   :  { %4109 = vst.msk [vmem:[%s6813_s3 + $0x1e4] sm:$0xf] %vm3987_vm0, %v4765_v11  ;;  %v1731_v18 = vadd.f32 %v5209_v41, %v1730_v12  ;;  %v2155_v19 = vadd.f32 %v5209_v41, %v2154_v13  ;;  %v1732_v20 = vpop.f32.mrb[35].mxu0  ;;  %v2156_v21 = vpop.f32.mrb[35].mxu1 }
 0x159   :  { %v2947_v25 = vsel %vm2525_vm3, %v1728_v7, %v2736_v16  ;;  %v3053_v26 = vsel %vm2631_vm4, %v2152_v8, %v2842_v17  ;;  %1942 = vmatmul.mubr.bf16.gmra.mrb[140].mxu0 %v4275_v3  ;;  %2366 = vmatmul.mubr.bf16.gmra.mrb[140].mxu1 %v4381_v59  ;;  %v4279_v8 = vcombine.low %v332_v22, %v333_v24  ;;  %v5629_v20 = vld [vmem:[%s6811_s0 + $0x2e0] sm:$0xff]  }
 0x15a   :  { %v4660_v30 = vpack.c.bf16 %v2947_v25, %v2947_v25  ;;  %v4766_v31 = vpack.c.bf16 %v3053_v26, %v3053_v26  ;;  %vm2526_vm5 = vcmp.ge.f32.partialorder %v1731_v18, 0.0  ;;  %v2737_v32 = vmul.f32 0.01, %v1731_v18  ;;  %1949 = vmatprep.mubr.bf16.mxu0 %v4278_v5  ;;  %2373 = vmatprep.mubr.bf16.mxu1 %v4384_v14 }
 0x15b   :  { %vm2632_vm6 = vcmp.ge.f32.partialorder %v2155_v19, 0.0  ;;  %v2843_v23 = vmul.f32 0.01, %v2155_v19 }
 0x15c   :  { %4004 = vst.msk [vmem:[%s6813_s3 + $0x40] sm:$0xf] %vm3987_vm0, %v4660_v30  ;;  %4110 = vst.msk [vmem:[%s6813_s3 + $0x1e8] sm:$0xf] %vm3987_vm0, %v4766_v31  ;;  %v2948_v33 = vsel %vm2526_vm5, %v1731_v18, %v2737_v32  ;;  %v1735_v35 = vpop.f32.mrb[36].mxu0  ;;  %v2159_v36 = vpop.f32.mrb[36].mxu1  ;;  %v337_v30 = vunpack.c.h.s8.bf16 %v5620_v15 }
 0x15d   :  { %v4661_v38 = vpack.c.bf16 %v2948_v33, %v2948_v33  ;;  %v3054_v40 = vsel %vm2632_vm6, %v2155_v19, %v2843_v23  ;;  %v1736_v42 = vadd.f32 %v5209_v41, %v1735_v35  ;;  %v2160_v43 = vadd.f32 %v5209_v41, %v2159_v36  ;;  %v1737_v34 = vpop.f32.mrb[37].mxu0  ;;  %v2161_v44 = vpop.f32.mrb[37].mxu1 }
 0x15e   :  { %v4767_v46 = vpack.c.bf16 %v3054_v40, %v3054_v40  ;;  %v1738_v47 = vpop.f32.mrb[38].mxu0  ;;  %v2162_v48 = vpop.f32.mrb[38].mxu1  ;;  %v4388_v19 = vcombine.high %v440_v54, %v441_v63  ;;  %v442_v23 = vunpack.c.l.s8.bf16 %v5629_v20  ;;  %v443_v33 = vunpack.c.h.s8.bf16 %v5629_v20 }
 0x15f   :  { %4005 = vst.msk [vmem:[%s6813_s3 + $0x44] sm:$0xf] %vm3987_vm0, %v4661_v38  ;;  %vm2527_vm7 = vcmp.ge.f32.partialorder %v1736_v42, 0.0  ;;  %v2738_v51 = vmul.f32 0.01, %v1736_v42  ;;  %vm2633_vm8 = vcmp.ge.f32.partialorder %v2160_v43, 0.0  ;;  %v1739_v53 = vadd.f32 %v5209_v41, %v1738_v47 }
 0x160   :  { %v2844_v52 = vmul.f32 0.01, %v2160_v43  ;;  %4111 = vst.msk [vmem:[%s6813_s3 + $0x1ec] sm:$0xf] %vm3987_vm0, %v4767_v46  ;;  %v2163_v55 = vadd.f32 %v5209_v41, %v2162_v48  ;;  %v1740_v56 = vpop.f32.mrb[39].mxu0  ;;  %v2164_v57 = vpop.f32.mrb[39].mxu1 }
 0x161   :  { %v2949_v61 = vsel %vm2527_vm7, %v1736_v42, %v2738_v51  ;;  %1950 = vmatmul.mubr.bf16.gmra.mrb[144].mxu0 %v4277_v37  ;;  %2374 = vmatmul.mubr.bf16.gmra.mrb[144].mxu1 %v4383_v29  ;;  %vm2528_vm9 = vcmp.ge.f32.partialorder %v1739_v53, 0.0  ;;  %v2739_v3 = vmul.f32 0.01, %v1739_v53  ;;  %v4281_v42 = vcombine.low %v334_v58, %v335_v60  ;;  %v5660_v46 = vld [vmem:[%s6812_s2] ss:$0 sm:$0xff]  ;;  %v5678_v56 = vld [vmem:[%s6811_s0 + $0x2e8] sm:$0xff]  }
 0x162   :  { %v3055_v62 = vsel %vm2633_vm8, %v2160_v43, %v2844_v52  ;;  %v4662_v1 = vpack.c.bf16 %v2949_v61, %v2949_v61  ;;  %1957 = vmatprep.mubr.bf16.mxu0 %v4280_v39  ;;  %2381 = vmatprep.mubr.bf16.mxu1 %v4386_v49  ;;  %vm2634_vm10 = vcmp.ge.f32.partialorder %v2163_v55, 0.0  ;;  %v2845_v59 = vmul.f32 0.01, %v2163_v55 }
 0x163   :  { %v4768_v2 = vpack.c.bf16 %v3055_v62, %v3055_v62  ;;  %v2950_v4 = vsel %vm2528_vm9, %v1739_v53, %v2739_v3  ;;  %v4387_v43 = vcombine.low %v440_v54, %v441_v63  ;;  %v4284_v53 = vcombine.high %v336_v28, %v337_v30 }
 0x164   :  { %4006 = vst.msk [vmem:[%s6813_s3 + $0x48] sm:$0xf] %vm3987_vm0, %v4662_v1  ;;  %v1743_v6 = vpop.f32.mrb[40].mxu0  ;;  %v2167_v7 = vpop.f32.mrb[40].mxu1  ;;  %v4663_v9 = vpack.c.bf16 %v2950_v4, %v2950_v4  ;;  %v3056_v11 = vsel %vm2634_vm10, %v2163_v55, %v2845_v59  ;;  %v4390_v55 = vcombine.high %v442_v23, %v443_v33  ;;  %v338_v63 = vunpack.c.l.s8.bf16 %v5667_v50 }
 0x165   :  { %4112 = vst.msk [vmem:[%s6813_s3 + $0x1f0] sm:$0xf] %vm3987_vm0, %v4768_v2  ;;  %v1744_v12 = vadd.f32 %v5209_v41, %v1743_v6  ;;  %v2168_v13 = vadd.f32 %v5209_v41, %v2167_v7  ;;  %v1745_v5 = vpop.f32.mrb[41].mxu0  ;;  %v2169_v14 = vpop.f32.mrb[41].mxu1  ;;  %v4769_v16 = vpack.c.bf16 %v3056_v11, %v3056_v11  ;;  %v339_v1 = vunpack.c.h.s8.bf16 %v5667_v50 }
 0x166   :  { %v1746_v17 = vpop.f32.mrb[42].mxu0  ;;  %v2170_v18 = vpop.f32.mrb[42].mxu1  ;;  %4007 = vst.msk [vmem:[%s6813_s3 + $0x4c] sm:$0xf] %vm3987_vm0, %v4663_v9  ;;  %v444_v59 = vunpack.c.l.s8.bf16 %v5678_v56  ;;  %v445_v4 = vunpack.c.h.s8.bf16 %v5678_v56  ;;  %v4389_v5 = vcombine.low %v442_v23, %v443_v33  ;;  %v5755_v56 = vld [vmem:[%s6811_s0 + $0x150] sm:$0xff]  }
 0x167   :  { %vm2529_vm11 = vcmp.ge.f32.partialorder %v1744_v12, 0.0  ;;  %v2740_v21 = vmul.f32 0.01, %v1744_v12  ;;  %vm2635_vm12 = vcmp.ge.f32.partialorder %v2168_v13, 0.0  ;;  %v2846_v22 = vmul.f32 0.01, %v2168_v13 }
 0x168   :  { %4113 = vst.msk [vmem:[%s6813_s3 + $0x1f4] sm:$0xf] %vm3987_vm0, %v4769_v16  ;;  %v1747_v24 = vadd.f32 %v5209_v41, %v1746_v17  ;;  %v2171_v25 = vadd.f32 %v5209_v41, %v2170_v18  ;;  %v1748_v26 = vpop.f32.mrb[43].mxu0  ;;  %v2172_v27 = vpop.f32.mrb[43].mxu1  ;;  %v4286_v20 = vcombine.high %v338_v63, %v339_v1 }
 0x169   :  { %v2951_v31 = vsel %vm2529_vm11, %v1744_v12, %v2740_v21  ;;  %v3057_v32 = vsel %vm2635_vm12, %v2168_v13, %v2846_v22  ;;  %1958 = vmatmul.mubr.bf16.gmra.mrb[148].mxu0 %v4279_v8  ;;  %2382 = vmatmul.mubr.bf16.gmra.mrb[148].mxu1 %v4385_v0  ;;  %v4283_v13 = vcombine.low %v336_v28, %v337_v30  ;;  %v5713_v21 = vld [vmem:[%s6811_s0 + $0x148] sm:$0xff]   ;;  %v5722_v26 = vld [vmem:[%s6811_s0 + $0x2f0] sm:$0xff]  }
 0x16a   :  { %v4664_v35 = vpack.c.bf16 %v2951_v31, %v2951_v31  ;;  %v4770_v36 = vpack.c.bf16 %v3057_v32, %v3057_v32  ;;  %vm2530_vm13 = vcmp.ge.f32.partialorder %v1747_v24, 0.0  ;;  %v2741_v37 = vmul.f32 0.01, %v1747_v24  ;;  %1965 = vmatprep.mubr.bf16.mxu0 %v4282_v10  ;;  %2389 = vmatprep.mubr.bf16.mxu1 %v4388_v19 }
 0x16b   :  { %vm2636_vm14 = vcmp.ge.f32.partialorder %v2171_v25, 0.0  ;;  %v2847_v41 = vmul.f32 0.01, %v2171_v25  ;;  %v340_v33 = vunpack.c.l.s8.bf16 %v5713_v21 }
 0x16c   :  { %4008 = vst.msk [vmem:[%s6813_s3 + $0x50] sm:$0xf] %vm3987_vm0, %v4664_v35  ;;  %4114 = vst.msk [vmem:[%s6813_s3 + $0x1f8] sm:$0xf] %vm3987_vm0, %v4770_v36  ;;  %v2952_v29 = vsel %vm2530_vm13, %v1747_v24, %v2741_v37  ;;  %v1751_v38 = vpop.f32.mrb[44].mxu0  ;;  %v2175_v40 = vpop.f32.mrb[44].mxu1  ;;  %v341_v35 = vunpack.c.h.s8.bf16 %v5713_v21 }
 0x16d   :  { %v4665_v34 = vpack.c.bf16 %v2952_v29, %v2952_v29  ;;  %v3058_v44 = vsel %vm2636_vm14, %v2171_v25, %v2847_v41  ;;  %v1752_v47 = vadd.f32 %v5660_v46, %v1751_v38  ;;  %v2176_v48 = vadd.f32 %v5660_v46, %v2175_v40  ;;  %v1753_v39 = vpop.f32.mrb[45].mxu0  ;;  %v2177_v49 = vpop.f32.mrb[45].mxu1 }
 0x16e   :  { %v4771_v45 = vpack.c.bf16 %v3058_v44, %v3058_v44  ;;  %v1754_v51 = vpop.f32.mrb[46].mxu0  ;;  %v2178_v52 = vpop.f32.mrb[46].mxu1  ;;  %v4392_v25 = vcombine.high %v444_v59, %v445_v4  ;;  %v446_v41 = vunpack.c.l.s8.bf16 %v5722_v26  ;;  %v447_v29 = vunpack.c.h.s8.bf16 %v5722_v26  ;;  %v5797_v26 = vld [vmem:[%s6811_s0 + $0x158] sm:$0xff]  }
 0x16f   :  { %4009 = vst.msk [vmem:[%s6813_s3 + $0x54] sm:$0xf] %vm3987_vm0, %v4665_v34  ;;  %vm2531_vm15 = vcmp.ge.f32.partialorder %v1752_v47, 0.0  ;;  %v2742_v57 = vmul.f32 0.01, %v1752_v47  ;;  %vm2637_vm1 = vcmp.ge.f32.partialorder %v2176_v48, 0.0  ;;  %v1755_v60 = vadd.f32 %v5660_v46, %v1754_v51 }
 0x170   :  { %v2848_v58 = vmul.f32 0.01, %v2176_v48  ;;  %4115 = vst.msk [vmem:[%s6813_s3 + $0x1fc] sm:$0xf] %vm3987_vm0, %v4771_v45  ;;  %v2179_v61 = vadd.f32 %v5660_v46, %v2178_v52  ;;  %v1756_v62 = vpop.f32.mrb[47].mxu0  ;;  %v2180_v54 = vpop.f32.mrb[47].mxu1  ;;  %v4391_v39 = vcombine.low %v444_v59, %v445_v4  ;;  %v4288_v50 = vcombine.high %v340_v33, %v341_v35 }
 0x171   :  { %v2953_v2 = vsel %vm2531_vm15, %v1752_v47, %v2742_v57  ;;  %1966 = vmatmul.mubr.bf16.gmra.mrb[152].mxu0 %v4281_v42  ;;  %2390 = vmatmul.mubr.bf16.gmra.mrb[152].mxu1 %v4387_v43  ;;  %vm2532_vm2 = vcmp.ge.f32.partialorder %v1755_v60, 0.0  ;;  %v2743_v8 = vmul.f32 0.01, %v1755_v60  ;;  %v5764_v62 = vld [vmem:[%s6811_s0 + $0x2f8] sm:$0xff]   ;;  %v342_v4 = vunpack.c.l.s8.bf16 %v5755_v56 }
 0x172   :  { %v3059_v3 = vsel %vm2637_vm1, %v2176_v48, %v2848_v58  ;;  %v4666_v6 = vpack.c.bf16 %v2953_v2, %v2953_v2  ;;  %1973 = vmatprep.mubr.bf16.mxu0 %v4284_v53  ;;  %2397 = vmatprep.mubr.bf16.mxu1 %v4390_v55  ;;  %vm2638_vm3 = vcmp.ge.f32.partialorder %v2179_v61, 0.0  ;;  %v2849_v0 = vmul.f32 0.01, %v2179_v61 }
 0x173   :  { %v4772_v7 = vpack.c.bf16 %v3059_v3, %v3059_v3  ;;  %v2954_v9 = vsel %vm2532_vm2, %v1755_v60, %v2743_v8  ;;  %v4285_v48 = vcombine.low %v338_v63, %v339_v1 }
 0x174   :  { %4010 = vst.msk [vmem:[%s6813_s3 + $0x58] sm:$0xf] %vm3987_vm0, %v4666_v6  ;;  %v1759_v11 = vpop.f32.mrb[48].mxu0  ;;  %v2183_v12 = vpop.f32.mrb[48].mxu1  ;;  %v4667_v14 = vpack.c.bf16 %v2954_v9, %v2954_v9  ;;  %v3060_v16 = vsel %vm2638_vm3, %v2179_v61, %v2849_v0  ;;  %v4394_v61 = vcombine.high %v446_v41, %v447_v29  ;;  %v343_v6 = vunpack.c.h.s8.bf16 %v5755_v56 }
 0x175   :  { %4116 = vst.msk [vmem:[%s6813_s3 + $0x200] sm:$0xf] %vm3987_vm0, %v4772_v7  ;;  %v1760_v17 = vadd.f32 %v5660_v46, %v1759_v11  ;;  %v2184_v18 = vadd.f32 %v5660_v46, %v2183_v12  ;;  %v1761_v10 = vpop.f32.mrb[49].mxu0  ;;  %v2185_v19 = vpop.f32.mrb[49].mxu1  ;;  %v4773_v22 = vpack.c.bf16 %v3060_v16, %v3060_v16  ;;  %v448_v0 = vunpack.c.l.s8.bf16 %v5764_v62 }
 0x176   :  { %v1762_v24 = vpop.f32.mrb[50].mxu0  ;;  %v2186_v15 = vpop.f32.mrb[50].mxu1  ;;  %4011 = vst.msk [vmem:[%s6813_s3 + $0x5c] sm:$0xf] %vm3987_vm0, %v4667_v14  ;;  %v449_v9 = vunpack.c.h.s8.bf16 %v5764_v62  ;;  %v4393_v10 = vcombine.low %v446_v41, %v447_v29  ;;  %v4290_v21 = vcombine.high %v342_v4, %v343_v6  ;;  %v344_v29 = vunpack.c.l.s8.bf16 %v5797_v26  ;;  %v5839_v62 = vld [vmem:[%s6811_s0 + $0x160] sm:$0xff]  }
 0x177   :  { %vm2533_vm4 = vcmp.ge.f32.partialorder %v1760_v17, 0.0  ;;  %v2744_v27 = vmul.f32 0.01, %v1760_v17  ;;  %vm2639_vm5 = vcmp.ge.f32.partialorder %v2184_v18, 0.0  ;;  %v2850_v28 = vmul.f32 0.01, %v2184_v18 }
 0x178   :  { %4117 = vst.msk [vmem:[%s6813_s3 + $0x204] sm:$0xf] %vm3987_vm0, %v4773_v22  ;;  %v1763_v30 = vadd.f32 %v5660_v46, %v1762_v24  ;;  %v2187_v31 = vadd.f32 %v5660_v46, %v2186_v15  ;;  %v1764_v32 = vpop.f32.mrb[51].mxu0  ;;  %v2188_v23 = vpop.f32.mrb[51].mxu1 }
 0x179   :  { %v2955_v36 = vsel %vm2533_vm4, %v1760_v17, %v2744_v27  ;;  %v3061_v37 = vsel %vm2639_vm5, %v2184_v18, %v2850_v28  ;;  %1974 = vmatmul.mubr.bf16.gmra.mrb[156].mxu0 %v4283_v13  ;;  %2398 = vmatmul.mubr.bf16.gmra.mrb[156].mxu1 %v4389_v5  ;;  %v4287_v18 = vcombine.low %v340_v33, %v341_v35  ;;  %v5806_v32 = vld [vmem:[%s6811_s0 + $0x300] sm:$0xff]  }
 0x17a   :  { %v4668_v38 = vpack.c.bf16 %v2955_v36, %v2955_v36  ;;  %v4774_v40 = vpack.c.bf16 %v3061_v37, %v3061_v37  ;;  %vm2534_vm6 = vcmp.ge.f32.partialorder %v1763_v30, 0.0  ;;  %v2745_v42 = vmul.f32 0.01, %v1763_v30  ;;  %1981 = vmatprep.mubr.bf16.mxu0 %v4286_v20  ;;  %2405 = vmatprep.mubr.bf16.mxu1 %v4392_v25 }
 0x17b   :  { %vm2640_vm7 = vcmp.ge.f32.partialorder %v2187_v31, 0.0  ;;  %v2851_v43 = vmul.f32 0.01, %v2187_v31 }
 0x17c   :  { %4012 = vst.msk [vmem:[%s6813_s3 + $0x60] sm:$0xf] %vm3987_vm0, %v4668_v38  ;;  %4118 = vst.msk [vmem:[%s6813_s3 + $0x208] sm:$0xf] %vm3987_vm0, %v4774_v40  ;;  %v2956_v34 = vsel %vm2534_vm6, %v1763_v30, %v2745_v42  ;;  %v1767_v44 = vpop.f32.mrb[52].mxu0  ;;  %v2191_v47 = vpop.f32.mrb[52].mxu1  ;;  %v345_v38 = vunpack.c.h.s8.bf16 %v5797_v26 }
 0x17d   :  { %v4669_v49 = vpack.c.bf16 %v2956_v34, %v2956_v34  ;;  %v3062_v45 = vsel %vm2640_vm7, %v2187_v31, %v2851_v43  ;;  %v1768_v51 = vadd.f32 %v5660_v46, %v1767_v44  ;;  %v2192_v52 = vadd.f32 %v5660_v46, %v2191_v47  ;;  %v1769_v53 = vpop.f32.mrb[53].mxu0  ;;  %v2193_v55 = vpop.f32.mrb[53].mxu1 }
 0x17e   :  { %v4775_v57 = vpack.c.bf16 %v3062_v45, %v3062_v45  ;;  %v1770_v58 = vpop.f32.mrb[54].mxu0  ;;  %v2194_v60 = vpop.f32.mrb[54].mxu1  ;;  %v4396_v31 = vcombine.high %v448_v0, %v449_v9  ;;  %v450_v43 = vunpack.c.l.s8.bf16 %v5806_v32  ;;  %v451_v34 = vunpack.c.h.s8.bf16 %v5806_v32  ;;  %v5881_v32 = vld [vmem:[%s6811_s0 + $0x168] sm:$0xff]  }
 0x17f   :  { %4013 = vst.msk [vmem:[%s6813_s3 + $0x64] sm:$0xf] %vm3987_vm0, %v4669_v49  ;;  %vm2535_vm8 = vcmp.ge.f32.partialorder %v1768_v51, 0.0  ;;  %v2746_v54 = vmul.f32 0.01, %v1768_v51  ;;  %vm2641_vm9 = vcmp.ge.f32.partialorder %v2192_v52, 0.0  ;;  %v1771_v1 = vadd.f32 %v5660_v46, %v1770_v58 }
 0x180   :  { %v2852_v63 = vmul.f32 0.01, %v2192_v52  ;;  %4119 = vst.msk [vmem:[%s6813_s3 + $0x20c] sm:$0xf] %vm3987_vm0, %v4775_v57  ;;  %v2195_v2 = vadd.f32 %v5660_v46, %v2194_v60  ;;  %v1772_v3 = vpop.f32.mrb[55].mxu0  ;;  %v2196_v59 = vpop.f32.mrb[55].mxu1  ;;  %v4395_v53 = vcombine.low %v448_v0, %v449_v9  ;;  %v4292_v56 = vcombine.high %v344_v29, %v345_v38 }
 0x181   :  { %v2957_v7 = vsel %vm2535_vm8, %v1768_v51, %v2746_v54  ;;  %1982 = vmatmul.mubr.bf16.gmra.mrb[160].mxu0 %v4285_v48  ;;  %2406 = vmatmul.mubr.bf16.gmra.mrb[160].mxu1 %v4391_v39  ;;  %vm2536_vm10 = vcmp.ge.f32.partialorder %v1771_v1, 0.0  ;;  %v2747_v13 = vmul.f32 0.01, %v1771_v1  ;;  %v5848_v3 = vld [vmem:[%s6811_s0 + $0x308] sm:$0xff]   ;;  %v346_v9 = vunpack.c.l.s8.bf16 %v5839_v62 }
 0x182   :  { %v3063_v8 = vsel %vm2641_vm9, %v2192_v52, %v2852_v63  ;;  %v4670_v11 = vpack.c.bf16 %v2957_v7, %v2957_v7  ;;  %1989 = vmatprep.mubr.bf16.mxu0 %v4288_v50  ;;  %2413 = vmatprep.mubr.bf16.mxu1 %v4394_v61  ;;  %vm2642_vm11 = vcmp.ge.f32.partialorder %v2195_v2, 0.0  ;;  %v2853_v5 = vmul.f32 0.01, %v2195_v2 }
 0x183   :  { %v4776_v12 = vpack.c.bf16 %v3063_v8, %v3063_v8  ;;  %v2958_v14 = vsel %vm2536_vm10, %v1771_v1, %v2747_v13  ;;  %v4289_v52 = vcombine.low %v342_v4, %v343_v6 }
 0x184   :  { %4014 = vst.msk [vmem:[%s6813_s3 + $0x68] sm:$0xf] %vm3987_vm0, %v4670_v11  ;;  %v1775_v16 = vpop.f32.mrb[56].mxu0  ;;  %v2199_v17 = vpop.f32.mrb[56].mxu1  ;;  %v4671_v19 = vpack.c.bf16 %v2958_v14, %v2958_v14  ;;  %v3064_v22 = vsel %vm2642_vm11, %v2195_v2, %v2853_v5  ;;  %v4398_v2 = vcombine.high %v450_v43, %v451_v34  ;;  %v347_v11 = vunpack.c.h.s8.bf16 %v5839_v62 }
 0x185   :  { %4120 = vst.msk [vmem:[%s6813_s3 + $0x210] sm:$0xf] %vm3987_vm0, %v4776_v12  ;;  %v1776_v24 = vadd.f32 %v5660_v46, %v1775_v16  ;;  %v2200_v15 = vadd.f32 %v5660_v46, %v2199_v17  ;;  %v1777_v20 = vpop.f32.mrb[57].mxu0  ;;  %v2201_v25 = vpop.f32.mrb[57].mxu1  ;;  %v4777_v27 = vpack.c.bf16 %v3064_v22, %v3064_v22  ;;  %v452_v5 = vunpack.c.l.s8.bf16 %v5848_v3 }
 0x186   :  { %v1778_v28 = vpop.f32.mrb[58].mxu0  ;;  %v2202_v30 = vpop.f32.mrb[58].mxu1  ;;  %4015 = vst.msk [vmem:[%s6813_s3 + $0x6c] sm:$0xf] %vm3987_vm0, %v4671_v19  ;;  %v453_v14 = vunpack.c.h.s8.bf16 %v5848_v3  ;;  %v4397_v20 = vcombine.low %v450_v43, %v451_v34  ;;  %v4294_v26 = vcombine.high %v346_v9, %v347_v11  ;;  %v348_v34 = vunpack.c.l.s8.bf16 %v5881_v32  ;;  %v5923_v3 = vld [vmem:[%s6811_s0 + $0x170] sm:$0xff]  }
 0x187   :  { %vm2537_vm12 = vcmp.ge.f32.partialorder %v1776_v24, 0.0  ;;  %v2748_v23 = vmul.f32 0.01, %v1776_v24  ;;  %vm2643_vm13 = vcmp.ge.f32.partialorder %v2200_v15, 0.0  ;;  %v2854_v33 = vmul.f32 0.01, %v2200_v15 }
 0x188   :  { %4121 = vst.msk [vmem:[%s6813_s3 + $0x214] sm:$0xf] %vm3987_vm0, %v4777_v27  ;;  %v1779_v35 = vadd.f32 %v5660_v46, %v1778_v28  ;;  %v2203_v36 = vadd.f32 %v5660_v46, %v2202_v30  ;;  %v1780_v37 = vpop.f32.mrb[59].mxu0  ;;  %v2204_v41 = vpop.f32.mrb[59].mxu1 }
 0x189   :  { %v2959_v40 = vsel %vm2537_vm12, %v1776_v24, %v2748_v23  ;;  %v3065_v42 = vsel %vm2643_vm13, %v2200_v15, %v2854_v33  ;;  %1990 = vmatmul.mubr.bf16.gmra.mrb[164].mxu0 %v4287_v18  ;;  %2414 = vmatmul.mubr.bf16.gmra.mrb[164].mxu1 %v4393_v10  ;;  %v4291_v15 = vcombine.low %v344_v29, %v345_v38  ;;  %v5890_v37 = vld [vmem:[%s6811_s0 + $0x310] sm:$0xff]  }
 0x18a   :  { %v4672_v44 = vpack.c.bf16 %v2959_v40, %v2959_v40  ;;  %v4778_v47 = vpack.c.bf16 %v3065_v42, %v3065_v42  ;;  %vm2538_vm14 = vcmp.ge.f32.partialorder %v1779_v35, 0.0  ;;  %v2749_v48 = vmul.f32 0.01, %v1779_v35  ;;  %1997 = vmatprep.mubr.bf16.mxu0 %v4290_v21  ;;  %2421 = vmatprep.mubr.bf16.mxu1 %v4396_v31 }
 0x18b   :  { %vm2644_vm15 = vcmp.ge.f32.partialorder %v2203_v36, 0.0  ;;  %v2855_v39 = vmul.f32 0.01, %v2203_v36 }
 0x18c   :  { %4016 = vst.msk [vmem:[%s6813_s3 + $0x70] sm:$0xf] %vm3987_vm0, %v4672_v44  ;;  %4122 = vst.msk [vmem:[%s6813_s3 + $0x218] sm:$0xf] %vm3987_vm0, %v4778_v47  ;;  %v2960_v49 = vsel %vm2538_vm14, %v1779_v35, %v2749_v48  ;;  %v1783_v45 = vpop.f32.mrb[60].mxu0  ;;  %v2207_v51 = vpop.f32.mrb[60].mxu1  ;;  %v349_v44 = vunpack.c.h.s8.bf16 %v5881_v32 }
 0x18d   :  { %v4673_v55 = vpack.c.bf16 %v2960_v49, %v2960_v49  ;;  %v3066_v57 = vsel %vm2644_vm15, %v2203_v36, %v2855_v39  ;;  %v1784_v58 = vadd.f32 %v5660_v46, %v1783_v45  ;;  %v2208_v60 = vadd.f32 %v5660_v46, %v2207_v51  ;;  %v1785_v50 = vpop.f32.mrb[61].mxu0  ;;  %v2209_v61 = vpop.f32.mrb[61].mxu1 }
 0x18e   :  { %v4779_v54 = vpack.c.bf16 %v3066_v57, %v3066_v57  ;;  %v1786_v63 = vpop.f32.mrb[62].mxu0  ;;  %v2210_v1 = vpop.f32.mrb[62].mxu1  ;;  %v4400_v36 = vcombine.high %v452_v5, %v453_v14  ;;  %v454_v39 = vunpack.c.l.s8.bf16 %v5890_v37  ;;  %v455_v49 = vunpack.c.h.s8.bf16 %v5890_v37  ;;  %v5965_v37 = vld [vmem:[%s6811_s0 + $0x178] sm:$0xff]  }
 0x18f   :  { %4017 = vst.msk [vmem:[%s6813_s3 + $0x74] sm:$0xf] %vm3987_vm0, %v4673_v55  ;;  %vm2539_vm1 = vcmp.ge.f32.partialorder %v1784_v58, 0.0  ;;  %v2750_v59 = vmul.f32 0.01, %v1784_v58  ;;  %vm2645_vm2 = vcmp.ge.f32.partialorder %v2208_v60, 0.0  ;;  %v1787_v6 = vadd.f32 %v5660_v46, %v1786_v63 }
 0x190   :  { %v2856_v4 = vmul.f32 0.01, %v2208_v60  ;;  %4123 = vst.msk [vmem:[%s6813_s3 + $0x21c] sm:$0xf] %vm3987_vm0, %v4779_v54  ;;  %v2211_v7 = vadd.f32 %v5660_v46, %v2210_v1  ;;  %v1788_v8 = vpop.f32.mrb[63].mxu0  ;;  %v2212_v0 = vpop.f32.mrb[63].mxu1  ;;  %v4399_v50 = vcombine.low %v452_v5, %v453_v14  ;;  %v4296_v62 = vcombine.high %v348_v34, %v349_v44 }
 0x191   :  { %v2961_v12 = vsel %vm2539_vm1, %v1784_v58, %v2750_v59  ;;  %1998 = vmatmul.mubr.bf16.gmra.mrb[168].mxu0 %v4289_v52  ;;  %2422 = vmatmul.mubr.bf16.gmra.mrb[168].mxu1 %v4395_v53  ;;  %vm2540_vm3 = vcmp.ge.f32.partialorder %v1787_v6, 0.0  ;;  %v2751_v18 = vmul.f32 0.01, %v1787_v6  ;;  %v5932_v8 = vld [vmem:[%s6811_s0 + $0x318] sm:$0xff]   ;;  %v350_v14 = vunpack.c.l.s8.bf16 %v5923_v3 }
 0x192   :  { %v3067_v13 = vsel %vm2645_vm2, %v2208_v60, %v2856_v4  ;;  %v4674_v16 = vpack.c.bf16 %v2961_v12, %v2961_v12  ;;  %2005 = vmatprep.mubr.bf16.mxu0 %v4292_v56  ;;  %2429 = vmatprep.mubr.bf16.mxu1 %v4398_v2  ;;  %vm2646_vm4 = vcmp.ge.f32.partialorder %v2211_v7, 0.0  ;;  %v2857_v10 = vmul.f32 0.01, %v2211_v7 }
 0x193   :  { %v4780_v17 = vpack.c.bf16 %v3067_v13, %v3067_v13  ;;  %v2962_v19 = vsel %vm2540_vm3, %v1787_v6, %v2751_v18  ;;  %v4293_v60 = vcombine.low %v346_v9, %v347_v11 }
 0x194   :  { %4018 = vst.msk [vmem:[%s6813_s3 + $0x78] sm:$0xf] %vm3987_vm0, %v4674_v16  ;;  %v1791_v22 = vpop.f32.mrb[64].mxu0  ;;  %v2215_v24 = vpop.f32.mrb[64].mxu1  ;;  %v4675_v25 = vpack.c.bf16 %v2962_v19, %v2962_v19  ;;  %v3068_v27 = vsel %vm2646_vm4, %v2211_v7, %v2857_v10  ;;  %v4402_v7 = vcombine.high %v454_v39, %v455_v49  ;;  %v351_v16 = vunpack.c.h.s8.bf16 %v5923_v3 }
 0x195   :  { %4124 = vst.msk [vmem:[%s6813_s3 + $0x220] sm:$0xf] %vm3987_vm0, %v4780_v17  ;;  %v1792_v28 = vadd.f32 %v5660_v46, %v1791_v22  ;;  %v2216_v30 = vadd.f32 %v5660_v46, %v2215_v24  ;;  %v1793_v21 = vpop.f32.mrb[65].mxu0  ;;  %v2217_v31 = vpop.f32.mrb[65].mxu1  ;;  %v4781_v23 = vpack.c.bf16 %v3068_v27, %v3068_v27  ;;  %v456_v10 = vunpack.c.l.s8.bf16 %v5932_v8 }
 0x196   :  { %v1794_v33 = vpop.f32.mrb[66].mxu0  ;;  %v2218_v35 = vpop.f32.mrb[66].mxu1  ;;  %4019 = vst.msk [vmem:[%s6813_s3 + $0x7c] sm:$0xf] %vm3987_vm0, %v4675_v25  ;;  %v457_v19 = vunpack.c.h.s8.bf16 %v5932_v8  ;;  %v4401_v21 = vcombine.low %v454_v39, %v455_v49  ;;  %v4298_v32 = vcombine.high %v350_v14, %v351_v16  ;;  %v352_v49 = vunpack.c.l.s8.bf16 %v5965_v37  ;;  %v6007_v8 = vld [vmem:[%s6811_s0 + $0x180] sm:$0xff]  }
 0x197   :  { %vm2541_vm5 = vcmp.ge.f32.partialorder %v1792_v28, 0.0  ;;  %v2752_v41 = vmul.f32 0.01, %v1792_v28  ;;  %vm2647_vm6 = vcmp.ge.f32.partialorder %v2216_v30, 0.0  ;;  %v2858_v29 = vmul.f32 0.01, %v2216_v30 }
 0x198   :  { %4125 = vst.msk [vmem:[%s6813_s3 + $0x224] sm:$0xf] %vm3987_vm0, %v4781_v23  ;;  %v1795_v38 = vadd.f32 %v5660_v46, %v1794_v33  ;;  %v2219_v40 = vadd.f32 %v5660_v46, %v2218_v35  ;;  %v1796_v42 = vpop.f32.mrb[67].mxu0  ;;  %v2220_v43 = vpop.f32.mrb[67].mxu1 }
 0x199   :  { %v2963_v47 = vsel %vm2541_vm5, %v1792_v28, %v2752_v41  ;;  %v3069_v48 = vsel %vm2647_vm6, %v2216_v30, %v2858_v29  ;;  %2006 = vmatmul.mubr.bf16.gmra.mrb[172].mxu0 %v4291_v15  ;;  %2430 = vmatmul.mubr.bf16.gmra.mrb[172].mxu1 %v4397_v20  ;;  %v4295_v30 = vcombine.low %v348_v34, %v349_v44  ;;  %v5974_v42 = vld [vmem:[%s6811_s0 + $0x320] sm:$0xff]  }
 0x19a   :  { %v4676_v45 = vpack.c.bf16 %v2963_v47, %v2963_v47  ;;  %v4782_v51 = vpack.c.bf16 %v3069_v48, %v3069_v48  ;;  %vm2542_vm7 = vcmp.ge.f32.partialorder %v1795_v38, 0.0  ;;  %v2753_v52 = vmul.f32 0.01, %v1795_v38  ;;  %2013 = vmatprep.mubr.bf16.mxu0 %v4294_v26  ;;  %2437 = vmatprep.mubr.bf16.mxu1 %v4400_v36 }
 0x19b   :  { %vm2648_vm8 = vcmp.ge.f32.partialorder %v2219_v40, 0.0  ;;  %v2859_v53 = vmul.f32 0.01, %v2219_v40 }
 0x19c   :  { %4020 = vst.msk [vmem:[%s6813_s3 + $0x80] sm:$0xf] %vm3987_vm0, %v4676_v45  ;;  %4126 = vst.msk [vmem:[%s6813_s3 + $0x228] sm:$0xf] %vm3987_vm0, %v4782_v51  ;;  %v2964_v55 = vsel %vm2542_vm7, %v1795_v38, %v2753_v52  ;;  %v1799_v57 = vpop.f32.mrb[68].mxu0  ;;  %v2223_v58 = vpop.f32.mrb[68].mxu1  ;;  %v353_v45 = vunpack.c.h.s8.bf16 %v5965_v37 }
 0x19d   :  { %v4677_v61 = vpack.c.bf16 %v2964_v55, %v2964_v55  ;;  %v3070_v54 = vsel %vm2648_vm8, %v2219_v40, %v2859_v53  ;;  %v1800_v63 = vadd.f32 %v5660_v46, %v1799_v57  ;;  %v2224_v1 = vadd.f32 %v5660_v46, %v2223_v58  ;;  %v1801_v56 = vpop.f32.mrb[69].mxu0  ;;  %v2225_v2 = vpop.f32.mrb[69].mxu1 }
 0x19e   :  { %v4783_v59 = vpack.c.bf16 %v3070_v54, %v3070_v54  ;;  %v1802_v4 = vpop.f32.mrb[70].mxu0  ;;  %v2226_v6 = vpop.f32.mrb[70].mxu1  ;;  %v4404_v40 = vcombine.high %v456_v10, %v457_v19  ;;  %v458_v53 = vunpack.c.l.s8.bf16 %v5974_v42  ;;  %v459_v55 = vunpack.c.h.s8.bf16 %v5974_v42  ;;  %v6049_v42 = vld [vmem:[%s6811_s0 + $0x188] sm:$0xff]  }
 0x19f   :  { %4021 = vst.msk [vmem:[%s6813_s3 + $0x84] sm:$0xf] %vm3987_vm0, %v4677_v61  ;;  %vm2543_vm9 = vcmp.ge.f32.partialorder %v1800_v63, 0.0  ;;  %v2754_v0 = vmul.f32 0.01, %v1800_v63  ;;  %vm2649_vm10 = vcmp.ge.f32.partialorder %v2224_v1, 0.0  ;;  %v1803_v11 = vadd.f32 %v5660_v46, %v1802_v4 }
 0x1a0   :  { %v2860_v9 = vmul.f32 0.01, %v2224_v1  ;;  %4127 = vst.msk [vmem:[%s6813_s3 + $0x22c] sm:$0xf] %vm3987_vm0, %v4783_v59  ;;  %v2227_v12 = vadd.f32 %v5660_v46, %v2226_v6  ;;  %v1804_v13 = vpop.f32.mrb[71].mxu0  ;;  %v2228_v5 = vpop.f32.mrb[71].mxu1  ;;  %v4403_v56 = vcombine.low %v456_v10, %v457_v19  ;;  %v4300_v3 = vcombine.high %v352_v49, %v353_v45 }
 0x1a1   :  { %v2965_v17 = vsel %vm2543_vm9, %v1800_v63, %v2754_v0  ;;  %2014 = vmatmul.mubr.bf16.gmra.mrb[176].mxu0 %v4293_v60  ;;  %2438 = vmatmul.mubr.bf16.gmra.mrb[176].mxu1 %v4399_v50  ;;  %vm2544_vm11 = vcmp.ge.f32.partialorder %v1803_v11, 0.0  ;;  %v2755_v15 = vmul.f32 0.01, %v1803_v11  ;;  %v6016_v13 = vld [vmem:[%s6811_s0 + $0x328] sm:$0xff]   ;;  %v354_v19 = vunpack.c.l.s8.bf16 %v6007_v8 }
 0x1a2   :  { %v3071_v18 = vsel %vm2649_vm10, %v2224_v1, %v2860_v9  ;;  %v4678_v22 = vpack.c.bf16 %v2965_v17, %v2965_v17  ;;  %2021 = vmatprep.mubr.bf16.mxu0 %v4296_v62  ;;  %2445 = vmatprep.mubr.bf16.mxu1 %v4402_v7  ;;  %vm2650_vm12 = vcmp.ge.f32.partialorder %v2227_v12, 0.0  ;;  %v2861_v20 = vmul.f32 0.01, %v2227_v12 }
 0x1a3   :  { %v4784_v24 = vpack.c.bf16 %v3071_v18, %v3071_v18  ;;  %v2966_v25 = vsel %vm2544_vm11, %v1803_v11, %v2755_v15  ;;  %v4297_v1 = vcombine.low %v350_v14, %v351_v16 }
 0x1a4   :  { %4022 = vst.msk [vmem:[%s6813_s3 + $0x88] sm:$0xf] %vm3987_vm0, %v4678_v22  ;;  %v1807_v27 = vpop.f32.mrb[72].mxu0  ;;  %v2231_v28 = vpop.f32.mrb[72].mxu1  ;;  %v4679_v31 = vpack.c.bf16 %v2966_v25, %v2966_v25  ;;  %v3072_v23 = vsel %vm2650_vm12, %v2227_v12, %v2861_v20  ;;  %v4406_v12 = vcombine.high %v458_v53, %v459_v55  ;;  %v355_v22 = vunpack.c.h.s8.bf16 %v6007_v8 }
 0x1a5   :  { %4128 = vst.msk [vmem:[%s6813_s3 + $0x230] sm:$0xf] %vm3987_vm0, %v4784_v24  ;;  %v1808_v33 = vadd.f32 %v5660_v46, %v1807_v27  ;;  %v2232_v35 = vadd.f32 %v5660_v46, %v2231_v28  ;;  %v1809_v26 = vpop.f32.mrb[73].mxu0  ;;  %v2233_v36 = vpop.f32.mrb[73].mxu1  ;;  %v4785_v41 = vpack.c.bf16 %v3072_v23, %v3072_v23  ;;  %v460_v20 = vunpack.c.l.s8.bf16 %v6016_v13 }
 0x1a6   :  { %v1810_v29 = vpop.f32.mrb[74].mxu0  ;;  %v2234_v38 = vpop.f32.mrb[74].mxu1  ;;  %4023 = vst.msk [vmem:[%s6813_s3 + $0x8c] sm:$0xf] %vm3987_vm0, %v4679_v31  ;;  %v461_v25 = vunpack.c.h.s8.bf16 %v6016_v13  ;;  %v4405_v26 = vcombine.low %v458_v53, %v459_v55  ;;  %v4302_v37 = vcombine.high %v354_v19, %v355_v22  ;;  %v356_v55 = vunpack.c.l.s8.bf16 %v6049_v42  ;;  %v6091_v13 = vld [vmem:[%s6811_s0 + $0x190] sm:$0xff]  }
 0x1a7   :  { %vm2545_vm13 = vcmp.ge.f32.partialorder %v1808_v33, 0.0  ;;  %v2756_v43 = vmul.f32 0.01, %v1808_v33  ;;  %vm2651_vm14 = vcmp.ge.f32.partialorder %v2232_v35, 0.0  ;;  %v2862_v34 = vmul.f32 0.01, %v2232_v35 }
 0x1a8   :  { %4129 = vst.msk [vmem:[%s6813_s3 + $0x234] sm:$0xf] %vm3987_vm0, %v4785_v41  ;;  %v1811_v44 = vadd.f32 %v5660_v46, %v1810_v29  ;;  %v2235_v47 = vadd.f32 %v5660_v46, %v2234_v38  ;;  %v1812_v48 = vpop.f32.mrb[75].mxu0  ;;  %v2236_v39 = vpop.f32.mrb[75].mxu1 }
 0x1a9   :  { %v2967_v51 = vsel %vm2545_vm13, %v1808_v33, %v2756_v43  ;;  %v3073_v52 = vsel %vm2651_vm14, %v2232_v35, %v2862_v34  ;;  %2022 = vmatmul.mubr.bf16.gmra.mrb[180].mxu0 %v4295_v30  ;;  %2446 = vmatmul.mubr.bf16.gmra.mrb[180].mxu1 %v4401_v21  ;;  %v4299_v35 = vcombine.low %v352_v49, %v353_v45  ;;  %v6058_v48 = vld [vmem:[%s6811_s0 + $0x330] sm:$0xff]  }
 0x1aa   :  { %v4680_v57 = vpack.c.bf16 %v2967_v51, %v2967_v51  ;;  %v4786_v58 = vpack.c.bf16 %v3073_v52, %v3073_v52  ;;  %vm2546_vm15 = vcmp.ge.f32.partialorder %v1811_v44, 0.0  ;;  %v2757_v60 = vmul.f32 0.01, %v1811_v44  ;;  %2029 = vmatprep.mubr.bf16.mxu0 %v4298_v32  ;;  %2453 = vmatprep.mubr.bf16.mxu1 %v4404_v40 }
 0x1ab   :  { %vm2652_vm1 = vcmp.ge.f32.partialorder %v2235_v47, 0.0  ;;  %v2863_v50 = vmul.f32 0.01, %v2235_v47 }
 0x1ac   :  { %4024 = vst.msk [vmem:[%s6813_s3 + $0x90] sm:$0xf] %vm3987_vm0, %v4680_v57  ;;  %4130 = vst.msk [vmem:[%s6813_s3 + $0x238] sm:$0xf] %vm3987_vm0, %v4786_v58  ;;  %v2968_v61 = vsel %vm2546_vm15, %v1811_v44, %v2757_v60  ;;  %v1815_v54 = vpop.f32.mrb[76].mxu0  ;;  %v2239_v63 = vpop.f32.mrb[76].mxu1  ;;  %v357_v57 = vunpack.c.h.s8.bf16 %v6049_v42 }
 0x1ad   :  { %v4681_v2 = vpack.c.bf16 %v2968_v61, %v2968_v61  ;;  %v3074_v59 = vsel %vm2652_vm1, %v2235_v47, %v2863_v50  ;;  %v1816_v4 = vadd.f32 %v5660_v46, %v1815_v54  ;;  %v2240_v6 = vadd.f32 %v5660_v46, %v2239_v63  ;;  %v1817_v62 = vpop.f32.mrb[77].mxu0  ;;  %v2241_v7 = vpop.f32.mrb[77].mxu1 }
 0x1ae   :  { %v4787_v0 = vpack.c.bf16 %v3074_v59, %v3074_v59  ;;  %v1818_v9 = vpop.f32.mrb[78].mxu0  ;;  %v2242_v11 = vpop.f32.mrb[78].mxu1  ;;  %v4408_v47 = vcombine.high %v460_v20, %v461_v25  ;;  %v462_v50 = vunpack.c.l.s8.bf16 %v6058_v48  ;;  %v463_v61 = vunpack.c.h.s8.bf16 %v6058_v48  ;;  %v6133_v48 = vld [vmem:[%s6811_s0 + $0x198] sm:$0xff]  }
 0x1af   :  { %4025 = vst.msk [vmem:[%s6813_s3 + $0x94] sm:$0xf] %vm3987_vm0, %v4681_v2  ;;  %vm2547_vm2 = vcmp.ge.f32.partialorder %v1816_v4, 0.0  ;;  %v2758_v5 = vmul.f32 0.01, %v1816_v4  ;;  %vm2653_vm3 = vcmp.ge.f32.partialorder %v2240_v6, 0.0  ;;  %v1819_v16 = vadd.f32 %v5660_v46, %v1818_v9 }
 0x1b0   :  { %v2864_v14 = vmul.f32 0.01, %v2240_v6  ;;  %4131 = vst.msk [vmem:[%s6813_s3 + $0x23c] sm:$0xf] %vm3987_vm0, %v4787_v0  ;;  %v2243_v17 = vadd.f32 %v5660_v46, %v2242_v11  ;;  %v1820_v18 = vpop.f32.mrb[79].mxu0  ;;  %v2244_v10 = vpop.f32.mrb[79].mxu1  ;;  %v4407_v62 = vcombine.low %v460_v20, %v461_v25  ;;  %v4304_v8 = vcombine.high %v356_v55, %v357_v57 }
 0x1b1   :  { %v2969_v24 = vsel %vm2547_vm2, %v1816_v4, %v2758_v5  ;;  %2030 = vmatmul.mubr.bf16.gmra.mrb[184].mxu0 %v4297_v1  ;;  %2454 = vmatmul.mubr.bf16.gmra.mrb[184].mxu1 %v4403_v56  ;;  %vm2548_vm4 = vcmp.ge.f32.partialorder %v1819_v16, 0.0  ;;  %v2759_v30 = vmul.f32 0.01, %v1819_v16  ;;  %v6100_v18 = vld [vmem:[%s6811_s0 + $0x338] sm:$0xff]   ;;  %v358_v25 = vunpack.c.l.s8.bf16 %v6091_v13 }
 0x1b2   :  { %v3075_v15 = vsel %vm2653_vm3, %v2240_v6, %v2864_v14  ;;  %v4682_v27 = vpack.c.bf16 %v2969_v24, %v2969_v24  ;;  %2037 = vmatprep.mubr.bf16.mxu0 %v4300_v3  ;;  %2461 = vmatprep.mubr.bf16.mxu1 %v4406_v12  ;;  %vm2654_vm5 = vcmp.ge.f32.partialorder %v2243_v17, 0.0  ;;  %v2865_v21 = vmul.f32 0.01, %v2243_v17 }
 0x1b3   :  { %v4788_v28 = vpack.c.bf16 %v3075_v15, %v3075_v15  ;;  %v2970_v31 = vsel %vm2548_vm4, %v1819_v16, %v2759_v30  ;;  %v4301_v6 = vcombine.low %v354_v19, %v355_v22 }
 0x1b4   :  { %4026 = vst.msk [vmem:[%s6813_s3 + $0x98] sm:$0xf] %vm3987_vm0, %v4682_v27  ;;  %v1823_v23 = vpop.f32.mrb[80].mxu0  ;;  %v2247_v33 = vpop.f32.mrb[80].mxu1  ;;  %v4683_v36 = vpack.c.bf16 %v2970_v31, %v2970_v31  ;;  %v3076_v41 = vsel %vm2654_vm5, %v2243_v17, %v2865_v21  ;;  %v4410_v17 = vcombine.high %v462_v50, %v463_v61  ;;  %v359_v27 = vunpack.c.h.s8.bf16 %v6091_v13 }
 0x1b5   :  { %4132 = vst.msk [vmem:[%s6813_s3 + $0x240] sm:$0xf] %vm3987_vm0, %v4788_v28  ;;  %v1824_v29 = vadd.f32 %v5660_v46, %v1823_v23  ;;  %v2248_v38 = vadd.f32 %v5660_v46, %v2247_v33  ;;  %v1825_v32 = vpop.f32.mrb[81].mxu0  ;;  %v2249_v40 = vpop.f32.mrb[81].mxu1  ;;  %v4789_v43 = vpack.c.bf16 %v3076_v41, %v3076_v41  ;;  %v464_v21 = vunpack.c.l.s8.bf16 %v6100_v18 }
 0x1b6   :  { %v1826_v34 = vpop.f32.mrb[82].mxu0  ;;  %v2250_v44 = vpop.f32.mrb[82].mxu1  ;;  %4027 = vst.msk [vmem:[%s6813_s3 + $0x9c] sm:$0xf] %vm3987_vm0, %v4683_v36  ;;  %v465_v31 = vunpack.c.h.s8.bf16 %v6100_v18  ;;  %v4409_v32 = vcombine.low %v462_v50, %v463_v61  ;;  %v4306_v42 = vcombine.high %v358_v25, %v359_v27  ;;  %v360_v61 = vunpack.c.l.s8.bf16 %v6133_v48 }
 0x1b7   :  { %vm2549_vm6 = vcmp.ge.f32.partialorder %v1824_v29, 0.0  ;;  %v2760_v39 = vmul.f32 0.01, %v1824_v29  ;;  %vm2655_vm7 = vcmp.ge.f32.partialorder %v2248_v38, 0.0  ;;  %v2866_v49 = vmul.f32 0.01, %v2248_v38 }
 0x1b8   :  { %4133 = vst.msk [vmem:[%s6813_s3 + $0x244] sm:$0xf] %vm3987_vm0, %v4789_v43  ;;  %v1827_v45 = vadd.f32 %v5660_v46, %v1826_v34  ;;  %v2251_v51 = vadd.f32 %v5660_v46, %v2250_v44  ;;  %v1828_v52 = vpop.f32.mrb[83].mxu0  ;;  %v2252_v53 = vpop.f32.mrb[83].mxu1 }
 0x1b9   :  { %v2971_v58 = vsel %vm2549_vm6, %v1824_v29, %v2760_v39  ;;  %v3077_v60 = vsel %vm2655_vm7, %v2248_v38, %v2866_v49  ;;  %2038 = vmatmul.mubr.bf16.gmra.mrb[188].mxu0 %v4299_v35  ;;  %2462 = vmatmul.mubr.bf16.gmra.mrb[188].mxu1 %v4405_v26  ;;  %v4303_v38 = vcombine.low %v356_v55, %v357_v57  ;;  %v6157_v55 = vld [vmem:[%s6812_s2] ss:$0 sm:$0xff] }
 0x1ba   :  { %v4684_v54 = vpack.c.bf16 %v2971_v58, %v2971_v58  ;;  %v4790_v63 = vpack.c.bf16 %v3077_v60, %v3077_v60  ;;  %vm2550_vm8 = vcmp.ge.f32.partialorder %v1827_v45, 0.0  ;;  %v2761_v1 = vmul.f32 0.01, %v1827_v45  ;;  %2045 = vmatprep.mubr.bf16.mxu0 %v4302_v37  ;;  %2469 = vmatprep.mubr.bf16.mxu1 %v4408_v47 }
 0x1bb   :  { %vm2656_vm9 = vcmp.ge.f32.partialorder %v2251_v51, 0.0  ;;  %v2867_v56 = vmul.f32 0.01, %v2251_v51 }
 0x1bc   :  { %4028 = vst.msk [vmem:[%s6813_s3 + $0xa0] sm:$0xf] %vm3987_vm0, %v4684_v54  ;;  %4134 = vst.msk [vmem:[%s6813_s3 + $0x248] sm:$0xf] %vm3987_vm0, %v4790_v63  ;;  %v2972_v2 = vsel %vm2550_vm8, %v1827_v45, %v2761_v1  ;;  %v1831_v59 = vpop.f32.mrb[84].mxu0  ;;  %v2255_v4 = vpop.f32.mrb[84].mxu1  ;;  %v361_v54 = vunpack.c.h.s8.bf16 %v6133_v48 }
 0x1bd   :  { %v4685_v7 = vpack.c.bf16 %v2972_v2, %v2972_v2  ;;  %v3078_v0 = vsel %vm2656_vm9, %v2251_v51, %v2867_v56  ;;  %v1832_v9 = vadd.f32 %v5660_v46, %v1831_v59  ;;  %v2256_v11 = vadd.f32 %v5660_v46, %v2255_v4  ;;  %v1833_v3 = vpop.f32.mrb[85].mxu0  ;;  %v2257_v12 = vpop.f32.mrb[85].mxu1 }
 0x1be   :  { %v4791_v5 = vpack.c.bf16 %v3078_v0, %v3078_v0  ;;  %v1834_v14 = vpop.f32.mrb[86].mxu0  ;;  %v2258_v16 = vpop.f32.mrb[86].mxu1  ;;  %v4412_v51 = vcombine.high %v464_v21, %v465_v31  ;;  %v4411_v3 = vcombine.low %v464_v21, %v465_v31  ;;  %v4308_v18 = vcombine.high %v360_v61, %v361_v54 }
 0x1bf   :  { %4029 = vst.msk [vmem:[%s6813_s3 + $0xa4] sm:$0xf] %vm3987_vm0, %v4685_v7  ;;  %vm2551_vm10 = vcmp.ge.f32.partialorder %v1832_v9, 0.0  ;;  %v2762_v10 = vmul.f32 0.01, %v1832_v9  ;;  %vm2657_vm11 = vcmp.ge.f32.partialorder %v2256_v11, 0.0  ;;  %v1835_v22 = vadd.f32 %v5660_v46, %v1834_v14 }
 0x1c0   :  { %v2868_v19 = vmul.f32 0.01, %v2256_v11  ;;  %4135 = vst.msk [vmem:[%s6813_s3 + $0x24c] sm:$0xf] %vm3987_vm0, %v4791_v5  ;;  %v2259_v24 = vadd.f32 %v5660_v46, %v2258_v16  ;;  %v1836_v15 = vpop.f32.mrb[87].mxu0  ;;  %v2260_v20 = vpop.f32.mrb[87].mxu1 }
 0x1c1   :  { %v2973_v28 = vsel %vm2551_vm10, %v1832_v9, %v2762_v10  ;;  %2046 = vmatmul.mubr.bf16.gmra.mrb[192].mxu0 %v4301_v6  ;;  %2470 = vmatmul.mubr.bf16.gmra.mrb[192].mxu1 %v4407_v62  ;;  %vm2552_vm12 = vcmp.ge.f32.partialorder %v1835_v22, 0.0  ;;  %v2763_v35 = vmul.f32 0.01, %v1835_v22  ;;  %v6184_v10 = vld [vmem:[%s6811_s0 + $0x1a0] sm:$0xff]   ;;  %v225_v15 = vld [vmem:[%s6811_s0 + $0x348] sm:$0x5] }
 0x1c2   :  { %v3079_v30 = vsel %vm2657_vm11, %v2256_v11, %v2868_v19  ;;  %v4686_v23 = vpack.c.bf16 %v2973_v28, %v2973_v28  ;;  %2053 = vmatprep.mubr.bf16.mxu0 %v4304_v8  ;;  %2477 = vmatprep.mubr.bf16.mxu1 %v4410_v17  ;;  %vm2658_vm13 = vcmp.ge.f32.partialorder %v2259_v24, 0.0  ;;  %v2869_v26 = vmul.f32 0.01, %v2259_v24 }
 0x1c3   :  { %v4792_v33 = vpack.c.bf16 %v3079_v30, %v3079_v30  ;;  %v2974_v36 = vsel %vm2552_vm12, %v1835_v22, %v2763_v35  ;;  %v4305_v11 = vcombine.low %v358_v25, %v359_v27  ;;  %v362_v31 = vunpack.c.l.s8.bf16 %v6184_v10 }
 0x1c4   :  { %4030 = vst.msk [vmem:[%s6813_s3 + $0xa8] sm:$0xf] %vm3987_vm0, %v4686_v23  ;;  %v1839_v41 = vpop.f32.mrb[88].mxu0  ;;  %v2263_v29 = vpop.f32.mrb[88].mxu1  ;;  %v4687_v40 = vpack.c.bf16 %v2974_v36, %v2974_v36  ;;  %v3080_v43 = vsel %vm2658_vm13, %v2259_v24, %v2869_v26  ;;  %v363_v35 = vunpack.c.h.s8.bf16 %v6184_v10  ;;  %v6205_v26 = vunpack.c.l.s8.bf16 %v225_v15 }
 0x1c5   :  { %4136 = vst.msk [vmem:[%s6813_s3 + $0x250] sm:$0xf] %vm3987_vm0, %v4792_v33  ;;  %v1840_v34 = vadd.f32 %v5660_v46, %v1839_v41  ;;  %v2264_v44 = vadd.f32 %v5660_v46, %v2263_v29  ;;  %v1841_v37 = vpop.f32.mrb[89].mxu0  ;;  %v2265_v47 = vpop.f32.mrb[89].mxu1  ;;  %v4793_v39 = vpack.c.bf16 %v3080_v43, %v3080_v43  ;;  %v6144_v46 = vld [vmem:[%s6811_s0 + $0x340] sm:$0xff]  }
 0x1c6   :  { %v1842_v49 = vpop.f32.mrb[90].mxu0  ;;  %v2266_v45 = vpop.f32.mrb[90].mxu1  ;;  %4031 = vst.msk [vmem:[%s6813_s3 + $0xac] sm:$0xf] %vm3987_vm0, %v4687_v40  ;;  %v466_v56 = vunpack.c.l.s8.bf16 %v6144_v46  ;;  %v467_v2 = vunpack.c.h.s8.bf16 %v6144_v46 }
 0x1c7   :  { %vm2553_vm14 = vcmp.ge.f32.partialorder %v1840_v34, 0.0  ;;  %v2764_v52 = vmul.f32 0.01, %v1840_v34  ;;  %vm2659_vm15 = vcmp.ge.f32.partialorder %v2264_v44, 0.0  ;;  %v2870_v53 = vmul.f32 0.01, %v2264_v44 }
 0x1c8   :  { %4137 = vst.msk [vmem:[%s6813_s3 + $0x254] sm:$0xf] %vm3987_vm0, %v4793_v39  ;;  %v1843_v57 = vadd.f32 %v6157_v55, %v1842_v49  ;;  %v2267_v58 = vadd.f32 %v6157_v55, %v2266_v45  ;;  %v1844_v60 = vpop.f32.mrb[91].mxu0  ;;  %v2268_v50 = vpop.f32.mrb[91].mxu1  ;;  %v4414_v24 = vcombine.high %v466_v56, %v467_v2 }
 0x1c9   :  { %v2975_v63 = vsel %vm2553_vm14, %v1840_v34, %v2764_v52  ;;  %v3081_v1 = vsel %vm2659_vm15, %v2264_v44, %v2870_v53  ;;  %2054 = vmatmul.mubr.bf16.gmra.mrb[196].mxu0 %v4303_v38  ;;  %2478 = vmatmul.mubr.bf16.gmra.mrb[196].mxu1 %v4409_v32  ;;  %v4307_v34 = vcombine.low %v360_v61, %v361_v54 }
 0x1ca   :  { %v4688_v59 = vpack.c.bf16 %v2975_v63, %v2975_v63  ;;  %v4794_v4 = vpack.c.bf16 %v3081_v1, %v3081_v1  ;;  %vm2554_vm1 = vcmp.ge.f32.partialorder %v1843_v57, 0.0  ;;  %v2765_v6 = vmul.f32 0.01, %v1843_v57  ;;  %2061 = vmatprep.mubr.bf16.mxu0 %v4306_v42  ;;  %2485 = vmatprep.mubr.bf16.mxu1 %v4412_v51 }
 0x1cb   :  { %vm2660_vm2 = vcmp.ge.f32.partialorder %v2267_v58, 0.0  ;;  %v2871_v62 = vmul.f32 0.01, %v2267_v58  ;;  %v4413_v44 = vcombine.low %v466_v56, %v467_v2  ;;  %v4310_v53 = vcombine.high %v362_v31, %v363_v35 }
 0x1cc   :  { %4032 = vst.msk [vmem:[%s6813_s3 + $0xb0] sm:$0xf] %vm3987_vm0, %v4688_v59  ;;  %4138 = vst.msk [vmem:[%s6813_s3 + $0x258] sm:$0xf] %vm3987_vm0, %v4794_v4  ;;  %v2976_v7 = vsel %vm2554_vm1, %v1843_v57, %v2765_v6  ;;  %v1847_v0 = vpop.f32.mrb[92].mxu0  ;;  %v2271_v9 = vpop.f32.mrb[92].mxu1  ;;  %v4416_v57 = vcombine.high %v6205_v26, %v6205_v26 }
 0x1cd   :  { %v4689_v12 = vpack.c.bf16 %v2976_v7, %v2976_v7  ;;  %v3082_v5 = vsel %vm2660_vm2, %v2267_v58, %v2871_v62  ;;  %v1848_v14 = vadd.f32 %v6157_v55, %v1847_v0  ;;  %v2272_v16 = vadd.f32 %v6157_v55, %v2271_v9  ;;  %v1849_v8 = vpop.f32.mrb[93].mxu0  ;;  %v2273_v17 = vpop.f32.mrb[93].mxu1 }
 0x1ce   :  { %v4795_v19 = vpack.c.bf16 %v3082_v5, %v3082_v5  ;;  %v1850_v22 = vpop.f32.mrb[94].mxu0  ;;  %v2274_v13 = vpop.f32.mrb[94].mxu1  ;;  %v4309_v0 = vcombine.low %v362_v31, %v363_v35  ;;  %v4415_v9 = vcombine.low %v6205_v26, %v6205_v26 }
 0x1cf   :  { %4033 = vst.msk [vmem:[%s6813_s3 + $0xb4] sm:$0xf] %vm3987_vm0, %v4689_v12  ;;  %vm2555_vm3 = vcmp.ge.f32.partialorder %v1848_v14, 0.0  ;;  %v2766_v20 = vmul.f32 0.01, %v1848_v14  ;;  %vm2661_vm4 = vcmp.ge.f32.partialorder %v2272_v16, 0.0  ;;  %v1851_v27 = vadd.f32 %v6157_v55, %v1850_v22 }
 0x1d0   :  { %v2872_v25 = vmul.f32 0.01, %v2272_v16  ;;  %4139 = vst.msk [vmem:[%s6813_s3 + $0x25c] sm:$0xf] %vm3987_vm0, %v4795_v19  ;;  %v2275_v28 = vadd.f32 %v6157_v55, %v2274_v13  ;;  %v1852_v30 = vpop.f32.mrb[95].mxu0  ;;  %v2276_v21 = vpop.f32.mrb[95].mxu1 }
 0x1d1   :  { %v2977_v23 = vsel %vm2555_vm3, %v1848_v14, %v2766_v20  ;;  %2062 = vmatmul.mubr.bf16.gmra.mrb[200].mxu0 %v4305_v11  ;;  %2486 = vmatmul.mubr.bf16.gmra.mrb[200].mxu1 %v4411_v3  ;;  %vm2556_vm5 = vcmp.ge.f32.partialorder %v1851_v27, 0.0  ;;  %v2767_v29 = vmul.f32 0.01, %v1851_v27 }
 0x1d2   :  { %v3083_v33 = vsel %vm2661_vm4, %v2272_v16, %v2872_v25  ;;  %v4690_v36 = vpack.c.bf16 %v2977_v23, %v2977_v23  ;;  %2069 = vmatprep.mubr.bf16.mxu0 %v4308_v18  ;;  %2493 = vmatprep.mubr.bf16.mxu1 %v4414_v24  ;;  %vm2662_vm6 = vcmp.ge.f32.partialorder %v2275_v28, 0.0  ;;  %v2873_v38 = vmul.f32 0.01, %v2275_v28 }
 0x1d3   :  { %v4796_v41 = vpack.c.bf16 %v3083_v33, %v3083_v33  ;;  %v2978_v32 = vsel %vm2556_vm5, %v1851_v27, %v2767_v29 }
 0x1d4   :  { %4034 = vst.msk [vmem:[%s6813_s3 + $0xb8] sm:$0xf] %vm3987_vm0, %v4690_v36  ;;  %v1855_v40 = vpop.f32.mrb[96].mxu0  ;;  %v2279_v43 = vpop.f32.mrb[96].mxu1  ;;  %v4691_v37 = vpack.c.bf16 %v2978_v32, %v2978_v32  ;;  %v3084_v47 = vsel %vm2662_vm6, %v2275_v28, %v2873_v38 }
 0x1d5   :  { %4140 = vst.msk [vmem:[%s6813_s3 + $0x260] sm:$0xf] %vm3987_vm0, %v4796_v41  ;;  %v1856_v39 = vadd.f32 %v6157_v55, %v1855_v40  ;;  %v2280_v49 = vadd.f32 %v6157_v55, %v2279_v43  ;;  %v1857_v45 = vpop.f32.mrb[97].mxu0  ;;  %v2281_v42 = vpop.f32.mrb[97].mxu1  ;;  %v4797_v51 = vpack.c.bf16 %v3084_v47, %v3084_v47 }
 0x1d6   :  { %v1858_v46 = vpop.f32.mrb[98].mxu0  ;;  %v2282_v52 = vpop.f32.mrb[98].mxu1  ;;  %4035 = vst.msk [vmem:[%s6813_s3 + $0xbc] sm:$0xf] %vm3987_vm0, %v4691_v37 }
 0x1d7   :  { %vm2557_vm7 = vcmp.ge.f32.partialorder %v1856_v39, 0.0  ;;  %v2768_v48 = vmul.f32 0.01, %v1856_v39  ;;  %vm2663_vm8 = vcmp.ge.f32.partialorder %v2280_v49, 0.0  ;;  %v2874_v58 = vmul.f32 0.01, %v2280_v49 }
 0x1d8   :  { %4141 = vst.msk [vmem:[%s6813_s3 + $0x264] sm:$0xf] %vm3987_vm0, %v4797_v51  ;;  %v1859_v60 = vadd.f32 %v6157_v55, %v1858_v46  ;;  %v2283_v50 = vadd.f32 %v6157_v55, %v2282_v52  ;;  %v1860_v61 = vpop.f32.mrb[99].mxu0  ;;  %v2284_v54 = vpop.f32.mrb[99].mxu1 }
 0x1d9   :  { %v2979_v63 = vsel %vm2557_vm7, %v1856_v39, %v2768_v48  ;;  %v3085_v1 = vsel %vm2663_vm8, %v2280_v49, %v2874_v58  ;;  %2070 = vmatmul.mubr.bf16.gmra.mrb[204].mxu0 %v4307_v34  ;;  %2494 = vmatmul.mubr.bf16.gmra.mrb[204].mxu1 %v4413_v44 }
 0x1da   :  { %v4692_v56 = vpack.c.bf16 %v2979_v63, %v2979_v63  ;;  %v4798_v2 = vpack.c.bf16 %v3085_v1, %v3085_v1  ;;  %vm2558_vm9 = vcmp.ge.f32.partialorder %v1859_v60, 0.0  ;;  %v2769_v59 = vmul.f32 0.01, %v1859_v60  ;;  %2077 = vmatprep.mubr.bf16.mxu0 %v4310_v53  ;;  %2501 = vmatprep.mubr.bf16.mxu1 %v4416_v57 }
 0x1db   :  { %vm2664_vm10 = vcmp.ge.f32.partialorder %v2283_v50, 0.0  ;;  %v2875_v4 = vmul.f32 0.01, %v2283_v50 }
 0x1dc   :  { %4036 = vst.msk [vmem:[%s6813_s3 + $0xc0] sm:$0xf] %vm3987_vm0, %v4692_v56  ;;  %4142 = vst.msk [vmem:[%s6813_s3 + $0x268] sm:$0xf] %vm3987_vm0, %v4798_v2  ;;  %v2980_v6 = vsel %vm2558_vm9, %v1859_v60, %v2769_v59  ;;  %v1863_v62 = vpop.f32.mrb[100].mxu0  ;;  %v2287_v7 = vpop.f32.mrb[100].mxu1 }
 0x1dd   :  { %v4693_v11 = vpack.c.bf16 %v2980_v6, %v2980_v6  ;;  %v3086_v3 = vsel %vm2664_vm10, %v2283_v50, %v2875_v4  ;;  %v1864_v12 = vadd.f32 %v6157_v55, %v1863_v62  ;;  %v2288_v5 = vadd.f32 %v6157_v55, %v2287_v7  ;;  %v1865_v14 = vpop.f32.mrb[101].mxu0  ;;  %v2289_v16 = vpop.f32.mrb[101].mxu1 }
 0x1de   :  { %v4799_v8 = vpack.c.bf16 %v3086_v3, %v3086_v3  ;;  %v1866_v17 = vpop.f32.mrb[102].mxu0  ;;  %v2290_v10 = vpop.f32.mrb[102].mxu1 }
 0x1df   :  { %4037 = vst.msk [vmem:[%s6813_s3 + $0xc4] sm:$0xf] %vm3987_vm0, %v4693_v11  ;;  %vm2559_vm11 = vcmp.ge.f32.partialorder %v1864_v12, 0.0  ;;  %v2770_v19 = vmul.f32 0.01, %v1864_v12  ;;  %vm2665_vm12 = vcmp.ge.f32.partialorder %v2288_v5, 0.0  ;;  %v1867_v13 = vadd.f32 %v6157_v55, %v1866_v17 }
 0x1e0   :  { %v2876_v22 = vmul.f32 0.01, %v2288_v5  ;;  %4143 = vst.msk [vmem:[%s6813_s3 + $0x26c] sm:$0xf] %vm3987_vm0, %v4799_v8  ;;  %v2291_v18 = vadd.f32 %v6157_v55, %v2290_v10  ;;  %v1868_v24 = vpop.f32.mrb[103].mxu0  ;;  %v2292_v15 = vpop.f32.mrb[103].mxu1 }
 0x1e1   :  { %v2981_v20 = vsel %vm2559_vm11, %v1864_v12, %v2770_v19  ;;  %2078 = vmatmul.mubr.bf16.gmra.mrb[208].mxu0 %v4309_v0  ;;  %2502 = vmatmul.mubr.bf16.gmra.mrb[208].mxu1 %v4415_v9  ;;  %vm2560_vm13 = vcmp.ge.f32.partialorder %v1867_v13, 0.0  ;;  %v2771_v30 = vmul.f32 0.01, %v1867_v13 }
 0x1e2   :  { %v3087_v25 = vsel %vm2665_vm12, %v2288_v5, %v2876_v22  ;;  %v4694_v27 = vpack.c.bf16 %v2981_v20, %v2981_v20  ;;  %vm2666_vm14 = vcmp.ge.f32.partialorder %v2291_v18, 0.0  ;;  %v2877_v21 = vmul.f32 0.01, %v2291_v18 }
 0x1e3   :  { %v4800_v28 = vpack.c.bf16 %v3087_v25, %v3087_v25  ;;  %v2982_v31 = vsel %vm2560_vm13, %v1867_v13, %v2771_v30 }
 0x1e4   :  { %4038 = vst.msk [vmem:[%s6813_s3 + $0xc8] sm:$0xf] %vm3987_vm0, %v4694_v27  ;;  %v1871_v23 = vpop.f32.mrb[104].mxu0  ;;  %v2295_v33 = vpop.f32.mrb[104].mxu1  ;;  %v4695_v35 = vpack.c.bf16 %v2982_v31, %v2982_v31  ;;  %v3088_v26 = vsel %vm2666_vm14, %v2291_v18, %v2877_v21 }
 0x1e5   :  { %4144 = vst.msk [vmem:[%s6813_s3 + $0x270] sm:$0xf] %vm3987_vm0, %v4800_v28  ;;  %v1872_v36 = vadd.f32 %v6157_v55, %v1871_v23  ;;  %v2296_v41 = vadd.f32 %v6157_v55, %v2295_v33  ;;  %v1873_v29 = vpop.f32.mrb[105].mxu0  ;;  %v2297_v38 = vpop.f32.mrb[105].mxu1  ;;  %v4801_v32 = vpack.c.bf16 %v3088_v26, %v3088_v26 }
 0x1e6   :  { %v1874_v40 = vpop.f32.mrb[106].mxu0  ;;  %v2298_v43 = vpop.f32.mrb[106].mxu1  ;;  %4039 = vst.msk [vmem:[%s6813_s3 + $0xcc] sm:$0xf] %vm3987_vm0, %v4695_v35 }
 0x1e7   :  { %vm2561_vm15 = vcmp.ge.f32.partialorder %v1872_v36, 0.0  ;;  %v2772_v34 = vmul.f32 0.01, %v1872_v36  ;;  %vm2667_vm1 = vcmp.ge.f32.partialorder %v2296_v41, 0.0  ;;  %v2878_v44 = vmul.f32 0.01, %v2296_v41 }
 0x1e8   :  { %4145 = vst.msk [vmem:[%s6813_s3 + $0x274] sm:$0xf] %vm3987_vm0, %v4801_v32  ;;  %v1875_v37 = vadd.f32 %v6157_v55, %v1874_v40  ;;  %v2299_v47 = vadd.f32 %v6157_v55, %v2298_v43  ;;  %v1876_v39 = vpop.f32.mrb[107].mxu0  ;;  %v2300_v49 = vpop.f32.mrb[107].mxu1 }
 0x1e9   :  { %v2983_v45 = vsel %vm2561_vm15, %v1872_v36, %v2772_v34  ;;  %v3089_v42 = vsel %vm2667_vm1, %v2296_v41, %v2878_v44 }
 0x1ea   :  { %v4696_v51 = vpack.c.bf16 %v2983_v45, %v2983_v45  ;;  %v4802_v46 = vpack.c.bf16 %v3089_v42, %v3089_v42  ;;  %vm2562_vm2 = vcmp.ge.f32.partialorder %v1875_v37, 0.0  ;;  %v2773_v52 = vmul.f32 0.01, %v1875_v37 }
 0x1eb   :  { %vm2668_vm3 = vcmp.ge.f32.partialorder %v2299_v47, 0.0  ;;  %v2879_v53 = vmul.f32 0.01, %v2299_v47 }
 0x1ec   :  { %4040 = vst.msk [vmem:[%s6813_s3 + $0xd0] sm:$0xf] %vm3987_vm0, %v4696_v51  ;;  %4146 = vst.msk [vmem:[%s6813_s3 + $0x278] sm:$0xf] %vm3987_vm0, %v4802_v46  ;;  %v2984_v57 = vsel %vm2562_vm2, %v1875_v37, %v2773_v52  ;;  %v1879_v48 = vpop.f32.mrb[108].mxu0  ;;  %v2303_v58 = vpop.f32.mrb[108].mxu1 }
 0x1ed   :  { %v4697_v60 = vpack.c.bf16 %v2984_v57, %v2984_v57  ;;  %v3090_v50 = vsel %vm2668_vm3, %v2299_v47, %v2879_v53  ;;  %v1880_v61 = vadd.f32 %v6157_v55, %v1879_v48  ;;  %v2304_v54 = vadd.f32 %v6157_v55, %v2303_v58  ;;  %v1881_v63 = vpop.f32.mrb[109].mxu0  ;;  %v2305_v1 = vpop.f32.mrb[109].mxu1 }
 0x1ee   :  { %v4803_v56 = vpack.c.bf16 %v3090_v50, %v3090_v50  ;;  %v1882_v2 = vpop.f32.mrb[110].mxu0  ;;  %v2306_v59 = vpop.f32.mrb[110].mxu1 }
 0x1ef   :  { %4041 = vst.msk [vmem:[%s6813_s3 + $0xd4] sm:$0xf] %vm3987_vm0, %v4697_v60  ;;  %vm2563_vm4 = vcmp.ge.f32.partialorder %v1880_v61, 0.0  ;;  %v2774_v4 = vmul.f32 0.01, %v1880_v61  ;;  %vm2669_vm5 = vcmp.ge.f32.partialorder %v2304_v54, 0.0  ;;  %v1883_v62 = vadd.f32 %v6157_v55, %v1882_v2 }
 0x1f0   :  { %v2880_v6 = vmul.f32 0.01, %v2304_v54  ;;  %4147 = vst.msk [vmem:[%s6813_s3 + $0x27c] sm:$0xf] %vm3987_vm0, %v4803_v56  ;;  %v2307_v7 = vadd.f32 %v6157_v55, %v2306_v59  ;;  %v1884_v0 = vpop.f32.mrb[111].mxu0  ;;  %v2308_v9 = vpop.f32.mrb[111].mxu1 }
 0x1f1   :  { %v2985_v11 = vsel %vm2563_vm4, %v1880_v61, %v2774_v4  ;;  %vm2564_vm6 = vcmp.ge.f32.partialorder %v1883_v62, 0.0  ;;  %v2775_v14 = vmul.f32 0.01, %v1883_v62 }
 0x1f2   :  { %v3091_v3 = vsel %vm2669_vm5, %v2304_v54, %v2880_v6  ;;  %v4698_v12 = vpack.c.bf16 %v2985_v11, %v2985_v11  ;;  %vm2670_vm7 = vcmp.ge.f32.partialorder %v2307_v7, 0.0  ;;  %v2881_v16 = vmul.f32 0.01, %v2307_v7 }
 0x1f3   :  { %v4804_v5 = vpack.c.bf16 %v3091_v3, %v3091_v3  ;;  %v2986_v8 = vsel %vm2564_vm6, %v1883_v62, %v2775_v14 }
 0x1f4   :  { %4042 = vst.msk [vmem:[%s6813_s3 + $0xd8] sm:$0xf] %vm3987_vm0, %v4698_v12  ;;  %v1887_v17 = vpop.f32.mrb[112].mxu0  ;;  %v2311_v10 = vpop.f32.mrb[112].mxu1  ;;  %v4699_v19 = vpack.c.bf16 %v2986_v8, %v2986_v8  ;;  %v3092_v22 = vsel %vm2670_vm7, %v2307_v7, %v2881_v16 }
 0x1f5   :  { %4148 = vst.msk [vmem:[%s6813_s3 + $0x280] sm:$0xf] %vm3987_vm0, %v4804_v5  ;;  %v1888_v13 = vadd.f32 %v6157_v55, %v1887_v17  ;;  %v2312_v18 = vadd.f32 %v6157_v55, %v2311_v10  ;;  %v1889_v24 = vpop.f32.mrb[113].mxu0  ;;  %v2313_v15 = vpop.f32.mrb[113].mxu1  ;;  %v4805_v20 = vpack.c.bf16 %v3092_v22, %v3092_v22 }
 0x1f6   :  { %v1890_v25 = vpop.f32.mrb[114].mxu0  ;;  %v2314_v27 = vpop.f32.mrb[114].mxu1  ;;  %4043 = vst.msk [vmem:[%s6813_s3 + $0xdc] sm:$0xf] %vm3987_vm0, %v4699_v19 }
 0x1f7   :  { %vm2565_vm8 = vcmp.ge.f32.partialorder %v1888_v13, 0.0  ;;  %v2776_v28 = vmul.f32 0.01, %v1888_v13  ;;  %vm2671_vm9 = vcmp.ge.f32.partialorder %v2312_v18, 0.0  ;;  %v2882_v30 = vmul.f32 0.01, %v2312_v18 }
 0x1f8   :  { %4149 = vst.msk [vmem:[%s6813_s3 + $0x284] sm:$0xf] %vm3987_vm0, %v4805_v20  ;;  %v1891_v21 = vadd.f32 %v6157_v55, %v1890_v25  ;;  %v2315_v31 = vadd.f32 %v6157_v55, %v2314_v27  ;;  %v1892_v23 = vpop.f32.mrb[115].mxu0  ;;  %v2316_v33 = vpop.f32.mrb[115].mxu1 }
 0x1f9   :  { %v2987_v35 = vsel %vm2565_vm8, %v1888_v13, %v2776_v28  ;;  %v3093_v26 = vsel %vm2671_vm9, %v2312_v18, %v2882_v30 }
 0x1fa   :  { %v4700_v36 = vpack.c.bf16 %v2987_v35, %v2987_v35  ;;  %v4806_v41 = vpack.c.bf16 %v3093_v26, %v3093_v26  ;;  %vm2566_vm10 = vcmp.ge.f32.partialorder %v1891_v21, 0.0  ;;  %v2777_v29 = vmul.f32 0.01, %v1891_v21 }
 0x1fb   :  { %vm2672_vm11 = vcmp.ge.f32.partialorder %v2315_v31, 0.0  ;;  %v2883_v38 = vmul.f32 0.01, %v2315_v31 }
 0x1fc   :  { %4044 = vst.msk [vmem:[%s6813_s3 + $0xe0] sm:$0xf] %vm3987_vm0, %v4700_v36  ;;  %4150 = vst.msk [vmem:[%s6813_s3 + $0x288] sm:$0xf] %vm3987_vm0, %v4806_v41  ;;  %v2988_v32 = vsel %vm2566_vm10, %v1891_v21, %v2777_v29  ;;  %v1895_v40 = vpop.f32.mrb[116].mxu0  ;;  %v2319_v43 = vpop.f32.mrb[116].mxu1 }
 0x1fd   :  { %v4701_v34 = vpack.c.bf16 %v2988_v32, %v2988_v32  ;;  %v3094_v44 = vsel %vm2672_vm11, %v2315_v31, %v2883_v38  ;;  %v1896_v37 = vadd.f32 %v6157_v55, %v1895_v40  ;;  %v2320_v47 = vadd.f32 %v6157_v55, %v2319_v43  ;;  %v1897_v39 = vpop.f32.mrb[117].mxu0  ;;  %v2321_v49 = vpop.f32.mrb[117].mxu1 }
 0x1fe   :  { %v4807_v45 = vpack.c.bf16 %v3094_v44, %v3094_v44  ;;  %v1898_v42 = vpop.f32.mrb[118].mxu0  ;;  %v2322_v51 = vpop.f32.mrb[118].mxu1 }
 0x1ff   :  { %4045 = vst.msk [vmem:[%s6813_s3 + $0xe4] sm:$0xf] %vm3987_vm0, %v4701_v34  ;;  %vm2567_vm12 = vcmp.ge.f32.partialorder %v1896_v37, 0.0  ;;  %v2778_v46 = vmul.f32 0.01, %v1896_v37  ;;  %vm2673_vm13 = vcmp.ge.f32.partialorder %v2320_v47, 0.0  ;;  %v1899_v53 = vadd.f32 %v6157_v55, %v1898_v42 }
 0x200   :  { %v2884_v52 = vmul.f32 0.01, %v2320_v47  ;;  %4151 = vst.msk [vmem:[%s6813_s3 + $0x28c] sm:$0xf] %vm3987_vm0, %v4807_v45  ;;  %v2323_v57 = vadd.f32 %v6157_v55, %v2322_v51  ;;  %v1900_v48 = vpop.f32.mrb[119].mxu0  ;;  %v2324_v58 = vpop.f32.mrb[119].mxu1 }
 0x201   :  { %v2989_v60 = vsel %vm2567_vm12, %v1896_v37, %v2778_v46  ;;  %vm2568_vm14 = vcmp.ge.f32.partialorder %v1899_v53, 0.0  ;;  %v2779_v63 = vmul.f32 0.01, %v1899_v53 }
 0x202   :  { %v3095_v50 = vsel %vm2673_vm13, %v2320_v47, %v2884_v52  ;;  %v4702_v61 = vpack.c.bf16 %v2989_v60, %v2989_v60  ;;  %vm2674_vm15 = vcmp.ge.f32.partialorder %v2323_v57, 0.0  ;;  %v2885_v1 = vmul.f32 0.01, %v2323_v57 }
 0x203   :  { %v4808_v54 = vpack.c.bf16 %v3095_v50, %v3095_v50  ;;  %v2990_v56 = vsel %vm2568_vm14, %v1899_v53, %v2779_v63 }
 0x204   :  { %4046 = vst.msk [vmem:[%s6813_s3 + $0xe8] sm:$0xf] %vm3987_vm0, %v4702_v61  ;;  %v1903_v2 = vpop.f32.mrb[120].mxu0  ;;  %v2327_v59 = vpop.f32.mrb[120].mxu1  ;;  %v4703_v4 = vpack.c.bf16 %v2990_v56, %v2990_v56  ;;  %v3096_v6 = vsel %vm2674_vm15, %v2323_v57, %v2885_v1 }
 0x205   :  { %4152 = vst.msk [vmem:[%s6813_s3 + $0x290] sm:$0xf] %vm3987_vm0, %v4808_v54  ;;  %v1904_v62 = vadd.f32 %v6157_v55, %v1903_v2  ;;  %v2328_v7 = vadd.f32 %v6157_v55, %v2327_v59  ;;  %v1905_v0 = vpop.f32.mrb[121].mxu0  ;;  %v2329_v9 = vpop.f32.mrb[121].mxu1  ;;  %v4809_v11 = vpack.c.bf16 %v3096_v6, %v3096_v6 }
 0x206   :  { %v1906_v3 = vpop.f32.mrb[122].mxu0  ;;  %v2330_v12 = vpop.f32.mrb[122].mxu1  ;;  %4047 = vst.msk [vmem:[%s6813_s3 + $0xec] sm:$0xf] %vm3987_vm0, %v4703_v4 }
 0x207   :  { %vm2569_vm1 = vcmp.ge.f32.partialorder %v1904_v62, 0.0  ;;  %v2780_v5 = vmul.f32 0.01, %v1904_v62  ;;  %vm2675_vm2 = vcmp.ge.f32.partialorder %v2328_v7, 0.0  ;;  %v2886_v14 = vmul.f32 0.01, %v2328_v7 }
 0x208   :  { %4153 = vst.msk [vmem:[%s6813_s3 + $0x294] sm:$0xf] %vm3987_vm0, %v4809_v11  ;;  %v1907_v16 = vadd.f32 %v6157_v55, %v1906_v3  ;;  %v2331_v8 = vadd.f32 %v6157_v55, %v2330_v12  ;;  %v1908_v17 = vpop.f32.mrb[123].mxu0  ;;  %v2332_v10 = vpop.f32.mrb[123].mxu1 }
 0x209   :  { %v2991_v19 = vsel %vm2569_vm1, %v1904_v62, %v2780_v5  ;;  %v3097_v22 = vsel %vm2675_vm2, %v2328_v7, %v2886_v14 }
 0x20a   :  { %v4704_v13 = vpack.c.bf16 %v2991_v19, %v2991_v19  ;;  %v4810_v18 = vpack.c.bf16 %v3097_v22, %v3097_v22  ;;  %vm2570_vm3 = vcmp.ge.f32.partialorder %v1907_v16, 0.0  ;;  %v2781_v24 = vmul.f32 0.01, %v1907_v16 }
 0x20b   :  { %vm2676_vm4 = vcmp.ge.f32.partialorder %v2331_v8, 0.0  ;;  %v2887_v15 = vmul.f32 0.01, %v2331_v8 }
 0x20c   :  { %4048 = vst.msk [vmem:[%s6813_s3 + $0xf0] sm:$0xf] %vm3987_vm0, %v4704_v13  ;;  %4154 = vst.msk [vmem:[%s6813_s3 + $0x298] sm:$0xf] %vm3987_vm0, %v4810_v18  ;;  %v2992_v20 = vsel %vm2570_vm3, %v1907_v16, %v2781_v24  ;;  %v1911_v25 = vpop.f32.mrb[124].mxu0  ;;  %v2335_v27 = vpop.f32.mrb[124].mxu1 }
 0x20d   :  { %v4705_v28 = vpack.c.bf16 %v2992_v20, %v2992_v20  ;;  %v3098_v30 = vsel %vm2676_vm4, %v2331_v8, %v2887_v15  ;;  %v1912_v21 = vadd.f32 %v6157_v55, %v1911_v25  ;;  %v2336_v31 = vadd.f32 %v6157_v55, %v2335_v27  ;;  %v1913_v23 = vpop.f32.mrb[125].mxu0  ;;  %v2337_v33 = vpop.f32.mrb[125].mxu1 }
 0x20e   :  { %v4811_v35 = vpack.c.bf16 %v3098_v30, %v3098_v30  ;;  %v1914_v26 = vpop.f32.mrb[126].mxu0  ;;  %v2338_v36 = vpop.f32.mrb[126].mxu1 }
 0x20f   :  { %4049 = vst.msk [vmem:[%s6813_s3 + $0xf4] sm:$0xf] %vm3987_vm0, %v4705_v28  ;;  %vm2571_vm5 = vcmp.ge.f32.partialorder %v1912_v21, 0.0  ;;  %v2782_v41 = vmul.f32 0.01, %v1912_v21  ;;  %vm2677_vm6 = vcmp.ge.f32.partialorder %v2336_v31, 0.0  ;;  %v1915_v38 = vadd.f32 %v6157_v55, %v1914_v26 }
 0x210   :  { %v2888_v29 = vmul.f32 0.01, %v2336_v31  ;;  %4155 = vst.msk [vmem:[%s6813_s3 + $0x29c] sm:$0xf] %vm3987_vm0, %v4811_v35  ;;  %v2339_v32 = vadd.f32 %v6157_v55, %v2338_v36  ;;  %v1916_v40 = vpop.f32.mrb[127].mxu0  ;;  %v2340_v43 = vpop.f32.mrb[127].mxu1 }
 0x211   :  { %v2993_v34 = vsel %vm2571_vm5, %v1912_v21, %v2782_v41  ;;  %vm2572_vm7 = vcmp.ge.f32.partialorder %v1915_v38, 0.0  ;;  %v2783_v39 = vmul.f32 0.01, %v1915_v38 }
 0x212   :  { %v3099_v44 = vsel %vm2677_vm6, %v2336_v31, %v2888_v29  ;;  %v4706_v37 = vpack.c.bf16 %v2993_v34, %v2993_v34  ;;  %vm2678_vm8 = vcmp.ge.f32.partialorder %v2339_v32, 0.0  ;;  %v2889_v49 = vmul.f32 0.01, %v2339_v32 }
 0x213   :  { %v4812_v47 = vpack.c.bf16 %v3099_v44, %v3099_v44  ;;  %v2994_v45 = vsel %vm2572_vm7, %v1915_v38, %v2783_v39 }
 0x214   :  { %4050 = vst.msk [vmem:[%s6813_s3 + $0xf8] sm:$0xf] %vm3987_vm0, %v4706_v37  ;;  %v1919_v42 = vpop.f32.mrb[128].mxu0  ;;  %v2343_v51 = vpop.f32.mrb[128].mxu1  ;;  %v4707_v46 = vpack.c.bf16 %v2994_v45, %v2994_v45  ;;  %v3100_v52 = vsel %vm2678_vm8, %v2339_v32, %v2889_v49 }
 0x215   :  { %4156 = vst.msk [vmem:[%s6813_s3 + $0x2a0] sm:$0xf] %vm3987_vm0, %v4812_v47  ;;  %v1920_v53 = vadd.f32 %v6157_v55, %v1919_v42  ;;  %v2344_v57 = vadd.f32 %v6157_v55, %v2343_v51  ;;  %v1921_v48 = vpop.f32.mrb[129].mxu0  ;;  %v2345_v58 = vpop.f32.mrb[129].mxu1  ;;  %v4813_v60 = vpack.c.bf16 %v3100_v52, %v3100_v52 }
 0x216   :  { %v1922_v50 = vpop.f32.mrb[130].mxu0  ;;  %v2346_v61 = vpop.f32.mrb[130].mxu1  ;;  %4051 = vst.msk [vmem:[%s6813_s3 + $0xfc] sm:$0xf] %vm3987_vm0, %v4707_v46 }
 0x217   :  { %vm2573_vm9 = vcmp.ge.f32.partialorder %v1920_v53, 0.0  ;;  %v2784_v54 = vmul.f32 0.01, %v1920_v53  ;;  %vm2679_vm10 = vcmp.ge.f32.partialorder %v2344_v57, 0.0  ;;  %v2890_v63 = vmul.f32 0.01, %v2344_v57 }
 0x218   :  { %4157 = vst.msk [vmem:[%s6813_s3 + $0x2a4] sm:$0xf] %vm3987_vm0, %v4813_v60  ;;  %v1923_v1 = vadd.f32 %v6157_v55, %v1922_v50  ;;  %v2347_v56 = vadd.f32 %v6157_v55, %v2346_v61  ;;  %v1924_v2 = vpop.f32.mrb[131].mxu0  ;;  %v2348_v59 = vpop.f32.mrb[131].mxu1 }
 0x219   :  { %v2995_v4 = vsel %vm2573_vm9, %v1920_v53, %v2784_v54  ;;  %v3101_v6 = vsel %vm2679_vm10, %v2344_v57, %v2890_v63 }
 0x21a   :  { %v4708_v62 = vpack.c.bf16 %v2995_v4, %v2995_v4  ;;  %v4814_v7 = vpack.c.bf16 %v3101_v6, %v3101_v6  ;;  %vm2574_vm11 = vcmp.ge.f32.partialorder %v1923_v1, 0.0  ;;  %v2785_v0 = vmul.f32 0.01, %v1923_v1 }
 0x21b   :  { %vm2680_vm12 = vcmp.ge.f32.partialorder %v2347_v56, 0.0  ;;  %v2891_v9 = vmul.f32 0.01, %v2347_v56 }
 0x21c   :  { %4052 = vst.msk [vmem:[%s6813_s3 + $0x100] sm:$0xf] %vm3987_vm0, %v4708_v62  ;;  %4158 = vst.msk [vmem:[%s6813_s3 + $0x2a8] sm:$0xf] %vm3987_vm0, %v4814_v7  ;;  %v2996_v11 = vsel %vm2574_vm11, %v1923_v1, %v2785_v0  ;;  %v1927_v3 = vpop.f32.mrb[132].mxu0  ;;  %v2351_v12 = vpop.f32.mrb[132].mxu1 }
 0x21d   :  { %v4709_v5 = vpack.c.bf16 %v2996_v11, %v2996_v11  ;;  %v3102_v14 = vsel %vm2680_vm12, %v2347_v56, %v2891_v9  ;;  %v1928_v16 = vadd.f32 %v6157_v55, %v1927_v3  ;;  %v2352_v8 = vadd.f32 %v6157_v55, %v2351_v12  ;;  %v1929_v17 = vpop.f32.mrb[133].mxu0  ;;  %v2353_v10 = vpop.f32.mrb[133].mxu1 }
 0x21e   :  { %v4815_v19 = vpack.c.bf16 %v3102_v14, %v3102_v14  ;;  %v1930_v22 = vpop.f32.mrb[134].mxu0  ;;  %v2354_v13 = vpop.f32.mrb[134].mxu1 }
 0x21f   :  { %4053 = vst.msk [vmem:[%s6813_s3 + $0x104] sm:$0xf] %vm3987_vm0, %v4709_v5  ;;  %vm2575_vm13 = vcmp.ge.f32.partialorder %v1928_v16, 0.0  ;;  %v2786_v18 = vmul.f32 0.01, %v1928_v16  ;;  %vm2681_vm14 = vcmp.ge.f32.partialorder %v2352_v8, 0.0  ;;  %v1931_v15 = vadd.f32 %v6157_v55, %v1930_v22 }
 0x220   :  { %v2892_v24 = vmul.f32 0.01, %v2352_v8  ;;  %4159 = vst.msk [vmem:[%s6813_s3 + $0x2ac] sm:$0xf] %vm3987_vm0, %v4815_v19  ;;  %v2355_v20 = vadd.f32 %v6157_v55, %v2354_v13  ;;  %v1932_v25 = vpop.f32.mrb[135].mxu0  ;;  %v2356_v27 = vpop.f32.mrb[135].mxu1 }
 0x221   :  { %v2997_v28 = vsel %vm2575_vm13, %v1928_v16, %v2786_v18  ;;  %vm2576_vm15 = vcmp.ge.f32.partialorder %v1931_v15, 0.0  ;;  %v2787_v23 = vmul.f32 0.01, %v1931_v15 }
 0x222   :  { %v3103_v30 = vsel %vm2681_vm14, %v2352_v8, %v2892_v24  ;;  %v4710_v21 = vpack.c.bf16 %v2997_v28, %v2997_v28  ;;  %vm2682_vm1 = vcmp.ge.f32.partialorder %v2355_v20, 0.0  ;;  %v2893_v33 = vmul.f32 0.01, %v2355_v20 }
 0x223   :  { %v4816_v31 = vpack.c.bf16 %v3103_v30, %v3103_v30  ;;  %v2998_v35 = vsel %vm2576_vm15, %v1931_v15, %v2787_v23 }
 0x224   :  { %4054 = vst.msk [vmem:[%s6813_s3 + $0x108] sm:$0xf] %vm3987_vm0, %v4710_v21  ;;  %v1935_v26 = vpop.f32.mrb[136].mxu0  ;;  %v2359_v36 = vpop.f32.mrb[136].mxu1  ;;  %v4711_v41 = vpack.c.bf16 %v2998_v35, %v2998_v35  ;;  %v3104_v29 = vsel %vm2682_vm1, %v2355_v20, %v2893_v33 }
 0x225   :  { %4160 = vst.msk [vmem:[%s6813_s3 + $0x2b0] sm:$0xf] %vm3987_vm0, %v4816_v31  ;;  %v1936_v38 = vadd.f32 %v6157_v55, %v1935_v26  ;;  %v2360_v32 = vadd.f32 %v6157_v55, %v2359_v36  ;;  %v1937_v40 = vpop.f32.mrb[137].mxu0  ;;  %v2361_v43 = vpop.f32.mrb[137].mxu1  ;;  %v4817_v34 = vpack.c.bf16 %v3104_v29, %v3104_v29 }
 0x226   :  { %v1938_v44 = vpop.f32.mrb[138].mxu0  ;;  %v2362_v37 = vpop.f32.mrb[138].mxu1  ;;  %4055 = vst.msk [vmem:[%s6813_s3 + $0x10c] sm:$0xf] %vm3987_vm0, %v4711_v41 }
 0x227   :  { %vm2577_vm2 = vcmp.ge.f32.partialorder %v1936_v38, 0.0  ;;  %v2788_v47 = vmul.f32 0.01, %v1936_v38  ;;  %vm2683_vm3 = vcmp.ge.f32.partialorder %v2360_v32, 0.0  ;;  %v2894_v39 = vmul.f32 0.01, %v2360_v32 }
 0x228   :  { %4161 = vst.msk [vmem:[%s6813_s3 + $0x2b4] sm:$0xf] %vm3987_vm0, %v4817_v34  ;;  %v1939_v49 = vadd.f32 %v6157_v55, %v1938_v44  ;;  %v2363_v45 = vadd.f32 %v6157_v55, %v2362_v37  ;;  %v1940_v42 = vpop.f32.mrb[139].mxu0  ;;  %v2364_v51 = vpop.f32.mrb[139].mxu1 }
 0x229   :  { %v2999_v46 = vsel %vm2577_vm2, %v1936_v38, %v2788_v47  ;;  %v3105_v52 = vsel %vm2683_vm3, %v2360_v32, %v2894_v39 }
 0x22a   :  { %v4712_v53 = vpack.c.bf16 %v2999_v46, %v2999_v46  ;;  %v4818_v57 = vpack.c.bf16 %v3105_v52, %v3105_v52  ;;  %vm2578_vm4 = vcmp.ge.f32.partialorder %v1939_v49, 0.0  ;;  %v2789_v48 = vmul.f32 0.01, %v1939_v49 }
 0x22b   :  { %vm2684_vm5 = vcmp.ge.f32.partialorder %v2363_v45, 0.0  ;;  %v2895_v58 = vmul.f32 0.01, %v2363_v45 }
 0x22c   :  { %4056 = vst.msk [vmem:[%s6813_s3 + $0x110] sm:$0xf] %vm3987_vm0, %v4712_v53  ;;  %4162 = vst.msk [vmem:[%s6813_s3 + $0x2b8] sm:$0xf] %vm3987_vm0, %v4818_v57  ;;  %v3000_v60 = vsel %vm2578_vm4, %v1939_v49, %v2789_v48  ;;  %v1943_v50 = vpop.f32.mrb[140].mxu0  ;;  %v2367_v61 = vpop.f32.mrb[140].mxu1 }
 0x22d   :  { %v4713_v54 = vpack.c.bf16 %v3000_v60, %v3000_v60  ;;  %v3106_v63 = vsel %vm2684_vm5, %v2363_v45, %v2895_v58  ;;  %v1944_v1 = vadd.f32 %v6157_v55, %v1943_v50  ;;  %v2368_v56 = vadd.f32 %v6157_v55, %v2367_v61  ;;  %v1945_v2 = vpop.f32.mrb[141].mxu0  ;;  %v2369_v59 = vpop.f32.mrb[141].mxu1 }
 0x22e   :  { %v4819_v4 = vpack.c.bf16 %v3106_v63, %v3106_v63  ;;  %v1946_v6 = vpop.f32.mrb[142].mxu0  ;;  %v2370_v62 = vpop.f32.mrb[142].mxu1 }
 0x22f   :  { %4057 = vst.msk [vmem:[%s6813_s3 + $0x114] sm:$0xf] %vm3987_vm0, %v4713_v54  ;;  %vm2579_vm6 = vcmp.ge.f32.partialorder %v1944_v1, 0.0  ;;  %v2790_v7 = vmul.f32 0.01, %v1944_v1  ;;  %vm2685_vm7 = vcmp.ge.f32.partialorder %v2368_v56, 0.0  ;;  %v1947_v9 = vadd.f32 %v6157_v55, %v1946_v6 }
 0x230   :  { %v2896_v0 = vmul.f32 0.01, %v2368_v56  ;;  %4163 = vst.msk [vmem:[%s6813_s3 + $0x2bc] sm:$0xf] %vm3987_vm0, %v4819_v4  ;;  %v2371_v11 = vadd.f32 %v6157_v55, %v2370_v62  ;;  %v1948_v3 = vpop.f32.mrb[143].mxu0  ;;  %v2372_v12 = vpop.f32.mrb[143].mxu1 }
 0x231   :  { %v3001_v5 = vsel %vm2579_vm6, %v1944_v1, %v2790_v7  ;;  %vm2580_vm8 = vcmp.ge.f32.partialorder %v1947_v9, 0.0  ;;  %v2791_v17 = vmul.f32 0.01, %v1947_v9 }
 0x232   :  { %v3107_v14 = vsel %vm2685_vm7, %v2368_v56, %v2896_v0  ;;  %v4714_v16 = vpack.c.bf16 %v3001_v5, %v3001_v5  ;;  %vm2686_vm9 = vcmp.ge.f32.partialorder %v2371_v11, 0.0  ;;  %v2897_v10 = vmul.f32 0.01, %v2371_v11 }
 0x233   :  { %v4820_v8 = vpack.c.bf16 %v3107_v14, %v3107_v14  ;;  %v3002_v19 = vsel %vm2580_vm8, %v1947_v9, %v2791_v17 }
 0x234   :  { %4058 = vst.msk [vmem:[%s6813_s3 + $0x118] sm:$0xf] %vm3987_vm0, %v4714_v16  ;;  %v1951_v22 = vpop.f32.mrb[144].mxu0  ;;  %v2375_v13 = vpop.f32.mrb[144].mxu1  ;;  %v4715_v18 = vpack.c.bf16 %v3002_v19, %v3002_v19  ;;  %v3108_v24 = vsel %vm2686_vm9, %v2371_v11, %v2897_v10 }
 0x235   :  { %4164 = vst.msk [vmem:[%s6813_s3 + $0x2c0] sm:$0xf] %vm3987_vm0, %v4820_v8  ;;  %v1952_v15 = vadd.f32 %v6157_v55, %v1951_v22  ;;  %v2376_v20 = vadd.f32 %v6157_v55, %v2375_v13  ;;  %v1953_v25 = vpop.f32.mrb[145].mxu0  ;;  %v2377_v27 = vpop.f32.mrb[145].mxu1  ;;  %v4821_v28 = vpack.c.bf16 %v3108_v24, %v3108_v24 }
 0x236   :  { %v1954_v30 = vpop.f32.mrb[146].mxu0  ;;  %v2378_v21 = vpop.f32.mrb[146].mxu1  ;;  %4059 = vst.msk [vmem:[%s6813_s3 + $0x11c] sm:$0xf] %vm3987_vm0, %v4715_v18 }
 0x237   :  { %vm2581_vm10 = vcmp.ge.f32.partialorder %v1952_v15, 0.0  ;;  %v2792_v31 = vmul.f32 0.01, %v1952_v15  ;;  %vm2687_vm11 = vcmp.ge.f32.partialorder %v2376_v20, 0.0  ;;  %v2898_v23 = vmul.f32 0.01, %v2376_v20 }
 0x238   :  { %4165 = vst.msk [vmem:[%s6813_s3 + $0x2c4] sm:$0xf] %vm3987_vm0, %v4821_v28  ;;  %v1955_v33 = vadd.f32 %v6157_v55, %v1954_v30  ;;  %v2379_v35 = vadd.f32 %v6157_v55, %v2378_v21  ;;  %v1956_v26 = vpop.f32.mrb[147].mxu0  ;;  %v2380_v36 = vpop.f32.mrb[147].mxu1 }
 0x239   :  { %v3003_v41 = vsel %vm2581_vm10, %v1952_v15, %v2792_v31  ;;  %v3109_v29 = vsel %vm2687_vm11, %v2376_v20, %v2898_v23 }
 0x23a   :  { %v4716_v38 = vpack.c.bf16 %v3003_v41, %v3003_v41  ;;  %v4822_v32 = vpack.c.bf16 %v3109_v29, %v3109_v29  ;;  %vm2582_vm12 = vcmp.ge.f32.partialorder %v1955_v33, 0.0  ;;  %v2793_v40 = vmul.f32 0.01, %v1955_v33 }
 0x23b   :  { %vm2688_vm13 = vcmp.ge.f32.partialorder %v2379_v35, 0.0  ;;  %v2899_v43 = vmul.f32 0.01, %v2379_v35 }
 0x23c   :  { %4060 = vst.msk [vmem:[%s6813_s3 + $0x120] sm:$0xf] %vm3987_vm0, %v4716_v38  ;;  %4166 = vst.msk [vmem:[%s6813_s3 + $0x2c8] sm:$0xf] %vm3987_vm0, %v4822_v32  ;;  %v3004_v34 = vsel %vm2582_vm12, %v1955_v33, %v2793_v40  ;;  %v1959_v44 = vpop.f32.mrb[148].mxu0  ;;  %v2383_v37 = vpop.f32.mrb[148].mxu1 }
 0x23d   :  { %v4717_v47 = vpack.c.bf16 %v3004_v34, %v3004_v34  ;;  %v3110_v39 = vsel %vm2688_vm13, %v2379_v35, %v2899_v43  ;;  %v1960_v49 = vadd.f32 %v6157_v55, %v1959_v44  ;;  %v2384_v45 = vadd.f32 %v6157_v55, %v2383_v37  ;;  %v1961_v42 = vpop.f32.mrb[149].mxu0  ;;  %v2385_v51 = vpop.f32.mrb[149].mxu1  ;;  %v6496_v55 = vld [vmem:[%s6812_s2] ss:$0 sm:$0xff] }
 0x23e   :  { %v4823_v46 = vpack.c.bf16 %v3110_v39, %v3110_v39  ;;  %v1962_v52 = vpop.f32.mrb[150].mxu0  ;;  %v2386_v53 = vpop.f32.mrb[150].mxu1 }
 0x23f   :  { %4061 = vst.msk [vmem:[%s6813_s3 + $0x124] sm:$0xf] %vm3987_vm0, %v4717_v47  ;;  %vm2583_vm14 = vcmp.ge.f32.partialorder %v1960_v49, 0.0  ;;  %v2794_v57 = vmul.f32 0.01, %v1960_v49  ;;  %vm2689_vm15 = vcmp.ge.f32.partialorder %v2384_v45, 0.0  ;;  %v1963_v58 = vadd.f32 %v6496_v55, %v1962_v52 }
 0x240   :  { %v2900_v48 = vmul.f32 0.01, %v2384_v45  ;;  %4167 = vst.msk [vmem:[%s6813_s3 + $0x2cc] sm:$0xf] %vm3987_vm0, %v4823_v46  ;;  %v2387_v60 = vadd.f32 %v6496_v55, %v2386_v53  ;;  %v1964_v50 = vpop.f32.mrb[151].mxu0  ;;  %v2388_v61 = vpop.f32.mrb[151].mxu1 }
 0x241   :  { %v3005_v54 = vsel %vm2583_vm14, %v1960_v49, %v2794_v57  ;;  %vm2584_vm1 = vcmp.ge.f32.partialorder %v1963_v58, 0.0  ;;  %v2795_v2 = vmul.f32 0.01, %v1963_v58 }
 0x242   :  { %v3111_v63 = vsel %vm2689_vm15, %v2384_v45, %v2900_v48  ;;  %v4718_v1 = vpack.c.bf16 %v3005_v54, %v3005_v54  ;;  %vm2690_vm2 = vcmp.ge.f32.partialorder %v2387_v60, 0.0  ;;  %v2901_v59 = vmul.f32 0.01, %v2387_v60 }
 0x243   :  { %v4824_v56 = vpack.c.bf16 %v3111_v63, %v3111_v63  ;;  %v3006_v4 = vsel %vm2584_vm1, %v1963_v58, %v2795_v2 }
 0x244   :  { %4062 = vst.msk [vmem:[%s6813_s3 + $0x128] sm:$0xf] %vm3987_vm0, %v4718_v1  ;;  %v1967_v6 = vpop.f32.mrb[152].mxu0  ;;  %v2391_v62 = vpop.f32.mrb[152].mxu1  ;;  %v4719_v7 = vpack.c.bf16 %v3006_v4, %v3006_v4  ;;  %v3112_v0 = vsel %vm2690_vm2, %v2387_v60, %v2901_v59 }
 0x245   :  { %4168 = vst.msk [vmem:[%s6813_s3 + $0x2d0] sm:$0xf] %vm3987_vm0, %v4824_v56  ;;  %v1968_v9 = vadd.f32 %v6496_v55, %v1967_v6  ;;  %v2392_v11 = vadd.f32 %v6496_v55, %v2391_v62  ;;  %v1969_v3 = vpop.f32.mrb[153].mxu0  ;;  %v2393_v12 = vpop.f32.mrb[153].mxu1  ;;  %v4825_v5 = vpack.c.bf16 %v3112_v0, %v3112_v0 }
 0x246   :  { %v1970_v14 = vpop.f32.mrb[154].mxu0  ;;  %v2394_v16 = vpop.f32.mrb[154].mxu1  ;;  %4063 = vst.msk [vmem:[%s6813_s3 + $0x12c] sm:$0xf] %vm3987_vm0, %v4719_v7 }
 0x247   :  { %vm2585_vm3 = vcmp.ge.f32.partialorder %v1968_v9, 0.0  ;;  %v2796_v8 = vmul.f32 0.01, %v1968_v9  ;;  %vm2691_vm4 = vcmp.ge.f32.partialorder %v2392_v11, 0.0  ;;  %v2902_v17 = vmul.f32 0.01, %v2392_v11 }
 0x248   :  { %4169 = vst.msk [vmem:[%s6813_s3 + $0x2d4] sm:$0xf] %vm3987_vm0, %v4825_v5  ;;  %v1971_v10 = vadd.f32 %v6496_v55, %v1970_v14  ;;  %v2395_v19 = vadd.f32 %v6496_v55, %v2394_v16  ;;  %v1972_v22 = vpop.f32.mrb[155].mxu0  ;;  %v2396_v13 = vpop.f32.mrb[155].mxu1 }
 0x249   :  { %v3007_v18 = vsel %vm2585_vm3, %v1968_v9, %v2796_v8  ;;  %v3113_v24 = vsel %vm2691_vm4, %v2392_v11, %v2902_v17 }
 0x24a   :  { %v4720_v15 = vpack.c.bf16 %v3007_v18, %v3007_v18  ;;  %v4826_v20 = vpack.c.bf16 %v3113_v24, %v3113_v24  ;;  %vm2586_vm5 = vcmp.ge.f32.partialorder %v1971_v10, 0.0  ;;  %v2797_v25 = vmul.f32 0.01, %v1971_v10 }
 0x24b   :  { %vm2692_vm6 = vcmp.ge.f32.partialorder %v2395_v19, 0.0  ;;  %v2903_v27 = vmul.f32 0.01, %v2395_v19 }
 0x24c   :  { %4064 = vst.msk [vmem:[%s6813_s3 + $0x130] sm:$0xf] %vm3987_vm0, %v4720_v15  ;;  %4170 = vst.msk [vmem:[%s6813_s3 + $0x2d8] sm:$0xf] %vm3987_vm0, %v4826_v20  ;;  %v3008_v28 = vsel %vm2586_vm5, %v1971_v10, %v2797_v25  ;;  %v1975_v30 = vpop.f32.mrb[156].mxu0  ;;  %v2399_v21 = vpop.f32.mrb[156].mxu1 }
 0x24d   :  { %v4721_v31 = vpack.c.bf16 %v3008_v28, %v3008_v28  ;;  %v3114_v23 = vsel %vm2692_vm6, %v2395_v19, %v2903_v27  ;;  %v1976_v33 = vadd.f32 %v6496_v55, %v1975_v30  ;;  %v2400_v35 = vadd.f32 %v6496_v55, %v2399_v21  ;;  %v1977_v26 = vpop.f32.mrb[157].mxu0  ;;  %v2401_v36 = vpop.f32.mrb[157].mxu1 }
 0x24e   :  { %v4827_v41 = vpack.c.bf16 %v3114_v23, %v3114_v23  ;;  %v1978_v29 = vpop.f32.mrb[158].mxu0  ;;  %v2402_v38 = vpop.f32.mrb[158].mxu1 }
 0x24f   :  { %4065 = vst.msk [vmem:[%s6813_s3 + $0x134] sm:$0xf] %vm3987_vm0, %v4721_v31  ;;  %vm2587_vm7 = vcmp.ge.f32.partialorder %v1976_v33, 0.0  ;;  %v2798_v32 = vmul.f32 0.01, %v1976_v33  ;;  %vm2693_vm8 = vcmp.ge.f32.partialorder %v2400_v35, 0.0  ;;  %v1979_v43 = vadd.f32 %v6496_v55, %v1978_v29 }
 0x250   :  { %v2904_v40 = vmul.f32 0.01, %v2400_v35  ;;  %4171 = vst.msk [vmem:[%s6813_s3 + $0x2dc] sm:$0xf] %vm3987_vm0, %v4827_v41  ;;  %v2403_v34 = vadd.f32 %v6496_v55, %v2402_v38  ;;  %v1980_v44 = vpop.f32.mrb[159].mxu0  ;;  %v2404_v37 = vpop.f32.mrb[159].mxu1 }
 0x251   :  { %v3009_v47 = vsel %vm2587_vm7, %v1976_v33, %v2798_v32  ;;  %vm2588_vm9 = vcmp.ge.f32.partialorder %v1979_v43, 0.0  ;;  %v2799_v42 = vmul.f32 0.01, %v1979_v43 }
 0x252   :  { %v3115_v39 = vsel %vm2693_vm8, %v2400_v35, %v2904_v40  ;;  %v4722_v49 = vpack.c.bf16 %v3009_v47, %v3009_v47  ;;  %vm2694_vm10 = vcmp.ge.f32.partialorder %v2403_v34, 0.0  ;;  %v2905_v51 = vmul.f32 0.01, %v2403_v34 }
 0x253   :  { %v4828_v45 = vpack.c.bf16 %v3115_v39, %v3115_v39  ;;  %v3010_v46 = vsel %vm2588_vm9, %v1979_v43, %v2799_v42 }
 0x254   :  { %4066 = vst.msk [vmem:[%s6813_s3 + $0x138] sm:$0xf] %vm3987_vm0, %v4722_v49  ;;  %v1983_v52 = vpop.f32.mrb[160].mxu0  ;;  %v2407_v53 = vpop.f32.mrb[160].mxu1  ;;  %v4723_v57 = vpack.c.bf16 %v3010_v46, %v3010_v46  ;;  %v3116_v48 = vsel %vm2694_vm10, %v2403_v34, %v2905_v51 }
 0x255   :  { %4172 = vst.msk [vmem:[%s6813_s3 + $0x2e0] sm:$0xf] %vm3987_vm0, %v4828_v45  ;;  %v1984_v58 = vadd.f32 %v6496_v55, %v1983_v52  ;;  %v2408_v60 = vadd.f32 %v6496_v55, %v2407_v53  ;;  %v1985_v50 = vpop.f32.mrb[161].mxu0  ;;  %v2409_v61 = vpop.f32.mrb[161].mxu1  ;;  %v4829_v54 = vpack.c.bf16 %v3116_v48, %v3116_v48 }
 0x256   :  { %v1986_v63 = vpop.f32.mrb[162].mxu0  ;;  %v2410_v1 = vpop.f32.mrb[162].mxu1  ;;  %4067 = vst.msk [vmem:[%s6813_s3 + $0x13c] sm:$0xf] %vm3987_vm0, %v4723_v57 }
 0x257   :  { %vm2589_vm11 = vcmp.ge.f32.partialorder %v1984_v58, 0.0  ;;  %v2800_v56 = vmul.f32 0.01, %v1984_v58  ;;  %vm2695_vm12 = vcmp.ge.f32.partialorder %v2408_v60, 0.0  ;;  %v2906_v2 = vmul.f32 0.01, %v2408_v60 }
 0x258   :  { %4173 = vst.msk [vmem:[%s6813_s3 + $0x2e4] sm:$0xf] %vm3987_vm0, %v4829_v54  ;;  %v1987_v59 = vadd.f32 %v6496_v55, %v1986_v63  ;;  %v2411_v4 = vadd.f32 %v6496_v55, %v2410_v1  ;;  %v1988_v6 = vpop.f32.mrb[163].mxu0  ;;  %v2412_v62 = vpop.f32.mrb[163].mxu1 }
 0x259   :  { %v3011_v7 = vsel %vm2589_vm11, %v1984_v58, %v2800_v56  ;;  %v3117_v0 = vsel %vm2695_vm12, %v2408_v60, %v2906_v2 }
 0x25a   :  { %v4724_v9 = vpack.c.bf16 %v3011_v7, %v3011_v7  ;;  %v4830_v11 = vpack.c.bf16 %v3117_v0, %v3117_v0  ;;  %vm2590_vm13 = vcmp.ge.f32.partialorder %v1987_v59, 0.0  ;;  %v2801_v3 = vmul.f32 0.01, %v1987_v59 }
 0x25b   :  { %vm2696_vm14 = vcmp.ge.f32.partialorder %v2411_v4, 0.0  ;;  %v2907_v12 = vmul.f32 0.01, %v2411_v4 }
 0x25c   :  { %4068 = vst.msk [vmem:[%s6813_s3 + $0x140] sm:$0xf] %vm3987_vm0, %v4724_v9  ;;  %4174 = vst.msk [vmem:[%s6813_s3 + $0x2e8] sm:$0xf] %vm3987_vm0, %v4830_v11  ;;  %v3012_v5 = vsel %vm2590_vm13, %v1987_v59, %v2801_v3  ;;  %v1991_v14 = vpop.f32.mrb[164].mxu0  ;;  %v2415_v16 = vpop.f32.mrb[164].mxu1 }
 0x25d   :  { %v4725_v8 = vpack.c.bf16 %v3012_v5, %v3012_v5  ;;  %v3118_v17 = vsel %vm2696_vm14, %v2411_v4, %v2907_v12  ;;  %v1992_v10 = vadd.f32 %v6496_v55, %v1991_v14  ;;  %v2416_v19 = vadd.f32 %v6496_v55, %v2415_v16  ;;  %v1993_v22 = vpop.f32.mrb[165].mxu0  ;;  %v2417_v13 = vpop.f32.mrb[165].mxu1 }
 0x25e   :  { %v4831_v18 = vpack.c.bf16 %v3118_v17, %v3118_v17  ;;  %v1994_v24 = vpop.f32.mrb[166].mxu0  ;;  %v2418_v15 = vpop.f32.mrb[166].mxu1 }
 0x25f   :  { %4069 = vst.msk [vmem:[%s6813_s3 + $0x144] sm:$0xf] %vm3987_vm0, %v4725_v8  ;;  %vm2591_vm15 = vcmp.ge.f32.partialorder %v1992_v10, 0.0  ;;  %v2802_v20 = vmul.f32 0.01, %v1992_v10  ;;  %vm2697_vm1 = vcmp.ge.f32.partialorder %v2416_v19, 0.0  ;;  %v1995_v27 = vadd.f32 %v6496_v55, %v1994_v24 }
 0x260   :  { %v2908_v25 = vmul.f32 0.01, %v2416_v19  ;;  %4175 = vst.msk [vmem:[%s6813_s3 + $0x2ec] sm:$0xf] %vm3987_vm0, %v4831_v18  ;;  %v2419_v28 = vadd.f32 %v6496_v55, %v2418_v15  ;;  %v1996_v30 = vpop.f32.mrb[167].mxu0  ;;  %v2420_v21 = vpop.f32.mrb[167].mxu1 }
 0x261   :  { %v3013_v31 = vsel %vm2591_vm15, %v1992_v10, %v2802_v20  ;;  %vm2592_vm2 = vcmp.ge.f32.partialorder %v1995_v27, 0.0  ;;  %v2803_v26 = vmul.f32 0.01, %v1995_v27 }
 0x262   :  { %v3119_v23 = vsel %vm2697_vm1, %v2416_v19, %v2908_v25  ;;  %v4726_v33 = vpack.c.bf16 %v3013_v31, %v3013_v31  ;;  %vm2698_vm3 = vcmp.ge.f32.partialorder %v2419_v28, 0.0  ;;  %v2909_v36 = vmul.f32 0.01, %v2419_v28 }
 0x263   :  { %v4832_v35 = vpack.c.bf16 %v3119_v23, %v3119_v23  ;;  %v3014_v41 = vsel %vm2592_vm2, %v1995_v27, %v2803_v26 }
 0x264   :  { %4070 = vst.msk [vmem:[%s6813_s3 + $0x148] sm:$0xf] %vm3987_vm0, %v4726_v33  ;;  %v1999_v29 = vpop.f32.mrb[168].mxu0  ;;  %v2423_v38 = vpop.f32.mrb[168].mxu1  ;;  %v4727_v32 = vpack.c.bf16 %v3014_v41, %v3014_v41  ;;  %v3120_v40 = vsel %vm2698_vm3, %v2419_v28, %v2909_v36 }
 0x265   :  { %4176 = vst.msk [vmem:[%s6813_s3 + $0x2f0] sm:$0xf] %vm3987_vm0, %v4832_v35  ;;  %v2000_v43 = vadd.f32 %v6496_v55, %v1999_v29  ;;  %v2424_v34 = vadd.f32 %v6496_v55, %v2423_v38  ;;  %v2001_v44 = vpop.f32.mrb[169].mxu0  ;;  %v2425_v37 = vpop.f32.mrb[169].mxu1  ;;  %v4833_v47 = vpack.c.bf16 %v3120_v40, %v3120_v40 }
 0x266   :  { %v2002_v39 = vpop.f32.mrb[170].mxu0  ;;  %v2426_v49 = vpop.f32.mrb[170].mxu1  ;;  %4071 = vst.msk [vmem:[%s6813_s3 + $0x14c] sm:$0xf] %vm3987_vm0, %v4727_v32 }
 0x267   :  { %vm2593_vm4 = vcmp.ge.f32.partialorder %v2000_v43, 0.0  ;;  %v2804_v45 = vmul.f32 0.01, %v2000_v43  ;;  %vm2699_vm5 = vcmp.ge.f32.partialorder %v2424_v34, 0.0  ;;  %v2910_v42 = vmul.f32 0.01, %v2424_v34 }
 0x268   :  { %4177 = vst.msk [vmem:[%s6813_s3 + $0x2f4] sm:$0xf] %vm3987_vm0, %v4833_v47  ;;  %v2003_v51 = vadd.f32 %v6496_v55, %v2002_v39  ;;  %v2427_v46 = vadd.f32 %v6496_v55, %v2426_v49  ;;  %v2004_v52 = vpop.f32.mrb[171].mxu0  ;;  %v2428_v53 = vpop.f32.mrb[171].mxu1 }
 0x269   :  { %v3015_v57 = vsel %vm2593_vm4, %v2000_v43, %v2804_v45  ;;  %v3121_v48 = vsel %vm2699_vm5, %v2424_v34, %v2910_v42 }
 0x26a   :  { %v4728_v58 = vpack.c.bf16 %v3015_v57, %v3015_v57  ;;  %v4834_v60 = vpack.c.bf16 %v3121_v48, %v3121_v48  ;;  %vm2594_vm6 = vcmp.ge.f32.partialorder %v2003_v51, 0.0  ;;  %v2805_v50 = vmul.f32 0.01, %v2003_v51 }
 0x26b   :  { %vm2700_vm7 = vcmp.ge.f32.partialorder %v2427_v46, 0.0  ;;  %v2911_v61 = vmul.f32 0.01, %v2427_v46 }
 0x26c   :  { %4072 = vst.msk [vmem:[%s6813_s3 + $0x150] sm:$0xf] %vm3987_vm0, %v4728_v58  ;;  %4178 = vst.msk [vmem:[%s6813_s3 + $0x2f8] sm:$0xf] %vm3987_vm0, %v4834_v60  ;;  %v3016_v54 = vsel %vm2594_vm6, %v2003_v51, %v2805_v50  ;;  %v2007_v63 = vpop.f32.mrb[172].mxu0  ;;  %v2431_v1 = vpop.f32.mrb[172].mxu1 }
 0x26d   :  { %v4729_v56 = vpack.c.bf16 %v3016_v54, %v3016_v54  ;;  %v3122_v2 = vsel %vm2700_vm7, %v2427_v46, %v2911_v61  ;;  %v2008_v59 = vadd.f32 %v6496_v55, %v2007_v63  ;;  %v2432_v4 = vadd.f32 %v6496_v55, %v2431_v1  ;;  %v2009_v6 = vpop.f32.mrb[173].mxu0  ;;  %v2433_v62 = vpop.f32.mrb[173].mxu1 }
 0x26e   :  { %v4835_v7 = vpack.c.bf16 %v3122_v2, %v3122_v2  ;;  %v2010_v0 = vpop.f32.mrb[174].mxu0  ;;  %v2434_v9 = vpop.f32.mrb[174].mxu1 }
 0x26f   :  { %4073 = vst.msk [vmem:[%s6813_s3 + $0x154] sm:$0xf] %vm3987_vm0, %v4729_v56  ;;  %vm2595_vm8 = vcmp.ge.f32.partialorder %v2008_v59, 0.0  ;;  %v2806_v11 = vmul.f32 0.01, %v2008_v59  ;;  %vm2701_vm9 = vcmp.ge.f32.partialorder %v2432_v4, 0.0  ;;  %v2011_v12 = vadd.f32 %v6496_v55, %v2010_v0 }
 0x270   :  { %v2912_v3 = vmul.f32 0.01, %v2432_v4  ;;  %4179 = vst.msk [vmem:[%s6813_s3 + $0x2fc] sm:$0xf] %vm3987_vm0, %v4835_v7  ;;  %v2435_v5 = vadd.f32 %v6496_v55, %v2434_v9  ;;  %v2012_v14 = vpop.f32.mrb[175].mxu0  ;;  %v2436_v16 = vpop.f32.mrb[175].mxu1 }
 0x271   :  { %v3017_v8 = vsel %vm2595_vm8, %v2008_v59, %v2806_v11  ;;  %vm2596_vm10 = vcmp.ge.f32.partialorder %v2011_v12, 0.0  ;;  %v2807_v22 = vmul.f32 0.01, %v2011_v12 }
 0x272   :  { %v3123_v17 = vsel %vm2701_vm9, %v2432_v4, %v2912_v3  ;;  %v4730_v10 = vpack.c.bf16 %v3017_v8, %v3017_v8  ;;  %vm2702_vm11 = vcmp.ge.f32.partialorder %v2435_v5, 0.0  ;;  %v2913_v13 = vmul.f32 0.01, %v2435_v5 }
 0x273   :  { %v4836_v19 = vpack.c.bf16 %v3123_v17, %v3123_v17  ;;  %v3018_v18 = vsel %vm2596_vm10, %v2011_v12, %v2807_v22 }
 0x274   :  { %4074 = vst.msk [vmem:[%s6813_s3 + $0x158] sm:$0xf] %vm3987_vm0, %v4730_v10  ;;  %v2015_v24 = vpop.f32.mrb[176].mxu0  ;;  %v2439_v15 = vpop.f32.mrb[176].mxu1  ;;  %v4731_v20 = vpack.c.bf16 %v3018_v18, %v3018_v18  ;;  %v3124_v25 = vsel %vm2702_vm11, %v2435_v5, %v2913_v13 }
 0x275   :  { %4180 = vst.msk [vmem:[%s6813_s3 + $0x300] sm:$0xf] %vm3987_vm0, %v4836_v19  ;;  %v2016_v27 = vadd.f32 %v6496_v55, %v2015_v24  ;;  %v2440_v28 = vadd.f32 %v6496_v55, %v2439_v15  ;;  %v2017_v30 = vpop.f32.mrb[177].mxu0  ;;  %v2441_v21 = vpop.f32.mrb[177].mxu1  ;;  %v4837_v31 = vpack.c.bf16 %v3124_v25, %v3124_v25 }
 0x276   :  { %v2018_v23 = vpop.f32.mrb[178].mxu0  ;;  %v2442_v33 = vpop.f32.mrb[178].mxu1  ;;  %4075 = vst.msk [vmem:[%s6813_s3 + $0x15c] sm:$0xf] %vm3987_vm0, %v4731_v20 }
 0x277   :  { %vm2597_vm12 = vcmp.ge.f32.partialorder %v2016_v27, 0.0  ;;  %v2808_v35 = vmul.f32 0.01, %v2016_v27  ;;  %vm2703_vm13 = vcmp.ge.f32.partialorder %v2440_v28, 0.0  ;;  %v2914_v26 = vmul.f32 0.01, %v2440_v28 }
 0x278   :  { %4181 = vst.msk [vmem:[%s6813_s3 + $0x304] sm:$0xf] %vm3987_vm0, %v4837_v31  ;;  %v2019_v36 = vadd.f32 %v6496_v55, %v2018_v23  ;;  %v2443_v41 = vadd.f32 %v6496_v55, %v2442_v33  ;;  %v2020_v29 = vpop.f32.mrb[179].mxu0  ;;  %v2444_v38 = vpop.f32.mrb[179].mxu1 }
 0x279   :  { %v3019_v32 = vsel %vm2597_vm12, %v2016_v27, %v2808_v35  ;;  %v3125_v40 = vsel %vm2703_vm13, %v2440_v28, %v2914_v26 }
 0x27a   :  { %v4732_v43 = vpack.c.bf16 %v3019_v32, %v3019_v32  ;;  %v4838_v34 = vpack.c.bf16 %v3125_v40, %v3125_v40  ;;  %vm2598_vm14 = vcmp.ge.f32.partialorder %v2019_v36, 0.0  ;;  %v2809_v44 = vmul.f32 0.01, %v2019_v36 }
 0x27b   :  { %vm2704_vm15 = vcmp.ge.f32.partialorder %v2443_v41, 0.0  ;;  %v2915_v37 = vmul.f32 0.01, %v2443_v41 }
 0x27c   :  { %4076 = vst.msk [vmem:[%s6813_s3 + $0x160] sm:$0xf] %vm3987_vm0, %v4732_v43  ;;  %4182 = vst.msk [vmem:[%s6813_s3 + $0x308] sm:$0xf] %vm3987_vm0, %v4838_v34  ;;  %v3020_v47 = vsel %vm2598_vm14, %v2019_v36, %v2809_v44  ;;  %v2023_v39 = vpop.f32.mrb[180].mxu0  ;;  %v2447_v49 = vpop.f32.mrb[180].mxu1 }
 0x27d   :  { %v4733_v45 = vpack.c.bf16 %v3020_v47, %v3020_v47  ;;  %v3126_v42 = vsel %vm2704_vm15, %v2443_v41, %v2915_v37  ;;  %v2024_v51 = vadd.f32 %v6496_v55, %v2023_v39  ;;  %v2448_v46 = vadd.f32 %v6496_v55, %v2447_v49  ;;  %v2025_v52 = vpop.f32.mrb[181].mxu0  ;;  %v2449_v53 = vpop.f32.mrb[181].mxu1 }
 0x27e   :  { %v4839_v57 = vpack.c.bf16 %v3126_v42, %v3126_v42  ;;  %v2026_v48 = vpop.f32.mrb[182].mxu0  ;;  %v2450_v58 = vpop.f32.mrb[182].mxu1 }
 0x27f   :  { %4077 = vst.msk [vmem:[%s6813_s3 + $0x164] sm:$0xf] %vm3987_vm0, %v4733_v45  ;;  %vm2599_vm1 = vcmp.ge.f32.partialorder %v2024_v51, 0.0  ;;  %v2810_v60 = vmul.f32 0.01, %v2024_v51  ;;  %vm2705_vm2 = vcmp.ge.f32.partialorder %v2448_v46, 0.0  ;;  %v2027_v61 = vadd.f32 %v6496_v55, %v2026_v48 }
 0x280   :  { %v2916_v50 = vmul.f32 0.01, %v2448_v46  ;;  %4183 = vst.msk [vmem:[%s6813_s3 + $0x30c] sm:$0xf] %vm3987_vm0, %v4839_v57  ;;  %v2451_v54 = vadd.f32 %v6496_v55, %v2450_v58  ;;  %v2028_v63 = vpop.f32.mrb[183].mxu0  ;;  %v2452_v1 = vpop.f32.mrb[183].mxu1 }
 0x281   :  { %v3021_v56 = vsel %vm2599_vm1, %v2024_v51, %v2810_v60  ;;  %vm2600_vm3 = vcmp.ge.f32.partialorder %v2027_v61, 0.0  ;;  %v2811_v6 = vmul.f32 0.01, %v2027_v61 }
 0x282   :  { %v3127_v2 = vsel %vm2705_vm2, %v2448_v46, %v2916_v50  ;;  %v4734_v59 = vpack.c.bf16 %v3021_v56, %v3021_v56  ;;  %vm2706_vm4 = vcmp.ge.f32.partialorder %v2451_v54, 0.0  ;;  %v2917_v62 = vmul.f32 0.01, %v2451_v54 }
 0x283   :  { %v4840_v4 = vpack.c.bf16 %v3127_v2, %v3127_v2  ;;  %v3022_v7 = vsel %vm2600_vm3, %v2027_v61, %v2811_v6 }
 0x284   :  { %4078 = vst.msk [vmem:[%s6813_s3 + $0x168] sm:$0xf] %vm3987_vm0, %v4734_v59  ;;  %v2031_v0 = vpop.f32.mrb[184].mxu0  ;;  %v2455_v9 = vpop.f32.mrb[184].mxu1  ;;  %v4735_v11 = vpack.c.bf16 %v3022_v7, %v3022_v7  ;;  %v3128_v3 = vsel %vm2706_vm4, %v2451_v54, %v2917_v62 }
 0x285   :  { %4184 = vst.msk [vmem:[%s6813_s3 + $0x310] sm:$0xf] %vm3987_vm0, %v4840_v4  ;;  %v2032_v12 = vadd.f32 %v6496_v55, %v2031_v0  ;;  %v2456_v5 = vadd.f32 %v6496_v55, %v2455_v9  ;;  %v2033_v14 = vpop.f32.mrb[185].mxu0  ;;  %v2457_v16 = vpop.f32.mrb[185].mxu1  ;;  %v4841_v8 = vpack.c.bf16 %v3128_v3, %v3128_v3 }
 0x286   :  { %v2034_v17 = vpop.f32.mrb[186].mxu0  ;;  %v2458_v10 = vpop.f32.mrb[186].mxu1  ;;  %4079 = vst.msk [vmem:[%s6813_s3 + $0x16c] sm:$0xf] %vm3987_vm0, %v4735_v11 }
 0x287   :  { %vm2601_vm5 = vcmp.ge.f32.partialorder %v2032_v12, 0.0  ;;  %v2812_v19 = vmul.f32 0.01, %v2032_v12  ;;  %vm2707_vm6 = vcmp.ge.f32.partialorder %v2456_v5, 0.0  ;;  %v2918_v22 = vmul.f32 0.01, %v2456_v5 }
 0x288   :  { %4185 = vst.msk [vmem:[%s6813_s3 + $0x314] sm:$0xf] %vm3987_vm0, %v4841_v8  ;;  %v2035_v13 = vadd.f32 %v6496_v55, %v2034_v17  ;;  %v2459_v18 = vadd.f32 %v6496_v55, %v2458_v10  ;;  %v2036_v24 = vpop.f32.mrb[187].mxu0  ;;  %v2460_v15 = vpop.f32.mrb[187].mxu1 }
 0x289   :  { %v3023_v20 = vsel %vm2601_vm5, %v2032_v12, %v2812_v19  ;;  %v3129_v25 = vsel %vm2707_vm6, %v2456_v5, %v2918_v22 }
 0x28a   :  { %v4736_v27 = vpack.c.bf16 %v3023_v20, %v3023_v20  ;;  %v4842_v28 = vpack.c.bf16 %v3129_v25, %v3129_v25  ;;  %vm2602_vm7 = vcmp.ge.f32.partialorder %v2035_v13, 0.0  ;;  %v2813_v30 = vmul.f32 0.01, %v2035_v13 }
 0x28b   :  { %vm2708_vm8 = vcmp.ge.f32.partialorder %v2459_v18, 0.0  ;;  %v2919_v21 = vmul.f32 0.01, %v2459_v18 }
 0x28c   :  { %4080 = vst.msk [vmem:[%s6813_s3 + $0x170] sm:$0xf] %vm3987_vm0, %v4736_v27  ;;  %4186 = vst.msk [vmem:[%s6813_s3 + $0x318] sm:$0xf] %vm3987_vm0, %v4842_v28  ;;  %v3024_v31 = vsel %vm2602_vm7, %v2035_v13, %v2813_v30  ;;  %v2039_v23 = vpop.f32.mrb[188].mxu0  ;;  %v2463_v33 = vpop.f32.mrb[188].mxu1 }
 0x28d   :  { %v4737_v35 = vpack.c.bf16 %v3024_v31, %v3024_v31  ;;  %v3130_v26 = vsel %vm2708_vm8, %v2459_v18, %v2919_v21  ;;  %v2040_v36 = vadd.f32 %v6496_v55, %v2039_v23  ;;  %v2464_v41 = vadd.f32 %v6496_v55, %v2463_v33  ;;  %v2041_v29 = vpop.f32.mrb[189].mxu0  ;;  %v2465_v38 = vpop.f32.mrb[189].mxu1 }
 0x28e   :  { %v4843_v32 = vpack.c.bf16 %v3130_v26, %v3130_v26  ;;  %v2042_v40 = vpop.f32.mrb[190].mxu0  ;;  %v2466_v43 = vpop.f32.mrb[190].mxu1 }
 0x28f   :  { %4081 = vst.msk [vmem:[%s6813_s3 + $0x174] sm:$0xf] %vm3987_vm0, %v4737_v35  ;;  %vm2603_vm9 = vcmp.ge.f32.partialorder %v2040_v36, 0.0  ;;  %v2814_v34 = vmul.f32 0.01, %v2040_v36  ;;  %vm2709_vm10 = vcmp.ge.f32.partialorder %v2464_v41, 0.0  ;;  %v2043_v37 = vadd.f32 %v6496_v55, %v2042_v40 }
 0x290   :  { %v2920_v44 = vmul.f32 0.01, %v2464_v41  ;;  %4187 = vst.msk [vmem:[%s6813_s3 + $0x31c] sm:$0xf] %vm3987_vm0, %v4843_v32  ;;  %v2467_v47 = vadd.f32 %v6496_v55, %v2466_v43  ;;  %v2044_v39 = vpop.f32.mrb[191].mxu0  ;;  %v2468_v49 = vpop.f32.mrb[191].mxu1 }
 0x291   :  { %v3025_v45 = vsel %vm2603_vm9, %v2040_v36, %v2814_v34  ;;  %vm2604_vm11 = vcmp.ge.f32.partialorder %v2043_v37, 0.0  ;;  %v2815_v52 = vmul.f32 0.01, %v2043_v37 }
 0x292   :  { %v3131_v42 = vsel %vm2709_vm10, %v2464_v41, %v2920_v44  ;;  %v4738_v51 = vpack.c.bf16 %v3025_v45, %v3025_v45  ;;  %vm2710_vm12 = vcmp.ge.f32.partialorder %v2467_v47, 0.0  ;;  %v2921_v53 = vmul.f32 0.01, %v2467_v47 }
 0x293   :  { %v4844_v46 = vpack.c.bf16 %v3131_v42, %v3131_v42  ;;  %v3026_v57 = vsel %vm2604_vm11, %v2043_v37, %v2815_v52 }
 0x294   :  { %4082 = vst.msk [vmem:[%s6813_s3 + $0x178] sm:$0xf] %vm3987_vm0, %v4738_v51  ;;  %v2047_v48 = vpop.f32.mrb[192].mxu0  ;;  %v2471_v58 = vpop.f32.mrb[192].mxu1  ;;  %v4739_v60 = vpack.c.bf16 %v3026_v57, %v3026_v57  ;;  %v3132_v50 = vsel %vm2710_vm12, %v2467_v47, %v2921_v53 }
 0x295   :  { %4188 = vst.msk [vmem:[%s6813_s3 + $0x320] sm:$0xf] %vm3987_vm0, %v4844_v46  ;;  %v2048_v61 = vadd.f32 %v6496_v55, %v2047_v48  ;;  %v2472_v54 = vadd.f32 %v6496_v55, %v2471_v58  ;;  %v2049_v63 = vpop.f32.mrb[193].mxu0  ;;  %v2473_v1 = vpop.f32.mrb[193].mxu1  ;;  %v4845_v56 = vpack.c.bf16 %v3132_v50, %v3132_v50 }
 0x296   :  { %v2050_v2 = vpop.f32.mrb[194].mxu0  ;;  %v2474_v59 = vpop.f32.mrb[194].mxu1  ;;  %4083 = vst.msk [vmem:[%s6813_s3 + $0x17c] sm:$0xf] %vm3987_vm0, %v4739_v60 }
 0x297   :  { %vm2605_vm13 = vcmp.ge.f32.partialorder %v2048_v61, 0.0  ;;  %v2816_v4 = vmul.f32 0.01, %v2048_v61  ;;  %vm2711_vm14 = vcmp.ge.f32.partialorder %v2472_v54, 0.0  ;;  %v2922_v6 = vmul.f32 0.01, %v2472_v54 }
 0x298   :  { %4189 = vst.msk [vmem:[%s6813_s3 + $0x324] sm:$0xf] %vm3987_vm0, %v4845_v56  ;;  %v2051_v62 = vadd.f32 %v6496_v55, %v2050_v2  ;;  %v2475_v7 = vadd.f32 %v6496_v55, %v2474_v59  ;;  %v2052_v0 = vpop.f32.mrb[195].mxu0  ;;  %v2476_v9 = vpop.f32.mrb[195].mxu1 }
 0x299   :  { %v3027_v11 = vsel %vm2605_vm13, %v2048_v61, %v2816_v4  ;;  %v3133_v3 = vsel %vm2711_vm14, %v2472_v54, %v2922_v6 }
 0x29a   :  { %v4740_v12 = vpack.c.bf16 %v3027_v11, %v3027_v11  ;;  %v4846_v5 = vpack.c.bf16 %v3133_v3, %v3133_v3  ;;  %vm2606_vm15 = vcmp.ge.f32.partialorder %v2051_v62, 0.0  ;;  %v2817_v14 = vmul.f32 0.01, %v2051_v62 }
 0x29b   :  { %vm2712_vm1 = vcmp.ge.f32.partialorder %v2475_v7, 0.0  ;;  %v2923_v16 = vmul.f32 0.01, %v2475_v7 }
 0x29c   :  { %4084 = vst.msk [vmem:[%s6813_s3 + $0x180] sm:$0xf] %vm3987_vm0, %v4740_v12  ;;  %4190 = vst.msk [vmem:[%s6813_s3 + $0x328] sm:$0xf] %vm3987_vm0, %v4846_v5  ;;  %v3028_v8 = vsel %vm2606_vm15, %v2051_v62, %v2817_v14  ;;  %v2055_v17 = vpop.f32.mrb[196].mxu0  ;;  %v2479_v10 = vpop.f32.mrb[196].mxu1 }
 0x29d   :  { %v4741_v19 = vpack.c.bf16 %v3028_v8, %v3028_v8  ;;  %v3134_v22 = vsel %vm2712_vm1, %v2475_v7, %v2923_v16  ;;  %v2056_v13 = vadd.f32 %v6496_v55, %v2055_v17  ;;  %v2480_v18 = vadd.f32 %v6496_v55, %v2479_v10  ;;  %v2057_v24 = vpop.f32.mrb[197].mxu0  ;;  %v2481_v15 = vpop.f32.mrb[197].mxu1 }
 0x29e   :  { %v4847_v20 = vpack.c.bf16 %v3134_v22, %v3134_v22  ;;  %v2058_v25 = vpop.f32.mrb[198].mxu0  ;;  %v2482_v27 = vpop.f32.mrb[198].mxu1  ;;  %vm4198_vm1 = vcmask 253952  }
 0x29f   :  { %4085 = vst.msk [vmem:[%s6813_s3 + $0x184] sm:$0xf] %vm3987_vm0, %v4741_v19  ;;  %vm2607_vm2 = vcmp.ge.f32.partialorder %v2056_v13, 0.0  ;;  %v2818_v28 = vmul.f32 0.01, %v2056_v13  ;;  %vm2713_vm3 = vcmp.ge.f32.partialorder %v2480_v18, 0.0  ;;  %v2059_v21 = vadd.f32 %v6496_v55, %v2058_v25 }
 0x2a0   :  { %v2924_v30 = vmul.f32 0.01, %v2480_v18  ;;  %4191 = vst.msk [vmem:[%s6813_s3 + $0x32c] sm:$0xf] %vm3987_vm0, %v4847_v20  ;;  %v2483_v31 = vadd.f32 %v6496_v55, %v2482_v27  ;;  %v2060_v23 = vpop.f32.mrb[199].mxu0  ;;  %v2484_v33 = vpop.f32.mrb[199].mxu1 }
 0x2a1   :  { %v3029_v35 = vsel %vm2607_vm2, %v2056_v13, %v2818_v28  ;;  %vm2608_vm4 = vcmp.ge.f32.partialorder %v2059_v21, 0.0  ;;  %v2819_v29 = vmul.f32 0.01, %v2059_v21 }
 0x2a2   :  { %v3135_v26 = vsel %vm2713_vm3, %v2480_v18, %v2924_v30  ;;  %v4742_v36 = vpack.c.bf16 %v3029_v35, %v3029_v35  ;;  %vm2714_vm5 = vcmp.ge.f32.partialorder %v2483_v31, 0.0  ;;  %v2925_v38 = vmul.f32 0.01, %v2483_v31 }
 0x2a3   :  { %v4848_v41 = vpack.c.bf16 %v3135_v26, %v3135_v26  ;;  %v3030_v32 = vsel %vm2608_vm4, %v2059_v21, %v2819_v29 }
 0x2a4   :  { %4086 = vst.msk [vmem:[%s6813_s3 + $0x188] sm:$0xf] %vm3987_vm0, %v4742_v36  ;;  %v2063_v40 = vpop.f32.mrb[200].mxu0  ;;  %v2487_v43 = vpop.f32.mrb[200].mxu1  ;;  %v4743_v34 = vpack.c.bf16 %v3030_v32, %v3030_v32  ;;  %v3136_v44 = vsel %vm2714_vm5, %v2483_v31, %v2925_v38 }
 0x2a5   :  { %4192 = vst.msk [vmem:[%s6813_s3 + $0x330] sm:$0xf] %vm3987_vm0, %v4848_v41  ;;  %v2064_v37 = vadd.f32 %v6496_v55, %v2063_v40  ;;  %v2488_v47 = vadd.f32 %v6496_v55, %v2487_v43  ;;  %v2065_v39 = vpop.f32.mrb[201].mxu0  ;;  %v2489_v49 = vpop.f32.mrb[201].mxu1  ;;  %v4849_v45 = vpack.c.bf16 %v3136_v44, %v3136_v44 }
 0x2a6   :  { %v2066_v42 = vpop.f32.mrb[202].mxu0  ;;  %v2490_v51 = vpop.f32.mrb[202].mxu1  ;;  %4087 = vst.msk [vmem:[%s6813_s3 + $0x18c] sm:$0xf] %vm3987_vm0, %v4743_v34 }
 0x2a7   :  { %vm2609_vm6 = vcmp.ge.f32.partialorder %v2064_v37, 0.0  ;;  %v2820_v46 = vmul.f32 0.01, %v2064_v37  ;;  %vm2715_vm7 = vcmp.ge.f32.partialorder %v2488_v47, 0.0  ;;  %v2926_v52 = vmul.f32 0.01, %v2488_v47 }
 0x2a8   :  { %4193 = vst.msk [vmem:[%s6813_s3 + $0x334] sm:$0xf] %vm3987_vm0, %v4849_v45  ;;  %v2067_v53 = vadd.f32 %v6496_v55, %v2066_v42  ;;  %v2491_v57 = vadd.f32 %v6496_v55, %v2490_v51  ;;  %v2068_v48 = vpop.f32.mrb[203].mxu0  ;;  %v2492_v58 = vpop.f32.mrb[203].mxu1 }
 0x2a9   :  { %v3031_v60 = vsel %vm2609_vm6, %v2064_v37, %v2820_v46  ;;  %v3137_v50 = vsel %vm2715_vm7, %v2488_v47, %v2926_v52 }
 0x2aa   :  { %v4744_v61 = vpack.c.bf16 %v3031_v60, %v3031_v60  ;;  %v4850_v54 = vpack.c.bf16 %v3137_v50, %v3137_v50  ;;  %vm2610_vm8 = vcmp.ge.f32.partialorder %v2067_v53, 0.0  ;;  %v2821_v63 = vmul.f32 0.01, %v2067_v53 }
 0x2ab   :  { %vm2716_vm9 = vcmp.ge.f32.partialorder %v2491_v57, 0.0  ;;  %v2927_v1 = vmul.f32 0.01, %v2491_v57 }
 0x2ac   :  { %4088 = vst.msk [vmem:[%s6813_s3 + $0x190] sm:$0xf] %vm3987_vm0, %v4744_v61  ;;  %4194 = vst.msk [vmem:[%s6813_s3 + $0x338] sm:$0xf] %vm3987_vm0, %v4850_v54  ;;  %v3032_v56 = vsel %vm2610_vm8, %v2067_v53, %v2821_v63  ;;  %v2071_v2 = vpop.f32.mrb[204].mxu0  ;;  %v2495_v59 = vpop.f32.mrb[204].mxu1 }
 0x2ad   :  { %v4745_v4 = vpack.c.bf16 %v3032_v56, %v3032_v56  ;;  %v3138_v6 = vsel %vm2716_vm9, %v2491_v57, %v2927_v1  ;;  %v2072_v62 = vadd.f32 %v6496_v55, %v2071_v2  ;;  %v2496_v7 = vadd.f32 %v6496_v55, %v2495_v59  ;;  %v2073_v0 = vpop.f32.mrb[205].mxu0  ;;  %v2497_v9 = vpop.f32.mrb[205].mxu1 }
 0x2ae   :  { %v4851_v11 = vpack.c.bf16 %v3138_v6, %v3138_v6  ;;  %v2074_v3 = vpop.f32.mrb[206].mxu0  ;;  %v2498_v12 = vpop.f32.mrb[206].mxu1 }
 0x2af   :  { %4089 = vst.msk [vmem:[%s6813_s3 + $0x194] sm:$0xf] %vm3987_vm0, %v4745_v4  ;;  %vm2611_vm10 = vcmp.ge.f32.partialorder %v2072_v62, 0.0  ;;  %v2822_v5 = vmul.f32 0.01, %v2072_v62  ;;  %vm2717_vm11 = vcmp.ge.f32.partialorder %v2496_v7, 0.0  ;;  %v2075_v16 = vadd.f32 %v6496_v55, %v2074_v3 }
 0x2b0   :  { %v2928_v14 = vmul.f32 0.01, %v2496_v7  ;;  %4195 = vst.msk [vmem:[%s6813_s3 + $0x33c] sm:$0xf] %vm3987_vm0, %v4851_v11  ;;  %v2499_v8 = vadd.f32 %v6496_v55, %v2498_v12  ;;  %v2076_v17 = vpop.f32.mrb[207].mxu0  ;;  %v2500_v10 = vpop.f32.mrb[207].mxu1 }
 0x2b1   :  { %v3033_v19 = vsel %vm2611_vm10, %v2072_v62, %v2822_v5  ;;  %vm2612_vm12 = vcmp.ge.f32.partialorder %v2075_v16, 0.0  ;;  %v2823_v24 = vmul.f32 0.01, %v2075_v16 }
 0x2b2   :  { %v3139_v22 = vsel %vm2717_vm11, %v2496_v7, %v2928_v14  ;;  %v4746_v13 = vpack.c.bf16 %v3033_v19, %v3033_v19  ;;  %vm2718_vm13 = vcmp.ge.f32.partialorder %v2499_v8, 0.0  ;;  %v2929_v15 = vmul.f32 0.01, %v2499_v8 }
 0x2b3   :  { %v4852_v18 = vpack.c.bf16 %v3139_v22, %v3139_v22  ;;  %v3034_v20 = vsel %vm2612_vm12, %v2075_v16, %v2823_v24 }
 0x2b4   :  { %4090 = vst.msk [vmem:[%s6813_s3 + $0x198] sm:$0xf] %vm3987_vm0, %v4746_v13  ;;  %v2079_v25 = vpop.f32.mrb[208].mxu0  ;;  %v2503_v27 = vpop.f32.mrb[208].mxu1  ;;  %v4747_v28 = vpack.c.bf16 %v3034_v20, %v3034_v20  ;;  %v3140_v30 = vsel %vm2718_vm13, %v2499_v8, %v2929_v15 }
 0x2b5   :  { %4196 = vst.msk [vmem:[%s6813_s3 + $0x340] sm:$0xf] %vm3987_vm0, %v4852_v18  ;;  %v2080_v21 = vadd.f32 %v6496_v55, %v2079_v25  ;;  %v2504_v31 = vadd.f32 %v6496_v55, %v2503_v27  ;;  %v2081_v23 = vpop.f32.mrb[209].mxu0  ;;  %v2505_v33 = vpop.f32.mrb[209].mxu1  ;;  %v4853_v35 = vpack.c.bf16 %v3140_v30, %v3140_v30 }
 0x2b6   :  { %v2082_v26 = vpop.f32.mrb[210].mxu0  ;;  %v2506_v36 = vpop.f32.mrb[210].mxu1  ;;  %4091 = vst.msk [vmem:[%s6813_s3 + $0x19c] sm:$0xf] %vm3987_vm0, %v4747_v28 }
 0x2b7   :  { %vm2613_vm14 = vcmp.ge.f32.partialorder %v2080_v21, 0.0  ;;  %v2824_v41 = vmul.f32 0.01, %v2080_v21  ;;  %vm2719_vm15 = vcmp.ge.f32.partialorder %v2504_v31, 0.0  ;;  %v2930_v29 = vmul.f32 0.01, %v2504_v31 }
 0x2b8   :  { %4197 = vst.msk [vmem:[%s6813_s3 + $0x344] sm:$0xf] %vm3987_vm0, %v4853_v35  ;;  %v2083_v38 = vadd.f32 %v6496_v55, %v2082_v26  ;;  %v2084_v32 = vpop.f32.mrb[211].mxu0  ;;  %v2507_v40 = vpop.f32.mrb[211].mxu1 }
 0x2b9   :  { %v3035_v43 = vsel %vm2613_vm14, %v2080_v21, %v2824_v41  ;;  %v3141_v34 = vsel %vm2719_vm15, %v2504_v31, %v2930_v29 }
 0x2ba   :  { %v4748_v44 = vpack.c.bf16 %v3035_v43, %v3035_v43  ;;  %v4854_v37 = vpack.c.bf16 %v3141_v34, %v3141_v34  ;;  %vm2614_vm2 = vcmp.ge.f32.partialorder %v2083_v38, 0.0  ;;  %v2825_v47 = vmul.f32 0.01, %v2083_v38 }
 0x2bc   :  { %4092 = vst.msk [vmem:[%s6813_s3 + $0x1a0] sm:$0xf] %vm3987_vm0, %v4748_v44  ;;  %v3036_v39 = vsel %vm2614_vm2, %v2083_v38, %v2825_v47 }
 0x2bd   :  { %4199 = vst.msk [vmem:[%s6813_s3 + $0x348] sm:$0x1] %vm4198_vm1, %v4854_v37  ;;  %v4749_v55 = vpack.c.bf16 %v3036_v39, %v3036_v39 }
 0x2bf   :  { %4093 = vst.msk [vmem:[%s6813_s3 + $0x1a4] sm:$0xf] %vm3987_vm0, %v4749_v55 }

// kernel: conv_actor_forward.4
= control target key start
LH: loop header
LB: loop body
LE: loop exit
PB: predicated region body
PF: predicated region fallthrough
CT: control target
= control target key end

     0   :  { %v2021_v0 = vmov 0   ;;  %vm1516_vm1 = vcmask 257024   ;;  %s2647_s1 = inlined_call_operand.vmem [shape: bf16[512,32], index: 1, kind: input, shape index: {}]   ;;  %s2648_s0 = inlined_call_operand.vmem [shape: bf16[338,512], index: 0, kind: input, shape index: {}]   ;;  %s2649_s2 = inlined_call_operand.vmem [shape: f32[1,32], index: 2, kind: input, shape index: {}]   ;;  %s2650_s3 = inlined_call_operand.vmem [shape: bf16[338,32], index: 3, kind: output, shape index: {}]  }
   0x1   :  { %798 = vmatprep.subr.bf16.mxu1 %v2021_v0  ;;  %1006 = vmatprep.subr.bf16.mxu0 %v2021_v0  ;;  %v1859_v1 = vld [vmem:[%s2647_s1] sm:$0xff]   ;;  %v1861_v3 = vld [vmem:[%s2647_s1 + $0x8] sm:$0xff]   ;;  %v1863_v5 = vld [vmem:[%s2647_s1 + $0x10] sm:$0xff]  }
   0x2   :  { %v1860_v2 = vld [vmem:[%s2647_s1 + $0x80] sm:$0xff]   ;;  %799 = vmatpush1.bf16.msra.mxu1 %v1859_v1  ;;  %v1862_v4 = vld [vmem:[%s2647_s1 + $0x88] sm:$0xff]   ;;  %v1864_v6 = vld [vmem:[%s2647_s1 + $0x90] sm:$0xff]  }
   0x3   :  { %1007 = vmatpush1.bf16.msra.mxu0 %v1860_v2  ;;  %800 = vmatprep.subr.bf16.mxu1 %v2021_v0  ;;  %v1865_v7 = vld [vmem:[%s2647_s1 + $0x18] sm:$0xff]   ;;  %v1867_v9 = vld [vmem:[%s2647_s1 + $0x20] sm:$0xff]   ;;  %v1869_v11 = vld [vmem:[%s2647_s1 + $0x28] sm:$0xff]  }
   0x4   :  { %1008 = vmatprep.subr.bf16.mxu0 %v2021_v0  ;;  %v1866_v8 = vld [vmem:[%s2647_s1 + $0x98] sm:$0xff]   ;;  %v1868_v10 = vld [vmem:[%s2647_s1 + $0xa0] sm:$0xff]   ;;  %v1870_v12 = vld [vmem:[%s2647_s1 + $0xa8] sm:$0xff]  }
   0x5   :  { %v1871_v13 = vld [vmem:[%s2647_s1 + $0x30] sm:$0xff]   ;;  %v1873_v15 = vld [vmem:[%s2647_s1 + $0x38] sm:$0xff]   ;;  %v1875_v17 = vld [vmem:[%s2647_s1 + $0x40] sm:$0xff]  }
   0x6   :  { %801 = vmatpush1.bf16.msra.mxu1 %v1861_v3  ;;  %v1872_v14 = vld [vmem:[%s2647_s1 + $0xb0] sm:$0xff]   ;;  %v1874_v16 = vld [vmem:[%s2647_s1 + $0xb8] sm:$0xff]   ;;  %v1876_v18 = vld [vmem:[%s2647_s1 + $0xc0] sm:$0xff]  }
   0x7   :  { %1009 = vmatpush1.bf16.msra.mxu0 %v1862_v4  ;;  %802 = vmatprep.subr.bf16.mxu1 %v2021_v0  ;;  %v1893_v19 = vld [vmem:[%s2648_s0 + $0x4] ss:$16 sps:$4 sm:$0xff]   ;;  %v1877_v20 = vld [vmem:[%s2647_s1 + $0x48] sm:$0xff]   ;;  %v1881_v25 = vld [vmem:[%s2647_s1 + $0x58] sm:$0xff]  }
   0x8   :  { %1010 = vmatprep.subr.bf16.mxu0 %v2021_v0  ;;  %v1896_v21 = vld [vmem:[%s2648_s0 + $0xc] ss:$16 sps:$4 sm:$0xff]   ;;  %830 = vmatprep.mubr.bf16.mxu1 %v1893_v19  ;;  %v1879_v23 = vld [vmem:[%s2647_s1 + $0x50] sm:$0xff]   ;;  %v1883_v27 = vld [vmem:[%s2647_s1 + $0x60] sm:$0xff]  }
   0x9   :  { %v1878_v22 = vld [vmem:[%s2647_s1 + $0xc8] sm:$0xff]   ;;  %1038 = vmatprep.mubr.bf16.mxu0 %v1896_v21  ;;  %v1880_v24 = vld [vmem:[%s2647_s1 + $0xd0] sm:$0xff]   ;;  %v1882_v26 = vld [vmem:[%s2647_s1 + $0xd8] sm:$0xff]  }
   0xa   :  { %803 = vmatpush1.bf16.msra.mxu1 %v1863_v5  ;;  %v1884_v28 = vld [vmem:[%s2647_s1 + $0xe0] sm:$0xff]   ;;  %v1885_v29 = vld [vmem:[%s2647_s1 + $0x68] sm:$0xff]   ;;  %v1887_v31 = vld [vmem:[%s2647_s1 + $0x70] sm:$0xff]  }
   0xb   :  { %1011 = vmatpush1.bf16.msra.mxu0 %v1864_v6  ;;  %804 = vmatprep.subr.bf16.mxu1 %v2021_v0  ;;  %v1886_v30 = vld [vmem:[%s2647_s1 + $0xe8] sm:$0xff]   ;;  %v1888_v32 = vld [vmem:[%s2647_s1 + $0xf0] sm:$0xff]   ;;  %v1889_v33 = vld [vmem:[%s2647_s1 + $0x78] sm:$0xff]  }
   0xc   :  { %1012 = vmatprep.subr.bf16.mxu0 %v2021_v0  ;;  %v1890_v34 = vld [vmem:[%s2647_s1 + $0xf8] sm:$0xff]   ;;  %v1891_v35 = vld [vmem:[%s2648_s0] ss:$16 sps:$4 sm:$0xff]   ;;  %v1897_v37 = vld [vmem:[%s2648_s0 + $0x24] ss:$16 sps:$4 sm:$0xff]  }
   0xd   :  { %v1894_v36 = vld [vmem:[%s2648_s0 + $0x8] ss:$16 sps:$4 sm:$0xff]   ;;  %v1899_v38 = vld [vmem:[%s2648_s0 + $0x2c] ss:$16 sps:$4 sm:$0xff]   ;;  %v1901_v39 = vld [vmem:[%s2648_s0 + $0x20] ss:$16 sps:$4 sm:$0xff]  }
   0xe   :  { %805 = vmatpush1.bf16.msra.mxu1 %v1865_v7  ;;  %v1902_v40 = vld [vmem:[%s2648_s0 + $0x28] ss:$16 sps:$4 sm:$0xff]   ;;  %v1903_v41 = vld [vmem:[%s2648_s0 + $0x44] ss:$16 sps:$4 sm:$0xff]   ;;  %v1905_v42 = vld [vmem:[%s2648_s0 + $0x4c] ss:$16 sps:$4 sm:$0xff]  }
   0xf   :  { %1013 = vmatpush1.bf16.msra.mxu0 %v1866_v8  ;;  %806 = vmatprep.subr.bf16.mxu1 %v2021_v0  ;;  %v1907_v43 = vld [vmem:[%s2648_s0 + $0x40] ss:$16 sps:$4 sm:$0xff]   ;;  %v1908_v44 = vld [vmem:[%s2648_s0 + $0x48] ss:$16 sps:$4 sm:$0xff]   ;;  %v1909_v45 = vld [vmem:[%s2648_s0 + $0x64] ss:$16 sps:$4 sm:$0xff]  }
  0x10   :  { %1014 = vmatprep.subr.bf16.mxu0 %v2021_v0  ;;  %v1911_v46 = vld [vmem:[%s2648_s0 + $0x6c] ss:$16 sps:$4 sm:$0xff]   ;;  %v1913_v47 = vld [vmem:[%s2648_s0 + $0x60] ss:$16 sps:$4 sm:$0xff]   ;;  %v1914_v48 = vld [vmem:[%s2648_s0 + $0x68] ss:$16 sps:$4 sm:$0xff]  }
  0x11   :  { %v1915_v49 = vld [vmem:[%s2648_s0 + $0x84] ss:$16 sps:$4 sm:$0xff]   ;;  %v1917_v50 = vld [vmem:[%s2648_s0 + $0x8c] ss:$16 sps:$4 sm:$0xff]   ;;  %v1919_v51 = vld [vmem:[%s2648_s0 + $0x80] ss:$16 sps:$4 sm:$0xff]  }
  0x12   :  { %807 = vmatpush1.bf16.msra.mxu1 %v1867_v9  ;;  %v1920_v52 = vld [vmem:[%s2648_s0 + $0x88] ss:$16 sps:$4 sm:$0xff]   ;;  %v1921_v53 = vld [vmem:[%s2648_s0 + $0xa4] ss:$16 sps:$4 sm:$0xff]   ;;  %v1923_v54 = vld [vmem:[%s2648_s0 + $0xac] ss:$16 sps:$4 sm:$0xff]  }
  0x13   :  { %1015 = vmatpush1.bf16.msra.mxu0 %v1868_v10  ;;  %808 = vmatprep.subr.bf16.mxu1 %v2021_v0  ;;  %v1925_v55 = vld [vmem:[%s2648_s0 + $0xa0] ss:$16 sps:$4 sm:$0xff]   ;;  %v1926_v56 = vld [vmem:[%s2648_s0 + $0xa8] ss:$16 sps:$4 sm:$0xff]   ;;  %v1927_v57 = vld [vmem:[%s2648_s0 + $0xc4] ss:$16 sps:$4 sm:$0xff]  }
  0x14   :  { %1016 = vmatprep.subr.bf16.mxu0 %v2021_v0  ;;  %v1929_v58 = vld [vmem:[%s2648_s0 + $0xcc] ss:$16 sps:$4 sm:$0xff]   ;;  %v1931_v59 = vld [vmem:[%s2648_s0 + $0xc0] ss:$16 sps:$4 sm:$0xff]   ;;  %v1932_v60 = vld [vmem:[%s2648_s0 + $0xc8] ss:$16 sps:$4 sm:$0xff]  }
  0x15   :  { %v1933_v61 = vld [vmem:[%s2648_s0 + $0xe4] ss:$16 sps:$4 sm:$0xff]   ;;  %v1935_v62 = vld [vmem:[%s2648_s0 + $0xec] ss:$16 sps:$4 sm:$0xff]   ;;  %v1937_v63 = vld [vmem:[%s2648_s0 + $0xe0] ss:$16 sps:$4 sm:$0xff]  }
  0x16   :  { %809 = vmatpush1.bf16.msra.mxu1 %v1869_v11  ;;  %v1939_v1 = vld [vmem:[%s2648_s0 + $0x104] ss:$16 sps:$4 sm:$0xff]   ;;  %v1941_v2 = vld [vmem:[%s2648_s0 + $0x10c] ss:$16 sps:$4 sm:$0xff]   ;;  %v1943_v3 = vld [vmem:[%s2648_s0 + $0x100] ss:$16 sps:$4 sm:$0xff]  }
  0x17   :  { %1017 = vmatpush1.bf16.msra.mxu0 %v1870_v12  ;;  %810 = vmatprep.subr.bf16.mxu1 %v2021_v0  ;;  %v1944_v4 = vld [vmem:[%s2648_s0 + $0x108] ss:$16 sps:$4 sm:$0xff]   ;;  %v1945_v5 = vld [vmem:[%s2648_s0 + $0x124] ss:$16 sps:$4 sm:$0xff]   ;;  %v1947_v6 = vld [vmem:[%s2648_s0 + $0x12c] ss:$16 sps:$4 sm:$0xff]  }
  0x18   :  { %1018 = vmatprep.subr.bf16.mxu0 %v2021_v0  ;;  %v1949_v7 = vld [vmem:[%s2648_s0 + $0x120] ss:$16 sps:$4 sm:$0xff]   ;;  %v1950_v8 = vld [vmem:[%s2648_s0 + $0x128] ss:$16 sps:$4 sm:$0xff]   ;;  %v1951_v9 = vld [vmem:[%s2648_s0 + $0x144] ss:$16 sps:$4 sm:$0xff]  }
  0x19   :  { %v1953_v10 = vld [vmem:[%s2648_s0 + $0x14c] ss:$16 sps:$4 sm:$0xff]   ;;  %v1955_v11 = vld [vmem:[%s2648_s0 + $0x140] ss:$16 sps:$4 sm:$0xff]   ;;  %v1956_v12 = vld [vmem:[%s2648_s0 + $0x148] ss:$16 sps:$4 sm:$0xff]  }
  0x1a   :  { %811 = vmatpush1.bf16.msra.mxu1 %v1871_v13  ;;  %v1957_v13 = vld [vmem:[%s2648_s0 + $0x164] ss:$16 sps:$4 sm:$0xff]   ;;  %v1967_v19 = vld [vmem:[%s2648_s0 + $0x180] ss:$16 sps:$4 sm:$0xff]  }
  0x1b   :  { %1019 = vmatpush1.bf16.msra.mxu0 %v1872_v14  ;;  %812 = vmatprep.subr.bf16.mxu1 %v2021_v0  ;;  %v1959_v14 = vld [vmem:[%s2648_s0 + $0x16c] ss:$16 sps:$4 sm:$0xff]   ;;  %v1969_v21 = vld [vmem:[%s2648_s0 + $0x1a4] ss:$16 sps:$4 sm:$0xff]  }
  0x1c   :  { %1020 = vmatprep.subr.bf16.mxu0 %v2021_v0 }
  0x1e   :  { %813 = vmatpush1.bf16.msra.mxu1 %v1873_v15  ;;  %v1961_v15 = vld [vmem:[%s2648_s0 + $0x160] ss:$16 sps:$4 sm:$0xff]  }
  0x1f   :  { %1021 = vmatpush1.bf16.msra.mxu0 %v1874_v16  ;;  %814 = vmatprep.subr.bf16.mxu1 %v2021_v0  ;;  %v1962_v16 = vld [vmem:[%s2648_s0 + $0x168] ss:$16 sps:$4 sm:$0xff]  }
  0x20   :  { %1022 = vmatprep.subr.bf16.mxu0 %v2021_v0 }
  0x22   :  { %815 = vmatpush1.bf16.msra.mxu1 %v1875_v17  ;;  %v1963_v17 = vld [vmem:[%s2648_s0 + $0x184] ss:$16 sps:$4 sm:$0xff]  }
  0x23   :  { %1023 = vmatpush1.bf16.msra.mxu0 %v1876_v18  ;;  %816 = vmatprep.subr.bf16.mxu1 %v2021_v0  ;;  %v1965_v18 = vld [vmem:[%s2648_s0 + $0x18c] ss:$16 sps:$4 sm:$0xff]  }
  0x24   :  { %1024 = vmatprep.subr.bf16.mxu0 %v2021_v0 }
  0x26   :  { %817 = vmatpush1.bf16.msra.mxu1 %v1877_v20  ;;  %v1968_v20 = vld [vmem:[%s2648_s0 + $0x188] ss:$16 sps:$4 sm:$0xff]  }
  0x27   :  { %1025 = vmatpush1.bf16.msra.mxu0 %v1878_v22  ;;  %818 = vmatprep.subr.bf16.mxu1 %v2021_v0  ;;  %v1971_v22 = vld [vmem:[%s2648_s0 + $0x1ac] ss:$16 sps:$4 sm:$0xff]  }
  0x28   :  { %1026 = vmatprep.subr.bf16.mxu0 %v2021_v0 }
  0x2a   :  { %819 = vmatpush1.bf16.msra.mxu1 %v1879_v23  ;;  %v1973_v23 = vld [vmem:[%s2648_s0 + $0x1a0] ss:$16 sps:$4 sm:$0xff]  }
  0x2b   :  { %1027 = vmatpush1.bf16.msra.mxu0 %v1880_v24  ;;  %820 = vmatprep.subr.bf16.mxu1 %v2021_v0  ;;  %v1974_v24 = vld [vmem:[%s2648_s0 + $0x1a8] ss:$16 sps:$4 sm:$0xff]  }
  0x2c   :  { %1028 = vmatprep.subr.bf16.mxu0 %v2021_v0 }
  0x2e   :  { %821 = vmatpush1.bf16.msra.mxu1 %v1881_v25  ;;  %v1975_v25 = vld [vmem:[%s2648_s0 + $0x1c4] ss:$16 sps:$4 sm:$0xff]  }
  0x2f   :  { %1029 = vmatpush1.bf16.msra.mxu0 %v1882_v26  ;;  %822 = vmatprep.subr.bf16.mxu1 %v2021_v0  ;;  %v1977_v26 = vld [vmem:[%s2648_s0 + $0x1cc] ss:$16 sps:$4 sm:$0xff]  }
  0x30   :  { %1030 = vmatprep.subr.bf16.mxu0 %v2021_v0 }
  0x32   :  { %823 = vmatpush1.bf16.msra.mxu1 %v1883_v27  ;;  %v1979_v27 = vld [vmem:[%s2648_s0 + $0x1c0] ss:$16 sps:$4 sm:$0xff]  }
  0x33   :  { %1031 = vmatpush1.bf16.msra.mxu0 %v1884_v28  ;;  %824 = vmatprep.subr.bf16.mxu1 %v2021_v0  ;;  %v1980_v28 = vld [vmem:[%s2648_s0 + $0x1c8] ss:$16 sps:$4 sm:$0xff]  }
  0x34   :  { %1032 = vmatprep.subr.bf16.mxu0 %v2021_v0 }
  0x36   :  { %825 = vmatpush1.bf16.msra.mxu1 %v1885_v29  ;;  %v1981_v29 = vld [vmem:[%s2648_s0 + $0x1e4] ss:$16 sps:$4 sm:$0xff]  }
  0x37   :  { %1033 = vmatpush1.bf16.msra.mxu0 %v1886_v30  ;;  %826 = vmatprep.subr.bf16.mxu1 %v2021_v0  ;;  %v1983_v30 = vld [vmem:[%s2648_s0 + $0x1ec] ss:$16 sps:$4 sm:$0xff]  }
  0x38   :  { %1034 = vmatprep.subr.bf16.mxu0 %v2021_v0 }
  0x3a   :  { %827 = vmatpush1.bf16.msra.mxu1 %v1887_v31  ;;  %v1985_v31 = vld [vmem:[%s2648_s0 + $0x1e0] ss:$16 sps:$4 sm:$0xff]  }
  0x3b   :  { %1035 = vmatpush1.bf16.msra.mxu0 %v1888_v32  ;;  %828 = vmatprep.subr.bf16.mxu1 %v2021_v0  ;;  %v1986_v32 = vld [vmem:[%s2648_s0 + $0x1e8] ss:$16 sps:$4 sm:$0xff]  }
  0x3c   :  { %1036 = vmatprep.subr.bf16.mxu0 %v2021_v0  ;;  %v1938_v0 = vld [vmem:[%s2648_s0 + $0xe8] ss:$16 sps:$4 sm:$0xff]  }
  0x3e   :  { %829 = vmatpush1.bf16.msra.mxu1 %v1889_v33  ;;  %v1987_v33 = vld [vmem:[%s2648_s0 + $0x204] ss:$16 sps:$4 sm:$0xff]  }
  0x3f   :  { %1037 = vmatpush1.bf16.msra.mxu0 %v1890_v34  ;;  %v1989_v34 = vld [vmem:[%s2648_s0 + $0x20c] ss:$16 sps:$4 sm:$0xff]  }
  0x41   :  { %831 = vmatmul.mubr.bf16.vlgmr.msra.gmra.mrb[0].mxu1 %v1891_v35  ;;  %v1991_v35 = vld [vmem:[%s2648_s0 + $0x200] ss:$16 sps:$4 sm:$0xff]  }
  0x42   :  { %1039 = vmatmul.mubr.bf16.vlgmr.msra.gmra.mrb[0].mxu0 %v1894_v36  ;;  %838 = vmatprep.mubr.bf16.mxu1 %v1897_v37  ;;  %v1992_v36 = vld [vmem:[%s2648_s0 + $0x208] ss:$16 sps:$4 sm:$0xff]   ;;  %v1993_v37 = vld [vmem:[%s2648_s0 + $0x224] ss:$16 sps:$4 sm:$0xff]  }
  0x43   :  { %1046 = vmatprep.mubr.bf16.mxu0 %v1899_v38  ;;  %v1995_v38 = vld [vmem:[%s2648_s0 + $0x22c] ss:$16 sps:$4 sm:$0xff]  }
  0x49   :  { %839 = vmatmul.mubr.bf16.gmra.mrb[4].mxu1 %v1901_v39  ;;  %v1997_v39 = vld [vmem:[%s2648_s0 + $0x220] ss:$16 sps:$4 sm:$0xff]  }
  0x4a   :  { %1047 = vmatmul.mubr.bf16.gmra.mrb[4].mxu0 %v1902_v40  ;;  %846 = vmatprep.mubr.bf16.mxu1 %v1903_v41  ;;  %v1998_v40 = vld [vmem:[%s2648_s0 + $0x228] ss:$16 sps:$4 sm:$0xff]   ;;  %v1999_v41 = vld [vmem:[%s2648_s0 + $0x244] ss:$16 sps:$4 sm:$0xff]  }
  0x4b   :  { %1054 = vmatprep.mubr.bf16.mxu0 %v1905_v42  ;;  %v2001_v42 = vld [vmem:[%s2648_s0 + $0x24c] ss:$16 sps:$4 sm:$0xff]  }
  0x51   :  { %847 = vmatmul.mubr.bf16.gmra.mrb[8].mxu1 %v1907_v43  ;;  %v2003_v43 = vld [vmem:[%s2648_s0 + $0x240] ss:$16 sps:$4 sm:$0xff]  }
  0x52   :  { %1055 = vmatmul.mubr.bf16.gmra.mrb[8].mxu0 %v1908_v44  ;;  %854 = vmatprep.mubr.bf16.mxu1 %v1909_v45  ;;  %v2004_v44 = vld [vmem:[%s2648_s0 + $0x248] ss:$16 sps:$4 sm:$0xff]   ;;  %v2005_v45 = vld [vmem:[%s2648_s0 + $0x264] ss:$16 sps:$4 sm:$0xff]  }
  0x53   :  { %1062 = vmatprep.mubr.bf16.mxu0 %v1911_v46  ;;  %v2007_v46 = vld [vmem:[%s2648_s0 + $0x26c] ss:$16 sps:$4 sm:$0xff]  }
  0x59   :  { %855 = vmatmul.mubr.bf16.gmra.mrb[12].mxu1 %v1913_v47  ;;  %v2009_v47 = vld [vmem:[%s2648_s0 + $0x260] ss:$16 sps:$4 sm:$0xff]  }
  0x5a   :  { %1063 = vmatmul.mubr.bf16.gmra.mrb[12].mxu0 %v1914_v48  ;;  %862 = vmatprep.mubr.bf16.mxu1 %v1915_v49  ;;  %v2010_v48 = vld [vmem:[%s2648_s0 + $0x268] ss:$16 sps:$4 sm:$0xff]   ;;  %v2011_v49 = vld [vmem:[%s2648_s0 + $0x284] ss:$16 sps:$4 sm:$0xff]  }
  0x5b   :  { %1070 = vmatprep.mubr.bf16.mxu0 %v1917_v50  ;;  %v2013_v50 = vld [vmem:[%s2648_s0 + $0x28c] ss:$16 sps:$4 sm:$0xff]  }
  0x61   :  { %863 = vmatmul.mubr.bf16.gmra.mrb[16].mxu1 %v1919_v51  ;;  %v99_v51 = vld [vmem:[%s2648_s0 + $0x2a0] sm:$0x11] }
  0x62   :  { %1071 = vmatmul.mubr.bf16.gmra.mrb[16].mxu0 %v1920_v52  ;;  %870 = vmatprep.mubr.bf16.mxu1 %v1921_v53  ;;  %v100_v52 = vld [vmem:[%s2648_s0 + $0x2a8] sm:$0x11]  ;;  %v2015_v53 = vld [vmem:[%s2648_s0 + $0x280] ss:$16 sps:$4 sm:$0xff]  }
  0x63   :  { %1078 = vmatprep.mubr.bf16.mxu0 %v1923_v54  ;;  %v2016_v54 = vld [vmem:[%s2648_s0 + $0x288] ss:$16 sps:$4 sm:$0xff]  }
  0x69   :  { %871 = vmatmul.mubr.bf16.gmra.mrb[20].mxu1 %v1925_v55  ;;  %v1651_v55 = vcombine.high %v99_v51, %v99_v51 }
  0x6a   :  { %1079 = vmatmul.mubr.bf16.gmra.mrb[20].mxu0 %v1926_v56  ;;  %878 = vmatprep.mubr.bf16.mxu1 %v1927_v57  ;;  %v1653_v56 = vcombine.high %v100_v52, %v100_v52  ;;  %v1650_v57 = vcombine.low %v99_v51, %v99_v51 }
  0x6b   :  { %1086 = vmatprep.mubr.bf16.mxu0 %v1929_v58  ;;  %v1652_v58 = vcombine.low %v100_v52, %v100_v52 }
  0x71   :  { %879 = vmatmul.mubr.bf16.gmra.mrb[24].mxu1 %v1931_v59  ;;  %v2431_v59 = vld [vmem:[%s2649_s2] ss:$0 sm:$0xff] }
  0x72   :  { %1087 = vmatmul.mubr.bf16.gmra.mrb[24].mxu0 %v1932_v60  ;;  %886 = vmatprep.mubr.bf16.mxu1 %v1933_v61 }
  0x73   :  { %1094 = vmatprep.mubr.bf16.mxu0 %v1935_v62 }
  0x79   :  { %887 = vmatmul.mubr.bf16.gmra.mrb[28].mxu1 %v1937_v63 }
  0x7a   :  { %1095 = vmatmul.mubr.bf16.gmra.mrb[28].mxu0 %v1938_v0  ;;  %894 = vmatprep.mubr.bf16.mxu1 %v1939_v1 }
  0x7b   :  { %1102 = vmatprep.mubr.bf16.mxu0 %v1941_v2 }
  0x81   :  { %895 = vmatmul.mubr.bf16.gmra.mrb[32].mxu1 %v1943_v3 }
  0x82   :  { %1103 = vmatmul.mubr.bf16.gmra.mrb[32].mxu0 %v1944_v4  ;;  %902 = vmatprep.mubr.bf16.mxu1 %v1945_v5 }
  0x83   :  { %1110 = vmatprep.mubr.bf16.mxu0 %v1947_v6 }
  0x89   :  { %903 = vmatmul.mubr.bf16.gmra.mrb[36].mxu1 %v1949_v7 }
  0x8a   :  { %1111 = vmatmul.mubr.bf16.gmra.mrb[36].mxu0 %v1950_v8  ;;  %910 = vmatprep.mubr.bf16.mxu1 %v1951_v9 }
  0x8b   :  { %1118 = vmatprep.mubr.bf16.mxu0 %v1953_v10 }
  0x91   :  { %911 = vmatmul.mubr.bf16.gmra.mrb[40].mxu1 %v1955_v11 }
  0x92   :  { %1119 = vmatmul.mubr.bf16.gmra.mrb[40].mxu0 %v1956_v12  ;;  %918 = vmatprep.mubr.bf16.mxu1 %v1957_v13 }
  0x93   :  { %1126 = vmatprep.mubr.bf16.mxu0 %v1959_v14 }
  0x99   :  { %919 = vmatmul.mubr.bf16.gmra.mrb[44].mxu1 %v1961_v15 }
  0x9a   :  { %1127 = vmatmul.mubr.bf16.gmra.mrb[44].mxu0 %v1962_v16  ;;  %926 = vmatprep.mubr.bf16.mxu1 %v1963_v17 }
  0x9b   :  { %1134 = vmatprep.mubr.bf16.mxu0 %v1965_v18 }
  0xa1   :  { %927 = vmatmul.mubr.bf16.gmra.mrb[48].mxu1 %v1967_v19 }
  0xa2   :  { %1135 = vmatmul.mubr.bf16.gmra.mrb[48].mxu0 %v1968_v20  ;;  %934 = vmatprep.mubr.bf16.mxu1 %v1969_v21 }
  0xa3   :  { %1142 = vmatprep.mubr.bf16.mxu0 %v1971_v22 }
  0xa9   :  { %935 = vmatmul.mubr.bf16.gmra.mrb[52].mxu1 %v1973_v23 }
  0xaa   :  { %1143 = vmatmul.mubr.bf16.gmra.mrb[52].mxu0 %v1974_v24  ;;  %942 = vmatprep.mubr.bf16.mxu1 %v1975_v25 }
  0xab   :  { %1150 = vmatprep.mubr.bf16.mxu0 %v1977_v26 }
  0xb1   :  { %943 = vmatmul.mubr.bf16.gmra.mrb[56].mxu1 %v1979_v27 }
  0xb2   :  { %1151 = vmatmul.mubr.bf16.gmra.mrb[56].mxu0 %v1980_v28  ;;  %950 = vmatprep.mubr.bf16.mxu1 %v1981_v29 }
  0xb3   :  { %1158 = vmatprep.mubr.bf16.mxu0 %v1983_v30 }
  0xb9   :  { %951 = vmatmul.mubr.bf16.gmra.mrb[60].mxu1 %v1985_v31 }
  0xba   :  { %1159 = vmatmul.mubr.bf16.gmra.mrb[60].mxu0 %v1986_v32  ;;  %958 = vmatprep.mubr.bf16.mxu1 %v1987_v33 }
  0xbb   :  { %1166 = vmatprep.mubr.bf16.mxu0 %v1989_v34 }
  0xc1   :  { %959 = vmatmul.mubr.bf16.gmra.mrb[64].mxu1 %v1991_v35 }
  0xc2   :  { %1167 = vmatmul.mubr.bf16.gmra.mrb[64].mxu0 %v1992_v36  ;;  %966 = vmatprep.mubr.bf16.mxu1 %v1993_v37 }
  0xc3   :  { %1174 = vmatprep.mubr.bf16.mxu0 %v1995_v38 }
  0xc9   :  { %967 = vmatmul.mubr.bf16.gmra.mrb[68].mxu1 %v1997_v39 }
  0xca   :  { %1175 = vmatmul.mubr.bf16.gmra.mrb[68].mxu0 %v1998_v40  ;;  %974 = vmatprep.mubr.bf16.mxu1 %v1999_v41 }
  0xcb   :  { %1182 = vmatprep.mubr.bf16.mxu0 %v2001_v42 }
  0xd1   :  { %975 = vmatmul.mubr.bf16.gmra.mrb[72].mxu1 %v2003_v43 }
  0xd2   :  { %1183 = vmatmul.mubr.bf16.gmra.mrb[72].mxu0 %v2004_v44  ;;  %982 = vmatprep.mubr.bf16.mxu1 %v2005_v45 }
  0xd3   :  { %1190 = vmatprep.mubr.bf16.mxu0 %v2007_v46 }
  0xd9   :  { %983 = vmatmul.mubr.bf16.gmra.mrb[76].mxu1 %v2009_v47 }
  0xda   :  { %1191 = vmatmul.mubr.bf16.gmra.mrb[76].mxu0 %v2010_v48  ;;  %990 = vmatprep.mubr.bf16.mxu1 %v2011_v49 }
  0xdb   :  { %1198 = vmatprep.mubr.bf16.mxu0 %v2013_v50 }
  0xe1   :  { %991 = vmatmul.mubr.bf16.gmra.mrb[80].mxu1 %v2015_v53 }
  0xe2   :  { %1199 = vmatmul.mubr.bf16.gmra.mrb[80].mxu0 %v2016_v54  ;;  %998 = vmatprep.mubr.bf16.mxu1 %v1651_v55 }
  0xe3   :  { %1206 = vmatprep.mubr.bf16.mxu0 %v1653_v56 }
  0xe9   :  { %999 = vmatmul.mubr.bf16.gmra.mrb[84].mxu1 %v1650_v57 }
  0xea   :  { %1207 = vmatmul.mubr.bf16.gmra.mrb[84].mxu0 %v1652_v58 }
 0x114   :  { %v832_v60 = vpop.f32.mrb[0].mxu1 }
 0x115   :  { %v833_v61 = vadd.f32 %v2431_v59, %v832_v60  ;;  %v1040_v62 = vpop.f32.mrb[0].mxu0  ;;  %v834_v63 = vpop.f32.mrb[1].mxu1 }
 0x116   :  { %v1042_v0 = vpop.f32.mrb[1].mxu0  ;;  %v835_v1 = vpop.f32.mrb[2].mxu1 }
 0x117   :  { %v1041_v2 = vadd.f32 %v1040_v62, %v833_v61  ;;  %v836_v3 = vadd.f32 %v2431_v59, %v835_v1  ;;  %v1043_v4 = vpop.f32.mrb[2].mxu0  ;;  %v837_v5 = vpop.f32.mrb[3].mxu1 }
 0x118   :  { %v1045_v6 = vpop.f32.mrb[3].mxu0 }
 0x119   :  { %vm1214_vm0 = vcmp.ge.f32.partialorder %v1041_v2, 0.0  ;;  %v1257_v7 = vmul.f32 0.01, %v1041_v2  ;;  %v1044_v8 = vadd.f32 %v1043_v4, %v836_v3 }
 0x11b   :  { %v1300_v9 = vsel %vm1214_vm0, %v1041_v2, %v1257_v7  ;;  %vm1215_vm2 = vcmp.ge.f32.partialorder %v1044_v8, 0.0  ;;  %v1258_v10 = vmul.f32 0.01, %v1044_v8 }
 0x11c   :  { %v1729_v11 = vpack.c.bf16 %v1300_v9, %v1300_v9  ;;  %v840_v12 = vpop.f32.mrb[4].mxu1 }
 0x11d   :  { %v1301_v13 = vsel %vm1215_vm2, %v1044_v8, %v1258_v10  ;;  %v841_v14 = vadd.f32 %v2431_v59, %v840_v12  ;;  %v1048_v15 = vpop.f32.mrb[4].mxu0  ;;  %v842_v16 = vpop.f32.mrb[5].mxu1 }
 0x11e   :  { %1517 = vst.msk [vmem:[%s2650_s3] sm:$0xf] %vm1516_vm1, %v1729_v11  ;;  %v1730_v17 = vpack.c.bf16 %v1301_v13, %v1301_v13  ;;  %v1050_v18 = vpop.f32.mrb[5].mxu0  ;;  %v843_v19 = vpop.f32.mrb[6].mxu1 }
 0x11f   :  { %v1049_v20 = vadd.f32 %v1048_v15, %v841_v14  ;;  %v844_v21 = vadd.f32 %v2431_v59, %v843_v19  ;;  %v1051_v22 = vpop.f32.mrb[6].mxu0  ;;  %v845_v23 = vpop.f32.mrb[7].mxu1 }
 0x120   :  { %1518 = vst.msk [vmem:[%s2650_s3 + $0x4] sm:$0xf] %vm1516_vm1, %v1730_v17  ;;  %v1053_v24 = vpop.f32.mrb[7].mxu0 }
 0x121   :  { %vm1216_vm3 = vcmp.ge.f32.partialorder %v1049_v20, 0.0  ;;  %v1259_v25 = vmul.f32 0.01, %v1049_v20  ;;  %v1052_v26 = vadd.f32 %v1051_v22, %v844_v21 }
 0x123   :  { %v1302_v27 = vsel %vm1216_vm3, %v1049_v20, %v1259_v25  ;;  %vm1217_vm4 = vcmp.ge.f32.partialorder %v1052_v26, 0.0  ;;  %v1260_v28 = vmul.f32 0.01, %v1052_v26 }
 0x124   :  { %v1731_v29 = vpack.c.bf16 %v1302_v27, %v1302_v27  ;;  %v848_v30 = vpop.f32.mrb[8].mxu1 }
 0x125   :  { %v1303_v31 = vsel %vm1217_vm4, %v1052_v26, %v1260_v28  ;;  %v849_v32 = vadd.f32 %v2431_v59, %v848_v30  ;;  %v1056_v33 = vpop.f32.mrb[8].mxu0  ;;  %v850_v34 = vpop.f32.mrb[9].mxu1 }
 0x126   :  { %1519 = vst.msk [vmem:[%s2650_s3 + $0x8] sm:$0xf] %vm1516_vm1, %v1731_v29  ;;  %v1732_v35 = vpack.c.bf16 %v1303_v31, %v1303_v31  ;;  %v1058_v36 = vpop.f32.mrb[9].mxu0  ;;  %v851_v37 = vpop.f32.mrb[10].mxu1 }
 0x127   :  { %v1057_v38 = vadd.f32 %v1056_v33, %v849_v32  ;;  %v852_v39 = vadd.f32 %v2431_v59, %v851_v37  ;;  %v1059_v40 = vpop.f32.mrb[10].mxu0  ;;  %v853_v41 = vpop.f32.mrb[11].mxu1 }
 0x128   :  { %1520 = vst.msk [vmem:[%s2650_s3 + $0xc] sm:$0xf] %vm1516_vm1, %v1732_v35  ;;  %v1061_v42 = vpop.f32.mrb[11].mxu0 }
 0x129   :  { %vm1218_vm5 = vcmp.ge.f32.partialorder %v1057_v38, 0.0  ;;  %v1261_v43 = vmul.f32 0.01, %v1057_v38  ;;  %v1060_v44 = vadd.f32 %v1059_v40, %v852_v39 }
 0x12b   :  { %v1304_v45 = vsel %vm1218_vm5, %v1057_v38, %v1261_v43  ;;  %vm1219_vm6 = vcmp.ge.f32.partialorder %v1060_v44, 0.0  ;;  %v1262_v46 = vmul.f32 0.01, %v1060_v44 }
 0x12c   :  { %v1733_v47 = vpack.c.bf16 %v1304_v45, %v1304_v45  ;;  %v856_v48 = vpop.f32.mrb[12].mxu1 }
 0x12d   :  { %v1305_v49 = vsel %vm1219_vm6, %v1060_v44, %v1262_v46  ;;  %v857_v50 = vadd.f32 %v2431_v59, %v856_v48  ;;  %v1064_v51 = vpop.f32.mrb[12].mxu0  ;;  %v858_v52 = vpop.f32.mrb[13].mxu1 }
 0x12e   :  { %1521 = vst.msk [vmem:[%s2650_s3 + $0x10] sm:$0xf] %vm1516_vm1, %v1733_v47  ;;  %v1734_v53 = vpack.c.bf16 %v1305_v49, %v1305_v49  ;;  %v1066_v54 = vpop.f32.mrb[13].mxu0  ;;  %v859_v55 = vpop.f32.mrb[14].mxu1 }
 0x12f   :  { %v1065_v56 = vadd.f32 %v1064_v51, %v857_v50  ;;  %v860_v57 = vadd.f32 %v2431_v59, %v859_v55  ;;  %v1067_v58 = vpop.f32.mrb[14].mxu0  ;;  %v861_v60 = vpop.f32.mrb[15].mxu1 }
 0x130   :  { %1522 = vst.msk [vmem:[%s2650_s3 + $0x14] sm:$0xf] %vm1516_vm1, %v1734_v53  ;;  %v1069_v61 = vpop.f32.mrb[15].mxu0 }
 0x131   :  { %vm1220_vm7 = vcmp.ge.f32.partialorder %v1065_v56, 0.0  ;;  %v1263_v62 = vmul.f32 0.01, %v1065_v56  ;;  %v1068_v63 = vadd.f32 %v1067_v58, %v860_v57 }
 0x133   :  { %v1306_v0 = vsel %vm1220_vm7, %v1065_v56, %v1263_v62  ;;  %vm1221_vm8 = vcmp.ge.f32.partialorder %v1068_v63, 0.0  ;;  %v1264_v1 = vmul.f32 0.01, %v1068_v63 }
 0x134   :  { %v1735_v2 = vpack.c.bf16 %v1306_v0, %v1306_v0  ;;  %v864_v3 = vpop.f32.mrb[16].mxu1 }
 0x135   :  { %v1307_v4 = vsel %vm1221_vm8, %v1068_v63, %v1264_v1  ;;  %v865_v5 = vadd.f32 %v2431_v59, %v864_v3  ;;  %v1072_v6 = vpop.f32.mrb[16].mxu0  ;;  %v866_v7 = vpop.f32.mrb[17].mxu1 }
 0x136   :  { %1523 = vst.msk [vmem:[%s2650_s3 + $0x18] sm:$0xf] %vm1516_vm1, %v1735_v2  ;;  %v1736_v8 = vpack.c.bf16 %v1307_v4, %v1307_v4  ;;  %v1074_v9 = vpop.f32.mrb[17].mxu0  ;;  %v867_v10 = vpop.f32.mrb[18].mxu1 }
 0x137   :  { %v1073_v11 = vadd.f32 %v1072_v6, %v865_v5  ;;  %v868_v12 = vadd.f32 %v2431_v59, %v867_v10  ;;  %v1075_v13 = vpop.f32.mrb[18].mxu0  ;;  %v869_v14 = vpop.f32.mrb[19].mxu1 }
 0x138   :  { %1524 = vst.msk [vmem:[%s2650_s3 + $0x1c] sm:$0xf] %vm1516_vm1, %v1736_v8  ;;  %v1077_v15 = vpop.f32.mrb[19].mxu0 }
 0x139   :  { %vm1222_vm9 = vcmp.ge.f32.partialorder %v1073_v11, 0.0  ;;  %v1265_v16 = vmul.f32 0.01, %v1073_v11  ;;  %v1076_v17 = vadd.f32 %v1075_v13, %v868_v12 }
 0x13b   :  { %v1308_v18 = vsel %vm1222_vm9, %v1073_v11, %v1265_v16  ;;  %vm1223_vm10 = vcmp.ge.f32.partialorder %v1076_v17, 0.0  ;;  %v1266_v19 = vmul.f32 0.01, %v1076_v17 }
 0x13c   :  { %v1737_v20 = vpack.c.bf16 %v1308_v18, %v1308_v18  ;;  %v872_v21 = vpop.f32.mrb[20].mxu1 }
 0x13d   :  { %v1309_v22 = vsel %vm1223_vm10, %v1076_v17, %v1266_v19  ;;  %v873_v23 = vadd.f32 %v2431_v59, %v872_v21  ;;  %v1080_v24 = vpop.f32.mrb[20].mxu0  ;;  %v874_v25 = vpop.f32.mrb[21].mxu1 }
 0x13e   :  { %1525 = vst.msk [vmem:[%s2650_s3 + $0x20] sm:$0xf] %vm1516_vm1, %v1737_v20  ;;  %v1738_v26 = vpack.c.bf16 %v1309_v22, %v1309_v22  ;;  %v1082_v27 = vpop.f32.mrb[21].mxu0  ;;  %v875_v28 = vpop.f32.mrb[22].mxu1 }
 0x13f   :  { %v1081_v29 = vadd.f32 %v1080_v24, %v873_v23  ;;  %v876_v30 = vadd.f32 %v2431_v59, %v875_v28  ;;  %v1083_v31 = vpop.f32.mrb[22].mxu0  ;;  %v877_v32 = vpop.f32.mrb[23].mxu1 }
 0x140   :  { %1526 = vst.msk [vmem:[%s2650_s3 + $0x24] sm:$0xf] %vm1516_vm1, %v1738_v26  ;;  %v1085_v33 = vpop.f32.mrb[23].mxu0 }
 0x141   :  { %vm1224_vm11 = vcmp.ge.f32.partialorder %v1081_v29, 0.0  ;;  %v1267_v34 = vmul.f32 0.01, %v1081_v29  ;;  %v1084_v35 = vadd.f32 %v1083_v31, %v876_v30 }
 0x143   :  { %v1310_v36 = vsel %vm1224_vm11, %v1081_v29, %v1267_v34  ;;  %vm1225_vm12 = vcmp.ge.f32.partialorder %v1084_v35, 0.0  ;;  %v1268_v37 = vmul.f32 0.01, %v1084_v35 }
 0x144   :  { %v1739_v38 = vpack.c.bf16 %v1310_v36, %v1310_v36  ;;  %v880_v39 = vpop.f32.mrb[24].mxu1 }
 0x145   :  { %v1311_v40 = vsel %vm1225_vm12, %v1084_v35, %v1268_v37  ;;  %v881_v41 = vadd.f32 %v2431_v59, %v880_v39  ;;  %v1088_v42 = vpop.f32.mrb[24].mxu0  ;;  %v882_v43 = vpop.f32.mrb[25].mxu1 }
 0x146   :  { %1527 = vst.msk [vmem:[%s2650_s3 + $0x28] sm:$0xf] %vm1516_vm1, %v1739_v38  ;;  %v1740_v44 = vpack.c.bf16 %v1311_v40, %v1311_v40  ;;  %v1090_v45 = vpop.f32.mrb[25].mxu0  ;;  %v883_v46 = vpop.f32.mrb[26].mxu1 }
 0x147   :  { %v1089_v47 = vadd.f32 %v1088_v42, %v881_v41  ;;  %v884_v48 = vadd.f32 %v2431_v59, %v883_v46  ;;  %v1091_v49 = vpop.f32.mrb[26].mxu0  ;;  %v885_v50 = vpop.f32.mrb[27].mxu1 }
 0x148   :  { %1528 = vst.msk [vmem:[%s2650_s3 + $0x2c] sm:$0xf] %vm1516_vm1, %v1740_v44  ;;  %v1093_v51 = vpop.f32.mrb[27].mxu0 }
 0x149   :  { %vm1226_vm13 = vcmp.ge.f32.partialorder %v1089_v47, 0.0  ;;  %v1269_v52 = vmul.f32 0.01, %v1089_v47  ;;  %v1092_v53 = vadd.f32 %v1091_v49, %v884_v48 }
 0x14b   :  { %v1312_v54 = vsel %vm1226_vm13, %v1089_v47, %v1269_v52  ;;  %vm1227_vm14 = vcmp.ge.f32.partialorder %v1092_v53, 0.0  ;;  %v1270_v55 = vmul.f32 0.01, %v1092_v53 }
 0x14c   :  { %v1741_v56 = vpack.c.bf16 %v1312_v54, %v1312_v54  ;;  %v888_v57 = vpop.f32.mrb[28].mxu1 }
 0x14d   :  { %v1313_v58 = vsel %vm1227_vm14, %v1092_v53, %v1270_v55  ;;  %v889_v60 = vadd.f32 %v2431_v59, %v888_v57  ;;  %v1096_v61 = vpop.f32.mrb[28].mxu0  ;;  %v890_v62 = vpop.f32.mrb[29].mxu1 }
 0x14e   :  { %1529 = vst.msk [vmem:[%s2650_s3 + $0x30] sm:$0xf] %vm1516_vm1, %v1741_v56  ;;  %v1742_v63 = vpack.c.bf16 %v1313_v58, %v1313_v58  ;;  %v1098_v0 = vpop.f32.mrb[29].mxu0  ;;  %v891_v1 = vpop.f32.mrb[30].mxu1 }
 0x14f   :  { %v1097_v2 = vadd.f32 %v1096_v61, %v889_v60  ;;  %v892_v3 = vadd.f32 %v2431_v59, %v891_v1  ;;  %v1099_v4 = vpop.f32.mrb[30].mxu0  ;;  %v893_v5 = vpop.f32.mrb[31].mxu1 }
 0x150   :  { %1530 = vst.msk [vmem:[%s2650_s3 + $0x34] sm:$0xf] %vm1516_vm1, %v1742_v63  ;;  %v1101_v6 = vpop.f32.mrb[31].mxu0 }
 0x151   :  { %vm1228_vm15 = vcmp.ge.f32.partialorder %v1097_v2, 0.0  ;;  %v1271_v7 = vmul.f32 0.01, %v1097_v2  ;;  %v1100_v8 = vadd.f32 %v1099_v4, %v892_v3 }
 0x153   :  { %v1314_v9 = vsel %vm1228_vm15, %v1097_v2, %v1271_v7  ;;  %vm1229_vm0 = vcmp.ge.f32.partialorder %v1100_v8, 0.0  ;;  %v1272_v10 = vmul.f32 0.01, %v1100_v8 }
 0x154   :  { %v1743_v11 = vpack.c.bf16 %v1314_v9, %v1314_v9  ;;  %v896_v12 = vpop.f32.mrb[32].mxu1 }
 0x155   :  { %v1315_v13 = vsel %vm1229_vm0, %v1100_v8, %v1272_v10  ;;  %v897_v14 = vadd.f32 %v2431_v59, %v896_v12  ;;  %v1104_v15 = vpop.f32.mrb[32].mxu0  ;;  %v898_v16 = vpop.f32.mrb[33].mxu1 }
 0x156   :  { %1531 = vst.msk [vmem:[%s2650_s3 + $0x38] sm:$0xf] %vm1516_vm1, %v1743_v11  ;;  %v1744_v17 = vpack.c.bf16 %v1315_v13, %v1315_v13  ;;  %v1106_v18 = vpop.f32.mrb[33].mxu0  ;;  %v899_v19 = vpop.f32.mrb[34].mxu1 }
 0x157   :  { %v1105_v20 = vadd.f32 %v1104_v15, %v897_v14  ;;  %v900_v21 = vadd.f32 %v2431_v59, %v899_v19  ;;  %v1107_v22 = vpop.f32.mrb[34].mxu0  ;;  %v901_v23 = vpop.f32.mrb[35].mxu1 }
 0x158   :  { %1532 = vst.msk [vmem:[%s2650_s3 + $0x3c] sm:$0xf] %vm1516_vm1, %v1744_v17  ;;  %v1109_v24 = vpop.f32.mrb[35].mxu0 }
 0x159   :  { %vm1230_vm2 = vcmp.ge.f32.partialorder %v1105_v20, 0.0  ;;  %v1273_v25 = vmul.f32 0.01, %v1105_v20  ;;  %v1108_v26 = vadd.f32 %v1107_v22, %v900_v21 }
 0x15b   :  { %v1316_v27 = vsel %vm1230_vm2, %v1105_v20, %v1273_v25  ;;  %vm1231_vm3 = vcmp.ge.f32.partialorder %v1108_v26, 0.0  ;;  %v1274_v28 = vmul.f32 0.01, %v1108_v26 }
 0x15c   :  { %v1745_v29 = vpack.c.bf16 %v1316_v27, %v1316_v27  ;;  %v904_v30 = vpop.f32.mrb[36].mxu1 }
 0x15d   :  { %v1317_v31 = vsel %vm1231_vm3, %v1108_v26, %v1274_v28  ;;  %v905_v32 = vadd.f32 %v2431_v59, %v904_v30  ;;  %v1112_v33 = vpop.f32.mrb[36].mxu0  ;;  %v906_v34 = vpop.f32.mrb[37].mxu1 }
 0x15e   :  { %1533 = vst.msk [vmem:[%s2650_s3 + $0x40] sm:$0xf] %vm1516_vm1, %v1745_v29  ;;  %v1746_v35 = vpack.c.bf16 %v1317_v31, %v1317_v31  ;;  %v1114_v36 = vpop.f32.mrb[37].mxu0  ;;  %v907_v37 = vpop.f32.mrb[38].mxu1 }
 0x15f   :  { %v1113_v38 = vadd.f32 %v1112_v33, %v905_v32  ;;  %v908_v39 = vadd.f32 %v2431_v59, %v907_v37  ;;  %v1115_v40 = vpop.f32.mrb[38].mxu0  ;;  %v909_v41 = vpop.f32.mrb[39].mxu1 }
 0x160   :  { %1534 = vst.msk [vmem:[%s2650_s3 + $0x44] sm:$0xf] %vm1516_vm1, %v1746_v35  ;;  %v1117_v42 = vpop.f32.mrb[39].mxu0 }
 0x161   :  { %vm1232_vm4 = vcmp.ge.f32.partialorder %v1113_v38, 0.0  ;;  %v1275_v43 = vmul.f32 0.01, %v1113_v38  ;;  %v1116_v44 = vadd.f32 %v1115_v40, %v908_v39 }
 0x163   :  { %v1318_v45 = vsel %vm1232_vm4, %v1113_v38, %v1275_v43  ;;  %vm1233_vm5 = vcmp.ge.f32.partialorder %v1116_v44, 0.0  ;;  %v1276_v46 = vmul.f32 0.01, %v1116_v44 }
 0x164   :  { %v1747_v47 = vpack.c.bf16 %v1318_v45, %v1318_v45  ;;  %v912_v48 = vpop.f32.mrb[40].mxu1 }
 0x165   :  { %v1319_v49 = vsel %vm1233_vm5, %v1116_v44, %v1276_v46  ;;  %v913_v50 = vadd.f32 %v2431_v59, %v912_v48  ;;  %v1120_v51 = vpop.f32.mrb[40].mxu0  ;;  %v914_v52 = vpop.f32.mrb[41].mxu1 }
 0x166   :  { %1535 = vst.msk [vmem:[%s2650_s3 + $0x48] sm:$0xf] %vm1516_vm1, %v1747_v47  ;;  %v1748_v53 = vpack.c.bf16 %v1319_v49, %v1319_v49  ;;  %v1122_v54 = vpop.f32.mrb[41].mxu0  ;;  %v915_v55 = vpop.f32.mrb[42].mxu1 }
 0x167   :  { %v1121_v56 = vadd.f32 %v1120_v51, %v913_v50  ;;  %v916_v57 = vadd.f32 %v2431_v59, %v915_v55  ;;  %v1123_v58 = vpop.f32.mrb[42].mxu0  ;;  %v917_v60 = vpop.f32.mrb[43].mxu1 }
 0x168   :  { %1536 = vst.msk [vmem:[%s2650_s3 + $0x4c] sm:$0xf] %vm1516_vm1, %v1748_v53  ;;  %v1125_v61 = vpop.f32.mrb[43].mxu0 }
 0x169   :  { %vm1234_vm6 = vcmp.ge.f32.partialorder %v1121_v56, 0.0  ;;  %v1277_v62 = vmul.f32 0.01, %v1121_v56  ;;  %v1124_v63 = vadd.f32 %v1123_v58, %v916_v57 }
 0x16b   :  { %v1320_v0 = vsel %vm1234_vm6, %v1121_v56, %v1277_v62  ;;  %vm1235_vm7 = vcmp.ge.f32.partialorder %v1124_v63, 0.0  ;;  %v1278_v1 = vmul.f32 0.01, %v1124_v63 }
 0x16c   :  { %v1749_v2 = vpack.c.bf16 %v1320_v0, %v1320_v0  ;;  %v920_v3 = vpop.f32.mrb[44].mxu1 }
 0x16d   :  { %v1321_v4 = vsel %vm1235_vm7, %v1124_v63, %v1278_v1  ;;  %v921_v5 = vadd.f32 %v2431_v59, %v920_v3  ;;  %v1128_v6 = vpop.f32.mrb[44].mxu0  ;;  %v922_v7 = vpop.f32.mrb[45].mxu1 }
 0x16e   :  { %1537 = vst.msk [vmem:[%s2650_s3 + $0x50] sm:$0xf] %vm1516_vm1, %v1749_v2  ;;  %v1750_v8 = vpack.c.bf16 %v1321_v4, %v1321_v4  ;;  %v1130_v9 = vpop.f32.mrb[45].mxu0  ;;  %v923_v10 = vpop.f32.mrb[46].mxu1 }
 0x16f   :  { %v1129_v11 = vadd.f32 %v1128_v6, %v921_v5  ;;  %v924_v12 = vadd.f32 %v2431_v59, %v923_v10  ;;  %v1131_v13 = vpop.f32.mrb[46].mxu0  ;;  %v925_v14 = vpop.f32.mrb[47].mxu1 }
 0x170   :  { %1538 = vst.msk [vmem:[%s2650_s3 + $0x54] sm:$0xf] %vm1516_vm1, %v1750_v8  ;;  %v1133_v15 = vpop.f32.mrb[47].mxu0 }
 0x171   :  { %vm1236_vm8 = vcmp.ge.f32.partialorder %v1129_v11, 0.0  ;;  %v1279_v16 = vmul.f32 0.01, %v1129_v11  ;;  %v1132_v17 = vadd.f32 %v1131_v13, %v924_v12 }
 0x173   :  { %v1322_v18 = vsel %vm1236_vm8, %v1129_v11, %v1279_v16  ;;  %vm1237_vm9 = vcmp.ge.f32.partialorder %v1132_v17, 0.0  ;;  %v1280_v19 = vmul.f32 0.01, %v1132_v17 }
 0x174   :  { %v1751_v20 = vpack.c.bf16 %v1322_v18, %v1322_v18  ;;  %v928_v21 = vpop.f32.mrb[48].mxu1 }
 0x175   :  { %v1323_v22 = vsel %vm1237_vm9, %v1132_v17, %v1280_v19  ;;  %v929_v23 = vadd.f32 %v2431_v59, %v928_v21  ;;  %v1136_v24 = vpop.f32.mrb[48].mxu0  ;;  %v930_v25 = vpop.f32.mrb[49].mxu1 }
 0x176   :  { %1539 = vst.msk [vmem:[%s2650_s3 + $0x58] sm:$0xf] %vm1516_vm1, %v1751_v20  ;;  %v1752_v26 = vpack.c.bf16 %v1323_v22, %v1323_v22  ;;  %v1138_v27 = vpop.f32.mrb[49].mxu0  ;;  %v931_v28 = vpop.f32.mrb[50].mxu1 }
 0x177   :  { %v1137_v29 = vadd.f32 %v1136_v24, %v929_v23  ;;  %v932_v30 = vadd.f32 %v2431_v59, %v931_v28  ;;  %v1139_v31 = vpop.f32.mrb[50].mxu0  ;;  %v933_v32 = vpop.f32.mrb[51].mxu1 }
 0x178   :  { %1540 = vst.msk [vmem:[%s2650_s3 + $0x5c] sm:$0xf] %vm1516_vm1, %v1752_v26  ;;  %v1141_v33 = vpop.f32.mrb[51].mxu0 }
 0x179   :  { %vm1238_vm10 = vcmp.ge.f32.partialorder %v1137_v29, 0.0  ;;  %v1281_v34 = vmul.f32 0.01, %v1137_v29  ;;  %v1140_v35 = vadd.f32 %v1139_v31, %v932_v30 }
 0x17b   :  { %v1324_v36 = vsel %vm1238_vm10, %v1137_v29, %v1281_v34  ;;  %vm1239_vm11 = vcmp.ge.f32.partialorder %v1140_v35, 0.0  ;;  %v1282_v37 = vmul.f32 0.01, %v1140_v35 }
 0x17c   :  { %v1753_v38 = vpack.c.bf16 %v1324_v36, %v1324_v36  ;;  %v936_v39 = vpop.f32.mrb[52].mxu1 }
 0x17d   :  { %v1325_v40 = vsel %vm1239_vm11, %v1140_v35, %v1282_v37  ;;  %v937_v41 = vadd.f32 %v2431_v59, %v936_v39  ;;  %v1144_v42 = vpop.f32.mrb[52].mxu0  ;;  %v938_v43 = vpop.f32.mrb[53].mxu1 }
 0x17e   :  { %1541 = vst.msk [vmem:[%s2650_s3 + $0x60] sm:$0xf] %vm1516_vm1, %v1753_v38  ;;  %v1754_v44 = vpack.c.bf16 %v1325_v40, %v1325_v40  ;;  %v1146_v45 = vpop.f32.mrb[53].mxu0  ;;  %v939_v46 = vpop.f32.mrb[54].mxu1 }
 0x17f   :  { %v1145_v47 = vadd.f32 %v1144_v42, %v937_v41  ;;  %v940_v48 = vadd.f32 %v2431_v59, %v939_v46  ;;  %v1147_v49 = vpop.f32.mrb[54].mxu0  ;;  %v941_v50 = vpop.f32.mrb[55].mxu1 }
 0x180   :  { %1542 = vst.msk [vmem:[%s2650_s3 + $0x64] sm:$0xf] %vm1516_vm1, %v1754_v44  ;;  %v1149_v51 = vpop.f32.mrb[55].mxu0 }
 0x181   :  { %vm1240_vm12 = vcmp.ge.f32.partialorder %v1145_v47, 0.0  ;;  %v1283_v52 = vmul.f32 0.01, %v1145_v47  ;;  %v1148_v53 = vadd.f32 %v1147_v49, %v940_v48 }
 0x183   :  { %v1326_v54 = vsel %vm1240_vm12, %v1145_v47, %v1283_v52  ;;  %vm1241_vm13 = vcmp.ge.f32.partialorder %v1148_v53, 0.0  ;;  %v1284_v55 = vmul.f32 0.01, %v1148_v53 }
 0x184   :  { %v1755_v56 = vpack.c.bf16 %v1326_v54, %v1326_v54  ;;  %v944_v57 = vpop.f32.mrb[56].mxu1 }
 0x185   :  { %v1327_v58 = vsel %vm1241_vm13, %v1148_v53, %v1284_v55  ;;  %v945_v60 = vadd.f32 %v2431_v59, %v944_v57  ;;  %v1152_v61 = vpop.f32.mrb[56].mxu0  ;;  %v946_v62 = vpop.f32.mrb[57].mxu1 }
 0x186   :  { %1543 = vst.msk [vmem:[%s2650_s3 + $0x68] sm:$0xf] %vm1516_vm1, %v1755_v56  ;;  %v1756_v63 = vpack.c.bf16 %v1327_v58, %v1327_v58  ;;  %v1154_v0 = vpop.f32.mrb[57].mxu0  ;;  %v947_v1 = vpop.f32.mrb[58].mxu1 }
 0x187   :  { %v1153_v2 = vadd.f32 %v1152_v61, %v945_v60  ;;  %v948_v3 = vadd.f32 %v2431_v59, %v947_v1  ;;  %v1155_v4 = vpop.f32.mrb[58].mxu0  ;;  %v949_v5 = vpop.f32.mrb[59].mxu1 }
 0x188   :  { %1544 = vst.msk [vmem:[%s2650_s3 + $0x6c] sm:$0xf] %vm1516_vm1, %v1756_v63  ;;  %v1157_v6 = vpop.f32.mrb[59].mxu0 }
 0x189   :  { %vm1242_vm14 = vcmp.ge.f32.partialorder %v1153_v2, 0.0  ;;  %v1285_v7 = vmul.f32 0.01, %v1153_v2  ;;  %v1156_v8 = vadd.f32 %v1155_v4, %v948_v3 }
 0x18b   :  { %v1328_v9 = vsel %vm1242_vm14, %v1153_v2, %v1285_v7  ;;  %vm1243_vm15 = vcmp.ge.f32.partialorder %v1156_v8, 0.0  ;;  %v1286_v10 = vmul.f32 0.01, %v1156_v8  ;;  %vm1559_vm14 = vcmask 253952  }
 0x18c   :  { %v1757_v11 = vpack.c.bf16 %v1328_v9, %v1328_v9  ;;  %v952_v12 = vpop.f32.mrb[60].mxu1 }
 0x18d   :  { %v1329_v13 = vsel %vm1243_vm15, %v1156_v8, %v1286_v10  ;;  %v953_v14 = vadd.f32 %v2431_v59, %v952_v12  ;;  %v1160_v15 = vpop.f32.mrb[60].mxu0  ;;  %v954_v16 = vpop.f32.mrb[61].mxu1 }
 0x18e   :  { %1545 = vst.msk [vmem:[%s2650_s3 + $0x70] sm:$0xf] %vm1516_vm1, %v1757_v11  ;;  %v1758_v17 = vpack.c.bf16 %v1329_v13, %v1329_v13  ;;  %v1162_v18 = vpop.f32.mrb[61].mxu0  ;;  %v955_v19 = vpop.f32.mrb[62].mxu1 }
 0x18f   :  { %v1161_v20 = vadd.f32 %v1160_v15, %v953_v14  ;;  %v956_v21 = vadd.f32 %v2431_v59, %v955_v19  ;;  %v1163_v22 = vpop.f32.mrb[62].mxu0  ;;  %v957_v23 = vpop.f32.mrb[63].mxu1 }
 0x190   :  { %1546 = vst.msk [vmem:[%s2650_s3 + $0x74] sm:$0xf] %vm1516_vm1, %v1758_v17  ;;  %v1165_v24 = vpop.f32.mrb[63].mxu0 }
 0x191   :  { %vm1244_vm0 = vcmp.ge.f32.partialorder %v1161_v20, 0.0  ;;  %v1287_v25 = vmul.f32 0.01, %v1161_v20  ;;  %v1164_v26 = vadd.f32 %v1163_v22, %v956_v21 }
 0x193   :  { %v1330_v27 = vsel %vm1244_vm0, %v1161_v20, %v1287_v25  ;;  %vm1245_vm2 = vcmp.ge.f32.partialorder %v1164_v26, 0.0  ;;  %v1288_v28 = vmul.f32 0.01, %v1164_v26 }
 0x194   :  { %v1759_v29 = vpack.c.bf16 %v1330_v27, %v1330_v27  ;;  %v960_v30 = vpop.f32.mrb[64].mxu1 }
 0x195   :  { %v1331_v31 = vsel %vm1245_vm2, %v1164_v26, %v1288_v28  ;;  %v961_v32 = vadd.f32 %v2431_v59, %v960_v30  ;;  %v1168_v33 = vpop.f32.mrb[64].mxu0  ;;  %v962_v34 = vpop.f32.mrb[65].mxu1 }
 0x196   :  { %1547 = vst.msk [vmem:[%s2650_s3 + $0x78] sm:$0xf] %vm1516_vm1, %v1759_v29  ;;  %v1760_v35 = vpack.c.bf16 %v1331_v31, %v1331_v31  ;;  %v1170_v36 = vpop.f32.mrb[65].mxu0  ;;  %v963_v37 = vpop.f32.mrb[66].mxu1 }
 0x197   :  { %v1169_v38 = vadd.f32 %v1168_v33, %v961_v32  ;;  %v964_v39 = vadd.f32 %v2431_v59, %v963_v37  ;;  %v1171_v40 = vpop.f32.mrb[66].mxu0  ;;  %v965_v41 = vpop.f32.mrb[67].mxu1 }
 0x198   :  { %1548 = vst.msk [vmem:[%s2650_s3 + $0x7c] sm:$0xf] %vm1516_vm1, %v1760_v35  ;;  %v1173_v42 = vpop.f32.mrb[67].mxu0 }
 0x199   :  { %vm1246_vm3 = vcmp.ge.f32.partialorder %v1169_v38, 0.0  ;;  %v1289_v43 = vmul.f32 0.01, %v1169_v38  ;;  %v1172_v44 = vadd.f32 %v1171_v40, %v964_v39 }
 0x19b   :  { %v1332_v45 = vsel %vm1246_vm3, %v1169_v38, %v1289_v43  ;;  %vm1247_vm4 = vcmp.ge.f32.partialorder %v1172_v44, 0.0  ;;  %v1290_v46 = vmul.f32 0.01, %v1172_v44 }
 0x19c   :  { %v1761_v47 = vpack.c.bf16 %v1332_v45, %v1332_v45  ;;  %v968_v48 = vpop.f32.mrb[68].mxu1 }
 0x19d   :  { %v1333_v49 = vsel %vm1247_vm4, %v1172_v44, %v1290_v46  ;;  %v969_v50 = vadd.f32 %v2431_v59, %v968_v48  ;;  %v1176_v51 = vpop.f32.mrb[68].mxu0  ;;  %v970_v52 = vpop.f32.mrb[69].mxu1 }
 0x19e   :  { %1549 = vst.msk [vmem:[%s2650_s3 + $0x80] sm:$0xf] %vm1516_vm1, %v1761_v47  ;;  %v1762_v53 = vpack.c.bf16 %v1333_v49, %v1333_v49  ;;  %v1178_v54 = vpop.f32.mrb[69].mxu0  ;;  %v971_v55 = vpop.f32.mrb[70].mxu1 }
 0x19f   :  { %v1177_v56 = vadd.f32 %v1176_v51, %v969_v50  ;;  %v972_v57 = vadd.f32 %v2431_v59, %v971_v55  ;;  %v1179_v58 = vpop.f32.mrb[70].mxu0  ;;  %v973_v60 = vpop.f32.mrb[71].mxu1 }
 0x1a0   :  { %1550 = vst.msk [vmem:[%s2650_s3 + $0x84] sm:$0xf] %vm1516_vm1, %v1762_v53  ;;  %v1181_v61 = vpop.f32.mrb[71].mxu0 }
 0x1a1   :  { %vm1248_vm5 = vcmp.ge.f32.partialorder %v1177_v56, 0.0  ;;  %v1291_v62 = vmul.f32 0.01, %v1177_v56  ;;  %v1180_v63 = vadd.f32 %v1179_v58, %v972_v57 }
 0x1a3   :  { %v1334_v0 = vsel %vm1248_vm5, %v1177_v56, %v1291_v62  ;;  %vm1249_vm6 = vcmp.ge.f32.partialorder %v1180_v63, 0.0  ;;  %v1292_v1 = vmul.f32 0.01, %v1180_v63 }
 0x1a4   :  { %v1763_v2 = vpack.c.bf16 %v1334_v0, %v1334_v0  ;;  %v976_v3 = vpop.f32.mrb[72].mxu1 }
 0x1a5   :  { %v1335_v4 = vsel %vm1249_vm6, %v1180_v63, %v1292_v1  ;;  %v977_v5 = vadd.f32 %v2431_v59, %v976_v3  ;;  %v1184_v6 = vpop.f32.mrb[72].mxu0  ;;  %v978_v7 = vpop.f32.mrb[73].mxu1 }
 0x1a6   :  { %1551 = vst.msk [vmem:[%s2650_s3 + $0x88] sm:$0xf] %vm1516_vm1, %v1763_v2  ;;  %v1764_v8 = vpack.c.bf16 %v1335_v4, %v1335_v4  ;;  %v1186_v9 = vpop.f32.mrb[73].mxu0  ;;  %v979_v10 = vpop.f32.mrb[74].mxu1 }
 0x1a7   :  { %v1185_v11 = vadd.f32 %v1184_v6, %v977_v5  ;;  %v980_v12 = vadd.f32 %v2431_v59, %v979_v10  ;;  %v1187_v13 = vpop.f32.mrb[74].mxu0  ;;  %v981_v14 = vpop.f32.mrb[75].mxu1 }
 0x1a8   :  { %1552 = vst.msk [vmem:[%s2650_s3 + $0x8c] sm:$0xf] %vm1516_vm1, %v1764_v8  ;;  %v1189_v15 = vpop.f32.mrb[75].mxu0 }
 0x1a9   :  { %vm1250_vm7 = vcmp.ge.f32.partialorder %v1185_v11, 0.0  ;;  %v1293_v16 = vmul.f32 0.01, %v1185_v11  ;;  %v1188_v17 = vadd.f32 %v1187_v13, %v980_v12 }
 0x1ab   :  { %v1336_v18 = vsel %vm1250_vm7, %v1185_v11, %v1293_v16  ;;  %vm1251_vm8 = vcmp.ge.f32.partialorder %v1188_v17, 0.0  ;;  %v1294_v19 = vmul.f32 0.01, %v1188_v17 }
 0x1ac   :  { %v1765_v20 = vpack.c.bf16 %v1336_v18, %v1336_v18  ;;  %v984_v21 = vpop.f32.mrb[76].mxu1 }
 0x1ad   :  { %v1337_v22 = vsel %vm1251_vm8, %v1188_v17, %v1294_v19  ;;  %v985_v23 = vadd.f32 %v2431_v59, %v984_v21  ;;  %v1192_v24 = vpop.f32.mrb[76].mxu0  ;;  %v986_v25 = vpop.f32.mrb[77].mxu1 }
 0x1ae   :  { %1553 = vst.msk [vmem:[%s2650_s3 + $0x90] sm:$0xf] %vm1516_vm1, %v1765_v20  ;;  %v1766_v26 = vpack.c.bf16 %v1337_v22, %v1337_v22  ;;  %v1194_v27 = vpop.f32.mrb[77].mxu0  ;;  %v987_v28 = vpop.f32.mrb[78].mxu1 }
 0x1af   :  { %v1193_v29 = vadd.f32 %v1192_v24, %v985_v23  ;;  %v988_v30 = vadd.f32 %v2431_v59, %v987_v28  ;;  %v1195_v31 = vpop.f32.mrb[78].mxu0  ;;  %v989_v32 = vpop.f32.mrb[79].mxu1 }
 0x1b0   :  { %1554 = vst.msk [vmem:[%s2650_s3 + $0x94] sm:$0xf] %vm1516_vm1, %v1766_v26  ;;  %v1197_v33 = vpop.f32.mrb[79].mxu0 }
 0x1b1   :  { %vm1252_vm9 = vcmp.ge.f32.partialorder %v1193_v29, 0.0  ;;  %v1295_v34 = vmul.f32 0.01, %v1193_v29  ;;  %v1196_v35 = vadd.f32 %v1195_v31, %v988_v30 }
 0x1b3   :  { %v1338_v36 = vsel %vm1252_vm9, %v1193_v29, %v1295_v34  ;;  %vm1253_vm10 = vcmp.ge.f32.partialorder %v1196_v35, 0.0  ;;  %v1296_v37 = vmul.f32 0.01, %v1196_v35 }
 0x1b4   :  { %v1767_v38 = vpack.c.bf16 %v1338_v36, %v1338_v36  ;;  %v992_v39 = vpop.f32.mrb[80].mxu1 }
 0x1b5   :  { %v1339_v40 = vsel %vm1253_vm10, %v1196_v35, %v1296_v37  ;;  %v993_v41 = vadd.f32 %v2431_v59, %v992_v39  ;;  %v1200_v42 = vpop.f32.mrb[80].mxu0  ;;  %v994_v43 = vpop.f32.mrb[81].mxu1 }
 0x1b6   :  { %1555 = vst.msk [vmem:[%s2650_s3 + $0x98] sm:$0xf] %vm1516_vm1, %v1767_v38  ;;  %v1768_v44 = vpack.c.bf16 %v1339_v40, %v1339_v40  ;;  %v1202_v45 = vpop.f32.mrb[81].mxu0  ;;  %v995_v46 = vpop.f32.mrb[82].mxu1 }
 0x1b7   :  { %v1201_v47 = vadd.f32 %v1200_v42, %v993_v41  ;;  %v996_v48 = vadd.f32 %v2431_v59, %v995_v46  ;;  %v1203_v49 = vpop.f32.mrb[82].mxu0  ;;  %v997_v50 = vpop.f32.mrb[83].mxu1 }
 0x1b8   :  { %1556 = vst.msk [vmem:[%s2650_s3 + $0x9c] sm:$0xf] %vm1516_vm1, %v1768_v44  ;;  %v1205_v51 = vpop.f32.mrb[83].mxu0 }
 0x1b9   :  { %vm1254_vm11 = vcmp.ge.f32.partialorder %v1201_v47, 0.0  ;;  %v1297_v52 = vmul.f32 0.01, %v1201_v47  ;;  %v1204_v53 = vadd.f32 %v1203_v49, %v996_v48 }
 0x1bb   :  { %v1340_v54 = vsel %vm1254_vm11, %v1201_v47, %v1297_v52  ;;  %vm1255_vm12 = vcmp.ge.f32.partialorder %v1204_v53, 0.0  ;;  %v1298_v55 = vmul.f32 0.01, %v1204_v53 }
 0x1bc   :  { %v1769_v56 = vpack.c.bf16 %v1340_v54, %v1340_v54  ;;  %v1000_v57 = vpop.f32.mrb[84].mxu1 }
 0x1bd   :  { %v1341_v58 = vsel %vm1255_vm12, %v1204_v53, %v1298_v55  ;;  %v1001_v60 = vadd.f32 %v2431_v59, %v1000_v57  ;;  %v1208_v61 = vpop.f32.mrb[84].mxu0  ;;  %v1002_v62 = vpop.f32.mrb[85].mxu1 }
 0x1be   :  { %1557 = vst.msk [vmem:[%s2650_s3 + $0xa0] sm:$0xf] %vm1516_vm1, %v1769_v56  ;;  %v1770_v63 = vpack.c.bf16 %v1341_v58, %v1341_v58  ;;  %v1210_v0 = vpop.f32.mrb[85].mxu0  ;;  %v1003_v1 = vpop.f32.mrb[86].mxu1 }
 0x1bf   :  { %v1209_v2 = vadd.f32 %v1208_v61, %v1001_v60  ;;  %v1211_v3 = vpop.f32.mrb[86].mxu0  ;;  %v1004_v4 = vpop.f32.mrb[87].mxu1 }
 0x1c0   :  { %1558 = vst.msk [vmem:[%s2650_s3 + $0xa4] sm:$0xf] %vm1516_vm1, %v1770_v63  ;;  %v1212_v5 = vpop.f32.mrb[87].mxu0 }
 0x1c1   :  { %vm1256_vm13 = vcmp.ge.f32.partialorder %v1209_v2, 0.0  ;;  %v1299_v59 = vmul.f32 0.01, %v1209_v2 }
 0x1c3   :  { %v1342_v6 = vsel %vm1256_vm13, %v1209_v2, %v1299_v59 }
 0x1c4   :  { %v1771_v7 = vpack.c.bf16 %v1342_v6, %v1342_v6 }
 0x1c6   :  { %1560 = vst.msk [vmem:[%s2650_s3 + $0xa8] sm:$0x1] %vm1559_vm14, %v1771_v7 }

// kernel: conv_actor_forward.5
= control target key start
LH: loop header
LB: loop body
LE: loop exit
PB: predicated region body
PF: predicated region fallthrough
CT: control target
= control target key end

     0   :  { %v9258_v22 = vmov 1966171168   ;;  %v11866_v24 = vlaneseq  ;;  %vm3199_vm0 = vcmask 1043456   ;;  %vm9260_vm1 = vmmov 0   ;;  %s11851_s2 = inlined_call_operand.vmem [shape: bf16[512,32], index: 2, kind: input, shape index: {}]   ;;  %s11852_s0 = inlined_call_operand.vmem [shape: bf16[25,2,512], index: 0, kind: input, shape index: {}]   ;;  %s11853_s3 = inlined_call_operand.vmem [shape: f32[1,32], index: 3, kind: input, shape index: {}]   ;;  %s11854_s4 = inlined_call_operand.vmem [shape: bf16[16,32,32], index: 4, kind: input, shape index: {}]   ;;  %s11855_s7 = inlined_call_operand.vmem [shape: bf16[8,32], index: 7, kind: input, shape index: {}]   ;;  %s11856_s1 = inlined_call_operand.vmem [shape: f32[2,8], index: 1, kind: input, shape index: {}]   ;;  %s11857_s6 = inlined_call_operand.vmem [shape: bf16[4,32,32], index: 6, kind: input, shape index: {}]   ;;  %s11858_s5 = inlined_call_operand.vmem [shape: f32[1,32], index: 5, kind: input, shape index: {}]   ;;  %s11859_s10 = inlined_call_operand.vmem [shape: bf16[8,32], index: 10, kind: input, shape index: {}]   ;;  %s11860_s9 = inlined_call_operand.vmem [shape: bf16[32,32], index: 9, kind: input, shape index: {}]   ;;  %s11861_s8 = inlined_call_operand.vmem [shape: f32[1,32], index: 8, kind: input, shape index: {}]   ;;  %s11862_s12 = inlined_call_operand.vmem [shape: bf16[32,4], index: 12, kind: input, shape index: {}]   ;;  %s11863_s11 = inlined_call_operand.vmem [shape: f32[1,32], index: 11, kind: input, shape index: {}]   ;;  %s11864_s13 = inlined_call_operand.vmem [shape: f32[1,4], index: 13, kind: input, shape index: {}]   ;;  %s11865_s14 = inlined_call_operand.vmem [shape: f32[2,4], index: 14, kind: output, shape index: {}]  }
   0x1   :  { %v9339_v0 = vld [vmem:[%s11851_s2 + $0x40] sm:$0xff]   ;;  %v9362_v4 = vld [vmem:[%s11851_s2 + $0x48] sm:$0xff]   ;;  %v9386_v8 = vld [vmem:[%s11851_s2 + $0x50] sm:$0xff]   ;;  %v130_v23 = vunpack.c.l.s4 %v9258_v22  ;;  %vm3195_vm2 = vcmask 64512   ;;  %vm3260_vm4 = vcmask 261120  }
   0x2   :  { %v9344_v1 = vld [vmem:[%s11851_s2 + $0xc0] sm:$0xff]   ;;  %6953 = vmatprep.subr.bf16.mxu0 %v9339_v0  ;;  %v9368_v5 = vld [vmem:[%s11851_s2 + $0xc8] sm:$0xff]   ;;  %v9392_v9 = vld [vmem:[%s11851_s2 + $0xd0] sm:$0xff]   ;;  %v133_v30 = vshrl.u32 %v11866_v24, 7 }
   0x3   :  { %v9350_v2 = vld [vmem:[%s11851_s2] sm:$0xff]   ;;  %6975 = vmatprep.subr.bf16.mxu1 %v9344_v1  ;;  %v9374_v6 = vld [vmem:[%s11851_s2 + $0x8] sm:$0xff]   ;;  %v9398_v10 = vld [vmem:[%s11851_s2 + $0x10] sm:$0xff]   ;;  %v131_v29 = vunpack.c.0.s8 %v130_v23 }
   0x4   :  { %v9356_v3 = vld [vmem:[%s11851_s2 + $0x80] sm:$0xff]   ;;  %6954 = vmatpush3.bf16.msra.mxu0 %v9350_v2  ;;  %v9380_v7 = vld [vmem:[%s11851_s2 + $0x88] sm:$0xff]   ;;  %v9404_v11 = vld [vmem:[%s11851_s2 + $0x90] sm:$0xff]  }
   0x5   :  { %6976 = vmatpush3.bf16.msra.mxu1 %v9356_v3  ;;  %6955 = vmatprep.subr.bf16.mxu0 %v9362_v4  ;;  %v9410_v12 = vld [vmem:[%s11851_s2 + $0x58] sm:$0xff]   ;;  %v9434_v16 = vld [vmem:[%s11851_s2 + $0x60] sm:$0xff]   ;;  %v9458_v20 = vld [vmem:[%s11851_s2 + $0x68] sm:$0xff]   ;;  %v9515_v35 = vsub.s32 %v131_v29, %v133_v30 }
   0x6   :  { %6977 = vmatprep.subr.bf16.mxu1 %v9368_v5  ;;  %v9416_v13 = vld [vmem:[%s11851_s2 + $0xd8] sm:$0xff]   ;;  %v9440_v17 = vld [vmem:[%s11851_s2 + $0xe0] sm:$0xff]   ;;  %v9464_v21 = vld [vmem:[%s11851_s2 + $0xe8] sm:$0xff]  }
   0x7   :  { %v9422_v14 = vld [vmem:[%s11851_s2 + $0x18] sm:$0xff]   ;;  %v9446_v18 = vld [vmem:[%s11851_s2 + $0x20] sm:$0xff]   ;;  %v9470_v25 = vld [vmem:[%s11851_s2 + $0x28] sm:$0xff]  }
   0x8   :  { %6956 = vmatpush3.bf16.msra.mxu0 %v9374_v6  ;;  %v9428_v15 = vld [vmem:[%s11851_s2 + $0x98] sm:$0xff]   ;;  %v9452_v19 = vld [vmem:[%s11851_s2 + $0xa0] sm:$0xff]   ;;  %v9476_v26 = vld [vmem:[%s11851_s2 + $0xa8] sm:$0xff]  }
   0x9   :  { %6978 = vmatpush3.bf16.msra.mxu1 %v9380_v7  ;;  %6957 = vmatprep.subr.bf16.mxu0 %v9386_v8  ;;  %v9482_v27 = vld [vmem:[%s11851_s2 + $0x70] sm:$0xff]   ;;  %v9507_v33 = vld [vmem:[%s11851_s2 + $0x78] sm:$0xff]   ;;  %v6680_v38 = vld.sshfl [vmem:[%s11852_s0] sm:$0x33 pattern:$0x75316420] }
   0xa   :  { %6979 = vmatprep.subr.bf16.mxu1 %v9392_v9  ;;  %v9488_v28 = vld [vmem:[%s11851_s2 + $0xf0] sm:$0xff]   ;;  %v9513_v34 = vld [vmem:[%s11851_s2 + $0xf8] sm:$0xff]   ;;  %v128_v39 = vcombine.high %v6680_v38, %v6680_v38  ;;  %v135_v40 = vrot.slane %v6680_v38, %v9515_v35  ;;  %v6714_v41 = vld.sshfl [vmem:[%s11852_s0 + $0x4] sm:$0x33 pattern:$0x75316420] }
   0xb   :  { %v9495_v31 = vld [vmem:[%s11851_s2 + $0x30] sm:$0xff]   ;;  %v9521_v36 = vld [vmem:[%s11851_s2 + $0x38] sm:$0xff]   ;;  %v435_v42 = vcombine.high %v6714_v41, %v6714_v41  ;;  %v6716_v48 = vld.sshfl [vmem:[%s11852_s0 + $0x8] sm:$0x33 pattern:$0x75316420]  ;;  %v442_v50 = vrot.slane %v6714_v41, %v9515_v35 }
   0xc   :  { %6958 = vmatpush3.bf16.msra.mxu0 %v9398_v10  ;;  %v9501_v32 = vld [vmem:[%s11851_s2 + $0xb0] sm:$0xff]   ;;  %v9527_v37 = vld [vmem:[%s11851_s2 + $0xb8] sm:$0xff]   ;;  %v142_v43 = vrot.slane %v128_v39, %v9515_v35  ;;  %v143_v44 = vcombine.high %v135_v40, %v135_v40  ;;  %v550_v49 = vcombine.high %v6716_v48, %v6716_v48  ;;  %v6718_v54 = vld.sshfl [vmem:[%s11852_s0 + $0xc] sm:$0x33 pattern:$0x75316420]  ;;  %v557_v56 = vrot.slane %v6716_v48, %v9515_v35 }
   0xd   :  { %6980 = vmatpush3.bf16.msra.mxu1 %v9404_v11  ;;  %6959 = vmatprep.subr.bf16.mxu0 %v9410_v12  ;;  %v449_v45 = vrot.slane %v435_v42, %v9515_v35  ;;  %v450_v52 = vcombine.high %v442_v50, %v442_v50  ;;  %v665_v55 = vcombine.high %v6718_v54, %v6718_v54  ;;  %v6720_v60 = vld.sshfl [vmem:[%s11852_s0 + $0x10] sm:$0x33 pattern:$0x75316420] }
   0xe   :  { %6981 = vmatprep.subr.bf16.mxu1 %v9416_v13  ;;  %373 = vmatprep.mubr.bf16.mxu0 %v142_v43  ;;  %v144_v46 = vcombine.high %v142_v43, %v142_v43  ;;  %v564_v51 = vrot.slane %v550_v49, %v9515_v35  ;;  %v565_v58 = vcombine.high %v557_v56, %v557_v56  ;;  %v6722_v29 = vld.sshfl [vmem:[%s11852_s0 + $0x14] sm:$0x33 pattern:$0x75316420] }
   0xf   :  { %v451_v47 = vcombine.high %v449_v45, %v449_v45  ;;  %v679_v57 = vrot.slane %v665_v55, %v9515_v35  ;;  %v780_v61 = vcombine.high %v6720_v60, %v6720_v60  ;;  %v672_v62 = vrot.slane %v6718_v54, %v9515_v35  ;;  %v6724_v42 = vld.sshfl [vmem:[%s11852_s0 + $0x18] sm:$0x33 pattern:$0x75316420]  ;;  %v9790_v55 = vld [vmem:[%s11853_s3] ss:$0 sm:$0xff] }
  0x10   :  { %6960 = vmatpush3.bf16.msra.mxu0 %v9422_v14  ;;  %413 = vmatprep.mubr.bf16.mxu1 %v144_v46  ;;  %v566_v53 = vcombine.high %v564_v51, %v564_v51  ;;  %v895_v30 = vcombine.high %v6722_v29, %v6722_v29  ;;  %v787_v38 = vrot.slane %v6720_v60, %v9515_v35  ;;  %v9750_v48 = vld.sshfl [vmem:[%s11852_s0 + $0x1c] sm:$0x33 pattern:$0x75316420] }
  0x11   :  { %6982 = vmatpush3.bf16.msra.mxu1 %v9428_v15  ;;  %6961 = vmatprep.subr.bf16.mxu0 %v9434_v16  ;;  %v681_v59 = vcombine.high %v679_v57, %v679_v57  ;;  %v794_v63 = vrot.slane %v780_v61, %v9515_v35  ;;  %v680_v22 = vcombine.high %v672_v62, %v672_v62 }
  0x12   :  { %6983 = vmatprep.subr.bf16.mxu1 %v9440_v17  ;;  %v909_v39 = vrot.slane %v895_v30, %v9515_v35  ;;  %v1010_v43 = vcombine.high %v6724_v42, %v6724_v42  ;;  %v1125_v49 = vcombine.high %v9750_v48, %v9750_v48 }
  0x13   :  { %v796_v23 = vcombine.high %v794_v63, %v794_v63 }
  0x14   :  { %6962 = vmatpush3.bf16.msra.mxu0 %v9446_v18  ;;  %v911_v41 = vcombine.high %v909_v39, %v909_v39 }
  0x15   :  { %6984 = vmatpush3.bf16.msra.mxu1 %v9452_v19  ;;  %6963 = vmatprep.subr.bf16.mxu0 %v9458_v20 }
  0x16   :  { %6985 = vmatprep.subr.bf16.mxu1 %v9464_v21 }
  0x18   :  { %6964 = vmatpush3.bf16.msra.mxu0 %v9470_v25 }
  0x19   :  { %6986 = vmatpush3.bf16.msra.mxu1 %v9476_v26  ;;  %6965 = vmatprep.subr.bf16.mxu0 %v9482_v27 }
  0x1a   :  { %6987 = vmatprep.subr.bf16.mxu1 %v9488_v28 }
  0x1c   :  { %6966 = vmatpush3.bf16.msra.mxu0 %v9495_v31 }
  0x1d   :  { %6988 = vmatpush3.bf16.msra.mxu1 %v9501_v32  ;;  %6967 = vmatprep.subr.bf16.mxu0 %v9507_v33 }
  0x1e   :  { %6989 = vmatprep.subr.bf16.mxu1 %v9513_v34 }
  0x20   :  { %6968 = vmatpush3.bf16.msra.mxu0 %v9521_v36 }
  0x21   :  { %6990 = vmatpush3.bf16.msra.mxu1 %v9527_v37  ;;  %6997 = vmatprep.subr.bf16.mxu0 %v9339_v0 }
  0x22   :  { %7019 = vmatprep.subr.bf16.mxu1 %v9344_v1 }
  0x23   :  { %374 = vmatmul.mubr.bf16.vlgmr.msra.gmra.mrb[0].mxu0 %v135_v40  ;;  %v795_v40 = vcombine.high %v787_v38, %v787_v38 }
  0x24   :  { %6998 = vmatpush3.bf16.msra.mxu0 %v9350_v2  ;;  %414 = vmatmul.mubr.bf16.vlgmr.msra.gmra.mrb[0].mxu1 %v143_v44  ;;  %v902_v44 = vrot.slane %v6722_v29, %v9515_v35 }
  0x25   :  { %6999 = vmatprep.subr.bf16.mxu0 %v9362_v4  ;;  %7020 = vmatpush3.bf16.msra.mxu1 %v9356_v3 }
  0x26   :  { %488 = vmatprep.mubr.bf16.mxu0 %v449_v45  ;;  %7021 = vmatprep.subr.bf16.mxu1 %v9368_v5  ;;  %v1024_v45 = vrot.slane %v1010_v43, %v9515_v35  ;;  %v910_v46 = vcombine.high %v902_v44, %v902_v44 }
  0x27   :  { %528 = vmatprep.mubr.bf16.mxu1 %v451_v47 }
  0x28   :  { %7000 = vmatpush3.bf16.msra.mxu0 %v9374_v6  ;;  %v1026_v47 = vcombine.high %v1024_v45, %v1024_v45 }
  0x29   :  { %7001 = vmatprep.subr.bf16.mxu0 %v9386_v8  ;;  %7022 = vmatpush3.bf16.msra.mxu1 %v9380_v7 }
  0x2a   :  { %7023 = vmatprep.subr.bf16.mxu1 %v9392_v9 }
  0x2c   :  { %7002 = vmatpush3.bf16.msra.mxu0 %v9398_v10 }
  0x2d   :  { %7003 = vmatprep.subr.bf16.mxu0 %v9410_v12  ;;  %7024 = vmatpush3.bf16.msra.mxu1 %v9404_v11 }
  0x2e   :  { %7025 = vmatprep.subr.bf16.mxu1 %v9416_v13 }
  0x30   :  { %7004 = vmatpush3.bf16.msra.mxu0 %v9422_v14 }
  0x31   :  { %7005 = vmatprep.subr.bf16.mxu0 %v9434_v16  ;;  %7026 = vmatpush3.bf16.msra.mxu1 %v9428_v15 }
  0x32   :  { %7027 = vmatprep.subr.bf16.mxu1 %v9440_v17 }
  0x34   :  { %7006 = vmatpush3.bf16.msra.mxu0 %v9446_v18 }
  0x35   :  { %7007 = vmatprep.subr.bf16.mxu0 %v9458_v20  ;;  %7028 = vmatpush3.bf16.msra.mxu1 %v9452_v19 }
  0x36   :  { %7029 = vmatprep.subr.bf16.mxu1 %v9464_v21 }
  0x38   :  { %7008 = vmatpush3.bf16.msra.mxu0 %v9470_v25 }
  0x39   :  { %7009 = vmatprep.subr.bf16.mxu0 %v9482_v27  ;;  %7030 = vmatpush3.bf16.msra.mxu1 %v9476_v26 }
  0x3a   :  { %7031 = vmatprep.subr.bf16.mxu1 %v9488_v28 }
  0x3c   :  { %7010 = vmatpush3.bf16.msra.mxu0 %v9495_v31 }
  0x3d   :  { %7011 = vmatprep.subr.bf16.mxu0 %v9507_v33  ;;  %7032 = vmatpush3.bf16.msra.mxu1 %v9501_v32 }
  0x3e   :  { %7033 = vmatprep.subr.bf16.mxu1 %v9513_v34 }
  0x40   :  { %7012 = vmatpush3.bf16.msra.mxu0 %v9521_v36 }
  0x41   :  { %7041 = vmatprep.subr.bf16.mxu0 %v9339_v0  ;;  %7034 = vmatpush3.bf16.msra.mxu1 %v9527_v37 }
  0x42   :  { %7063 = vmatprep.subr.bf16.mxu1 %v9344_v1 }
  0x43   :  { %489 = vmatmul.mubr.bf16.vlgmr.msra.gmra.mrb[4].mxu0 %v442_v50  ;;  %v1017_v50 = vrot.slane %v6724_v42, %v9515_v35 }
  0x44   :  { %7042 = vmatpush3.bf16.msra.mxu0 %v9350_v2  ;;  %603 = vmatprep.mubr.bf16.mxu0 %v564_v51  ;;  %v1139_v51 = vrot.slane %v1125_v49, %v9515_v35 }
  0x45   :  { %529 = vmatmul.mubr.bf16.vlgmr.msra.gmra.mrb[4].mxu1 %v450_v52  ;;  %7043 = vmatprep.subr.bf16.mxu0 %v9362_v4  ;;  %v1025_v52 = vcombine.high %v1017_v50, %v1017_v50 }
  0x46   :  { %7064 = vmatpush3.bf16.msra.mxu1 %v9356_v3  ;;  %643 = vmatprep.mubr.bf16.mxu1 %v566_v53  ;;  %v1141_v53 = vcombine.high %v1139_v51, %v1139_v51 }
  0x47   :  { %7065 = vmatprep.subr.bf16.mxu1 %v9368_v5 }
  0x48   :  { %7044 = vmatpush3.bf16.msra.mxu0 %v9374_v6 }
  0x49   :  { %7045 = vmatprep.subr.bf16.mxu0 %v9386_v8 }
  0x4a   :  { %7066 = vmatpush3.bf16.msra.mxu1 %v9380_v7 }
  0x4b   :  { %7067 = vmatprep.subr.bf16.mxu1 %v9392_v9 }
  0x4c   :  { %7046 = vmatpush3.bf16.msra.mxu0 %v9398_v10 }
  0x4d   :  { %7047 = vmatprep.subr.bf16.mxu0 %v9410_v12 }
  0x4e   :  { %7068 = vmatpush3.bf16.msra.mxu1 %v9404_v11 }
  0x4f   :  { %7069 = vmatprep.subr.bf16.mxu1 %v9416_v13 }
  0x50   :  { %7048 = vmatpush3.bf16.msra.mxu0 %v9422_v14 }
  0x51   :  { %7049 = vmatprep.subr.bf16.mxu0 %v9434_v16 }
  0x52   :  { %7070 = vmatpush3.bf16.msra.mxu1 %v9428_v15 }
  0x53   :  { %7071 = vmatprep.subr.bf16.mxu1 %v9440_v17 }
  0x54   :  { %7050 = vmatpush3.bf16.msra.mxu0 %v9446_v18 }
  0x55   :  { %7051 = vmatprep.subr.bf16.mxu0 %v9458_v20 }
  0x56   :  { %7072 = vmatpush3.bf16.msra.mxu1 %v9452_v19 }
  0x57   :  { %7073 = vmatprep.subr.bf16.mxu1 %v9464_v21 }
  0x58   :  { %7052 = vmatpush3.bf16.msra.mxu0 %v9470_v25 }
  0x59   :  { %7053 = vmatprep.subr.bf16.mxu0 %v9482_v27 }
  0x5a   :  { %7074 = vmatpush3.bf16.msra.mxu1 %v9476_v26 }
  0x5b   :  { %7075 = vmatprep.subr.bf16.mxu1 %v9488_v28 }
  0x5c   :  { %7054 = vmatpush3.bf16.msra.mxu0 %v9495_v31 }
  0x5d   :  { %7055 = vmatprep.subr.bf16.mxu0 %v9507_v33 }
  0x5e   :  { %7076 = vmatpush3.bf16.msra.mxu1 %v9501_v32 }
  0x5f   :  { %7077 = vmatprep.subr.bf16.mxu1 %v9513_v34 }
  0x60   :  { %7056 = vmatpush3.bf16.msra.mxu0 %v9521_v36 }
  0x61   :  { %7085 = vmatprep.subr.bf16.mxu0 %v9339_v0 }
  0x62   :  { %7078 = vmatpush3.bf16.msra.mxu1 %v9527_v37 }
  0x63   :  { %604 = vmatmul.mubr.bf16.vlgmr.msra.gmra.mrb[8].mxu0 %v557_v56  ;;  %7107 = vmatprep.subr.bf16.mxu1 %v9344_v1 }
  0x64   :  { %7086 = vmatpush3.bf16.msra.mxu0 %v9350_v2  ;;  %718 = vmatprep.mubr.bf16.mxu0 %v679_v57  ;;  %v9796_v57 = vld.sshfl [vmem:[%s11852_s0 + $0x20] sm:$0x33 pattern:$0x75316420] }
  0x65   :  { %644 = vmatmul.mubr.bf16.vlgmr.msra.gmra.mrb[8].mxu1 %v565_v58  ;;  %7087 = vmatprep.subr.bf16.mxu0 %v9362_v4  ;;  %v1240_v29 = vcombine.high %v9796_v57, %v9796_v57 }
  0x66   :  { %7108 = vmatpush3.bf16.msra.mxu1 %v9356_v3  ;;  %758 = vmatprep.mubr.bf16.mxu1 %v681_v59 }
  0x67   :  { %7109 = vmatprep.subr.bf16.mxu1 %v9368_v5 }
  0x68   :  { %7088 = vmatpush3.bf16.msra.mxu0 %v9374_v6 }
  0x69   :  { %7089 = vmatprep.subr.bf16.mxu0 %v9386_v8 }
  0x6a   :  { %7110 = vmatpush3.bf16.msra.mxu1 %v9380_v7 }
  0x6b   :  { %7111 = vmatprep.subr.bf16.mxu1 %v9392_v9 }
  0x6c   :  { %7090 = vmatpush3.bf16.msra.mxu0 %v9398_v10 }
  0x6d   :  { %7091 = vmatprep.subr.bf16.mxu0 %v9410_v12 }
  0x6e   :  { %7112 = vmatpush3.bf16.msra.mxu1 %v9404_v11 }
  0x6f   :  { %7113 = vmatprep.subr.bf16.mxu1 %v9416_v13 }
  0x70   :  { %7092 = vmatpush3.bf16.msra.mxu0 %v9422_v14 }
  0x71   :  { %7093 = vmatprep.subr.bf16.mxu0 %v9434_v16 }
  0x72   :  { %7114 = vmatpush3.bf16.msra.mxu1 %v9428_v15 }
  0x73   :  { %7115 = vmatprep.subr.bf16.mxu1 %v9440_v17 }
  0x74   :  { %7094 = vmatpush3.bf16.msra.mxu0 %v9446_v18 }
  0x75   :  { %7095 = vmatprep.subr.bf16.mxu0 %v9458_v20 }
  0x76   :  { %7116 = vmatpush3.bf16.msra.mxu1 %v9452_v19 }
  0x77   :  { %7117 = vmatprep.subr.bf16.mxu1 %v9464_v21 }
  0x78   :  { %7096 = vmatpush3.bf16.msra.mxu0 %v9470_v25 }
  0x79   :  { %7097 = vmatprep.subr.bf16.mxu0 %v9482_v27 }
  0x7a   :  { %7118 = vmatpush3.bf16.msra.mxu1 %v9476_v26 }
  0x7b   :  { %7119 = vmatprep.subr.bf16.mxu1 %v9488_v28 }
  0x7c   :  { %7098 = vmatpush3.bf16.msra.mxu0 %v9495_v31 }
  0x7d   :  { %7099 = vmatprep.subr.bf16.mxu0 %v9507_v33 }
  0x7e   :  { %7120 = vmatpush3.bf16.msra.mxu1 %v9501_v32 }
  0x7f   :  { %7121 = vmatprep.subr.bf16.mxu1 %v9513_v34 }
  0x80   :  { %7100 = vmatpush3.bf16.msra.mxu0 %v9521_v36 }
  0x81   :  { %7129 = vmatprep.subr.bf16.mxu0 %v9339_v0 }
  0x82   :  { %7122 = vmatpush3.bf16.msra.mxu1 %v9527_v37 }
  0x83   :  { %719 = vmatmul.mubr.bf16.vlgmr.msra.gmra.mrb[12].mxu0 %v672_v62  ;;  %7151 = vmatprep.subr.bf16.mxu1 %v9344_v1 }
  0x84   :  { %7130 = vmatpush3.bf16.msra.mxu0 %v9350_v2  ;;  %833 = vmatprep.mubr.bf16.mxu0 %v794_v63 }
  0x85   :  { %759 = vmatmul.mubr.bf16.vlgmr.msra.gmra.mrb[12].mxu1 %v680_v22  ;;  %7131 = vmatprep.subr.bf16.mxu0 %v9362_v4 }
  0x86   :  { %7152 = vmatpush3.bf16.msra.mxu1 %v9356_v3  ;;  %873 = vmatprep.mubr.bf16.mxu1 %v796_v23 }
  0x87   :  { %7153 = vmatprep.subr.bf16.mxu1 %v9368_v5 }
  0x88   :  { %7132 = vmatpush3.bf16.msra.mxu0 %v9374_v6 }
  0x89   :  { %7133 = vmatprep.subr.bf16.mxu0 %v9386_v8 }
  0x8a   :  { %7154 = vmatpush3.bf16.msra.mxu1 %v9380_v7 }
  0x8b   :  { %7155 = vmatprep.subr.bf16.mxu1 %v9392_v9 }
  0x8c   :  { %7134 = vmatpush3.bf16.msra.mxu0 %v9398_v10 }
  0x8d   :  { %7135 = vmatprep.subr.bf16.mxu0 %v9410_v12 }
  0x8e   :  { %7156 = vmatpush3.bf16.msra.mxu1 %v9404_v11 }
  0x8f   :  { %7157 = vmatprep.subr.bf16.mxu1 %v9416_v13 }
  0x90   :  { %7136 = vmatpush3.bf16.msra.mxu0 %v9422_v14 }
  0x91   :  { %7137 = vmatprep.subr.bf16.mxu0 %v9434_v16 }
  0x92   :  { %7158 = vmatpush3.bf16.msra.mxu1 %v9428_v15 }
  0x93   :  { %7159 = vmatprep.subr.bf16.mxu1 %v9440_v17 }
  0x94   :  { %7138 = vmatpush3.bf16.msra.mxu0 %v9446_v18 }
  0x95   :  { %7139 = vmatprep.subr.bf16.mxu0 %v9458_v20 }
  0x96   :  { %7160 = vmatpush3.bf16.msra.mxu1 %v9452_v19 }
  0x97   :  { %7161 = vmatprep.subr.bf16.mxu1 %v9464_v21 }
  0x98   :  { %7140 = vmatpush3.bf16.msra.mxu0 %v9470_v25 }
  0x99   :  { %7141 = vmatprep.subr.bf16.mxu0 %v9482_v27 }
  0x9a   :  { %7162 = vmatpush3.bf16.msra.mxu1 %v9476_v26 }
  0x9b   :  { %7163 = vmatprep.subr.bf16.mxu1 %v9488_v28 }
  0x9c   :  { %7142 = vmatpush3.bf16.msra.mxu0 %v9495_v31 }
  0x9d   :  { %7143 = vmatprep.subr.bf16.mxu0 %v9507_v33 }
  0x9e   :  { %7164 = vmatpush3.bf16.msra.mxu1 %v9501_v32 }
  0x9f   :  { %7165 = vmatprep.subr.bf16.mxu1 %v9513_v34 }
  0xa0   :  { %7144 = vmatpush3.bf16.msra.mxu0 %v9521_v36 }
  0xa1   :  { %7173 = vmatprep.subr.bf16.mxu0 %v9339_v0 }
  0xa2   :  { %7166 = vmatpush3.bf16.msra.mxu1 %v9527_v37 }
  0xa3   :  { %834 = vmatmul.mubr.bf16.vlgmr.msra.gmra.mrb[16].mxu0 %v787_v38  ;;  %7195 = vmatprep.subr.bf16.mxu1 %v9344_v1 }
  0xa4   :  { %7174 = vmatpush3.bf16.msra.mxu0 %v9350_v2  ;;  %948 = vmatprep.mubr.bf16.mxu0 %v909_v39  ;;  %v1132_v39 = vrot.slane %v9750_v48, %v9515_v35 }
  0xa5   :  { %874 = vmatmul.mubr.bf16.vlgmr.msra.gmra.mrb[16].mxu1 %v795_v40  ;;  %7175 = vmatprep.subr.bf16.mxu0 %v9362_v4  ;;  %v1254_v40 = vrot.slane %v1240_v29, %v9515_v35  ;;  %v9933_v29 = vld [vmem:[%s11851_s2 + $0x80] sm:$0xff]  }
  0xa6   :  { %7196 = vmatpush3.bf16.msra.mxu1 %v9356_v3  ;;  %988 = vmatprep.mubr.bf16.mxu1 %v911_v41  ;;  %v1140_v41 = vcombine.high %v1132_v39, %v1132_v39 }
  0xa7   :  { %7197 = vmatprep.subr.bf16.mxu1 %v9368_v5  ;;  %v1256_v42 = vcombine.high %v1254_v40, %v1254_v40 }
  0xa8   :  { %7176 = vmatpush3.bf16.msra.mxu0 %v9374_v6 }
  0xa9   :  { %7177 = vmatprep.subr.bf16.mxu0 %v9386_v8 }
  0xaa   :  { %7198 = vmatpush3.bf16.msra.mxu1 %v9380_v7 }
  0xab   :  { %7199 = vmatprep.subr.bf16.mxu1 %v9392_v9 }
  0xac   :  { %7178 = vmatpush3.bf16.msra.mxu0 %v9398_v10 }
  0xad   :  { %7179 = vmatprep.subr.bf16.mxu0 %v9410_v12 }
  0xae   :  { %7200 = vmatpush3.bf16.msra.mxu1 %v9404_v11 }
  0xaf   :  { %7201 = vmatprep.subr.bf16.mxu1 %v9416_v13 }
  0xb0   :  { %7180 = vmatpush3.bf16.msra.mxu0 %v9422_v14 }
  0xb1   :  { %7181 = vmatprep.subr.bf16.mxu0 %v9434_v16 }
  0xb2   :  { %7202 = vmatpush3.bf16.msra.mxu1 %v9428_v15 }
  0xb3   :  { %7203 = vmatprep.subr.bf16.mxu1 %v9440_v17 }
  0xb4   :  { %7182 = vmatpush3.bf16.msra.mxu0 %v9446_v18 }
  0xb5   :  { %7183 = vmatprep.subr.bf16.mxu0 %v9458_v20 }
  0xb6   :  { %7204 = vmatpush3.bf16.msra.mxu1 %v9452_v19 }
  0xb7   :  { %7205 = vmatprep.subr.bf16.mxu1 %v9464_v21 }
  0xb8   :  { %7184 = vmatpush3.bf16.msra.mxu0 %v9470_v25 }
  0xb9   :  { %7185 = vmatprep.subr.bf16.mxu0 %v9482_v27 }
  0xba   :  { %7206 = vmatpush3.bf16.msra.mxu1 %v9476_v26 }
  0xbb   :  { %7207 = vmatprep.subr.bf16.mxu1 %v9488_v28 }
  0xbc   :  { %7186 = vmatpush3.bf16.msra.mxu0 %v9495_v31 }
  0xbd   :  { %7187 = vmatprep.subr.bf16.mxu0 %v9507_v33 }
  0xbe   :  { %7208 = vmatpush3.bf16.msra.mxu1 %v9501_v32 }
  0xbf   :  { %7209 = vmatprep.subr.bf16.mxu1 %v9513_v34 }
  0xc0   :  { %7188 = vmatpush3.bf16.msra.mxu0 %v9521_v36 }
  0xc1   :  { %7217 = vmatprep.subr.bf16.mxu0 %v9339_v0 }
  0xc2   :  { %7210 = vmatpush3.bf16.msra.mxu1 %v9527_v37 }
  0xc3   :  { %949 = vmatmul.mubr.bf16.vlgmr.msra.gmra.mrb[20].mxu0 %v902_v44  ;;  %7239 = vmatprep.subr.bf16.mxu1 %v9344_v1 }
  0xc4   :  { %7218 = vmatpush3.bf16.msra.mxu0 %v9350_v2  ;;  %1063 = vmatprep.mubr.bf16.mxu0 %v1024_v45  ;;  %v9841_v45 = vld.sshfl [vmem:[%s11852_s0 + $0x24] sm:$0x33 pattern:$0x75316420] }
  0xc5   :  { %989 = vmatmul.mubr.bf16.vlgmr.msra.gmra.mrb[20].mxu1 %v910_v46  ;;  %7219 = vmatprep.subr.bf16.mxu0 %v9362_v4 }
  0xc6   :  { %7240 = vmatpush3.bf16.msra.mxu1 %v9356_v3  ;;  %1103 = vmatprep.mubr.bf16.mxu1 %v1026_v47 }
  0xc7   :  { %7241 = vmatprep.subr.bf16.mxu1 %v9368_v5 }
  0xc8   :  { %7220 = vmatpush3.bf16.msra.mxu0 %v9374_v6 }
  0xc9   :  { %7221 = vmatprep.subr.bf16.mxu0 %v9386_v8 }
  0xca   :  { %7242 = vmatpush3.bf16.msra.mxu1 %v9380_v7 }
  0xcb   :  { %7243 = vmatprep.subr.bf16.mxu1 %v9392_v9 }
  0xcc   :  { %7222 = vmatpush3.bf16.msra.mxu0 %v9398_v10 }
  0xcd   :  { %7223 = vmatprep.subr.bf16.mxu0 %v9410_v12 }
  0xce   :  { %7244 = vmatpush3.bf16.msra.mxu1 %v9404_v11 }
  0xcf   :  { %7245 = vmatprep.subr.bf16.mxu1 %v9416_v13 }
  0xd0   :  { %7224 = vmatpush3.bf16.msra.mxu0 %v9422_v14 }
  0xd1   :  { %7225 = vmatprep.subr.bf16.mxu0 %v9434_v16 }
  0xd2   :  { %7246 = vmatpush3.bf16.msra.mxu1 %v9428_v15 }
  0xd3   :  { %7247 = vmatprep.subr.bf16.mxu1 %v9440_v17 }
  0xd4   :  { %7226 = vmatpush3.bf16.msra.mxu0 %v9446_v18 }
  0xd5   :  { %7227 = vmatprep.subr.bf16.mxu0 %v9458_v20 }
  0xd6   :  { %7248 = vmatpush3.bf16.msra.mxu1 %v9452_v19 }
  0xd7   :  { %7249 = vmatprep.subr.bf16.mxu1 %v9464_v21 }
  0xd8   :  { %7228 = vmatpush3.bf16.msra.mxu0 %v9470_v25 }
  0xd9   :  { %7229 = vmatprep.subr.bf16.mxu0 %v9482_v27 }
  0xda   :  { %7250 = vmatpush3.bf16.msra.mxu1 %v9476_v26 }
  0xdb   :  { %7251 = vmatprep.subr.bf16.mxu1 %v9488_v28 }
  0xdc   :  { %7230 = vmatpush3.bf16.msra.mxu0 %v9495_v31 }
  0xdd   :  { %7231 = vmatprep.subr.bf16.mxu0 %v9507_v33 }
  0xde   :  { %7252 = vmatpush3.bf16.msra.mxu1 %v9501_v32 }
  0xdf   :  { %7253 = vmatprep.subr.bf16.mxu1 %v9513_v34 }
  0xe0   :  { %7232 = vmatpush3.bf16.msra.mxu0 %v9521_v36 }
  0xe1   :  { %7261 = vmatprep.subr.bf16.mxu0 %v9339_v0 }
  0xe2   :  { %7254 = vmatpush3.bf16.msra.mxu1 %v9527_v37 }
  0xe3   :  { %1064 = vmatmul.mubr.bf16.vlgmr.msra.gmra.mrb[24].mxu0 %v1017_v50  ;;  %7283 = vmatprep.subr.bf16.mxu1 %v9344_v1 }
  0xe4   :  { %7262 = vmatpush3.bf16.msra.mxu0 %v9350_v2  ;;  %1178 = vmatprep.mubr.bf16.mxu0 %v1139_v51 }
  0xe5   :  { %1104 = vmatmul.mubr.bf16.vlgmr.msra.gmra.mrb[24].mxu1 %v1025_v52  ;;  %7263 = vmatprep.subr.bf16.mxu0 %v9362_v4 }
  0xe6   :  { %7284 = vmatpush3.bf16.msra.mxu1 %v9356_v3  ;;  %1218 = vmatprep.mubr.bf16.mxu1 %v1141_v53 }
  0xe7   :  { %7285 = vmatprep.subr.bf16.mxu1 %v9368_v5 }
  0xe8   :  { %7264 = vmatpush3.bf16.msra.mxu0 %v9374_v6 }
  0xe9   :  { %7265 = vmatprep.subr.bf16.mxu0 %v9386_v8 }
  0xea   :  { %7286 = vmatpush3.bf16.msra.mxu1 %v9380_v7 }
  0xeb   :  { %7287 = vmatprep.subr.bf16.mxu1 %v9392_v9 }
  0xec   :  { %7266 = vmatpush3.bf16.msra.mxu0 %v9398_v10 }
  0xed   :  { %7267 = vmatprep.subr.bf16.mxu0 %v9410_v12 }
  0xee   :  { %7288 = vmatpush3.bf16.msra.mxu1 %v9404_v11 }
  0xef   :  { %7289 = vmatprep.subr.bf16.mxu1 %v9416_v13 }
  0xf0   :  { %7268 = vmatpush3.bf16.msra.mxu0 %v9422_v14 }
  0xf1   :  { %7269 = vmatprep.subr.bf16.mxu0 %v9434_v16 }
  0xf2   :  { %7290 = vmatpush3.bf16.msra.mxu1 %v9428_v15 }
  0xf3   :  { %7291 = vmatprep.subr.bf16.mxu1 %v9440_v17 }
  0xf4   :  { %7270 = vmatpush3.bf16.msra.mxu0 %v9446_v18 }
  0xf5   :  { %7271 = vmatprep.subr.bf16.mxu0 %v9458_v20 }
  0xf6   :  { %7292 = vmatpush3.bf16.msra.mxu1 %v9452_v19  ;;  %v6969_v54 = vpop.f32.mrb[0].mxu0 }
  0xf7   :  { %v6970_v56 = vpop.f32.mrb[1].mxu0  ;;  %7293 = vmatprep.subr.bf16.mxu1 %v9464_v21  ;;  %v6991_v58 = vpop.f32.mrb[0].mxu1 }
  0xf8   :  { %v6971_v59 = vadd.f32 %v6970_v56, %v6969_v54  ;;  %7272 = vmatpush3.bf16.msra.mxu0 %v9470_v25  ;;  %v6972_v60 = vpop.f32.mrb[2].mxu0  ;;  %v6992_v61 = vpop.f32.mrb[1].mxu1  ;;  %v1355_v54 = vcombine.high %v9841_v45, %v9841_v45 }
  0xf9   :  { %7273 = vmatprep.subr.bf16.mxu0 %v9482_v27  ;;  %v6973_v62 = vpop.f32.mrb[3].mxu0  ;;  %v6993_v22 = vadd.f32 %v6992_v61, %v6991_v58  ;;  %v6994_v23 = vpop.f32.mrb[2].mxu1 }
  0xfa   :  { %v376_v63 = vadd.f32 %v6971_v59, %v9790_v55  ;;  %7294 = vmatpush3.bf16.msra.mxu1 %v9476_v26  ;;  %v6995_v30 = vpop.f32.mrb[3].mxu1  ;;  %v1247_v59 = vrot.slane %v9796_v57, %v9515_v35  ;;  %v1369_v60 = vrot.slane %v1355_v54, %v9515_v35  ;;  %v9927_v23 = vld [vmem:[%s11851_s2 + $0x48] sm:$0xff]  }
  0xfb   :  { %7295 = vmatprep.subr.bf16.mxu1 %v9488_v28  ;;  %v9939_v30 = vld [vmem:[%s11851_s2 + $0xc8] sm:$0xff]  }
  0xfc   :  { %v9805_v38 = vadd.f32 %v6993_v22, %v376_v63  ;;  %7274 = vmatpush3.bf16.msra.mxu0 %v9495_v31  ;;  %v1255_v61 = vcombine.high %v1247_v59, %v1247_v59  ;;  %v1371_v62 = vcombine.high %v1369_v60, %v1369_v60  ;;  %v9915_v63 = vld [vmem:[%s11851_s2 + $0xc0] sm:$0xff]  }
  0xfd   :  { %7275 = vmatprep.subr.bf16.mxu0 %v9507_v33  ;;  %v9921_v22 = vld [vmem:[%s11851_s2] sm:$0xff]  }
  0xfe   :  { %7296 = vmatpush3.bf16.msra.mxu1 %v9501_v32  ;;  %vm421_vm3 = vcmp.ge.f32.partialorder %v9805_v38, 0.0 }
  0xff   :  { %7297 = vmatprep.subr.bf16.mxu1 %v9513_v34 }
 0x100   :  { %7276 = vmatpush3.bf16.msra.mxu0 %v9521_v36 }
 0x101   :  { %7305 = vmatprep.subr.bf16.mxu0 %v9339_v0 }
 0x102   :  { %7298 = vmatpush3.bf16.msra.mxu1 %v9527_v37 }
 0x103   :  { %1179 = vmatmul.mubr.bf16.vlgmr.msra.gmra.mrb[28].mxu0 %v1132_v39  ;;  %7327 = vmatprep.subr.bf16.mxu1 %v9344_v1  ;;  %v9945_v39 = vld [vmem:[%s11851_s2 + $0x8] sm:$0xff]  }
 0x104   :  { %7306 = vmatpush3.bf16.msra.mxu0 %v9350_v2  ;;  %1293 = vmatprep.mubr.bf16.mxu0 %v1254_v40  ;;  %v9951_v40 = vld [vmem:[%s11851_s2 + $0x50] sm:$0xff]  }
 0x105   :  { %1219 = vmatmul.mubr.bf16.vlgmr.msra.gmra.mrb[28].mxu1 %v1140_v41  ;;  %7307 = vmatprep.subr.bf16.mxu0 %v9362_v4  ;;  %v9957_v41 = vld [vmem:[%s11851_s2 + $0x88] sm:$0xff]  }
 0x106   :  { %7328 = vmatpush3.bf16.msra.mxu1 %v9356_v3  ;;  %1333 = vmatprep.mubr.bf16.mxu1 %v1256_v42  ;;  %v9963_v42 = vld [vmem:[%s11851_s2 + $0xd0] sm:$0xff]  }
 0x107   :  { %7329 = vmatprep.subr.bf16.mxu1 %v9368_v5 }
 0x108   :  { %7308 = vmatpush3.bf16.msra.mxu0 %v9374_v6 }
 0x109   :  { %7309 = vmatprep.subr.bf16.mxu0 %v9386_v8 }
 0x10a   :  { %7330 = vmatpush3.bf16.msra.mxu1 %v9380_v7 }
 0x10b   :  { %7331 = vmatprep.subr.bf16.mxu1 %v9392_v9 }
 0x10c   :  { %7310 = vmatpush3.bf16.msra.mxu0 %v9398_v10 }
 0x10d   :  { %7311 = vmatprep.subr.bf16.mxu0 %v9410_v12 }
 0x10e   :  { %7332 = vmatpush3.bf16.msra.mxu1 %v9404_v11 }
 0x10f   :  { %7333 = vmatprep.subr.bf16.mxu1 %v9416_v13 }
 0x110   :  { %7312 = vmatpush3.bf16.msra.mxu0 %v9422_v14 }
 0x111   :  { %7313 = vmatprep.subr.bf16.mxu0 %v9434_v16 }
 0x112   :  { %7334 = vmatpush3.bf16.msra.mxu1 %v9428_v15 }
 0x113   :  { %7335 = vmatprep.subr.bf16.mxu1 %v9440_v17 }
 0x114   :  { %7314 = vmatpush3.bf16.msra.mxu0 %v9446_v18 }
 0x115   :  { %7315 = vmatprep.subr.bf16.mxu0 %v9458_v20 }
 0x116   :  { %7336 = vmatpush3.bf16.msra.mxu1 %v9452_v19  ;;  %v7013_v43 = vpop.f32.mrb[4].mxu0 }
 0x117   :  { %v7014_v44 = vpop.f32.mrb[5].mxu0  ;;  %7337 = vmatprep.subr.bf16.mxu1 %v9464_v21 }
 0x118   :  { %v7035_v46 = vpop.f32.mrb[4].mxu1  ;;  %v7015_v47 = vadd.f32 %v7014_v44, %v7013_v43  ;;  %7316 = vmatpush3.bf16.msra.mxu0 %v9470_v25  ;;  %v7016_v48 = vpop.f32.mrb[6].mxu0  ;;  %v9969_v43 = vld [vmem:[%s11851_s2 + $0x10] sm:$0xff]   ;;  %v9975_v44 = vld [vmem:[%s11851_s2 + $0x58] sm:$0xff]  }
 0x119   :  { %v7036_v49 = vpop.f32.mrb[5].mxu1  ;;  %7317 = vmatprep.subr.bf16.mxu0 %v9482_v27  ;;  %v7017_v50 = vpop.f32.mrb[7].mxu0  ;;  %v9999_v48 = vld [vmem:[%s11851_s2 + $0x60] sm:$0xff]  }
 0x11a   :  { %v491_v51 = vadd.f32 %v7015_v47, %v9790_v55  ;;  %v7037_v52 = vadd.f32 %v7036_v49, %v7035_v46  ;;  %v7038_v53 = vpop.f32.mrb[6].mxu1  ;;  %7338 = vmatpush3.bf16.msra.mxu1 %v9476_v26  ;;  %v9987_v46 = vld [vmem:[%s11851_s2 + $0xd8] sm:$0xff]   ;;  %v10011_v50 = vld [vmem:[%s11851_s2 + $0xe0] sm:$0xff]  }
 0x11b   :  { %v7039_v56 = vpop.f32.mrb[7].mxu1  ;;  %7339 = vmatprep.subr.bf16.mxu1 %v9488_v28  ;;  %v9993_v47 = vld [vmem:[%s11851_s2 + $0x18] sm:$0xff]   ;;  %v10021_v53 = vld.sshfl [vmem:[%s11852_s0 + $0x2c] sm:$0x33 pattern:$0x75316420] }
 0x11c   :  { %v9850_v58 = vadd.f32 %v7037_v52, %v491_v51  ;;  %7318 = vmatpush3.bf16.msra.mxu0 %v9495_v31  ;;  %v10005_v49 = vld [vmem:[%s11851_s2 + $0x98] sm:$0xff]  }
 0x11d   :  { %7319 = vmatprep.subr.bf16.mxu0 %v9507_v33 }
 0x11e   :  { %7340 = vmatpush3.bf16.msra.mxu1 %v9501_v32  ;;  %vm536_vm5 = vcmp.ge.f32.partialorder %v9850_v58, 0.0 }
 0x11f   :  { %7341 = vmatprep.subr.bf16.mxu1 %v9513_v34 }
 0x120   :  { %7320 = vmatpush3.bf16.msra.mxu0 %v9521_v36 }
 0x121   :  { %7349 = vmatprep.subr.bf16.mxu0 %v9339_v0 }
 0x122   :  { %7342 = vmatpush3.bf16.msra.mxu1 %v9527_v37 }
 0x123   :  { %1294 = vmatmul.mubr.bf16.vlgmr.msra.gmra.mrb[32].mxu0 %v1247_v59  ;;  %7371 = vmatprep.subr.bf16.mxu1 %v9344_v1 }
 0x124   :  { %7350 = vmatpush3.bf16.msra.mxu0 %v9350_v2  ;;  %1408 = vmatprep.mubr.bf16.mxu0 %v1369_v60  ;;  %v9886_v2 = vld.sshfl [vmem:[%s11852_s0 + $0x28] sm:$0x33 pattern:$0x75316420] }
 0x125   :  { %1334 = vmatmul.mubr.bf16.vlgmr.msra.gmra.mrb[32].mxu1 %v1255_v61  ;;  %7351 = vmatprep.subr.bf16.mxu0 %v9362_v4 }
 0x126   :  { %7372 = vmatpush3.bf16.msra.mxu1 %v9356_v3  ;;  %1448 = vmatprep.mubr.bf16.mxu1 %v1371_v62 }
 0x127   :  { %7373 = vmatprep.subr.bf16.mxu1 %v9368_v5 }
 0x128   :  { %7352 = vmatpush3.bf16.msra.mxu0 %v9374_v6 }
 0x129   :  { %7353 = vmatprep.subr.bf16.mxu0 %v9386_v8 }
 0x12a   :  { %7374 = vmatpush3.bf16.msra.mxu1 %v9380_v7 }
 0x12b   :  { %7375 = vmatprep.subr.bf16.mxu1 %v9392_v9 }
 0x12c   :  { %7354 = vmatpush3.bf16.msra.mxu0 %v9398_v10 }
 0x12d   :  { %7355 = vmatprep.subr.bf16.mxu0 %v9410_v12 }
 0x12e   :  { %7376 = vmatpush3.bf16.msra.mxu1 %v9404_v11  ;;  %v1470_v11 = vcombine.high %v9886_v2, %v9886_v2 }
 0x12f   :  { %7377 = vmatprep.subr.bf16.mxu1 %v9416_v13 }
 0x130   :  { %7356 = vmatpush3.bf16.msra.mxu0 %v9422_v14  ;;  %v1362_v14 = vrot.slane %v9841_v45, %v9515_v35  ;;  %v9981_v45 = vld [vmem:[%s11851_s2 + $0x90] sm:$0xff]  }
 0x131   :  { %7357 = vmatprep.subr.bf16.mxu0 %v9434_v16 }
 0x132   :  { %7378 = vmatpush3.bf16.msra.mxu1 %v9428_v15  ;;  %v1484_v15 = vrot.slane %v1470_v11, %v9515_v35  ;;  %v1370_v16 = vcombine.high %v1362_v14, %v1362_v14 }
 0x133   :  { %7379 = vmatprep.subr.bf16.mxu1 %v9440_v17  ;;  %v9908_v17 = vld [vmem:[%s11851_s2 + $0x40] sm:$0xff]  }
 0x134   :  { %7358 = vmatpush3.bf16.msra.mxu0 %v9446_v18  ;;  %v1486_v57 = vcombine.high %v1484_v15, %v1484_v15 }
 0x135   :  { %7359 = vmatprep.subr.bf16.mxu0 %v9458_v20 }
 0x136   :  { %7380 = vmatpush3.bf16.msra.mxu1 %v9452_v19  ;;  %v7057_v0 = vpop.f32.mrb[8].mxu0 }
 0x137   :  { %v7058_v1 = vpop.f32.mrb[9].mxu0  ;;  %7381 = vmatprep.subr.bf16.mxu1 %v9464_v21 }
 0x138   :  { %v7079_v3 = vpop.f32.mrb[8].mxu1  ;;  %v7059_v4 = vadd.f32 %v7058_v1, %v7057_v0  ;;  %7360 = vmatpush3.bf16.msra.mxu0 %v9470_v25  ;;  %v7060_v5 = vpop.f32.mrb[10].mxu0  ;;  %v10086_v1 = vld.sshfl [vmem:[%s11852_s0 + $0x30] sm:$0x33 pattern:$0x75316420] }
 0x139   :  { %v7080_v6 = vpop.f32.mrb[9].mxu1  ;;  %7361 = vmatprep.subr.bf16.mxu0 %v9482_v27  ;;  %v7061_v7 = vpop.f32.mrb[11].mxu0 }
 0x13a   :  { %v606_v8 = vadd.f32 %v7059_v4, %v9790_v55  ;;  %v7081_v9 = vadd.f32 %v7080_v6, %v7079_v3  ;;  %v7082_v10 = vpop.f32.mrb[10].mxu1  ;;  %7382 = vmatpush3.bf16.msra.mxu1 %v9476_v26  ;;  %v10091_v4 = vld [vmem:[%s11851_s2 + $0x28] sm:$0xff]   ;;  %v10097_v7 = vld [vmem:[%s11851_s2 + $0x70] sm:$0xff]  }
 0x13b   :  { %v7083_v12 = vpop.f32.mrb[11].mxu1  ;;  %7383 = vmatprep.subr.bf16.mxu1 %v9488_v28 }
 0x13c   :  { %v9895_v13 = vadd.f32 %v7081_v9, %v606_v8  ;;  %7362 = vmatpush3.bf16.msra.mxu0 %v9495_v31  ;;  %v10104_v12 = vld [vmem:[%s11851_s2 + $0xa8] sm:$0xff]  }
 0x13d   :  { %7363 = vmatprep.subr.bf16.mxu0 %v9507_v33 }
 0x13e   :  { %7384 = vmatpush3.bf16.msra.mxu1 %v9501_v32  ;;  %vm651_vm6 = vcmp.ge.f32.partialorder %v9895_v13, 0.0 }
 0x13f   :  { %7385 = vmatprep.subr.bf16.mxu1 %v9513_v34 }
 0x140   :  { %7364 = vmatpush3.bf16.msra.mxu0 %v9521_v36 }
 0x141   :  { %7393 = vmatprep.subr.bf16.mxu0 %v9908_v17 }
 0x142   :  { %7386 = vmatpush3.bf16.msra.mxu1 %v9527_v37 }
 0x143   :  { %1409 = vmatmul.mubr.bf16.vlgmr.msra.gmra.mrb[36].mxu0 %v1362_v14  ;;  %7415 = vmatprep.subr.bf16.mxu1 %v9915_v63  ;;  %v1700_v14 = vcombine.high %v10086_v1, %v10086_v1 }
 0x144   :  { %7394 = vmatpush3.bf16.msra.mxu0 %v9921_v22  ;;  %1523 = vmatprep.mubr.bf16.mxu0 %v1484_v15 }
 0x145   :  { %1449 = vmatmul.mubr.bf16.vlgmr.msra.gmra.mrb[36].mxu1 %v1370_v16  ;;  %7395 = vmatprep.subr.bf16.mxu0 %v9927_v23  ;;  %v10112_v16 = vld [vmem:[%s11851_s2 + $0xf0] sm:$0xff]  }
 0x146   :  { %7416 = vmatpush3.bf16.msra.mxu1 %v9933_v29  ;;  %1563 = vmatprep.mubr.bf16.mxu1 %v1486_v57 }
 0x147   :  { %7417 = vmatprep.subr.bf16.mxu1 %v9939_v30 }
 0x148   :  { %7396 = vmatpush3.bf16.msra.mxu0 %v9945_v39 }
 0x149   :  { %7397 = vmatprep.subr.bf16.mxu0 %v9951_v40 }
 0x14a   :  { %7418 = vmatpush3.bf16.msra.mxu1 %v9957_v41 }
 0x14b   :  { %7419 = vmatprep.subr.bf16.mxu1 %v9963_v42 }
 0x14c   :  { %7398 = vmatpush3.bf16.msra.mxu0 %v9969_v43 }
 0x14d   :  { %7399 = vmatprep.subr.bf16.mxu0 %v9975_v44 }
 0x14e   :  { %7420 = vmatpush3.bf16.msra.mxu1 %v9981_v45 }
 0x14f   :  { %7421 = vmatprep.subr.bf16.mxu1 %v9987_v46 }
 0x150   :  { %7400 = vmatpush3.bf16.msra.mxu0 %v9993_v47 }
 0x151   :  { %7401 = vmatprep.subr.bf16.mxu0 %v9999_v48 }
 0x152   :  { %7422 = vmatpush3.bf16.msra.mxu1 %v10005_v49 }
 0x153   :  { %7423 = vmatprep.subr.bf16.mxu1 %v10011_v50 }
 0x154   :  { %7402 = vmatpush3.bf16.msra.mxu0 %v9446_v18 }
 0x155   :  { %7403 = vmatprep.subr.bf16.mxu0 %v9458_v20 }
 0x156   :  { %7424 = vmatpush3.bf16.msra.mxu1 %v9452_v19  ;;  %v7101_v51 = vpop.f32.mrb[12].mxu0 }
 0x157   :  { %v7102_v52 = vpop.f32.mrb[13].mxu0  ;;  %7425 = vmatprep.subr.bf16.mxu1 %v9464_v21  ;;  %v1585_v21 = vcombine.high %v10021_v53, %v10021_v53 }
 0x158   :  { %v7123_v54 = vpop.f32.mrb[12].mxu1  ;;  %v7103_v56 = vadd.f32 %v7102_v52, %v7101_v51  ;;  %7404 = vmatpush3.bf16.msra.mxu0 %v9470_v25  ;;  %v7104_v59 = vpop.f32.mrb[14].mxu0  ;;  %v1477_v25 = vrot.slane %v9886_v2, %v9515_v35  ;;  %v10120_v51 = vld [vmem:[%s11851_s2 + $0x30] sm:$0xff]   ;;  %v10126_v52 = vld [vmem:[%s11851_s2 + $0x78] sm:$0xff]  }
 0x159   :  { %v7124_v60 = vpop.f32.mrb[13].mxu1  ;;  %7405 = vmatprep.subr.bf16.mxu0 %v9482_v27  ;;  %v7105_v18 = vpop.f32.mrb[15].mxu0  ;;  %v1599_v27 = vrot.slane %v1585_v21, %v9515_v35  ;;  %v1714_v59 = vrot.slane %v1700_v14, %v9515_v35 }
 0x15a   :  { %v721_v19 = vadd.f32 %v7103_v56, %v9790_v55  ;;  %v7125_v20 = vadd.f32 %v7124_v60, %v7123_v54  ;;  %v7126_v61 = vpop.f32.mrb[14].mxu1  ;;  %7426 = vmatpush3.bf16.msra.mxu1 %v9476_v26  ;;  %v1485_v26 = vcombine.high %v1477_v25, %v1477_v25  ;;  %v1592_v54 = vrot.slane %v10021_v53, %v9515_v35  ;;  %v10134_v56 = vld [vmem:[%s11851_s2 + $0xb0] sm:$0xff]   ;;  %v10141_v60 = vld [vmem:[%s11851_s2 + $0xf8] sm:$0xff]  }
 0x15b   :  { %v7127_v62 = vpop.f32.mrb[15].mxu1  ;;  %7427 = vmatprep.subr.bf16.mxu1 %v9488_v28  ;;  %v1601_v28 = vcombine.high %v1599_v27, %v1599_v27  ;;  %v10147_v53 = vld [vmem:[%s11851_s2 + $0x38] sm:$0xff]  }
 0x15c   :  { %v10030_v0 = vadd.f32 %v7125_v20, %v721_v19  ;;  %7406 = vmatpush3.bf16.msra.mxu0 %v9495_v31  ;;  %v10062_v31 = vld [vmem:[%s11851_s2 + $0x20] sm:$0xff]   ;;  %v1600_v18 = vcombine.high %v1592_v54, %v1592_v54  ;;  %v10154_v19 = vld [vmem:[%s11851_s2 + $0xb8] sm:$0xff]   ;;  %v1716_v20 = vcombine.high %v1714_v59, %v1714_v59  ;;  %v10181_v62 = vld.sshfl [vmem:[%s11852_s0 + $0x34] sm:$0x33 pattern:$0x75316420] }
 0x15d   :  { %7407 = vmatprep.subr.bf16.mxu0 %v9507_v33  ;;  %v10074_v33 = vld [vmem:[%s11851_s2 + $0xa0] sm:$0xff]  }
 0x15e   :  { %7428 = vmatpush3.bf16.msra.mxu1 %v9501_v32  ;;  %v10068_v32 = vld [vmem:[%s11851_s2 + $0x68] sm:$0xff]   ;;  %vm766_vm7 = vcmp.ge.f32.partialorder %v10030_v0, 0.0 }
 0x15f   :  { %7429 = vmatprep.subr.bf16.mxu1 %v9513_v34 }
 0x160   :  { %7408 = vmatpush3.bf16.msra.mxu0 %v9521_v36 }
 0x161   :  { %7437 = vmatprep.subr.bf16.mxu0 %v9908_v17 }
 0x162   :  { %7430 = vmatpush3.bf16.msra.mxu1 %v9527_v37  ;;  %v10080_v37 = vld [vmem:[%s11851_s2 + $0xe8] sm:$0xff]  }
 0x163   :  { %1524 = vmatmul.mubr.bf16.vlgmr.msra.gmra.mrb[40].mxu0 %v1477_v25  ;;  %7459 = vmatprep.subr.bf16.mxu1 %v9915_v63 }
 0x164   :  { %7438 = vmatpush3.bf16.msra.mxu0 %v9921_v22  ;;  %1638 = vmatprep.mubr.bf16.mxu0 %v1599_v27 }
 0x165   :  { %1564 = vmatmul.mubr.bf16.vlgmr.msra.gmra.mrb[40].mxu1 %v1485_v26  ;;  %7439 = vmatprep.subr.bf16.mxu0 %v9927_v23 }
 0x166   :  { %7460 = vmatpush3.bf16.msra.mxu1 %v9933_v29  ;;  %1678 = vmatprep.mubr.bf16.mxu1 %v1601_v28 }
 0x167   :  { %7461 = vmatprep.subr.bf16.mxu1 %v9939_v30 }
 0x168   :  { %7440 = vmatpush3.bf16.msra.mxu0 %v9945_v39 }
 0x169   :  { %7441 = vmatprep.subr.bf16.mxu0 %v9951_v40 }
 0x16a   :  { %7462 = vmatpush3.bf16.msra.mxu1 %v9957_v41 }
 0x16b   :  { %7463 = vmatprep.subr.bf16.mxu1 %v9963_v42 }
 0x16c   :  { %7442 = vmatpush3.bf16.msra.mxu0 %v9969_v43 }
 0x16d   :  { %7443 = vmatprep.subr.bf16.mxu0 %v9975_v44 }
 0x16e   :  { %7464 = vmatpush3.bf16.msra.mxu1 %v9981_v45 }
 0x16f   :  { %7465 = vmatprep.subr.bf16.mxu1 %v9987_v46 }
 0x170   :  { %7444 = vmatpush3.bf16.msra.mxu0 %v9993_v47 }
 0x171   :  { %7445 = vmatprep.subr.bf16.mxu0 %v9999_v48 }
 0x172   :  { %7466 = vmatpush3.bf16.msra.mxu1 %v10005_v49 }
 0x173   :  { %7467 = vmatprep.subr.bf16.mxu1 %v10011_v50 }
 0x174   :  { %7446 = vmatpush3.bf16.msra.mxu0 %v10062_v31 }
 0x175   :  { %7447 = vmatprep.subr.bf16.mxu0 %v10068_v32 }
 0x176   :  { %7468 = vmatpush3.bf16.msra.mxu1 %v10074_v33  ;;  %v7145_v34 = vpop.f32.mrb[16].mxu0 }
 0x177   :  { %v7146_v36 = vpop.f32.mrb[17].mxu0  ;;  %7469 = vmatprep.subr.bf16.mxu1 %v10080_v37 }
 0x178   :  { %v7167_v2 = vpop.f32.mrb[16].mxu1  ;;  %v7147_v3 = vadd.f32 %v7146_v36, %v7145_v34  ;;  %7448 = vmatpush3.bf16.msra.mxu0 %v10091_v4  ;;  %v7148_v5 = vpop.f32.mrb[18].mxu0 }
 0x179   :  { %v7168_v6 = vpop.f32.mrb[17].mxu1  ;;  %7449 = vmatprep.subr.bf16.mxu0 %v10097_v7  ;;  %v7149_v8 = vpop.f32.mrb[19].mxu0  ;;  %v1815_v5 = vcombine.high %v10181_v62, %v10181_v62 }
 0x17a   :  { %v836_v9 = vadd.f32 %v7147_v3, %v9790_v55  ;;  %v7169_v10 = vadd.f32 %v7168_v6, %v7167_v2  ;;  %v7170_v11 = vpop.f32.mrb[18].mxu1  ;;  %7470 = vmatpush3.bf16.msra.mxu1 %v10104_v12 }
 0x17b   :  { %v7171_v15 = vpop.f32.mrb[19].mxu1  ;;  %7471 = vmatprep.subr.bf16.mxu1 %v10112_v16 }
 0x17c   :  { %v10115_v57 = vadd.f32 %v7169_v10, %v836_v9  ;;  %7450 = vmatpush3.bf16.msra.mxu0 %v10120_v51  ;;  %v1707_v9 = vrot.slane %v10086_v1, %v9515_v35  ;;  %v1829_v10 = vrot.slane %v1815_v5, %v9515_v35 }
 0x17d   :  { %7451 = vmatprep.subr.bf16.mxu0 %v10126_v52 }
 0x17e   :  { %11875 = vst [vmem:[#allocation2_spill] sm:$0xff] %v10115_v57  ;;  %7472 = vmatpush3.bf16.msra.mxu1 %v10134_v56  ;;  %v1715_v11 = vcombine.high %v1707_v9, %v1707_v9  ;;  %v1831_v14 = vcombine.high %v1829_v10, %v1829_v10 }
 0x17f   :  { %7473 = vmatprep.subr.bf16.mxu1 %v10141_v60 }
 0x180   :  { %7452 = vmatpush3.bf16.msra.mxu0 %v10147_v53 }
 0x181   :  { %7481 = vmatprep.subr.bf16.mxu0 %v9908_v17 }
 0x182   :  { %7474 = vmatpush3.bf16.msra.mxu1 %v10154_v19 }
 0x183   :  { %1639 = vmatmul.mubr.bf16.vlgmr.msra.gmra.mrb[44].mxu0 %v1592_v54  ;;  %7503 = vmatprep.subr.bf16.mxu1 %v9915_v63  ;;  %v10226_v54 = vld.sshfl [vmem:[%s11852_s0 + $0x38] sm:$0x33 pattern:$0x75316420] }
 0x184   :  { %7482 = vmatpush3.bf16.msra.mxu0 %v9921_v22  ;;  %1753 = vmatprep.mubr.bf16.mxu0 %v1714_v59 }
 0x185   :  { %1679 = vmatmul.mubr.bf16.vlgmr.msra.gmra.mrb[44].mxu1 %v1600_v18  ;;  %7483 = vmatprep.subr.bf16.mxu0 %v9927_v23 }
 0x186   :  { %7504 = vmatpush3.bf16.msra.mxu1 %v9933_v29  ;;  %1793 = vmatprep.mubr.bf16.mxu1 %v1716_v20 }
 0x187   :  { %7505 = vmatprep.subr.bf16.mxu1 %v9939_v30 }
 0x188   :  { %7484 = vmatpush3.bf16.msra.mxu0 %v9945_v39 }
 0x189   :  { %7485 = vmatprep.subr.bf16.mxu0 %v9951_v40 }
 0x18a   :  { %7506 = vmatpush3.bf16.msra.mxu1 %v9957_v41 }
 0x18b   :  { %7507 = vmatprep.subr.bf16.mxu1 %v9963_v42 }
 0x18c   :  { %7486 = vmatpush3.bf16.msra.mxu0 %v9969_v43 }
 0x18d   :  { %7487 = vmatprep.subr.bf16.mxu0 %v9975_v44 }
 0x18e   :  { %7508 = vmatpush3.bf16.msra.mxu1 %v9981_v45 }
 0x18f   :  { %7509 = vmatprep.subr.bf16.mxu1 %v9987_v46 }
 0x190   :  { %7488 = vmatpush3.bf16.msra.mxu0 %v9993_v47 }
 0x191   :  { %7489 = vmatprep.subr.bf16.mxu0 %v9999_v48 }
 0x192   :  { %7510 = vmatpush3.bf16.msra.mxu1 %v10005_v49 }
 0x193   :  { %7511 = vmatprep.subr.bf16.mxu1 %v10011_v50 }
 0x194   :  { %7490 = vmatpush3.bf16.msra.mxu0 %v10062_v31 }
 0x195   :  { %7491 = vmatprep.subr.bf16.mxu0 %v10068_v32 }
 0x196   :  { %7512 = vmatpush3.bf16.msra.mxu1 %v10074_v33  ;;  %v7189_v61 = vpop.f32.mrb[20].mxu0 }
 0x197   :  { %v7190_v21 = vpop.f32.mrb[21].mxu0  ;;  %7513 = vmatprep.subr.bf16.mxu1 %v10080_v37 }
 0x198   :  { %v7211_v25 = vpop.f32.mrb[20].mxu1  ;;  %v7191_v27 = vadd.f32 %v7190_v21, %v7189_v61  ;;  %7492 = vmatpush3.bf16.msra.mxu0 %v10091_v4  ;;  %v7192_v26 = vpop.f32.mrb[22].mxu0 }
 0x199   :  { %v7212_v28 = vpop.f32.mrb[21].mxu1  ;;  %7493 = vmatprep.subr.bf16.mxu0 %v10097_v7  ;;  %v7193_v34 = vpop.f32.mrb[23].mxu0 }
 0x19a   :  { %v951_v36 = vadd.f32 %v7191_v27, %v9790_v55  ;;  %v7213_v2 = vadd.f32 %v7212_v28, %v7211_v25  ;;  %v7214_v3 = vpop.f32.mrb[22].mxu1  ;;  %7514 = vmatpush3.bf16.msra.mxu1 %v10104_v12  ;;  %v1930_v28 = vcombine.high %v10226_v54, %v10226_v54 }
 0x19b   :  { %v7215_v6 = vpop.f32.mrb[23].mxu1  ;;  %7515 = vmatprep.subr.bf16.mxu1 %v10112_v16 }
 0x19c   :  { %v10190_v8 = vadd.f32 %v7213_v2, %v951_v36  ;;  %7494 = vmatpush3.bf16.msra.mxu0 %v10120_v51  ;;  %v1822_v2 = vrot.slane %v10181_v62, %v9515_v35  ;;  %v1944_v3 = vrot.slane %v1930_v28, %v9515_v35 }
 0x19d   :  { %7495 = vmatprep.subr.bf16.mxu0 %v10126_v52 }
 0x19e   :  { %7516 = vmatpush3.bf16.msra.mxu1 %v10134_v56  ;;  %v1830_v5 = vcombine.high %v1822_v2, %v1822_v2  ;;  %v1946_v6 = vcombine.high %v1944_v3, %v1944_v3  ;;  %vm996_vm8 = vcmp.ge.f32.partialorder %v10190_v8, 0.0 }
 0x19f   :  { %7517 = vmatprep.subr.bf16.mxu1 %v10141_v60 }
 0x1a0   :  { %7496 = vmatpush3.bf16.msra.mxu0 %v10147_v53 }
 0x1a1   :  { %7525 = vmatprep.subr.bf16.mxu0 %v9908_v17 }
 0x1a2   :  { %7518 = vmatpush3.bf16.msra.mxu1 %v10154_v19 }
 0x1a3   :  { %1754 = vmatmul.mubr.bf16.vlgmr.msra.gmra.mrb[48].mxu0 %v1707_v9  ;;  %7547 = vmatprep.subr.bf16.mxu1 %v9915_v63 }
 0x1a4   :  { %7526 = vmatpush3.bf16.msra.mxu0 %v9921_v22  ;;  %1868 = vmatprep.mubr.bf16.mxu0 %v1829_v10  ;;  %v10271_v10 = vld.sshfl [vmem:[%s11852_s0 + $0x3c] sm:$0x33 pattern:$0x75316420] }
 0x1a5   :  { %1794 = vmatmul.mubr.bf16.vlgmr.msra.gmra.mrb[48].mxu1 %v1715_v11  ;;  %7527 = vmatprep.subr.bf16.mxu0 %v9927_v23 }
 0x1a6   :  { %7548 = vmatpush3.bf16.msra.mxu1 %v9933_v29  ;;  %1908 = vmatprep.mubr.bf16.mxu1 %v1831_v14 }
 0x1a7   :  { %7549 = vmatprep.subr.bf16.mxu1 %v9939_v30 }
 0x1a8   :  { %7528 = vmatpush3.bf16.msra.mxu0 %v9945_v39 }
 0x1a9   :  { %7529 = vmatprep.subr.bf16.mxu0 %v9951_v40 }
 0x1aa   :  { %7550 = vmatpush3.bf16.msra.mxu1 %v9957_v41 }
 0x1ab   :  { %7551 = vmatprep.subr.bf16.mxu1 %v9963_v42 }
 0x1ac   :  { %7530 = vmatpush3.bf16.msra.mxu0 %v9969_v43 }
 0x1ad   :  { %7531 = vmatprep.subr.bf16.mxu0 %v9975_v44 }
 0x1ae   :  { %7552 = vmatpush3.bf16.msra.mxu1 %v9981_v45 }
 0x1af   :  { %7553 = vmatprep.subr.bf16.mxu1 %v9987_v46 }
 0x1b0   :  { %7532 = vmatpush3.bf16.msra.mxu0 %v9993_v47 }
 0x1b1   :  { %7533 = vmatprep.subr.bf16.mxu0 %v9999_v48 }
 0x1b2   :  { %7554 = vmatpush3.bf16.msra.mxu1 %v10005_v49 }
 0x1b3   :  { %7555 = vmatprep.subr.bf16.mxu1 %v10011_v50 }
 0x1b4   :  { %7534 = vmatpush3.bf16.msra.mxu0 %v10062_v31 }
 0x1b5   :  { %7535 = vmatprep.subr.bf16.mxu0 %v10068_v32 }
 0x1b6   :  { %7556 = vmatpush3.bf16.msra.mxu1 %v10074_v33  ;;  %v7233_v1 = vpop.f32.mrb[24].mxu0 }
 0x1b7   :  { %v7234_v15 = vpop.f32.mrb[25].mxu0  ;;  %7557 = vmatprep.subr.bf16.mxu1 %v10080_v37 }
 0x1b8   :  { %v7255_v59 = vpop.f32.mrb[24].mxu1  ;;  %v7235_v18 = vadd.f32 %v7234_v15, %v7233_v1  ;;  %7536 = vmatpush3.bf16.msra.mxu0 %v10091_v4  ;;  %v7236_v20 = vpop.f32.mrb[26].mxu0 }
 0x1b9   :  { %v7256_v61 = vpop.f32.mrb[25].mxu1  ;;  %7537 = vmatprep.subr.bf16.mxu0 %v10097_v7  ;;  %v7237_v21 = vpop.f32.mrb[27].mxu0 }
 0x1ba   :  { %v1066_v25 = vadd.f32 %v7235_v18, %v9790_v55  ;;  %v7257_v27 = vadd.f32 %v7256_v61, %v7255_v59  ;;  %v7258_v26 = vpop.f32.mrb[26].mxu1  ;;  %7558 = vmatpush3.bf16.msra.mxu1 %v10104_v12  ;;  %v2045_v21 = vcombine.high %v10271_v10, %v10271_v10 }
 0x1bb   :  { %v7259_v34 = vpop.f32.mrb[27].mxu1  ;;  %7559 = vmatprep.subr.bf16.mxu1 %v10112_v16  ;;  %v1937_v26 = vrot.slane %v10226_v54, %v9515_v35 }
 0x1bc   :  { %v10235_v36 = vadd.f32 %v7257_v27, %v1066_v25  ;;  %7538 = vmatpush3.bf16.msra.mxu0 %v10120_v51  ;;  %v2059_v28 = vrot.slane %v2045_v21, %v9515_v35  ;;  %v2052_v21 = vrot.slane %v10271_v10, %v9515_v35 }
 0x1bd   :  { %7539 = vmatprep.subr.bf16.mxu0 %v10126_v52  ;;  %v1945_v34 = vcombine.high %v1937_v26, %v1937_v26 }
 0x1be   :  { %7560 = vmatpush3.bf16.msra.mxu1 %v10134_v56  ;;  %vm1111_vm9 = vcmp.ge.f32.partialorder %v10235_v36, 0.0 }
 0x1bf   :  { %7561 = vmatprep.subr.bf16.mxu1 %v10141_v60 }
 0x1c0   :  { %7540 = vmatpush3.bf16.msra.mxu0 %v10147_v53 }
 0x1c1   :  { %7569 = vmatprep.subr.bf16.mxu0 %v9908_v17 }
 0x1c2   :  { %7562 = vmatpush3.bf16.msra.mxu1 %v10154_v19 }
 0x1c3   :  { %1869 = vmatmul.mubr.bf16.vlgmr.msra.gmra.mrb[52].mxu0 %v1822_v2  ;;  %7591 = vmatprep.subr.bf16.mxu1 %v9915_v63  ;;  %v2061_v2 = vcombine.high %v2059_v28, %v2059_v28 }
 0x1c4   :  { %7570 = vmatpush3.bf16.msra.mxu0 %v9921_v22  ;;  %1983 = vmatprep.mubr.bf16.mxu0 %v1944_v3 }
 0x1c5   :  { %1909 = vmatmul.mubr.bf16.vlgmr.msra.gmra.mrb[52].mxu1 %v1830_v5  ;;  %7571 = vmatprep.subr.bf16.mxu0 %v9927_v23  ;;  %v10316_v5 = vld.sshfl [vmem:[%s11852_s0 + $0x40] sm:$0x33 pattern:$0x75316420] }
 0x1c6   :  { %7592 = vmatpush3.bf16.msra.mxu1 %v9933_v29  ;;  %2023 = vmatprep.mubr.bf16.mxu1 %v1946_v6 }
 0x1c7   :  { %7593 = vmatprep.subr.bf16.mxu1 %v9939_v30 }
 0x1c8   :  { %7572 = vmatpush3.bf16.msra.mxu0 %v9945_v39 }
 0x1c9   :  { %7573 = vmatprep.subr.bf16.mxu0 %v9951_v40 }
 0x1ca   :  { %7594 = vmatpush3.bf16.msra.mxu1 %v9957_v41 }
 0x1cb   :  { %7595 = vmatprep.subr.bf16.mxu1 %v9963_v42 }
 0x1cc   :  { %7574 = vmatpush3.bf16.msra.mxu0 %v9969_v43 }
 0x1cd   :  { %7575 = vmatprep.subr.bf16.mxu0 %v9975_v44 }
 0x1ce   :  { %7596 = vmatpush3.bf16.msra.mxu1 %v9981_v45 }
 0x1cf   :  { %7597 = vmatprep.subr.bf16.mxu1 %v9987_v46 }
 0x1d0   :  { %7576 = vmatpush3.bf16.msra.mxu0 %v9993_v47 }
 0x1d1   :  { %7577 = vmatprep.subr.bf16.mxu0 %v9999_v48 }
 0x1d2   :  { %7598 = vmatpush3.bf16.msra.mxu1 %v10005_v49 }
 0x1d3   :  { %7599 = vmatprep.subr.bf16.mxu1 %v10011_v50 }
 0x1d4   :  { %7578 = vmatpush3.bf16.msra.mxu0 %v10062_v31 }
 0x1d5   :  { %7579 = vmatprep.subr.bf16.mxu0 %v10068_v32 }
 0x1d6   :  { %7600 = vmatpush3.bf16.msra.mxu1 %v10074_v33  ;;  %v7277_v62 = vpop.f32.mrb[28].mxu0 }
 0x1d7   :  { %v7278_v9 = vpop.f32.mrb[29].mxu0  ;;  %7601 = vmatprep.subr.bf16.mxu1 %v10080_v37 }
 0x1d8   :  { %v7299_v11 = vpop.f32.mrb[28].mxu1  ;;  %v7279_v14 = vadd.f32 %v7278_v9, %v7277_v62  ;;  %7580 = vmatpush3.bf16.msra.mxu0 %v10091_v4  ;;  %v7280_v1 = vpop.f32.mrb[30].mxu0 }
 0x1d9   :  { %v7300_v15 = vpop.f32.mrb[29].mxu1  ;;  %7581 = vmatprep.subr.bf16.mxu0 %v10097_v7  ;;  %v7281_v59 = vpop.f32.mrb[31].mxu0 }
 0x1da   :  { %v1181_v18 = vadd.f32 %v7279_v14, %v9790_v55  ;;  %v7301_v20 = vadd.f32 %v7300_v15, %v7299_v11  ;;  %v7302_v61 = vpop.f32.mrb[30].mxu1  ;;  %7602 = vmatpush3.bf16.msra.mxu1 %v10104_v12 }
 0x1db   :  { %v7303_v25 = vpop.f32.mrb[31].mxu1  ;;  %7603 = vmatprep.subr.bf16.mxu1 %v10112_v16 }
 0x1dc   :  { %v10280_v27 = vadd.f32 %v7301_v20, %v1181_v18  ;;  %7582 = vmatpush3.bf16.msra.mxu0 %v10120_v51  ;;  %v2160_v18 = vcombine.high %v10316_v5, %v10316_v5 }
 0x1dd   :  { %7583 = vmatprep.subr.bf16.mxu0 %v10126_v52 }
 0x1de   :  { %7604 = vmatpush3.bf16.msra.mxu1 %v10134_v56  ;;  %v2174_v25 = vrot.slane %v2160_v18, %v9515_v35  ;;  %vm1226_vm10 = vcmp.ge.f32.partialorder %v10280_v27, 0.0 }
 0x1df   :  { %7605 = vmatprep.subr.bf16.mxu1 %v10141_v60 }
 0x1e0   :  { %7584 = vmatpush3.bf16.msra.mxu0 %v10147_v53 }
 0x1e1   :  { %7613 = vmatprep.subr.bf16.mxu0 %v9908_v17 }
 0x1e2   :  { %7606 = vmatpush3.bf16.msra.mxu1 %v10154_v19 }
 0x1e3   :  { %1984 = vmatmul.mubr.bf16.vlgmr.msra.gmra.mrb[56].mxu0 %v1937_v26  ;;  %7635 = vmatprep.subr.bf16.mxu1 %v9915_v63  ;;  %v2060_v26 = vcombine.high %v2052_v21, %v2052_v21 }
 0x1e4   :  { %7614 = vmatpush3.bf16.msra.mxu0 %v9921_v22  ;;  %2098 = vmatprep.mubr.bf16.mxu0 %v2059_v28  ;;  %v2176_v28 = vcombine.high %v2174_v25, %v2174_v25 }
 0x1e5   :  { %2024 = vmatmul.mubr.bf16.vlgmr.msra.gmra.mrb[56].mxu1 %v1945_v34  ;;  %7615 = vmatprep.subr.bf16.mxu0 %v9927_v23 }
 0x1e6   :  { %7636 = vmatpush3.bf16.msra.mxu1 %v9933_v29  ;;  %2138 = vmatprep.mubr.bf16.mxu1 %v2061_v2  ;;  %v10361_v2 = vld.sshfl [vmem:[%s11852_s0 + $0x44] sm:$0x33 pattern:$0x75316420] }
 0x1e7   :  { %7637 = vmatprep.subr.bf16.mxu1 %v9939_v30 }
 0x1e8   :  { %7616 = vmatpush3.bf16.msra.mxu0 %v9945_v39 }
 0x1e9   :  { %7617 = vmatprep.subr.bf16.mxu0 %v9951_v40 }
 0x1ea   :  { %7638 = vmatpush3.bf16.msra.mxu1 %v9957_v41 }
 0x1eb   :  { %7639 = vmatprep.subr.bf16.mxu1 %v9963_v42 }
 0x1ec   :  { %7618 = vmatpush3.bf16.msra.mxu0 %v9969_v43 }
 0x1ed   :  { %7619 = vmatprep.subr.bf16.mxu0 %v9975_v44 }
 0x1ee   :  { %7640 = vmatpush3.bf16.msra.mxu1 %v9981_v45 }
 0x1ef   :  { %7641 = vmatprep.subr.bf16.mxu1 %v9987_v46 }
 0x1f0   :  { %7620 = vmatpush3.bf16.msra.mxu0 %v9993_v47 }
 0x1f1   :  { %7621 = vmatprep.subr.bf16.mxu0 %v9999_v48 }
 0x1f2   :  { %7642 = vmatpush3.bf16.msra.mxu1 %v10005_v49 }
 0x1f3   :  { %7643 = vmatprep.subr.bf16.mxu1 %v10011_v50 }
 0x1f4   :  { %7622 = vmatpush3.bf16.msra.mxu0 %v10062_v31 }
 0x1f5   :  { %7623 = vmatprep.subr.bf16.mxu0 %v10068_v32 }
 0x1f6   :  { %7644 = vmatpush3.bf16.msra.mxu1 %v10074_v33  ;;  %v7321_v54 = vpop.f32.mrb[32].mxu0 }
 0x1f7   :  { %v7322_v3 = vpop.f32.mrb[33].mxu0  ;;  %7645 = vmatprep.subr.bf16.mxu1 %v10080_v37 }
 0x1f8   :  { %v7343_v6 = vpop.f32.mrb[32].mxu1  ;;  %v7323_v62 = vadd.f32 %v7322_v3, %v7321_v54  ;;  %7624 = vmatpush3.bf16.msra.mxu0 %v10091_v4  ;;  %v7324_v9 = vpop.f32.mrb[34].mxu0 }
 0x1f9   :  { %v7344_v11 = vpop.f32.mrb[33].mxu1  ;;  %7625 = vmatprep.subr.bf16.mxu0 %v10097_v7  ;;  %v7325_v14 = vpop.f32.mrb[35].mxu0 }
 0x1fa   :  { %v1296_v1 = vadd.f32 %v7323_v62, %v9790_v55  ;;  %v7345_v15 = vadd.f32 %v7344_v11, %v7343_v6  ;;  %v7346_v59 = vpop.f32.mrb[34].mxu1  ;;  %7646 = vmatpush3.bf16.msra.mxu1 %v10104_v12 }
 0x1fb   :  { %v7347_v20 = vpop.f32.mrb[35].mxu1  ;;  %7647 = vmatprep.subr.bf16.mxu1 %v10112_v16 }
 0x1fc   :  { %v10325_v61 = vadd.f32 %v7345_v15, %v1296_v1  ;;  %7626 = vmatpush3.bf16.msra.mxu0 %v10120_v51  ;;  %v2275_v15 = vcombine.high %v10361_v2, %v10361_v2  ;;  %v2167_v20 = vrot.slane %v10316_v5, %v9515_v35 }
 0x1fd   :  { %7627 = vmatprep.subr.bf16.mxu0 %v10126_v52 }
 0x1fe   :  { %7648 = vmatpush3.bf16.msra.mxu1 %v10134_v56  ;;  %vm1341_vm11 = vcmp.ge.f32.partialorder %v10325_v61, 0.0 }
 0x1ff   :  { %7649 = vmatprep.subr.bf16.mxu1 %v10141_v60 }
 0x200   :  { %7628 = vmatpush3.bf16.msra.mxu0 %v10147_v53 }
 0x201   :  { %7657 = vmatprep.subr.bf16.mxu0 %v9908_v17 }
 0x202   :  { %7650 = vmatpush3.bf16.msra.mxu1 %v10154_v19 }
 0x203   :  { %2099 = vmatmul.mubr.bf16.vlgmr.msra.gmra.mrb[60].mxu0 %v2052_v21  ;;  %7679 = vmatprep.subr.bf16.mxu1 %v9915_v63  ;;  %v2175_v21 = vcombine.high %v2167_v20, %v2167_v20 }
 0x204   :  { %7658 = vmatpush3.bf16.msra.mxu0 %v9921_v22  ;;  %2213 = vmatprep.mubr.bf16.mxu0 %v2174_v25 }
 0x205   :  { %2139 = vmatmul.mubr.bf16.vlgmr.msra.gmra.mrb[60].mxu1 %v2060_v26  ;;  %7659 = vmatprep.subr.bf16.mxu0 %v9927_v23 }
 0x206   :  { %7680 = vmatpush3.bf16.msra.mxu1 %v9933_v29  ;;  %2253 = vmatprep.mubr.bf16.mxu1 %v2176_v28  ;;  %v10406_v28 = vld.sshfl [vmem:[%s11852_s0 + $0x48] sm:$0x33 pattern:$0x75316420] }
 0x207   :  { %7681 = vmatprep.subr.bf16.mxu1 %v9939_v30 }
 0x208   :  { %7660 = vmatpush3.bf16.msra.mxu0 %v9945_v39 }
 0x209   :  { %7661 = vmatprep.subr.bf16.mxu0 %v9951_v40 }
 0x20a   :  { %7682 = vmatpush3.bf16.msra.mxu1 %v9957_v41 }
 0x20b   :  { %7683 = vmatprep.subr.bf16.mxu1 %v9963_v42 }
 0x20c   :  { %7662 = vmatpush3.bf16.msra.mxu0 %v9969_v43 }
 0x20d   :  { %7663 = vmatprep.subr.bf16.mxu0 %v9975_v44 }
 0x20e   :  { %7684 = vmatpush3.bf16.msra.mxu1 %v9981_v45 }
 0x20f   :  { %7685 = vmatprep.subr.bf16.mxu1 %v9987_v46 }
 0x210   :  { %7664 = vmatpush3.bf16.msra.mxu0 %v9993_v47 }
 0x211   :  { %7665 = vmatprep.subr.bf16.mxu0 %v9999_v48 }
 0x212   :  { %7686 = vmatpush3.bf16.msra.mxu1 %v10005_v49 }
 0x213   :  { %7687 = vmatprep.subr.bf16.mxu1 %v10011_v50 }
 0x214   :  { %7666 = vmatpush3.bf16.msra.mxu0 %v10062_v31 }
 0x215   :  { %7667 = vmatprep.subr.bf16.mxu0 %v10068_v32 }
 0x216   :  { %7688 = vmatpush3.bf16.msra.mxu1 %v10074_v33  ;;  %v7365_v10 = vpop.f32.mrb[36].mxu0 }
 0x217   :  { %v7366_v34 = vpop.f32.mrb[37].mxu0  ;;  %7689 = vmatprep.subr.bf16.mxu1 %v10080_v37 }
 0x218   :  { %v7387_v54 = vpop.f32.mrb[36].mxu1  ;;  %v7367_v3 = vadd.f32 %v7366_v34, %v7365_v10  ;;  %7668 = vmatpush3.bf16.msra.mxu0 %v10091_v4  ;;  %v7368_v6 = vpop.f32.mrb[38].mxu0 }
 0x219   :  { %v7388_v62 = vpop.f32.mrb[37].mxu1  ;;  %7669 = vmatprep.subr.bf16.mxu0 %v10097_v7  ;;  %v7369_v9 = vpop.f32.mrb[39].mxu0 }
 0x21a   :  { %v1411_v11 = vadd.f32 %v7367_v3, %v9790_v55  ;;  %v7389_v14 = vadd.f32 %v7388_v62, %v7387_v54  ;;  %v7390_v1 = vpop.f32.mrb[38].mxu1  ;;  %7690 = vmatpush3.bf16.msra.mxu1 %v10104_v12  ;;  %v2289_v55 = vrot.slane %v2275_v15, %v9515_v35  ;;  %v10413_v62 = vld [vmem:[%s11853_s3] ss:$0 sm:$0xff] }
 0x21b   :  { %v7391_v59 = vpop.f32.mrb[39].mxu1  ;;  %7691 = vmatprep.subr.bf16.mxu1 %v10112_v16  ;;  %v2390_v1 = vcombine.high %v10406_v28, %v10406_v28 }
 0x21c   :  { %v10370_v18 = vadd.f32 %v7389_v14, %v1411_v11  ;;  %7670 = vmatpush3.bf16.msra.mxu0 %v10120_v51  ;;  %v2291_v25 = vcombine.high %v2289_v55, %v2289_v55 }
 0x21d   :  { %7671 = vmatprep.subr.bf16.mxu0 %v10126_v52 }
 0x21e   :  { %11876 = vst [vmem:[#allocation3_spill] sm:$0xff] %v10370_v18  ;;  %7692 = vmatpush3.bf16.msra.mxu1 %v10134_v56  ;;  %v11278_v18 = vld [vmem:[%s11854_s4 + $0xf0] sm:$0xff]  }
 0x21f   :  { %7693 = vmatprep.subr.bf16.mxu1 %v10141_v60 }
 0x220   :  { %7672 = vmatpush3.bf16.msra.mxu0 %v10147_v53 }
 0x221   :  { %7701 = vmatprep.subr.bf16.mxu0 %v9908_v17 }
 0x222   :  { %7694 = vmatpush3.bf16.msra.mxu1 %v10154_v19 }
 0x223   :  { %2214 = vmatmul.mubr.bf16.vlgmr.msra.gmra.mrb[64].mxu0 %v2167_v20  ;;  %7723 = vmatprep.subr.bf16.mxu1 %v9915_v63  ;;  %v2282_v20 = vrot.slane %v10361_v2, %v9515_v35 }
 0x224   :  { %7702 = vmatpush3.bf16.msra.mxu0 %v9921_v22  ;;  %2328 = vmatprep.mubr.bf16.mxu0 %v2289_v55  ;;  %v2404_v55 = vrot.slane %v2390_v1, %v9515_v35 }
 0x225   :  { %2254 = vmatmul.mubr.bf16.vlgmr.msra.gmra.mrb[64].mxu1 %v2175_v21  ;;  %7703 = vmatprep.subr.bf16.mxu0 %v9927_v23  ;;  %v2290_v21 = vcombine.high %v2282_v20, %v2282_v20 }
 0x226   :  { %7724 = vmatpush3.bf16.msra.mxu1 %v9933_v29  ;;  %2368 = vmatprep.mubr.bf16.mxu1 %v2291_v25  ;;  %v2406_v25 = vcombine.high %v2404_v55, %v2404_v55 }
 0x227   :  { %7725 = vmatprep.subr.bf16.mxu1 %v9939_v30 }
 0x228   :  { %7704 = vmatpush3.bf16.msra.mxu0 %v9945_v39 }
 0x229   :  { %7705 = vmatprep.subr.bf16.mxu0 %v9951_v40 }
 0x22a   :  { %7726 = vmatpush3.bf16.msra.mxu1 %v9957_v41 }
 0x22b   :  { %7727 = vmatprep.subr.bf16.mxu1 %v9963_v42 }
 0x22c   :  { %7706 = vmatpush3.bf16.msra.mxu0 %v9969_v43 }
 0x22d   :  { %7707 = vmatprep.subr.bf16.mxu0 %v9975_v44 }
 0x22e   :  { %7728 = vmatpush3.bf16.msra.mxu1 %v9981_v45 }
 0x22f   :  { %7729 = vmatprep.subr.bf16.mxu1 %v9987_v46 }
 0x230   :  { %7708 = vmatpush3.bf16.msra.mxu0 %v9993_v47 }
 0x231   :  { %7709 = vmatprep.subr.bf16.mxu0 %v9999_v48 }
 0x232   :  { %7730 = vmatpush3.bf16.msra.mxu1 %v10005_v49 }
 0x233   :  { %7731 = vmatprep.subr.bf16.mxu1 %v10011_v50 }
 0x234   :  { %7710 = vmatpush3.bf16.msra.mxu0 %v10062_v31 }
 0x235   :  { %7711 = vmatprep.subr.bf16.mxu0 %v10068_v32 }
 0x236   :  { %7732 = vmatpush3.bf16.msra.mxu1 %v10074_v33  ;;  %v7409_v5 = vpop.f32.mrb[40].mxu0 }
 0x237   :  { %v7410_v26 = vpop.f32.mrb[41].mxu0  ;;  %7733 = vmatprep.subr.bf16.mxu1 %v10080_v37 }
 0x238   :  { %v7431_v10 = vpop.f32.mrb[40].mxu1  ;;  %v7411_v34 = vadd.f32 %v7410_v26, %v7409_v5  ;;  %7712 = vmatpush3.bf16.msra.mxu0 %v10091_v4  ;;  %v7412_v54 = vpop.f32.mrb[42].mxu0  ;;  %v10456_v26 = vld.sshfl [vmem:[%s11852_s0 + $0x4c] sm:$0x33 pattern:$0x75316420] }
 0x239   :  { %v7432_v3 = vpop.f32.mrb[41].mxu1  ;;  %7713 = vmatprep.subr.bf16.mxu0 %v10097_v7  ;;  %v7413_v6 = vpop.f32.mrb[43].mxu0  ;;  %v2505_v1 = vcombine.high %v10456_v26, %v10456_v26 }
 0x23a   :  { %v1526_v9 = vadd.f32 %v10413_v62, %v7411_v34  ;;  %v7433_v11 = vadd.f32 %v7432_v3, %v7431_v10  ;;  %v7434_v14 = vpop.f32.mrb[42].mxu1  ;;  %7734 = vmatpush3.bf16.msra.mxu1 %v10104_v12 }
 0x23b   :  { %v7435_v15 = vpop.f32.mrb[43].mxu1  ;;  %7735 = vmatprep.subr.bf16.mxu1 %v10112_v16 }
 0x23c   :  { %v10420_v59 = vadd.f32 %v7433_v11, %v1526_v9  ;;  %7714 = vmatpush3.bf16.msra.mxu0 %v10120_v51 }
 0x23d   :  { %7715 = vmatprep.subr.bf16.mxu0 %v10126_v52 }
 0x23e   :  { %7736 = vmatpush3.bf16.msra.mxu1 %v10134_v56  ;;  %vm1571_vm12 = vcmp.ge.f32.partialorder %v10420_v59, 0.0 }
 0x23f   :  { %7737 = vmatprep.subr.bf16.mxu1 %v10141_v60 }
 0x240   :  { %7716 = vmatpush3.bf16.msra.mxu0 %v10147_v53 }
 0x241   :  { %7745 = vmatprep.subr.bf16.mxu0 %v9908_v17 }
 0x242   :  { %7738 = vmatpush3.bf16.msra.mxu1 %v10154_v19 }
 0x243   :  { %2329 = vmatmul.mubr.bf16.vlgmr.msra.gmra.mrb[68].mxu0 %v2282_v20  ;;  %7767 = vmatprep.subr.bf16.mxu1 %v9915_v63 }
 0x244   :  { %7746 = vmatpush3.bf16.msra.mxu0 %v9921_v22  ;;  %2443 = vmatprep.mubr.bf16.mxu0 %v2404_v55  ;;  %v2397_v55 = vrot.slane %v10406_v28, %v9515_v35 }
 0x245   :  { %2369 = vmatmul.mubr.bf16.vlgmr.msra.gmra.mrb[68].mxu1 %v2290_v21  ;;  %7747 = vmatprep.subr.bf16.mxu0 %v9927_v23  ;;  %v2519_v21 = vrot.slane %v2505_v1, %v9515_v35  ;;  %v10590_v1 = vld [vmem:[%s11851_s2 + $0x58] sm:$0xff]  }
 0x246   :  { %7768 = vmatpush3.bf16.msra.mxu1 %v9933_v29  ;;  %2483 = vmatprep.mubr.bf16.mxu1 %v2406_v25  ;;  %v2405_v25 = vcombine.high %v2397_v55, %v2397_v55 }
 0x247   :  { %7769 = vmatprep.subr.bf16.mxu1 %v9939_v30 }
 0x248   :  { %7748 = vmatpush3.bf16.msra.mxu0 %v9945_v39 }
 0x249   :  { %7749 = vmatprep.subr.bf16.mxu0 %v9951_v40 }
 0x24a   :  { %7770 = vmatpush3.bf16.msra.mxu1 %v9957_v41 }
 0x24b   :  { %7771 = vmatprep.subr.bf16.mxu1 %v9963_v42 }
 0x24c   :  { %7750 = vmatpush3.bf16.msra.mxu0 %v9969_v43 }
 0x24d   :  { %7751 = vmatprep.subr.bf16.mxu0 %v9975_v44 }
 0x24e   :  { %7772 = vmatpush3.bf16.msra.mxu1 %v9981_v45 }
 0x24f   :  { %7773 = vmatprep.subr.bf16.mxu1 %v9987_v46 }
 0x250   :  { %7752 = vmatpush3.bf16.msra.mxu0 %v9993_v47 }
 0x251   :  { %7753 = vmatprep.subr.bf16.mxu0 %v9999_v48 }
 0x252   :  { %7774 = vmatpush3.bf16.msra.mxu1 %v10005_v49 }
 0x253   :  { %7775 = vmatprep.subr.bf16.mxu1 %v10011_v50 }
 0x254   :  { %7754 = vmatpush3.bf16.msra.mxu0 %v10062_v31 }
 0x255   :  { %7755 = vmatprep.subr.bf16.mxu0 %v10068_v32 }
 0x256   :  { %7776 = vmatpush3.bf16.msra.mxu1 %v10074_v33  ;;  %v7453_v2 = vpop.f32.mrb[44].mxu0 }
 0x257   :  { %v7454_v5 = vpop.f32.mrb[45].mxu0  ;;  %7777 = vmatprep.subr.bf16.mxu1 %v10080_v37 }
 0x258   :  { %v7475_v10 = vpop.f32.mrb[44].mxu1  ;;  %v7455_v34 = vadd.f32 %v7454_v5, %v7453_v2  ;;  %7756 = vmatpush3.bf16.msra.mxu0 %v10091_v4  ;;  %v7456_v54 = vpop.f32.mrb[46].mxu0  ;;  %v2521_v2 = vcombine.high %v2519_v21, %v2519_v21  ;;  %v10530_v5 = vld [vmem:[%s11851_s2 + $0xc0] sm:$0xff]  }
 0x259   :  { %v7476_v3 = vpop.f32.mrb[45].mxu1  ;;  %7757 = vmatprep.subr.bf16.mxu0 %v10097_v7  ;;  %v7457_v6 = vpop.f32.mrb[47].mxu0  ;;  %v10554_v54 = vld [vmem:[%s11851_s2 + $0xc8] sm:$0xff]  }
 0x25a   :  { %v1641_v9 = vadd.f32 %v10413_v62, %v7455_v34  ;;  %v7477_v11 = vadd.f32 %v7476_v3, %v7475_v10  ;;  %v7478_v14 = vpop.f32.mrb[46].mxu1  ;;  %7778 = vmatpush3.bf16.msra.mxu1 %v10104_v12  ;;  %v10542_v10 = vld [vmem:[%s11851_s2 + $0x48] sm:$0xff]   ;;  %v10548_v34 = vld [vmem:[%s11851_s2 + $0x80] sm:$0xff]   ;;  %v10566_v6 = vld [vmem:[%s11851_s2 + $0x50] sm:$0xff]  }
 0x25b   :  { %v7479_v15 = vpop.f32.mrb[47].mxu1  ;;  %7779 = vmatprep.subr.bf16.mxu1 %v10112_v16  ;;  %v10560_v3 = vld [vmem:[%s11851_s2 + $0x8] sm:$0xff]   ;;  %v10584_v14 = vld [vmem:[%s11851_s2 + $0x10] sm:$0xff]  }
 0x25c   :  { %v10465_v20 = vadd.f32 %v7477_v11, %v1641_v9  ;;  %7758 = vmatpush3.bf16.msra.mxu0 %v10120_v51  ;;  %v10572_v9 = vld [vmem:[%s11851_s2 + $0x88] sm:$0xff]   ;;  %v10578_v11 = vld [vmem:[%s11851_s2 + $0xd0] sm:$0xff]  }
 0x25d   :  { %7759 = vmatprep.subr.bf16.mxu0 %v10126_v52  ;;  %v10596_v15 = vld [vmem:[%s11851_s2 + $0x90] sm:$0xff]  }
 0x25e   :  { %7780 = vmatpush3.bf16.msra.mxu1 %v10134_v56  ;;  %vm1686_vm13 = vcmp.ge.f32.partialorder %v10465_v20, 0.0 }
 0x25f   :  { %7781 = vmatprep.subr.bf16.mxu1 %v10141_v60 }
 0x260   :  { %7760 = vmatpush3.bf16.msra.mxu0 %v10147_v53 }
 0x261   :  { %7789 = vmatprep.subr.bf16.mxu0 %v9908_v17 }
 0x262   :  { %7782 = vmatpush3.bf16.msra.mxu1 %v10154_v19 }
 0x263   :  { %2444 = vmatmul.mubr.bf16.vlgmr.msra.gmra.mrb[72].mxu0 %v2397_v55  ;;  %7811 = vmatprep.subr.bf16.mxu1 %v9915_v63  ;;  %v10602_v55 = vld [vmem:[%s11851_s2 + $0xd8] sm:$0xff]  }
 0x264   :  { %7790 = vmatpush3.bf16.msra.mxu0 %v9921_v22  ;;  %2558 = vmatprep.mubr.bf16.mxu0 %v2519_v21  ;;  %v10501_v22 = vld.sshfl [vmem:[%s11852_s0 + $0x50] sm:$0x33 pattern:$0x75316420]  ;;  %v10608_v21 = vld [vmem:[%s11851_s2 + $0x18] sm:$0xff]  }
 0x265   :  { %2484 = vmatmul.mubr.bf16.vlgmr.msra.gmra.mrb[72].mxu1 %v2405_v25  ;;  %7791 = vmatprep.subr.bf16.mxu0 %v9927_v23  ;;  %v10614_v25 = vld [vmem:[%s11851_s2 + $0x60] sm:$0xff]  }
 0x266   :  { %7812 = vmatpush3.bf16.msra.mxu1 %v9933_v29  ;;  %2598 = vmatprep.mubr.bf16.mxu1 %v2521_v2  ;;  %v10620_v2 = vld [vmem:[%s11851_s2 + $0x98] sm:$0xff]  }
 0x267   :  { %7813 = vmatprep.subr.bf16.mxu1 %v9939_v30 }
 0x268   :  { %7792 = vmatpush3.bf16.msra.mxu0 %v9945_v39 }
 0x269   :  { %7793 = vmatprep.subr.bf16.mxu0 %v9951_v40 }
 0x26a   :  { %7814 = vmatpush3.bf16.msra.mxu1 %v9957_v41 }
 0x26b   :  { %7815 = vmatprep.subr.bf16.mxu1 %v9963_v42 }
 0x26c   :  { %7794 = vmatpush3.bf16.msra.mxu0 %v9969_v43 }
 0x26d   :  { %7795 = vmatprep.subr.bf16.mxu0 %v9975_v44  ;;  %v2620_v44 = vcombine.high %v10501_v22, %v10501_v22 }
 0x26e   :  { %7816 = vmatpush3.bf16.msra.mxu1 %v9981_v45 }
 0x26f   :  { %7817 = vmatprep.subr.bf16.mxu1 %v9987_v46 }
 0x270   :  { %7796 = vmatpush3.bf16.msra.mxu0 %v9993_v47  ;;  %v2512_v47 = vrot.slane %v10456_v26, %v9515_v35  ;;  %v10536_v26 = vld [vmem:[%s11851_s2] sm:$0xff]  }
 0x271   :  { %7797 = vmatprep.subr.bf16.mxu0 %v9999_v48  ;;  %v2634_v48 = vrot.slane %v2620_v44, %v9515_v35 }
 0x272   :  { %7818 = vmatpush3.bf16.msra.mxu1 %v10005_v49  ;;  %v2520_v49 = vcombine.high %v2512_v47, %v2512_v47 }
 0x273   :  { %7819 = vmatprep.subr.bf16.mxu1 %v10011_v50  ;;  %v10523_v50 = vld [vmem:[%s11851_s2 + $0x40] sm:$0xff]   ;;  %v2636_v28 = vcombine.high %v2634_v48, %v2634_v48 }
 0x274   :  { %7798 = vmatpush3.bf16.msra.mxu0 %v10062_v31 }
 0x275   :  { %7799 = vmatprep.subr.bf16.mxu0 %v10068_v32 }
 0x276   :  { %7820 = vmatpush3.bf16.msra.mxu1 %v10074_v33  ;;  %v7497_v17 = vpop.f32.mrb[48].mxu0 }
 0x277   :  { %v7498_v63 = vpop.f32.mrb[49].mxu0  ;;  %7821 = vmatprep.subr.bf16.mxu1 %v10080_v37 }
 0x278   :  { %v7519_v23 = vpop.f32.mrb[48].mxu1  ;;  %v7499_v29 = vadd.f32 %v7498_v63, %v7497_v17  ;;  %7800 = vmatpush3.bf16.msra.mxu0 %v10091_v4  ;;  %v7500_v30 = vpop.f32.mrb[50].mxu0  ;;  %v10626_v17 = vld [vmem:[%s11851_s2 + $0xe0] sm:$0xff]  }
 0x279   :  { %v7520_v39 = vpop.f32.mrb[49].mxu1  ;;  %7801 = vmatprep.subr.bf16.mxu0 %v10097_v7  ;;  %v7501_v40 = vpop.f32.mrb[51].mxu0 }
 0x27a   :  { %v1756_v41 = vadd.f32 %v10413_v62, %v7499_v29  ;;  %v7521_v42 = vadd.f32 %v7520_v39, %v7519_v23  ;;  %v7522_v43 = vpop.f32.mrb[50].mxu1  ;;  %7822 = vmatpush3.bf16.msra.mxu1 %v10104_v12  ;;  %v10636_v29 = vld.sshfl [vmem:[%s11852_s0 + $0x54] sm:$0x33 pattern:$0x75316420] }
 0x27b   :  { %v7523_v45 = vpop.f32.mrb[51].mxu1  ;;  %7823 = vmatprep.subr.bf16.mxu1 %v10112_v16 }
 0x27c   :  { %v10510_v46 = vadd.f32 %v7521_v42, %v1756_v41  ;;  %7802 = vmatpush3.bf16.msra.mxu0 %v10120_v51 }
 0x27d   :  { %7803 = vmatprep.subr.bf16.mxu0 %v10126_v52 }
 0x27e   :  { %7824 = vmatpush3.bf16.msra.mxu1 %v10134_v56  ;;  %vm1801_vm14 = vcmp.ge.f32.partialorder %v10510_v46, 0.0 }
 0x27f   :  { %7825 = vmatprep.subr.bf16.mxu1 %v10141_v60 }
 0x280   :  { %7804 = vmatpush3.bf16.msra.mxu0 %v10147_v53 }
 0x281   :  { %7833 = vmatprep.subr.bf16.mxu0 %v10523_v50 }
 0x282   :  { %7826 = vmatpush3.bf16.msra.mxu1 %v10154_v19 }
 0x283   :  { %2559 = vmatmul.mubr.bf16.vlgmr.msra.gmra.mrb[76].mxu0 %v2512_v47  ;;  %7855 = vmatprep.subr.bf16.mxu1 %v10530_v5 }
 0x284   :  { %7834 = vmatpush3.bf16.msra.mxu0 %v10536_v26  ;;  %2673 = vmatprep.mubr.bf16.mxu0 %v2634_v48  ;;  %v10706_v48 = vld [vmem:[%s11851_s2 + $0x28] sm:$0xff]  }
 0x285   :  { %2599 = vmatmul.mubr.bf16.vlgmr.msra.gmra.mrb[76].mxu1 %v2520_v49  ;;  %7835 = vmatprep.subr.bf16.mxu0 %v10542_v10 }
 0x286   :  { %7856 = vmatpush3.bf16.msra.mxu1 %v10548_v34  ;;  %2713 = vmatprep.mubr.bf16.mxu1 %v2636_v28 }
 0x287   :  { %7857 = vmatprep.subr.bf16.mxu1 %v10554_v54 }
 0x288   :  { %7836 = vmatpush3.bf16.msra.mxu0 %v10560_v3 }
 0x289   :  { %7837 = vmatprep.subr.bf16.mxu0 %v10566_v6 }
 0x28a   :  { %7858 = vmatpush3.bf16.msra.mxu1 %v10572_v9 }
 0x28b   :  { %7859 = vmatprep.subr.bf16.mxu1 %v10578_v11 }
 0x28c   :  { %7838 = vmatpush3.bf16.msra.mxu0 %v10584_v14 }
 0x28d   :  { %7839 = vmatprep.subr.bf16.mxu0 %v10590_v1 }
 0x28e   :  { %7860 = vmatpush3.bf16.msra.mxu1 %v10596_v15 }
 0x28f   :  { %7861 = vmatprep.subr.bf16.mxu1 %v10602_v55 }
 0x290   :  { %7840 = vmatpush3.bf16.msra.mxu0 %v10608_v21 }
 0x291   :  { %7841 = vmatprep.subr.bf16.mxu0 %v10614_v25 }
 0x292   :  { %7862 = vmatpush3.bf16.msra.mxu1 %v10620_v2 }
 0x293   :  { %7863 = vmatprep.subr.bf16.mxu1 %v10626_v17 }
 0x294   :  { %7842 = vmatpush3.bf16.msra.mxu0 %v10062_v31 }
 0x295   :  { %7843 = vmatprep.subr.bf16.mxu0 %v10068_v32 }
 0x296   :  { %7864 = vmatpush3.bf16.msra.mxu1 %v10074_v33  ;;  %v7541_v63 = vpop.f32.mrb[52].mxu0 }
 0x297   :  { %v7542_v23 = vpop.f32.mrb[53].mxu0  ;;  %7865 = vmatprep.subr.bf16.mxu1 %v10080_v37  ;;  %v2735_v37 = vcombine.high %v10636_v29, %v10636_v29 }
 0x298   :  { %v7563_v30 = vpop.f32.mrb[52].mxu1  ;;  %v7543_v39 = vadd.f32 %v7542_v23, %v7541_v63  ;;  %7844 = vmatpush3.bf16.msra.mxu0 %v10091_v4  ;;  %v7544_v40 = vpop.f32.mrb[54].mxu0  ;;  %v2627_v4 = vrot.slane %v10501_v22, %v9515_v35  ;;  %v10700_v22 = vld [vmem:[%s11851_s2 + $0xe8] sm:$0xff]   ;;  %v10712_v63 = vld [vmem:[%s11851_s2 + $0x70] sm:$0xff]  }
 0x299   :  { %v7564_v41 = vpop.f32.mrb[53].mxu1  ;;  %7845 = vmatprep.subr.bf16.mxu0 %v10097_v7  ;;  %v7545_v31 = vpop.f32.mrb[55].mxu0  ;;  %v2749_v7 = vrot.slane %v2735_v37, %v9515_v35  ;;  %v10735_v37 = vld [vmem:[%s11851_s2 + $0x30] sm:$0xff]  }
 0x29a   :  { %v1871_v32 = vadd.f32 %v10413_v62, %v7543_v39  ;;  %v7565_v33 = vadd.f32 %v7564_v41, %v7563_v30  ;;  %v7566_v42 = vpop.f32.mrb[54].mxu1  ;;  %7866 = vmatpush3.bf16.msra.mxu1 %v10104_v12  ;;  %v2635_v12 = vcombine.high %v2627_v4, %v2627_v4  ;;  %v10719_v41 = vld [vmem:[%s11851_s2 + $0xa8] sm:$0xff]  }
 0x29b   :  { %v7567_v43 = vpop.f32.mrb[55].mxu1  ;;  %7867 = vmatprep.subr.bf16.mxu1 %v10112_v16  ;;  %v2751_v16 = vcombine.high %v2749_v7, %v2749_v7 }
 0x29c   :  { %v10645_v44 = vadd.f32 %v7565_v33, %v1871_v32  ;;  %7846 = vmatpush3.bf16.msra.mxu0 %v10120_v51  ;;  %v10677_v51 = vld [vmem:[%s11851_s2 + $0x20] sm:$0xff]   ;;  %v10727_v33 = vld [vmem:[%s11851_s2 + $0xf0] sm:$0xff]   ;;  %v10741_v43 = vld [vmem:[%s11851_s2 + $0x78] sm:$0xff]  }
 0x29d   :  { %7847 = vmatprep.subr.bf16.mxu0 %v10126_v52  ;;  %v10683_v52 = vld [vmem:[%s11851_s2 + $0x68] sm:$0xff]  }
 0x29e   :  { %7868 = vmatpush3.bf16.msra.mxu1 %v10134_v56  ;;  %v10689_v56 = vld.sshfl [vmem:[%s11852_s0 + $0x58] sm:$0x33 pattern:$0x75316420]  ;;  %vm1916_vm15 = vcmp.ge.f32.partialorder %v10645_v44, 0.0 }
 0x29f   :  { %7869 = vmatprep.subr.bf16.mxu1 %v10141_v60  ;;  %v10694_v60 = vld [vmem:[%s11851_s2 + $0xa0] sm:$0xff]   ;;  %v2850_v31 = vcombine.high %v10689_v56, %v10689_v56 }
 0x2a0   :  { %7848 = vmatpush3.bf16.msra.mxu0 %v10147_v53 }
 0x2a1   :  { %7877 = vmatprep.subr.bf16.mxu0 %v10523_v50 }
 0x2a2   :  { %7870 = vmatpush3.bf16.msra.mxu1 %v10154_v19 }
 0x2a3   :  { %2674 = vmatmul.mubr.bf16.vlgmr.msra.gmra.mrb[80].mxu0 %v2627_v4  ;;  %7899 = vmatprep.subr.bf16.mxu1 %v10530_v5  ;;  %v2742_v4 = vrot.slane %v10636_v29, %v9515_v35  ;;  %v10762_v29 = vld [vmem:[%s11851_s2 + $0x38] sm:$0xff]  }
 0x2a4   :  { %7878 = vmatpush3.bf16.msra.mxu0 %v10536_v26  ;;  %2788 = vmatprep.mubr.bf16.mxu0 %v2749_v7  ;;  %v10749_v7 = vld [vmem:[%s11851_s2 + $0xb0] sm:$0xff]  }
 0x2a5   :  { %2714 = vmatmul.mubr.bf16.vlgmr.msra.gmra.mrb[80].mxu1 %v2635_v12  ;;  %7879 = vmatprep.subr.bf16.mxu0 %v10542_v10  ;;  %v2864_v12 = vrot.slane %v2850_v31, %v9515_v35 }
 0x2a6   :  { %7900 = vmatpush3.bf16.msra.mxu1 %v10548_v34  ;;  %2828 = vmatprep.mubr.bf16.mxu1 %v2751_v16  ;;  %v10756_v16 = vld [vmem:[%s11851_s2 + $0xf8] sm:$0xff]  }
 0x2a7   :  { %7901 = vmatprep.subr.bf16.mxu1 %v10554_v54 }
 0x2a8   :  { %7880 = vmatpush3.bf16.msra.mxu0 %v10560_v3 }
 0x2a9   :  { %7881 = vmatprep.subr.bf16.mxu0 %v10566_v6 }
 0x2aa   :  { %7902 = vmatpush3.bf16.msra.mxu1 %v10572_v9 }
 0x2ab   :  { %7903 = vmatprep.subr.bf16.mxu1 %v10578_v11 }
 0x2ac   :  { %7882 = vmatpush3.bf16.msra.mxu0 %v10584_v14 }
 0x2ad   :  { %7883 = vmatprep.subr.bf16.mxu0 %v10590_v1 }
 0x2ae   :  { %7904 = vmatpush3.bf16.msra.mxu1 %v10596_v15 }
 0x2af   :  { %7905 = vmatprep.subr.bf16.mxu1 %v10602_v55 }
 0x2b0   :  { %7884 = vmatpush3.bf16.msra.mxu0 %v10608_v21 }
 0x2b1   :  { %7885 = vmatprep.subr.bf16.mxu0 %v10614_v25 }
 0x2b2   :  { %7906 = vmatpush3.bf16.msra.mxu1 %v10620_v2 }
 0x2b3   :  { %7907 = vmatprep.subr.bf16.mxu1 %v10626_v17 }
 0x2b4   :  { %7886 = vmatpush3.bf16.msra.mxu0 %v10677_v51 }
 0x2b5   :  { %7887 = vmatprep.subr.bf16.mxu0 %v10683_v52 }
 0x2b6   :  { %7908 = vmatpush3.bf16.msra.mxu1 %v10694_v60  ;;  %v7585_v53 = vpop.f32.mrb[56].mxu0 }
 0x2b7   :  { %v7586_v19 = vpop.f32.mrb[57].mxu0  ;;  %7909 = vmatprep.subr.bf16.mxu1 %v10700_v22 }
 0x2b8   :  { %v7607_v45 = vpop.f32.mrb[56].mxu1  ;;  %v7587_v47 = vadd.f32 %v7586_v19, %v7585_v53  ;;  %7888 = vmatpush3.bf16.msra.mxu0 %v10706_v48  ;;  %v7588_v49 = vpop.f32.mrb[58].mxu0  ;;  %v2750_v53 = vcombine.high %v2742_v4, %v2742_v4  ;;  %v10769_v19 = vld [vmem:[%s11851_s2 + $0xb8] sm:$0xff]  }
 0x2b9   :  { %v7608_v28 = vpop.f32.mrb[57].mxu1  ;;  %7889 = vmatprep.subr.bf16.mxu0 %v10712_v63  ;;  %v7589_v23 = vpop.f32.mrb[59].mxu0 }
 0x2ba   :  { %v1986_v30 = vadd.f32 %v10413_v62, %v7587_v47  ;;  %v7609_v39 = vadd.f32 %v7608_v28, %v7607_v45  ;;  %v7610_v40 = vpop.f32.mrb[58].mxu1  ;;  %7910 = vmatpush3.bf16.msra.mxu1 %v10719_v41  ;;  %v2866_v45 = vcombine.high %v2864_v12, %v2864_v12  ;;  %v10796_v28 = vld.sshfl [vmem:[%s11852_s0 + $0x5c] sm:$0x33 pattern:$0x75316420] }
 0x2bb   :  { %v7611_v32 = vpop.f32.mrb[59].mxu1  ;;  %7911 = vmatprep.subr.bf16.mxu1 %v10727_v33 }
 0x2bc   :  { %v10730_v42 = vadd.f32 %v7609_v39, %v1986_v30  ;;  %7890 = vmatpush3.bf16.msra.mxu0 %v10735_v37 }
 0x2bd   :  { %7891 = vmatprep.subr.bf16.mxu0 %v10741_v43 }
 0x2be   :  { %11877 = vst [vmem:[#allocation4_spill] sm:$0xff] %v10730_v42  ;;  %7912 = vmatpush3.bf16.msra.mxu1 %v10749_v7 }
 0x2bf   :  { %7913 = vmatprep.subr.bf16.mxu1 %v10756_v16 }
 0x2c0   :  { %7892 = vmatpush3.bf16.msra.mxu0 %v10762_v29 }
 0x2c1   :  { %7921 = vmatprep.subr.bf16.mxu0 %v10523_v50 }
 0x2c2   :  { %7914 = vmatpush3.bf16.msra.mxu1 %v10769_v19 }
 0x2c3   :  { %2789 = vmatmul.mubr.bf16.vlgmr.msra.gmra.mrb[84].mxu0 %v2742_v4  ;;  %7943 = vmatprep.subr.bf16.mxu1 %v10530_v5 }
 0x2c4   :  { %7922 = vmatpush3.bf16.msra.mxu0 %v10536_v26  ;;  %2903 = vmatprep.mubr.bf16.mxu0 %v2864_v12 }
 0x2c5   :  { %2829 = vmatmul.mubr.bf16.vlgmr.msra.gmra.mrb[84].mxu1 %v2750_v53  ;;  %7923 = vmatprep.subr.bf16.mxu0 %v10542_v10  ;;  %v2965_v53 = vcombine.high %v10796_v28, %v10796_v28 }
 0x2c6   :  { %7944 = vmatpush3.bf16.msra.mxu1 %v10548_v34  ;;  %2943 = vmatprep.mubr.bf16.mxu1 %v2866_v45 }
 0x2c7   :  { %7945 = vmatprep.subr.bf16.mxu1 %v10554_v54 }
 0x2c8   :  { %7924 = vmatpush3.bf16.msra.mxu0 %v10560_v3 }
 0x2c9   :  { %7925 = vmatprep.subr.bf16.mxu0 %v10566_v6 }
 0x2ca   :  { %7946 = vmatpush3.bf16.msra.mxu1 %v10572_v9 }
 0x2cb   :  { %7947 = vmatprep.subr.bf16.mxu1 %v10578_v11 }
 0x2cc   :  { %7926 = vmatpush3.bf16.msra.mxu0 %v10584_v14 }
 0x2cd   :  { %7927 = vmatprep.subr.bf16.mxu0 %v10590_v1 }
 0x2ce   :  { %7948 = vmatpush3.bf16.msra.mxu1 %v10596_v15 }
 0x2cf   :  { %7949 = vmatprep.subr.bf16.mxu1 %v10602_v55 }
 0x2d0   :  { %7928 = vmatpush3.bf16.msra.mxu0 %v10608_v21 }
 0x2d1   :  { %7929 = vmatprep.subr.bf16.mxu0 %v10614_v25 }
 0x2d2   :  { %7950 = vmatpush3.bf16.msra.mxu1 %v10620_v2 }
 0x2d3   :  { %7951 = vmatprep.subr.bf16.mxu1 %v10626_v17 }
 0x2d4   :  { %7930 = vmatpush3.bf16.msra.mxu0 %v10677_v51 }
 0x2d5   :  { %7931 = vmatprep.subr.bf16.mxu0 %v10683_v52 }
 0x2d6   :  { %7952 = vmatpush3.bf16.msra.mxu1 %v10694_v60  ;;  %v7629_v47 = vpop.f32.mrb[60].mxu0 }
 0x2d7   :  { %v7630_v49 = vpop.f32.mrb[61].mxu0  ;;  %7953 = vmatprep.subr.bf16.mxu1 %v10700_v22 }
 0x2d8   :  { %v7651_v23 = vpop.f32.mrb[60].mxu1  ;;  %v7631_v30 = vadd.f32 %v7630_v49, %v7629_v47  ;;  %7932 = vmatpush3.bf16.msra.mxu0 %v10706_v48  ;;  %v7632_v39 = vpop.f32.mrb[62].mxu0  ;;  %v2857_v49 = vrot.slane %v10689_v56, %v9515_v35 }
 0x2d9   :  { %v7652_v40 = vpop.f32.mrb[61].mxu1  ;;  %7933 = vmatprep.subr.bf16.mxu0 %v10712_v63  ;;  %v7633_v31 = vpop.f32.mrb[63].mxu0 }
 0x2da   :  { %v2101_v32 = vadd.f32 %v10413_v62, %v7631_v30  ;;  %v7653_v4 = vadd.f32 %v7652_v40, %v7651_v23  ;;  %v7654_v12 = vpop.f32.mrb[62].mxu1  ;;  %7954 = vmatpush3.bf16.msra.mxu1 %v10719_v41  ;;  %v2979_v23 = vrot.slane %v2965_v53, %v9515_v35  ;;  %v2865_v30 = vcombine.high %v2857_v49, %v2857_v49  ;;  %v10841_v31 = vld.sshfl [vmem:[%s11852_s0 + $0x60] sm:$0x33 pattern:$0x75316420] }
 0x2db   :  { %v7655_v45 = vpop.f32.mrb[63].mxu1  ;;  %7955 = vmatprep.subr.bf16.mxu1 %v10727_v33 }
 0x2dc   :  { %v10805_v47 = vadd.f32 %v7653_v4, %v2101_v32  ;;  %7934 = vmatpush3.bf16.msra.mxu0 %v10735_v37  ;;  %v2981_v39 = vcombine.high %v2979_v23, %v2979_v23 }
 0x2dd   :  { %7935 = vmatprep.subr.bf16.mxu0 %v10741_v43 }
 0x2de   :  { %7956 = vmatpush3.bf16.msra.mxu1 %v10749_v7 }
 0x2df   :  { %7957 = vmatprep.subr.bf16.mxu1 %v10756_v16 }
 0x2e0   :  { %7936 = vmatpush3.bf16.msra.mxu0 %v10762_v29 }
 0x2e1   :  { %7965 = vmatprep.subr.bf16.mxu0 %v10523_v50 }
 0x2e2   :  { %7958 = vmatpush3.bf16.msra.mxu1 %v10769_v19 }
 0x2e3   :  { %2904 = vmatmul.mubr.bf16.vlgmr.msra.gmra.mrb[88].mxu0 %v2857_v49  ;;  %7987 = vmatprep.subr.bf16.mxu1 %v10530_v5 }
 0x2e4   :  { %7966 = vmatpush3.bf16.msra.mxu0 %v10536_v26  ;;  %3018 = vmatprep.mubr.bf16.mxu0 %v2979_v23 }
 0x2e5   :  { %2944 = vmatmul.mubr.bf16.vlgmr.msra.gmra.mrb[88].mxu1 %v2865_v30  ;;  %7967 = vmatprep.subr.bf16.mxu0 %v10542_v10 }
 0x2e6   :  { %7988 = vmatpush3.bf16.msra.mxu1 %v10548_v34  ;;  %3058 = vmatprep.mubr.bf16.mxu1 %v2981_v39  ;;  %v3080_v39 = vcombine.high %v10841_v31, %v10841_v31 }
 0x2e7   :  { %7989 = vmatprep.subr.bf16.mxu1 %v10554_v54 }
 0x2e8   :  { %7968 = vmatpush3.bf16.msra.mxu0 %v10560_v3 }
 0x2e9   :  { %7969 = vmatprep.subr.bf16.mxu0 %v10566_v6 }
 0x2ea   :  { %7990 = vmatpush3.bf16.msra.mxu1 %v10572_v9 }
 0x2eb   :  { %7991 = vmatprep.subr.bf16.mxu1 %v10578_v11 }
 0x2ec   :  { %7970 = vmatpush3.bf16.msra.mxu0 %v10584_v14 }
 0x2ed   :  { %7971 = vmatprep.subr.bf16.mxu0 %v10590_v1 }
 0x2ee   :  { %7992 = vmatpush3.bf16.msra.mxu1 %v10596_v15 }
 0x2ef   :  { %7993 = vmatprep.subr.bf16.mxu1 %v10602_v55 }
 0x2f0   :  { %7972 = vmatpush3.bf16.msra.mxu0 %v10608_v21 }
 0x2f1   :  { %7973 = vmatprep.subr.bf16.mxu0 %v10614_v25 }
 0x2f2   :  { %7994 = vmatpush3.bf16.msra.mxu1 %v10620_v2 }
 0x2f3   :  { %7995 = vmatprep.subr.bf16.mxu1 %v10626_v17 }
 0x2f4   :  { %7974 = vmatpush3.bf16.msra.mxu0 %v10677_v51 }
 0x2f5   :  { %7975 = vmatprep.subr.bf16.mxu0 %v10683_v52 }
 0x2f6   :  { %7996 = vmatpush3.bf16.msra.mxu1 %v10694_v60  ;;  %v7673_v56 = vpop.f32.mrb[64].mxu0 }
 0x2f7   :  { %v7674_v40 = vpop.f32.mrb[65].mxu0  ;;  %7997 = vmatprep.subr.bf16.mxu1 %v10700_v22 }
 0x2f8   :  { %v7695_v32 = vpop.f32.mrb[64].mxu1  ;;  %v7675_v4 = vadd.f32 %v7674_v40, %v7673_v56  ;;  %7976 = vmatpush3.bf16.msra.mxu0 %v10706_v48  ;;  %v7676_v12 = vpop.f32.mrb[66].mxu0  ;;  %v2972_v40 = vrot.slane %v10796_v28, %v9515_v35 }
 0x2f9   :  { %v7696_v53 = vpop.f32.mrb[65].mxu1  ;;  %7977 = vmatprep.subr.bf16.mxu0 %v10712_v63  ;;  %v7677_v45 = vpop.f32.mrb[67].mxu0 }
 0x2fa   :  { %v2216_v49 = vadd.f32 %v10413_v62, %v7675_v4  ;;  %v7697_v23 = vadd.f32 %v7696_v53, %v7695_v32  ;;  %v7698_v30 = vpop.f32.mrb[66].mxu1  ;;  %7998 = vmatpush3.bf16.msra.mxu1 %v10719_v41  ;;  %v3094_v32 = vrot.slane %v3080_v39, %v9515_v35 }
 0x2fb   :  { %v7699_v24 = vpop.f32.mrb[67].mxu1  ;;  %7999 = vmatprep.subr.bf16.mxu1 %v10727_v33 }
 0x2fc   :  { %v10850_v56 = vadd.f32 %v7697_v23, %v2216_v49  ;;  %7978 = vmatpush3.bf16.msra.mxu0 %v10735_v37  ;;  %v2980_v24 = vcombine.high %v2972_v40, %v2972_v40  ;;  %v3096_v4 = vcombine.high %v3094_v32, %v3094_v32  ;;  %v10961_v23 = vld [vmem:[%s11854_s4 + $0x20] sm:$0xff]  }
 0x2fd   :  { %7979 = vmatprep.subr.bf16.mxu0 %v10741_v43 }
 0x2fe   :  { %8000 = vmatpush3.bf16.msra.mxu1 %v10749_v7 }
 0x2ff   :  { %8001 = vmatprep.subr.bf16.mxu1 %v10756_v16 }
 0x300   :  { %7980 = vmatpush3.bf16.msra.mxu0 %v10762_v29 }
 0x301   :  { %8009 = vmatprep.subr.bf16.mxu0 %v10523_v50 }
 0x302   :  { %8002 = vmatpush3.bf16.msra.mxu1 %v10769_v19 }
 0x303   :  { %3019 = vmatmul.mubr.bf16.vlgmr.msra.gmra.mrb[92].mxu0 %v2972_v40  ;;  %8031 = vmatprep.subr.bf16.mxu1 %v10530_v5  ;;  %v10984_v40 = vld [vmem:[%s11854_s4 + $0x30] sm:$0xff]  }
 0x304   :  { %8010 = vmatpush3.bf16.msra.mxu0 %v10536_v26  ;;  %3133 = vmatprep.mubr.bf16.mxu0 %v3094_v32 }
 0x305   :  { %3059 = vmatmul.mubr.bf16.vlgmr.msra.gmra.mrb[92].mxu1 %v2980_v24  ;;  %8011 = vmatprep.subr.bf16.mxu0 %v10542_v10  ;;  %v10994_v24 = vld [vmem:[%s11854_s4 + $0x38] sm:$0xff]  }
 0x306   :  { %8032 = vmatpush3.bf16.msra.mxu1 %v10548_v34  ;;  %3173 = vmatprep.mubr.bf16.mxu1 %v3096_v4 }
 0x307   :  { %8033 = vmatprep.subr.bf16.mxu1 %v10554_v54 }
 0x308   :  { %8012 = vmatpush3.bf16.msra.mxu0 %v10560_v3 }
 0x309   :  { %8013 = vmatprep.subr.bf16.mxu0 %v10566_v6 }
 0x30a   :  { %8034 = vmatpush3.bf16.msra.mxu1 %v10572_v9 }
 0x30b   :  { %8035 = vmatprep.subr.bf16.mxu1 %v10578_v11 }
 0x30c   :  { %8014 = vmatpush3.bf16.msra.mxu0 %v10584_v14 }
 0x30d   :  { %8015 = vmatprep.subr.bf16.mxu0 %v10590_v1 }
 0x30e   :  { %8036 = vmatpush3.bf16.msra.mxu1 %v10596_v15  ;;  %v3087_v15 = vrot.slane %v10841_v31, %v9515_v35 }
 0x30f   :  { %8037 = vmatprep.subr.bf16.mxu1 %v10602_v55  ;;  %v3187_v55 = vld [vmem:[%s11855_s7] sm:$0xf] }
 0x310   :  { %8016 = vmatpush3.bf16.msra.mxu0 %v10608_v21  ;;  %v3095_v21 = vcombine.high %v3087_v15, %v3087_v15  ;;  %v3201_v35 = vsel %vm3199_vm0, %v3187_v55, 0  ;;  %v11023_v55 = vld [vmem:[%s11854_s4 + $0x48] sm:$0xff]  }
 0x311   :  { %8017 = vmatprep.subr.bf16.mxu0 %v10614_v25  ;;  %v11873_v25 = vmov 0.0  }
 0x312   :  { %8038 = vmatpush3.bf16.msra.mxu1 %v10620_v2  ;;  %v3185_v2 = vld [vmem:[%s11856_s1] sm:$0x3] }
 0x313   :  { %8039 = vmatprep.subr.bf16.mxu1 %v10626_v17  ;;  %v10912_v17 = vpack.c.bf16 %v3185_v2, %v3185_v2 }
 0x314   :  { %8018 = vmatpush3.bf16.msra.mxu0 %v10677_v51  ;;  %v10917_v51 = vld [vmem:[%s11854_s4] sm:$0xff]  }
 0x315   :  { %8019 = vmatprep.subr.bf16.mxu0 %v10683_v52  ;;  %11878 = vst [vmem:[#allocation5_spill] sm:$0xff] %v10912_v17  ;;  %v422_v52 = vmul.f32 0.01, %v9805_v38 }
 0x316   :  { %8040 = vmatpush3.bf16.msra.mxu1 %v10694_v60  ;;  %v7717_v50 = vpop.f32.mrb[68].mxu0  ;;  %v10927_v60 = vld [vmem:[%s11854_s4 + $0x8] sm:$0xff]  }
 0x317   :  { %v7718_v5 = vpop.f32.mrb[69].mxu0  ;;  %8041 = vmatprep.subr.bf16.mxu1 %v10700_v22  ;;  %v423_v22 = vsel %vm421_vm3, %v9805_v38, %v422_v52  ;;  %v10945_v38 = vld [vmem:[%s11854_s4 + $0x18] sm:$0xff]   ;;  %vm2146_vm3 = vcmp.ge.f32.partialorder %v10805_v47, 0.0 }
 0x318   :  { %v7739_v26 = vpop.f32.mrb[68].mxu1  ;;  %v7719_v10 = vadd.f32 %v7718_v5, %v7717_v50  ;;  %8020 = vmatpush3.bf16.msra.mxu0 %v10706_v48  ;;  %v7720_v34 = vpop.f32.mrb[70].mxu0  ;;  %v10937_v48 = vld [vmem:[%s11854_s4 + $0x10] sm:$0xff]   ;;  %v11007_v5 = vld [vmem:[%s11854_s4 + $0x40] sm:$0xff]  }
 0x319   :  { %v7740_v54 = vpop.f32.mrb[69].mxu1  ;;  %8021 = vmatprep.subr.bf16.mxu0 %v10712_v63  ;;  %v7721_v3 = vpop.f32.mrb[71].mxu0  ;;  %v424_v63 = vpack.c.bf16 %v423_v22, %v423_v22  ;;  %v11038_v22 = vld [vmem:[%s11854_s4 + $0x50] sm:$0xff]  }
 0x31a   :  { %v2331_v6 = vadd.f32 %v10413_v62, %v7719_v10  ;;  %v7741_v9 = vadd.f32 %v7740_v54, %v7739_v26  ;;  %v7742_v11 = vpop.f32.mrb[70].mxu1  ;;  %8042 = vmatpush3.bf16.msra.mxu1 %v10719_v41 }
 0x31b   :  { %v7743_v14 = vpop.f32.mrb[71].mxu1  ;;  %8043 = vmatprep.subr.bf16.mxu1 %v10727_v33 }
 0x31c   :  { %v10888_v1 = vadd.f32 %v7741_v9, %v2331_v6  ;;  %8022 = vmatpush3.bf16.msra.mxu0 %v10735_v37  ;;  %v537_v37 = vmul.f32 0.01, %v9850_v58 }
 0x31d   :  { %8023 = vmatprep.subr.bf16.mxu0 %v10741_v43 }
 0x31e   :  { %8044 = vmatpush3.bf16.msra.mxu1 %v10749_v7  ;;  %v538_v45 = vsel %vm536_vm5, %v9850_v58, %v537_v37  ;;  %v652_v58 = vmul.f32 0.01, %v9895_v13  ;;  %v11061_v37 = vld [vmem:[%s11854_s4 + $0x60] sm:$0xff]   ;;  %vm2261_vm5 = vcmp.ge.f32.partialorder %v10850_v56, 0.0 }
 0x31f   :  { %8045 = vmatprep.subr.bf16.mxu1 %v10756_v16  ;;  %v10963_v30 = vpack.c.bf16 %v538_v45, %v538_v45 }
 0x320   :  { %8024 = vmatpush3.bf16.msra.mxu0 %v10762_v29  ;;  %v653_v39 = vsel %vm651_vm6, %v9895_v13, %v652_v58  ;;  %v767_v13 = vmul.f32 0.01, %v10030_v0  ;;  %vm2376_vm6 = vcmp.ge.f32.partialorder %v10888_v1, 0.0 }
 0x321   :  { %8401 = vmatprep.subr.bf16.mxu0 %v11873_v25  ;;  %v10986_v32 = vpack.c.bf16 %v653_v39, %v653_v39 }
 0x322   :  { %8046 = vmatpush3.bf16.msra.mxu1 %v10769_v19  ;;  %v768_v4 = vsel %vm766_vm7, %v10030_v0, %v767_v13  ;;  %v11016_v0 = vld [vmem:[%s11853_s3] ss:$0 sm:$0xff] }
 0x323   :  { %3134 = vmatmul.mubr.bf16.vlgmr.msra.gmra.mrb[96].mxu0 %v3087_v15  ;;  %8267 = vmatprep.subr.bf16.mxu1 %v11873_v25  ;;  %v11009_v26 = vpack.c.bf16 %v768_v4, %v768_v4  ;;  %v11085_v4 = vld [vmem:[%s11854_s4 + $0x70] sm:$0xff]  }
 0x324   :  { %8405 = vmatprep.mubr.msk.bf16.mxu0 %vm9260_vm1, %v11873_v25 }
 0x325   :  { %3174 = vmatmul.mubr.bf16.vlgmr.msra.gmra.mrb[96].mxu1 %v3095_v21  ;;  %11879 = vst [vmem:[#allocation6_spill] sm:$0xff] %v11009_v26 }
 0x326   :  { %8268 = vmatpush3.bf16.msra.mxu1 %v3201_v35  ;;  %8269 = vmatprep.mubr.msk.bf16.mxu1 %vm9260_vm1, %v11873_v25  ;;  %v997_v35 = vmul.f32 0.01, %v10190_v8 }
 0x327   :  { %8273 = vmatprep.subr.bf16.mxu1 %v11873_v25 }
 0x328   :  { %v998_v52 = vsel %vm996_vm8, %v10190_v8, %v997_v35  ;;  %v1112_v8 = vmul.f32 0.01, %v10235_v36 }
 0x32d   :  { %8270 = vmatmul.mubr.msk.bf16.vlgmr.msra.gmra.mrb[100].mxu1 %vm3195_vm2, %v10912_v17 }
 0x32e   :  { %8274 = vmatpush3.bf16.msra.mxu1 %v10917_v51  ;;  %8277 = vmatprep.mubr.msk.bf16.mxu1 %vm9260_vm1, %v11873_v25 }
 0x32f   :  { %8275 = vmatprep.subr.bf16.mxu1 %v11873_v25 }
 0x332   :  { %8276 = vmatpush3.bf16.msra.mxu1 %v10927_v60 }
 0x333   :  { %8281 = vmatprep.subr.bf16.mxu1 %v11873_v25 }
 0x335   :  { %8278 = vmatmul.mubr.msk.bf16.vlgmr.msra.gmra.mrb[104].mxu1 %vm3260_vm4, %v424_v63  ;;  %v11040_v63 = vpack.c.bf16 %v998_v52, %v998_v52  ;;  %v11143_v52 = vld [vmem:[%s11854_s4 + $0x98] sm:$0xff]  }
 0x336   :  { %8282 = vmatpush3.bf16.msra.mxu1 %v10937_v48  ;;  %v7761_v41 = vpop.f32.mrb[72].mxu0  ;;  %8285 = vmatprep.mubr.msk.bf16.mxu1 %vm9260_vm1, %v11873_v25 }
 0x337   :  { %v7762_v33 = vpop.f32.mrb[73].mxu0  ;;  %8283 = vmatprep.subr.bf16.mxu1 %v11873_v25 }
 0x338   :  { %v7783_v43 = vpop.f32.mrb[72].mxu1  ;;  %v7763_v7 = vadd.f32 %v7762_v33, %v7761_v41  ;;  %v7764_v16 = vpop.f32.mrb[74].mxu0  ;;  %v11048_v41 = vld [vmem:[%s11854_s4 + $0x58] sm:$0xff]   ;;  %v1113_v33 = vsel %vm1111_vm9, %v10235_v36, %v1112_v8  ;;  %v1227_v36 = vmul.f32 0.01, %v10280_v27 }
 0x339   :  { %v7784_v29 = vpop.f32.mrb[73].mxu1  ;;  %v7765_v19 = vpop.f32.mrb[75].mxu0  ;;  %v1687_v8 = vmul.f32 0.01, %v10465_v20 }
 0x33a   :  { %v2446_v28 = vadd.f32 %v10413_v62, %v7763_v7  ;;  %v7785_v31 = vadd.f32 %v7784_v29, %v7783_v43  ;;  %v7786_v12 = vpop.f32.mrb[74].mxu1  ;;  %8284 = vmatpush3.bf16.msra.mxu1 %v10945_v38  ;;  %v10971_v62 = vld [vmem:[%s11854_s4 + $0x28] sm:$0xff]   ;;  %v11063_v43 = vpack.c.bf16 %v1113_v33, %v1113_v33  ;;  %v1228_v19 = vsel %vm1226_vm10, %v10280_v27, %v1227_v36  ;;  %v11097_v27 = vld [vmem:[%s11854_s4 + $0x78] sm:$0xff]  }
 0x33b   :  { %v7787_v53 = vpop.f32.mrb[75].mxu1  ;;  %8289 = vmatprep.subr.bf16.mxu1 %v11873_v25  ;;  %v11071_v7 = vld [vmem:[%s11854_s4 + $0x68] sm:$0xff]  }
 0x33c   :  { %v10956_v49 = vadd.f32 %v7785_v31, %v2446_v28 }
 0x33e   :  { %vm2491_vm7 = vcmp.ge.f32.partialorder %v10956_v49, 0.0 }
 0x341   :  { %8286 = vmatmul.mubr.msk.bf16.vlgmr.msra.gmra.mrb[104].mxu1 %vm3260_vm4, %v10963_v30 }
 0x342   :  { %8290 = vmatpush3.bf16.msra.mxu1 %v10961_v23  ;;  %8293 = vmatprep.mubr.msk.bf16.mxu1 %vm9260_vm1, %v11873_v25 }
 0x343   :  { %8291 = vmatprep.subr.bf16.mxu1 %v11873_v25 }
 0x346   :  { %8292 = vmatpush3.bf16.msra.mxu1 %v10971_v62 }
 0x347   :  { %8297 = vmatprep.subr.bf16.mxu1 %v11873_v25 }
 0x34d   :  { %8294 = vmatmul.mubr.msk.bf16.vlgmr.msra.gmra.mrb[104].mxu1 %vm3260_vm4, %v10986_v32 }
 0x34e   :  { %8298 = vmatpush3.bf16.msra.mxu1 %v10984_v40  ;;  %8301 = vmatprep.mubr.msk.bf16.mxu1 %vm9260_vm1, %v11873_v25 }
 0x34f   :  { %8299 = vmatprep.subr.bf16.mxu1 %v11873_v25 }
 0x352   :  { %8300 = vmatpush3.bf16.msra.mxu1 %v10994_v24 }
 0x353   :  { %8305 = vmatprep.subr.bf16.mxu1 %v11873_v25 }
 0x356   :  { %v7805_v50 = vpop.f32.mrb[76].mxu0 }
 0x357   :  { %v7806_v10 = vpop.f32.mrb[77].mxu0 }
 0x358   :  { %v7827_v34 = vpop.f32.mrb[76].mxu1  ;;  %v7807_v54 = vadd.f32 %v7806_v10, %v7805_v50  ;;  %v7808_v3 = vpop.f32.mrb[78].mxu0  ;;  %v11087_v50 = vpack.c.bf16 %v1228_v19, %v1228_v19 }
 0x359   :  { %v7828_v6 = vpop.f32.mrb[77].mxu1  ;;  %8302 = vmatmul.mubr.msk.bf16.vlgmr.msra.gmra.mrb[104].mxu1 %vm3260_vm4, %v11009_v26  ;;  %v7809_v9 = vpop.f32.mrb[79].mxu0 }
 0x35a   :  { %v2561_v11 = vadd.f32 %v11016_v0, %v7807_v54  ;;  %v7829_v14 = vadd.f32 %v7828_v6, %v7827_v34  ;;  %v7830_v15 = vpop.f32.mrb[78].mxu1  ;;  %8306 = vmatpush3.bf16.msra.mxu1 %v11007_v5  ;;  %8309 = vmatprep.mubr.msk.bf16.mxu1 %vm9260_vm1, %v11873_v25  ;;  %v1342_v54 = vmul.f32 0.01, %v10325_v61  ;;  %v11110_v6 = vld [vmem:[%s11854_s4 + $0x80] sm:$0xff]  }
 0x35b   :  { %v7831_v21 = vpop.f32.mrb[79].mxu1  ;;  %8307 = vmatprep.subr.bf16.mxu1 %v11873_v25  ;;  %v11133_v15 = vld [vmem:[%s11854_s4 + $0x90] sm:$0xff]  }
 0x35c   :  { %v11029_v2 = vadd.f32 %v7829_v14, %v2561_v11  ;;  %v1343_v3 = vsel %vm1341_vm11, %v10325_v61, %v1342_v54  ;;  %v11120_v11 = vld [vmem:[%s11854_s4 + $0x88] sm:$0xff]   ;;  %v1572_v61 = vmul.f32 0.01, %v10420_v59 }
 0x35d   :  { %v11112_v9 = vpack.c.bf16 %v1343_v3, %v1343_v3  ;;  %v11182_v3 = vld [vmem:[%s11854_s4 + $0xb0] sm:$0xff]  }
 0x35e   :  { %11880 = vst [vmem:[#allocation7_spill] sm:$0xff] %v11029_v2  ;;  %8308 = vmatpush3.bf16.msra.mxu1 %v11023_v55  ;;  %v1573_v14 = vsel %vm1571_vm12, %v10420_v59, %v1572_v61 }
 0x35f   :  { %8313 = vmatprep.subr.bf16.mxu1 %v11873_v25  ;;  %v11135_v21 = vpack.c.bf16 %v1573_v14, %v1573_v14  ;;  %v11192_v14 = vld [vmem:[%s11854_s4 + $0xb8] sm:$0xff]  }
 0x365   :  { %8310 = vmatmul.mubr.msk.bf16.vlgmr.msra.gmra.mrb[104].mxu1 %vm3260_vm4, %v11040_v63 }
 0x366   :  { %8314 = vmatpush3.bf16.msra.mxu1 %v11038_v22  ;;  %8317 = vmatprep.mubr.msk.bf16.mxu1 %vm9260_vm1, %v11873_v25 }
 0x367   :  { %8315 = vmatprep.subr.bf16.mxu1 %v11873_v25 }
 0x36a   :  { %8316 = vmatpush3.bf16.msra.mxu1 %v11048_v41 }
 0x36b   :  { %8321 = vmatprep.subr.bf16.mxu1 %v11873_v25 }
 0x371   :  { %8318 = vmatmul.mubr.msk.bf16.vlgmr.msra.gmra.mrb[104].mxu1 %vm3260_vm4, %v11063_v43 }
 0x372   :  { %8322 = vmatpush3.bf16.msra.mxu1 %v11061_v37  ;;  %8325 = vmatprep.mubr.msk.bf16.mxu1 %vm9260_vm1, %v11873_v25 }
 0x373   :  { %8323 = vmatprep.subr.bf16.mxu1 %v11873_v25 }
 0x376   :  { %v7849_v16 = vpop.f32.mrb[80].mxu0  ;;  %8324 = vmatpush3.bf16.msra.mxu1 %v11071_v7 }
 0x377   :  { %v7850_v29 = vpop.f32.mrb[81].mxu0  ;;  %8329 = vmatprep.subr.bf16.mxu1 %v11873_v25 }
 0x378   :  { %v7871_v28 = vpop.f32.mrb[80].mxu1  ;;  %v7851_v31 = vadd.f32 %v7850_v29, %v7849_v16  ;;  %v7852_v12 = vpop.f32.mrb[82].mxu0 }
 0x379   :  { %v7872_v53 = vpop.f32.mrb[81].mxu1  ;;  %v7853_v45 = vpop.f32.mrb[83].mxu0 }
 0x37a   :  { %v2676_v58 = vadd.f32 %v11016_v0, %v7851_v31  ;;  %v7873_v39 = vadd.f32 %v7872_v53, %v7871_v28  ;;  %v7874_v13 = vpop.f32.mrb[82].mxu1  ;;  %v1688_v45 = vsel %vm1686_vm13, %v10465_v20, %v1687_v8  ;;  %v1802_v20 = vmul.f32 0.01, %v10510_v46  ;;  %v11205_v8 = vld [vmem:[%s11854_s4 + $0xc0] sm:$0xff]  }
 0x37b   :  { %v7875_v10 = vpop.f32.mrb[83].mxu1  ;;  %v11161_v13 = vpack.c.bf16 %v1688_v45, %v1688_v45  ;;  %v11216_v45 = vld [vmem:[%s11854_s4 + $0xc8] sm:$0xff]  }
 0x37c   :  { %v11089_v34 = vadd.f32 %v7873_v39, %v2676_v58  ;;  %v11159_v39 = vld [vmem:[%s11854_s4 + $0xa0] sm:$0xff]   ;;  %v11169_v10 = vld [vmem:[%s11854_s4 + $0xa8] sm:$0xff]   ;;  %v1803_v54 = vsel %vm1801_vm14, %v10510_v46, %v1802_v20  ;;  %v1917_v46 = vmul.f32 0.01, %v10645_v44 }
 0x37d   :  { %8326 = vmatmul.mubr.msk.bf16.vlgmr.msra.gmra.mrb[104].mxu1 %vm3260_vm4, %v11087_v50  ;;  %v11184_v61 = vpack.c.bf16 %v1803_v54, %v1803_v54  ;;  %v2147_v54 = vmul.f32 0.01, %v10805_v47 }
 0x37e   :  { %8330 = vmatpush3.bf16.msra.mxu1 %v11085_v4  ;;  %8333 = vmatprep.mubr.msk.bf16.mxu1 %vm9260_vm1, %v11873_v25  ;;  %vm2721_vm8 = vcmp.ge.f32.partialorder %v11089_v34, 0.0 }
 0x37f   :  { %8331 = vmatprep.subr.bf16.mxu1 %v11873_v25 }
 0x382   :  { %8332 = vmatpush3.bf16.msra.mxu1 %v11097_v27 }
 0x383   :  { %8337 = vmatprep.subr.bf16.mxu1 %v11873_v25 }
 0x389   :  { %8334 = vmatmul.mubr.msk.bf16.vlgmr.msra.gmra.mrb[104].mxu1 %vm3260_vm4, %v11112_v9 }
 0x38a   :  { %8338 = vmatpush3.bf16.msra.mxu1 %v11110_v6  ;;  %8341 = vmatprep.mubr.msk.bf16.mxu1 %vm9260_vm1, %v11873_v25 }
 0x38b   :  { %8339 = vmatprep.subr.bf16.mxu1 %v11873_v25 }
 0x38e   :  { %8340 = vmatpush3.bf16.msra.mxu1 %v11120_v11 }
 0x38f   :  { %8345 = vmatprep.subr.bf16.mxu1 %v11873_v25 }
 0x395   :  { %8342 = vmatmul.mubr.msk.bf16.vlgmr.msra.gmra.mrb[104].mxu1 %vm3260_vm4, %v11135_v21 }
 0x396   :  { %8346 = vmatpush3.bf16.msra.mxu1 %v11133_v15  ;;  %v7893_v35 = vpop.f32.mrb[84].mxu0  ;;  %8349 = vmatprep.mubr.msk.bf16.mxu1 %vm9260_vm1, %v11873_v25 }
 0x397   :  { %v7894_v59 = vpop.f32.mrb[85].mxu0  ;;  %8347 = vmatprep.subr.bf16.mxu1 %v11873_v25 }
 0x398   :  { %v7915_v33 = vpop.f32.mrb[84].mxu1  ;;  %v7895_v36 = vadd.f32 %v7894_v59, %v7893_v35  ;;  %v7896_v16 = vpop.f32.mrb[86].mxu0  ;;  %v1918_v35 = vsel %vm1916_vm15, %v10645_v44, %v1917_v46 }
 0x399   :  { %v7916_v29 = vpop.f32.mrb[85].mxu1  ;;  %v7897_v19 = vpop.f32.mrb[87].mxu0 }
 0x39a   :  { %v2791_v28 = vadd.f32 %v11016_v0, %v7895_v36  ;;  %v7917_v31 = vadd.f32 %v7916_v29, %v7915_v33  ;;  %v7918_v12 = vpop.f32.mrb[86].mxu1  ;;  %8348 = vmatpush3.bf16.msra.mxu1 %v11143_v52  ;;  %v11207_v33 = vpack.c.bf16 %v1918_v35, %v1918_v35  ;;  %v2148_v35 = vsel %vm2146_vm3, %v10805_v47, %v2147_v54 }
 0x39b   :  { %v7919_v53 = vpop.f32.mrb[87].mxu1  ;;  %8353 = vmatprep.subr.bf16.mxu1 %v11873_v25  ;;  %v2262_v47 = vmul.f32 0.01, %v10850_v56 }
 0x39c   :  { %v11154_v58 = vadd.f32 %v7917_v31, %v2791_v28 }
 0x39e   :  { %vm2836_vm9 = vcmp.ge.f32.partialorder %v11154_v58, 0.0 }
 0x3a1   :  { %8350 = vmatmul.mubr.msk.bf16.vlgmr.msra.gmra.mrb[104].mxu1 %vm3260_vm4, %v11161_v13 }
 0x3a2   :  { %8354 = vmatpush3.bf16.msra.mxu1 %v11159_v39  ;;  %8357 = vmatprep.mubr.msk.bf16.mxu1 %vm9260_vm1, %v11873_v25 }
 0x3a3   :  { %8355 = vmatprep.subr.bf16.mxu1 %v11873_v25 }
 0x3a6   :  { %8356 = vmatpush3.bf16.msra.mxu1 %v11169_v10 }
 0x3a7   :  { %8361 = vmatprep.subr.bf16.mxu1 %v11873_v25 }
 0x3ad   :  { %8358 = vmatmul.mubr.msk.bf16.vlgmr.msra.gmra.mrb[104].mxu1 %vm3260_vm4, %v11184_v61 }
 0x3ae   :  { %8362 = vmatpush3.bf16.msra.mxu1 %v11182_v3  ;;  %8365 = vmatprep.mubr.msk.bf16.mxu1 %vm9260_vm1, %v11873_v25 }
 0x3af   :  { %8363 = vmatprep.subr.bf16.mxu1 %v11873_v25 }
 0x3b2   :  { %8364 = vmatpush3.bf16.msra.mxu1 %v11192_v14 }
 0x3b3   :  { %8369 = vmatprep.subr.bf16.mxu1 %v11873_v25 }
 0x3b6   :  { %v7937_v59 = vpop.f32.mrb[88].mxu0 }
 0x3b7   :  { %v7938_v36 = vpop.f32.mrb[89].mxu0 }
 0x3b8   :  { %v7959_v16 = vpop.f32.mrb[88].mxu1  ;;  %v7939_v29 = vadd.f32 %v7938_v36, %v7937_v59  ;;  %v7940_v19 = vpop.f32.mrb[90].mxu0  ;;  %v11231_v59 = vld [vmem:[%s11854_s4 + $0xd0] sm:$0xff]   ;;  %v11233_v36 = vpack.c.bf16 %v2148_v35, %v2148_v35 }
 0x3b9   :  { %v7960_v28 = vpop.f32.mrb[89].mxu1  ;;  %8366 = vmatmul.mubr.msk.bf16.vlgmr.msra.gmra.mrb[104].mxu1 %vm3260_vm4, %v11207_v33  ;;  %v7941_v31 = vpop.f32.mrb[91].mxu0  ;;  %v11254_v19 = vld [vmem:[%s11854_s4 + $0xe0] sm:$0xff]  }
 0x3ba   :  { %v2906_v12 = vadd.f32 %v11016_v0, %v7939_v29  ;;  %v7961_v44 = vadd.f32 %v7960_v28, %v7959_v16  ;;  %v7962_v53 = vpop.f32.mrb[90].mxu1  ;;  %8370 = vmatpush3.bf16.msra.mxu1 %v11205_v8  ;;  %8373 = vmatprep.mubr.msk.bf16.mxu1 %vm9260_vm1, %v11873_v25  ;;  %v11241_v16 = vld [vmem:[%s11854_s4 + $0xd8] sm:$0xff]   ;;  %v2263_v29 = vsel %vm2261_vm5, %v10850_v56, %v2262_v47  ;;  %v11264_v31 = vld [vmem:[%s11854_s4 + $0xe8] sm:$0xff]   ;;  %v2377_v56 = vmul.f32 0.01, %v10888_v1 }
 0x3bb   :  { %v7963_v20 = vpop.f32.mrb[91].mxu1  ;;  %8371 = vmatprep.subr.bf16.mxu1 %v11873_v25  ;;  %v11256_v28 = vpack.c.bf16 %v2263_v29, %v2263_v29 }
 0x3bc   :  { %v11222_v46 = vadd.f32 %v7961_v44, %v2906_v12  ;;  %v2378_v53 = vsel %vm2376_vm6, %v10888_v1, %v2377_v56  ;;  %v11290_v1 = vld [vmem:[%s11854_s4 + $0xf8] sm:$0xff]   ;;  %v2492_v56 = vmul.f32 0.01, %v10956_v49 }
 0x3bd   :  { %v11280_v57 = vpack.c.bf16 %v2378_v53, %v2378_v53 }
 0x3be   :  { %8372 = vmatpush3.bf16.msra.mxu1 %v11216_v45  ;;  %vm2951_vm10 = vcmp.ge.f32.partialorder %v11222_v46, 0.0 }
 0x3bf   :  { %8377 = vmatprep.subr.bf16.mxu1 %v11873_v25 }
 0x3c5   :  { %8374 = vmatmul.mubr.msk.bf16.vlgmr.msra.gmra.mrb[104].mxu1 %vm3260_vm4, %v11233_v36 }
 0x3c6   :  { %8378 = vmatpush3.bf16.msra.mxu1 %v11231_v59  ;;  %8381 = vmatprep.mubr.msk.bf16.mxu1 %vm9260_vm1, %v11873_v25 }
 0x3c7   :  { %8379 = vmatprep.subr.bf16.mxu1 %v11873_v25 }
 0x3ca   :  { %8380 = vmatpush3.bf16.msra.mxu1 %v11241_v16 }
 0x3cb   :  { %8385 = vmatprep.subr.bf16.mxu1 %v11873_v25 }
 0x3d1   :  { %8382 = vmatmul.mubr.msk.bf16.vlgmr.msra.gmra.mrb[104].mxu1 %vm3260_vm4, %v11256_v28 }
 0x3d2   :  { %8386 = vmatpush3.bf16.msra.mxu1 %v11254_v19  ;;  %8389 = vmatprep.mubr.msk.bf16.mxu1 %vm9260_vm1, %v11873_v25 }
 0x3d3   :  { %8387 = vmatprep.subr.bf16.mxu1 %v11873_v25 }
 0x3d6   :  { %v7981_v12 = vpop.f32.mrb[92].mxu0  ;;  %8388 = vmatpush3.bf16.msra.mxu1 %v11264_v31 }
 0x3d7   :  { %v7982_v44 = vpop.f32.mrb[93].mxu0  ;;  %8393 = vmatprep.subr.bf16.mxu1 %v11873_v25 }
 0x3d8   :  { %v8003_v20 = vpop.f32.mrb[92].mxu1  ;;  %v7983_v54 = vadd.f32 %v7982_v44, %v7981_v12  ;;  %v7984_v35 = vpop.f32.mrb[94].mxu0 }
 0x3d9   :  { %v8004_v47 = vpop.f32.mrb[93].mxu1  ;;  %v7985_v29 = vpop.f32.mrb[95].mxu0 }
 0x3da   :  { %v3021_v17 = vadd.f32 %v11016_v0, %v7983_v54  ;;  %v8005_v2 = vadd.f32 %v8004_v47, %v8003_v20  ;;  %v8006_v42 = vpop.f32.mrb[94].mxu1 }
 0x3db   :  { %v8007_v26 = vpop.f32.mrb[95].mxu1  ;;  %v11881_v42 = vmov 0.0  }
 0x3dc   :  { %v11282_v25 = vadd.f32 %v8005_v2, %v3021_v17  ;;  %v2493_v17 = vsel %vm2491_vm7, %v10956_v49, %v2492_v56 }
 0x3dd   :  { %8390 = vmatmul.mubr.msk.bf16.vlgmr.msra.gmra.mrb[104].mxu1 %vm3260_vm4, %v11280_v57  ;;  %v11300_v26 = vpack.c.bf16 %v2493_v17, %v2493_v17 }
 0x3de   :  { %8394 = vmatpush3.bf16.msra.mxu1 %v11278_v18  ;;  %8397 = vmatprep.mubr.msk.bf16.mxu1 %vm9260_vm1, %v11881_v42  ;;  %vm3066_vm11 = vcmp.ge.f32.partialorder %v11282_v25, 0.0 }
 0x3df   :  { %8395 = vmatprep.subr.bf16.mxu1 %v11881_v42 }
 0x3e2   :  { %8396 = vmatpush3.bf16.msra.mxu1 %v11290_v1 }
 0x3e3   :  { %8545 = vmatprep.subr.bf16.mxu1 %v11881_v42 }
 0x3e9   :  { %8398 = vmatmul.mubr.msk.bf16.vlgmr.msra.gmra.mrb[104].mxu1 %vm3260_vm4, %v11300_v26 }
 0x3ea   :  { %8546 = vmatpush3.bf16.msra.mxu1 %v10917_v51  ;;  %8549 = vmatprep.mubr.msk.bf16.mxu1 %vm9260_vm1, %v11881_v42 }
 0x3eb   :  { %8547 = vmatprep.subr.bf16.mxu1 %v11881_v42 }
 0x3ee   :  { %8548 = vmatpush3.bf16.msra.mxu1 %v10927_v60 }
 0x3ef   :  { %8553 = vmatprep.subr.bf16.mxu1 %v11881_v42 }
 0x3f1   :  { %8550 = vmatmul.mubr.msk.bf16.vlgmr.msra.gmra.mrb[108].mxu1 %vm3260_vm4, %v11040_v63 }
 0x3f2   :  { %8554 = vmatpush3.bf16.msra.mxu1 %v10937_v48  ;;  %8557 = vmatprep.mubr.msk.bf16.mxu1 %vm9260_vm1, %v11881_v42 }
 0x3f3   :  { %8555 = vmatprep.subr.bf16.mxu1 %v11881_v42 }
 0x3f6   :  { %v8025_v49 = vpop.f32.mrb[96].mxu0  ;;  %8556 = vmatpush3.bf16.msra.mxu1 %v10945_v38 }
 0x3f7   :  { %v8026_v2 = vpop.f32.mrb[97].mxu0  ;;  %8561 = vmatprep.subr.bf16.mxu1 %v11881_v42 }
 0x3f8   :  { %v8047_v12 = vpop.f32.mrb[96].mxu1  ;;  %v8027_v44 = vadd.f32 %v8026_v2, %v8025_v49  ;;  %v8028_v53 = vpop.f32.mrb[98].mxu0 }
 0x3f9   :  { %v8048_v20 = vpop.f32.mrb[97].mxu1  ;;  %v8029_v54 = vpop.f32.mrb[99].mxu0 }
 0x3fa   :  { %v3136_v63 = vadd.f32 %v11016_v0, %v8027_v44  ;;  %v8049_v35 = vadd.f32 %v8048_v20, %v8047_v12  ;;  %v8050_v47 = vpop.f32.mrb[98].mxu1  ;;  %v9165_v12 = vld [vmem:[%s11857_s6 + $0x8] sm:$0xff]   ;;  %v2837_v20 = vmul.f32 0.01, %v11154_v58 }
 0x3fb   :  { %v8051_v29 = vpop.f32.mrb[99].mxu1  ;;  %v3067_v47 = vmul.f32 0.01, %v11282_v25 }
 0x3fc   :  { %v11319_v56 = vadd.f32 %v8049_v35, %v3136_v63  ;;  %v2952_v63 = vmul.f32 0.01, %v11222_v46 }
 0x3fd   :  { %8558 = vmatmul.mubr.msk.bf16.vlgmr.msra.gmra.mrb[108].mxu1 %vm3260_vm4, %v11063_v43 }
 0x3fe   :  { %8562 = vmatpush3.bf16.msra.mxu1 %v10961_v23  ;;  %8565 = vmatprep.mubr.msk.bf16.mxu1 %vm9260_vm1, %v11881_v42  ;;  %vm3181_vm7 = vcmp.ge.f32.partialorder %v11319_v56, 0.0 }
 0x3ff   :  { %8563 = vmatprep.subr.bf16.mxu1 %v11881_v42 }
 0x400   :  { %v11327_v17 = vpop.f32.mrb[100].mxu1 }
 0x401   :  { %v8271_v49 = vpop.f32.mrb[101].mxu1 }
 0x402   :  { %v3240_v2 = vpop.f32.mrb[102].mxu1  ;;  %8564 = vmatpush3.bf16.msra.mxu1 %v10971_v62  ;;  %v11467_v49 = vld [vmem:[%s11858_s5] ss:$0 sm:$0xff] }
 0x403   :  { %v8272_v0 = vpop.f32.mrb[103].mxu1  ;;  %8569 = vmatprep.subr.bf16.mxu1 %v11881_v42 }
 0x409   :  { %8566 = vmatmul.mubr.msk.bf16.vlgmr.msra.gmra.mrb[108].mxu1 %vm3260_vm4, %v11087_v50 }
 0x40a   :  { %8570 = vmatpush3.bf16.msra.mxu1 %v10984_v40  ;;  %8573 = vmatprep.mubr.msk.bf16.mxu1 %vm9260_vm1, %v11881_v42 }
 0x40b   :  { %8571 = vmatprep.subr.bf16.mxu1 %v11881_v42 }
 0x40e   :  { %8572 = vmatpush3.bf16.msra.mxu1 %v10994_v24 }
 0x40f   :  { %8577 = vmatprep.subr.bf16.mxu1 %v11881_v42 }
 0x415   :  { %8574 = vmatmul.mubr.msk.bf16.vlgmr.msra.gmra.mrb[108].mxu1 %vm3260_vm4, %v11112_v9 }
 0x416   :  { %8578 = vmatpush3.bf16.msra.mxu1 %v11007_v5  ;;  %8581 = vmatprep.mubr.msk.bf16.mxu1 %vm9260_vm1, %v11881_v42 }
 0x417   :  { %8579 = vmatprep.subr.bf16.mxu1 %v11881_v42 }
 0x41a   :  { %8580 = vmatpush3.bf16.msra.mxu1 %v11023_v55 }
 0x41b   :  { %8585 = vmatprep.subr.bf16.mxu1 %v11881_v42 }
 0x421   :  { %8582 = vmatmul.mubr.msk.bf16.vlgmr.msra.gmra.mrb[108].mxu1 %vm3260_vm4, %v11135_v21  ;;  %v9164_v21 = vld [vmem:[%s11857_s6] sm:$0xff]  }
 0x422   :  { %8586 = vmatpush3.bf16.msra.mxu1 %v11038_v22  ;;  %8589 = vmatprep.mubr.msk.bf16.mxu1 %vm9260_vm1, %v11881_v42 }
 0x423   :  { %8587 = vmatprep.subr.bf16.mxu1 %v11881_v42  ;;  %8402 = vmatpush3.bf16.msra.mxu0 %v9164_v21 }
 0x424   :  { %8403 = vmatprep.subr.bf16.mxu0 %v11881_v42 }
 0x426   :  { %8588 = vmatpush3.bf16.msra.mxu1 %v11048_v41 }
 0x427   :  { %8593 = vmatprep.subr.bf16.mxu1 %v11881_v42  ;;  %8404 = vmatpush3.bf16.msra.mxu0 %v9165_v12 }
 0x428   :  { %8409 = vmatprep.subr.bf16.mxu0 %v11881_v42 }
 0x42d   :  { %8590 = vmatmul.mubr.msk.bf16.vlgmr.msra.gmra.mrb[108].mxu1 %vm3260_vm4, %v11161_v13 }
 0x42e   :  { %8594 = vmatpush3.bf16.msra.mxu1 %v11061_v37  ;;  %8597 = vmatprep.mubr.msk.bf16.mxu1 %vm9260_vm1, %v11881_v42 }
 0x42f   :  { %8595 = vmatprep.subr.bf16.mxu1 %v11881_v42 }
 0x432   :  { %8596 = vmatpush3.bf16.msra.mxu1 %v11071_v7 }
 0x433   :  { %8601 = vmatprep.subr.bf16.mxu1 %v11881_v42 }
 0x439   :  { %8598 = vmatmul.mubr.msk.bf16.vlgmr.msra.gmra.mrb[108].mxu1 %vm3260_vm4, %v11184_v61 }
 0x43a   :  { %8602 = vmatpush3.bf16.msra.mxu1 %v11085_v4  ;;  %8605 = vmatprep.mubr.msk.bf16.mxu1 %vm9260_vm1, %v11881_v42 }
 0x43b   :  { %8603 = vmatprep.subr.bf16.mxu1 %v11881_v42 }
 0x43e   :  { %8604 = vmatpush3.bf16.msra.mxu1 %v11097_v27 }
 0x43f   :  { %8609 = vmatprep.subr.bf16.mxu1 %v11881_v42 }
 0x445   :  { %8606 = vmatmul.mubr.msk.bf16.vlgmr.msra.gmra.mrb[108].mxu1 %vm3260_vm4, %v11207_v33 }
 0x446   :  { %8610 = vmatpush3.bf16.msra.mxu1 %v11110_v6  ;;  %8613 = vmatprep.mubr.msk.bf16.mxu1 %vm9260_vm1, %v11881_v42 }
 0x447   :  { %8611 = vmatprep.subr.bf16.mxu1 %v11881_v42 }
 0x44a   :  { %8612 = vmatpush3.bf16.msra.mxu1 %v11120_v11 }
 0x44b   :  { %8617 = vmatprep.subr.bf16.mxu1 %v11881_v42 }
 0x451   :  { %8614 = vmatmul.mubr.msk.bf16.vlgmr.msra.gmra.mrb[108].mxu1 %vm3260_vm4, %v11233_v36  ;;  %v2722_v36 = vmul.f32 0.01, %v11089_v34 }
 0x452   :  { %8618 = vmatpush3.bf16.msra.mxu1 %v11133_v15  ;;  %8621 = vmatprep.mubr.msk.bf16.mxu1 %vm9260_vm1, %v11881_v42 }
 0x453   :  { %8619 = vmatprep.subr.bf16.mxu1 %v11881_v42  ;;  %v2723_v44 = vsel %vm2721_vm8, %v11089_v34, %v2722_v36  ;;  %v2838_v34 = vsel %vm2836_vm9, %v11154_v58, %v2837_v20  ;;  %v2953_v58 = vsel %vm2951_vm10, %v11222_v46, %v2952_v63  ;;  %v3068_v46 = vsel %vm3066_vm11, %v11282_v25, %v3067_v47 }
 0x454   :  { %v2724_v53 = vpack.c.bf16 %v2723_v44, %v2723_v44  ;;  %v11432_v54 = vpack.c.bf16 %v2838_v34, %v2838_v34  ;;  %v11445_v35 = vpack.c.bf16 %v2953_v58, %v2953_v58  ;;  %v11458_v29 = vpack.c.bf16 %v3068_v46, %v3068_v46  ;;  %v9166_v46 = vld [vmem:[%s11857_s6 + $0x10] sm:$0xff]  }
 0x455   :  { %vm6673_vm9 = vcmask 25600  }
 0x456   :  { %8620 = vmatpush3.bf16.msra.mxu1 %v11143_v52 }
 0x457   :  { %8625 = vmatprep.subr.bf16.mxu1 %v11881_v42 }
 0x45d   :  { %8622 = vmatmul.mubr.msk.bf16.vlgmr.msra.gmra.mrb[108].mxu1 %vm3260_vm4, %v11256_v28 }
 0x45e   :  { %8626 = vmatpush3.bf16.msra.mxu1 %v11159_v39  ;;  %8629 = vmatprep.mubr.msk.bf16.mxu1 %vm9260_vm1, %v11881_v42 }
 0x45f   :  { %8627 = vmatprep.subr.bf16.mxu1 %v11881_v42 }
 0x462   :  { %8628 = vmatpush3.bf16.msra.mxu1 %v11169_v10 }
 0x463   :  { %8633 = vmatprep.subr.bf16.mxu1 %v11881_v42 }
 0x469   :  { %8630 = vmatmul.mubr.msk.bf16.vlgmr.msra.gmra.mrb[108].mxu1 %vm3260_vm4, %v11280_v57 }
 0x46a   :  { %8634 = vmatpush3.bf16.msra.mxu1 %v11182_v3  ;;  %8637 = vmatprep.mubr.msk.bf16.mxu1 %vm9260_vm1, %v11881_v42 }
 0x46b   :  { %8635 = vmatprep.subr.bf16.mxu1 %v11881_v42 }
 0x46e   :  { %8636 = vmatpush3.bf16.msra.mxu1 %v11192_v14 }
 0x46f   :  { %8641 = vmatprep.subr.bf16.mxu1 %v11881_v42 }
 0x475   :  { %8638 = vmatmul.mubr.msk.bf16.vlgmr.msra.gmra.mrb[108].mxu1 %vm3260_vm4, %v11300_v26 }
 0x476   :  { %8642 = vmatpush3.bf16.msra.mxu1 %v11205_v8  ;;  %8645 = vmatprep.mubr.msk.bf16.mxu1 %vm9260_vm1, %v11881_v42 }
 0x477   :  { %8643 = vmatprep.subr.bf16.mxu1 %v11881_v42 }
 0x47a   :  { %8644 = vmatpush3.bf16.msra.mxu1 %v11216_v45 }
 0x47b   :  { %8649 = vmatprep.subr.bf16.mxu1 %v11881_v42 }
 0x481   :  { %8646 = vmatmul.mubr.msk.bf16.vlgmr.msra.gmra.mrb[108].mxu1 %vm3260_vm4, %v2724_v53 }
 0x482   :  { %8650 = vmatpush3.bf16.msra.mxu1 %v11231_v59  ;;  %8653 = vmatprep.mubr.msk.bf16.mxu1 %vm9260_vm1, %v11881_v42 }
 0x483   :  { %8651 = vmatprep.subr.bf16.mxu1 %v11881_v42 }
 0x486   :  { %8652 = vmatpush3.bf16.msra.mxu1 %v11241_v16 }
 0x487   :  { %8657 = vmatprep.subr.bf16.mxu1 %v11881_v42 }
 0x48d   :  { %8654 = vmatmul.mubr.msk.bf16.vlgmr.msra.gmra.mrb[108].mxu1 %vm3260_vm4, %v11432_v54 }
 0x48e   :  { %8658 = vmatpush3.bf16.msra.mxu1 %v11254_v19  ;;  %8661 = vmatprep.mubr.msk.bf16.mxu1 %vm9260_vm1, %v11881_v42 }
 0x48f   :  { %8659 = vmatprep.subr.bf16.mxu1 %v11881_v42 }
 0x492   :  { %8660 = vmatpush3.bf16.msra.mxu1 %v11264_v31 }
 0x493   :  { %8665 = vmatprep.subr.bf16.mxu1 %v11881_v42 }
 0x499   :  { %8662 = vmatmul.mubr.msk.bf16.vlgmr.msra.gmra.mrb[108].mxu1 %vm3260_vm4, %v11445_v35 }
 0x49a   :  { %8666 = vmatpush3.bf16.msra.mxu1 %v11278_v18  ;;  %8669 = vmatprep.mubr.msk.bf16.mxu1 %vm9260_vm1, %v11881_v42 }
 0x49b   :  { %8667 = vmatprep.subr.bf16.mxu1 %v11881_v42 }
 0x49e   :  { %8668 = vmatpush3.bf16.msra.mxu1 %v11290_v1 }
 0x49f   :  { %8817 = vmatprep.subr.bf16.mxu1 %v11881_v42 }
 0x4a5   :  { %8670 = vmatmul.mubr.msk.bf16.vlgmr.msra.gmra.mrb[108].mxu1 %vm3260_vm4, %v11458_v29 }
 0x4a6   :  { %8819 = vmatprep.mubr.msk.bf16.mxu1 %vm9260_vm1, %v11881_v42 }
 0x4bc   :  { %v4219_v2 = vpop.f32.mrb[104].mxu1 }
 0x4bd   :  { %v8841_v0 = vadd.f32 %v11467_v49, %v4219_v2  ;;  %v8399_v21 = vpop.f32.mrb[105].mxu1  ;;  %v9167_v2 = vld [vmem:[%s11857_s6 + $0x18] sm:$0xff]  }
 0x4be   :  { %v4222_v12 = vpop.f32.mrb[106].mxu1 }
 0x4bf   :  { %vm4226_vm12 = vcmp.ge.f32.partialorder %v8841_v0, 0.0  ;;  %v4227_v25 = vmul.f32 0.01, %v8841_v0  ;;  %v8400_v36 = vpop.f32.mrb[107].mxu1 }
 0x4c1   :  { %v4228_v44 = vsel %vm4226_vm12, %v8841_v0, %v4227_v25 }
 0x4c2   :  { %v4229_v53 = vpack.c.bf16 %v4228_v44, %v4228_v44 }
 0x4c4   :  { %8406 = vmatmul.mubr.msk.bf16.vlgmr.msra.gmra.mrb[100].mxu0 %vm3260_vm4, %v4229_v53 }
 0x4c5   :  { %8410 = vmatpush3.bf16.msra.mxu0 %v10917_v51  ;;  %8413 = vmatprep.mubr.msk.bf16.mxu0 %vm9260_vm1, %v11881_v42  ;;  %v11882_v51 = vld [vmem:[#allocation6_spill] sm:$0xff] }
 0x4c6   :  { %8411 = vmatprep.subr.bf16.mxu0 %v11881_v42 }
 0x4c9   :  { %8412 = vmatpush3.bf16.msra.mxu0 %v10927_v60  ;;  %v11883_v60 = vld [vmem:[#allocation2_spill] sm:$0xff] }
 0x4ca   :  { %8417 = vmatprep.subr.bf16.mxu0 %v11881_v42  ;;  %vm881_vm13 = vcmp.ge.f32.partialorder %v11883_v60, 0.0 }
 0x4cc   :  { %8414 = vmatmul.mubr.msk.bf16.vlgmr.msra.gmra.mrb[104].mxu0 %vm3260_vm4, %v10963_v30  ;;  %v11884_v30 = vld [vmem:[#allocation3_spill] sm:$0xff] }
 0x4cd   :  { %8418 = vmatpush3.bf16.msra.mxu0 %v10937_v48  ;;  %8421 = vmatprep.mubr.msk.bf16.mxu0 %vm9260_vm1, %v11881_v42  ;;  %v882_v48 = vmul.f32 0.01, %v11883_v60  ;;  %vm1456_vm14 = vcmp.ge.f32.partialorder %v11884_v30, 0.0 }
 0x4ce   :  { %8419 = vmatprep.subr.bf16.mxu0 %v11881_v42 }
 0x4d1   :  { %8420 = vmatpush3.bf16.msra.mxu0 %v10945_v38  ;;  %v883_v38 = vsel %vm881_vm13, %v11883_v60, %v882_v48 }
 0x4d2   :  { %8425 = vmatprep.subr.bf16.mxu0 %v11881_v42 }
 0x4d8   :  { %8422 = vmatmul.mubr.msk.bf16.vlgmr.msra.gmra.mrb[104].mxu0 %vm3260_vm4, %v10986_v32 }
 0x4d9   :  { %8426 = vmatpush3.bf16.msra.mxu0 %v10961_v23  ;;  %8429 = vmatprep.mubr.msk.bf16.mxu0 %vm9260_vm1, %v11881_v42  ;;  %v884_v23 = vpack.c.bf16 %v883_v38, %v883_v38  ;;  %v9169_v38 = vld [vmem:[%s11857_s6 + $0x28] sm:$0xff]  }
 0x4da   :  { %8427 = vmatprep.subr.bf16.mxu0 %v11881_v42 }
 0x4dd   :  { %8428 = vmatpush3.bf16.msra.mxu0 %v10971_v62  ;;  %v1457_v62 = vmul.f32 0.01, %v11884_v30 }
 0x4de   :  { %8433 = vmatprep.subr.bf16.mxu0 %v11881_v42 }
 0x4e4   :  { %8430 = vmatmul.mubr.msk.bf16.vlgmr.msra.gmra.mrb[104].mxu0 %vm3260_vm4, %v11882_v51  ;;  %v9168_v51 = vld [vmem:[%s11857_s6 + $0x20] sm:$0xff]  }
 0x4e5   :  { %8434 = vmatpush3.bf16.msra.mxu0 %v10984_v40  ;;  %8437 = vmatprep.mubr.msk.bf16.mxu0 %vm9260_vm1, %v11881_v42  ;;  %v1458_v40 = vsel %vm1456_vm14, %v11884_v30, %v1457_v62 }
 0x4e6   :  { %8435 = vmatprep.subr.bf16.mxu0 %v11881_v42  ;;  %v11538_v32 = vpack.c.bf16 %v1458_v40, %v1458_v40  ;;  %v9244_v40 = vld [vmem:[%s11854_s4] sm:$0xff]  }
 0x4e9   :  { %8436 = vmatpush3.bf16.msra.mxu0 %v10994_v24  ;;  %v11885_v24 = vld [vmem:[#allocation4_spill] sm:$0xff] }
 0x4ea   :  { %8441 = vmatprep.subr.bf16.mxu0 %v11881_v42  ;;  %vm2031_vm15 = vcmp.ge.f32.partialorder %v11885_v24, 0.0 }
 0x4f0   :  { %8438 = vmatmul.mubr.msk.bf16.vlgmr.msra.gmra.mrb[104].mxu0 %vm3260_vm4, %v884_v23 }
 0x4f1   :  { %8442 = vmatpush3.bf16.msra.mxu0 %v11007_v5  ;;  %8445 = vmatprep.mubr.msk.bf16.mxu0 %vm9260_vm1, %v11881_v42  ;;  %v2032_v5 = vmul.f32 0.01, %v11885_v24 }
 0x4f2   :  { %8443 = vmatprep.subr.bf16.mxu0 %v11881_v42 }
 0x4f5   :  { %8444 = vmatpush3.bf16.msra.mxu0 %v11023_v55  ;;  %v2033_v55 = vsel %vm2031_vm15, %v11885_v24, %v2032_v5  ;;  %v9245_v24 = vld [vmem:[%s11854_s4 + $0x8] sm:$0xff]   ;;  %v9246_v5 = vld [vmem:[%s11854_s4 + $0x10] sm:$0xff]  }
 0x4f6   :  { %8449 = vmatprep.subr.bf16.mxu0 %v11881_v42 }
 0x4fc   :  { %8446 = vmatmul.mubr.msk.bf16.vlgmr.msra.gmra.mrb[104].mxu0 %vm3260_vm4, %v11063_v43 }
 0x4fd   :  { %8450 = vmatpush3.bf16.msra.mxu0 %v11038_v22  ;;  %8453 = vmatprep.mubr.msk.bf16.mxu0 %vm9260_vm1, %v11881_v42  ;;  %v11575_v22 = vpack.c.bf16 %v2033_v55, %v2033_v55  ;;  %v9247_v55 = vld [vmem:[%s11854_s4 + $0x18] sm:$0xff]  }
 0x4fe   :  { %8451 = vmatprep.subr.bf16.mxu0 %v11881_v42 }
 0x501   :  { %8452 = vmatpush3.bf16.msra.mxu0 %v11048_v41  ;;  %v11886_v41 = vld [vmem:[#allocation7_spill] sm:$0xff] }
 0x502   :  { %8457 = vmatprep.subr.bf16.mxu0 %v11881_v42  ;;  %vm2606_vm3 = vcmp.ge.f32.partialorder %v11886_v41, 0.0 }
 0x508   :  { %8454 = vmatmul.mubr.msk.bf16.vlgmr.msra.gmra.mrb[104].mxu0 %vm3260_vm4, %v11087_v50 }
 0x509   :  { %8458 = vmatpush3.bf16.msra.mxu0 %v11061_v37  ;;  %8461 = vmatprep.mubr.msk.bf16.mxu0 %vm9260_vm1, %v11881_v42  ;;  %v2607_v37 = vmul.f32 0.01, %v11886_v41 }
 0x50a   :  { %8459 = vmatprep.subr.bf16.mxu0 %v11881_v42 }
 0x50b   :  { %v2608_v63 = vsel %vm2606_vm3, %v11886_v41, %v2607_v37  ;;  %v9249_v41 = vld [vmem:[%s11854_s4 + $0x28] sm:$0xff]   ;;  %v9251_v37 = vld [vmem:[%s11854_s4 + $0x38] sm:$0xff]  }
 0x50c   :  { %v11612_v47 = vpack.c.bf16 %v2608_v63, %v2608_v63 }
 0x50d   :  { %8460 = vmatpush3.bf16.msra.mxu0 %v11071_v7 }
 0x50e   :  { %8465 = vmatprep.subr.bf16.mxu0 %v11881_v42 }
 0x514   :  { %8462 = vmatmul.mubr.msk.bf16.vlgmr.msra.gmra.mrb[104].mxu0 %vm3260_vm4, %v11112_v9 }
 0x515   :  { %8466 = vmatpush3.bf16.msra.mxu0 %v11085_v4  ;;  %8469 = vmatprep.mubr.msk.bf16.mxu0 %vm9260_vm1, %v11881_v42 }
 0x516   :  { %8467 = vmatprep.subr.bf16.mxu0 %v11881_v42 }
 0x519   :  { %8468 = vmatpush3.bf16.msra.mxu0 %v11097_v27 }
 0x51a   :  { %8473 = vmatprep.subr.bf16.mxu0 %v11881_v42 }
 0x520   :  { %8470 = vmatmul.mubr.msk.bf16.vlgmr.msra.gmra.mrb[104].mxu0 %vm3260_vm4, %v11538_v32 }
 0x521   :  { %8474 = vmatpush3.bf16.msra.mxu0 %v11110_v6  ;;  %8477 = vmatprep.mubr.msk.bf16.mxu0 %vm9260_vm1, %v11881_v42 }
 0x522   :  { %8475 = vmatprep.subr.bf16.mxu0 %v11881_v42 }
 0x525   :  { %8476 = vmatpush3.bf16.msra.mxu0 %v11120_v11 }
 0x526   :  { %8481 = vmatprep.subr.bf16.mxu0 %v11881_v42 }
 0x52c   :  { %8478 = vmatmul.mubr.msk.bf16.vlgmr.msra.gmra.mrb[104].mxu0 %vm3260_vm4, %v11161_v13 }
 0x52d   :  { %8482 = vmatpush3.bf16.msra.mxu0 %v11133_v15  ;;  %8485 = vmatprep.mubr.msk.bf16.mxu0 %vm9260_vm1, %v11881_v42 }
 0x52e   :  { %8483 = vmatprep.subr.bf16.mxu0 %v11881_v42 }
 0x531   :  { %8484 = vmatpush3.bf16.msra.mxu0 %v11143_v52 }
 0x532   :  { %8489 = vmatprep.subr.bf16.mxu0 %v11881_v42 }
 0x538   :  { %8486 = vmatmul.mubr.msk.bf16.vlgmr.msra.gmra.mrb[104].mxu0 %vm3260_vm4, %v11184_v61 }
 0x539   :  { %8490 = vmatpush3.bf16.msra.mxu0 %v11159_v39  ;;  %8493 = vmatprep.mubr.msk.bf16.mxu0 %vm9260_vm1, %v11881_v42 }
 0x53a   :  { %8491 = vmatprep.subr.bf16.mxu0 %v11881_v42 }
 0x53d   :  { %8492 = vmatpush3.bf16.msra.mxu0 %v11169_v10 }
 0x53e   :  { %8497 = vmatprep.subr.bf16.mxu0 %v11881_v42 }
 0x544   :  { %8494 = vmatmul.mubr.msk.bf16.vlgmr.msra.gmra.mrb[104].mxu0 %vm3260_vm4, %v11207_v33 }
 0x545   :  { %8498 = vmatpush3.bf16.msra.mxu0 %v11182_v3  ;;  %8501 = vmatprep.mubr.msk.bf16.mxu0 %vm9260_vm1, %v11881_v42 }
 0x546   :  { %8499 = vmatprep.subr.bf16.mxu0 %v11881_v42 }
 0x549   :  { %8500 = vmatpush3.bf16.msra.mxu0 %v11192_v14 }
 0x54a   :  { %8505 = vmatprep.subr.bf16.mxu0 %v11881_v42 }
 0x550   :  { %8502 = vmatmul.mubr.msk.bf16.vlgmr.msra.gmra.mrb[104].mxu0 %vm3260_vm4, %v11575_v22 }
 0x551   :  { %8506 = vmatpush3.bf16.msra.mxu0 %v11205_v8  ;;  %8509 = vmatprep.mubr.msk.bf16.mxu0 %vm9260_vm1, %v11881_v42 }
 0x552   :  { %8507 = vmatprep.subr.bf16.mxu0 %v11881_v42 }
 0x555   :  { %8508 = vmatpush3.bf16.msra.mxu0 %v11216_v45 }
 0x556   :  { %8513 = vmatprep.subr.bf16.mxu0 %v11881_v42 }
 0x55c   :  { %8510 = vmatmul.mubr.msk.bf16.vlgmr.msra.gmra.mrb[104].mxu0 %vm3260_vm4, %v11256_v28 }
 0x55d   :  { %8514 = vmatpush3.bf16.msra.mxu0 %v11231_v59  ;;  %8517 = vmatprep.mubr.msk.bf16.mxu0 %vm9260_vm1, %v11881_v42 }
 0x55e   :  { %8515 = vmatprep.subr.bf16.mxu0 %v11881_v42 }
 0x561   :  { %8516 = vmatpush3.bf16.msra.mxu0 %v11241_v16 }
 0x562   :  { %8521 = vmatprep.subr.bf16.mxu0 %v11881_v42 }
 0x568   :  { %8518 = vmatmul.mubr.msk.bf16.vlgmr.msra.gmra.mrb[104].mxu0 %vm3260_vm4, %v11280_v57 }
 0x569   :  { %8522 = vmatpush3.bf16.msra.mxu0 %v11254_v19  ;;  %8525 = vmatprep.mubr.msk.bf16.mxu0 %vm9260_vm1, %v11881_v42 }
 0x56a   :  { %8523 = vmatprep.subr.bf16.mxu0 %v11881_v42 }
 0x56d   :  { %8524 = vmatpush3.bf16.msra.mxu0 %v11264_v31 }
 0x56e   :  { %8529 = vmatprep.subr.bf16.mxu0 %v11881_v42 }
 0x574   :  { %8526 = vmatmul.mubr.msk.bf16.vlgmr.msra.gmra.mrb[104].mxu0 %vm3260_vm4, %v11300_v26 }
 0x575   :  { %8530 = vmatpush3.bf16.msra.mxu0 %v11278_v18  ;;  %8533 = vmatprep.mubr.msk.bf16.mxu0 %vm9260_vm1, %v11881_v42 }
 0x576   :  { %8531 = vmatprep.subr.bf16.mxu0 %v11881_v42 }
 0x578   :  { %v5684_v7 = vpop.f32.mrb[108].mxu1 }
 0x579   :  { %v8671_v20 = vpop.f32.mrb[109].mxu1  ;;  %8532 = vmatpush3.bf16.msra.mxu0 %v11290_v1  ;;  %v8843_v48 = vadd.f32 %v11467_v49, %v5684_v7  ;;  %v9253_v7 = vld [vmem:[%s11854_s4 + $0x48] sm:$0xff]  }
 0x57a   :  { %v5687_v34 = vpop.f32.mrb[110].mxu1  ;;  %8537 = vmatprep.subr.bf16.mxu0 %v11881_v42  ;;  %v9255_v20 = vld [vmem:[%s11854_s4 + $0x58] sm:$0xff]  }
 0x57b   :  { %v8672_v58 = vpop.f32.mrb[111].mxu1  ;;  %v5692_v23 = vmul.f32 0.01, %v8843_v48  ;;  %vm5691_vm6 = vcmp.ge.f32.partialorder %v8843_v48, 0.0  ;;  %v9257_v34 = vld [vmem:[%s11854_s4 + $0x68] sm:$0xff]  }
 0x57d   :  { %v5693_v30 = vsel %vm5691_vm6, %v8843_v48, %v5692_v23 }
 0x57e   :  { %v5694_v62 = vpack.c.bf16 %v5693_v30, %v5693_v30 }
 0x580   :  { %8534 = vmatmul.mubr.msk.bf16.vlgmr.msra.gmra.mrb[104].mxu0 %vm3260_vm4, %v11612_v47 }
 0x581   :  { %8541 = vmatprep.mubr.msk.bf16.mxu0 %vm9260_vm1, %v11881_v42  ;;  %8538 = vmatpush3.bf16.msra.mxu0 %v9166_v46  ;;  %v9174_v46 = vld [vmem:[%s11862_s12] sm:$0xff]  }
 0x582   :  { %8539 = vmatprep.subr.bf16.mxu0 %v11881_v42 }
 0x585   :  { %8540 = vmatpush3.bf16.msra.mxu0 %v9167_v2 }
 0x586   :  { %8673 = vmatprep.subr.bf16.mxu0 %v11881_v42 }
 0x653   :  { %v4951_v0 = vpop.f32.mrb[104].mxu0 }
 0x654   :  { %v8842_v21 = vadd.f32 %v11467_v49, %v4951_v0  ;;  %v8535_v12 = vpop.f32.mrb[105].mxu0  ;;  %v6948_v0 = vld [vmem:[%s11863_s11] ss:$0 sm:$0xff] }
 0x655   :  { %v4954_v25 = vpop.f32.mrb[106].mxu0 }
 0x656   :  { %vm4958_vm5 = vcmp.ge.f32.partialorder %v8842_v21, 0.0  ;;  %v4959_v36 = vmul.f32 0.01, %v8842_v21  ;;  %v8536_v44 = vpop.f32.mrb[107].mxu0 }
 0x658   :  { %v4960_v53 = vsel %vm4958_vm5, %v8842_v21, %v4959_v36 }
 0x659   :  { %v4961_v60 = vpack.c.bf16 %v4960_v53, %v4960_v53 }
 0x65b   :  { %8542 = vmatmul.mubr.msk.bf16.vlgmr.msra.gmra.mrb[100].mxu0 %vm3260_vm4, %v4961_v60 }
 0x65c   :  { %8674 = vmatpush3.bf16.msra.mxu0 %v9168_v51  ;;  %8677 = vmatprep.mubr.msk.bf16.mxu0 %vm9260_vm1, %v11881_v42 }
 0x65d   :  { %8675 = vmatprep.subr.bf16.mxu0 %v11881_v42 }
 0x660   :  { %8676 = vmatpush3.bf16.msra.mxu0 %v9169_v38 }
 0x661   :  { %8681 = vmatprep.subr.bf16.mxu0 %v11881_v42 }
 0x667   :  { %8678 = vmatmul.mubr.msk.bf16.vlgmr.msra.gmra.mrb[100].mxu0 %vm3260_vm4, %v5694_v62 }
 0x668   :  { %8682 = vmatpush3.bf16.msra.mxu0 %v9244_v40  ;;  %8685 = vmatprep.mubr.msk.bf16.mxu0 %vm9260_vm1, %v11881_v42 }
 0x669   :  { %8683 = vmatprep.subr.bf16.mxu0 %v11881_v42 }
 0x66c   :  { %8684 = vmatpush3.bf16.msra.mxu0 %v9245_v24 }
 0x66d   :  { %8689 = vmatprep.subr.bf16.mxu0 %v11881_v42 }
 0x66f   :  { %8686 = vmatmul.mubr.msk.bf16.vlgmr.msra.gmra.mrb[108].mxu0 %vm3260_vm4, %v11063_v43  ;;  %v9248_v43 = vld [vmem:[%s11854_s4 + $0x20] sm:$0xff]  }
 0x670   :  { %8690 = vmatpush3.bf16.msra.mxu0 %v9246_v5  ;;  %8693 = vmatprep.mubr.msk.bf16.mxu0 %vm9260_vm1, %v11881_v42 }
 0x671   :  { %8691 = vmatprep.subr.bf16.mxu0 %v11881_v42 }
 0x674   :  { %8692 = vmatpush3.bf16.msra.mxu0 %v9247_v55  ;;  %v11888_v55 = vlaneseq }
 0x675   :  { %8697 = vmatprep.subr.bf16.mxu0 %v11881_v42 }
 0x67b   :  { %8694 = vmatmul.mubr.msk.bf16.vlgmr.msra.gmra.mrb[108].mxu0 %vm3260_vm4, %v11087_v50  ;;  %v9250_v50 = vld [vmem:[%s11854_s4 + $0x30] sm:$0xff]  }
 0x67c   :  { %8698 = vmatpush3.bf16.msra.mxu0 %v9248_v43  ;;  %8701 = vmatprep.mubr.msk.bf16.mxu0 %vm9260_vm1, %v11881_v42  ;;  %v6666_v43 = vand.u32 127, %v11888_v55 }
 0x67d   :  { %8699 = vmatprep.subr.bf16.mxu0 %v11881_v42 }
 0x680   :  { %8700 = vmatpush3.bf16.msra.mxu0 %v9249_v41 }
 0x681   :  { %8705 = vmatprep.subr.bf16.mxu0 %v11881_v42 }
 0x687   :  { %8702 = vmatmul.mubr.msk.bf16.vlgmr.msra.gmra.mrb[108].mxu0 %vm3260_vm4, %v11112_v9  ;;  %v9252_v9 = vld [vmem:[%s11854_s4 + $0x40] sm:$0xff]  }
 0x688   :  { %8706 = vmatpush3.bf16.msra.mxu0 %v9250_v50  ;;  %8709 = vmatprep.mubr.msk.bf16.mxu0 %vm9260_vm1, %v11881_v42 }
 0x689   :  { %8707 = vmatprep.subr.bf16.mxu0 %v11881_v42 }
 0x68c   :  { %8708 = vmatpush3.bf16.msra.mxu0 %v9251_v37 }
 0x68d   :  { %8713 = vmatprep.subr.bf16.mxu0 %v11881_v42 }
 0x693   :  { %8710 = vmatmul.mubr.msk.bf16.vlgmr.msra.gmra.mrb[108].mxu0 %vm3260_vm4, %v11538_v32  ;;  %v9254_v32 = vld [vmem:[%s11854_s4 + $0x50] sm:$0xff]  }
 0x694   :  { %8714 = vmatpush3.bf16.msra.mxu0 %v9252_v9  ;;  %8717 = vmatprep.mubr.msk.bf16.mxu0 %vm9260_vm1, %v11881_v42 }
 0x695   :  { %8715 = vmatprep.subr.bf16.mxu0 %v11881_v42 }
 0x698   :  { %8716 = vmatpush3.bf16.msra.mxu0 %v9253_v7 }
 0x699   :  { %8721 = vmatprep.subr.bf16.mxu0 %v11881_v42 }
 0x69f   :  { %8718 = vmatmul.mubr.msk.bf16.vlgmr.msra.gmra.mrb[108].mxu0 %vm3260_vm4, %v11161_v13  ;;  %v9256_v13 = vld [vmem:[%s11854_s4 + $0x60] sm:$0xff]  }
 0x6a0   :  { %8722 = vmatpush3.bf16.msra.mxu0 %v9254_v32  ;;  %8725 = vmatprep.mubr.msk.bf16.mxu0 %vm9260_vm1, %v11881_v42 }
 0x6a1   :  { %8723 = vmatprep.subr.bf16.mxu0 %v11881_v42 }
 0x6a4   :  { %8724 = vmatpush3.bf16.msra.mxu0 %v9255_v20 }
 0x6a5   :  { %8729 = vmatprep.subr.bf16.mxu0 %v11881_v42 }
 0x6ab   :  { %8726 = vmatmul.mubr.msk.bf16.vlgmr.msra.gmra.mrb[108].mxu0 %vm3260_vm4, %v11184_v61 }
 0x6ac   :  { %8730 = vmatpush3.bf16.msra.mxu0 %v9256_v13  ;;  %8733 = vmatprep.mubr.msk.bf16.mxu0 %vm9260_vm1, %v11881_v42 }
 0x6ad   :  { %8731 = vmatprep.subr.bf16.mxu0 %v11881_v42 }
 0x6b0   :  { %8732 = vmatpush3.bf16.msra.mxu0 %v9257_v34 }
 0x6b1   :  { %8737 = vmatprep.subr.bf16.mxu0 %v11881_v42 }
 0x6b7   :  { %8734 = vmatmul.mubr.msk.bf16.vlgmr.msra.gmra.mrb[108].mxu0 %vm3260_vm4, %v11207_v33 }
 0x6b8   :  { %8738 = vmatpush3.bf16.msra.mxu0 %v11085_v4  ;;  %8741 = vmatprep.mubr.msk.bf16.mxu0 %vm9260_vm1, %v11881_v42 }
 0x6b9   :  { %8739 = vmatprep.subr.bf16.mxu0 %v11881_v42 }
 0x6bc   :  { %8740 = vmatpush3.bf16.msra.mxu0 %v11097_v27 }
 0x6bd   :  { %8745 = vmatprep.subr.bf16.mxu0 %v11881_v42 }
 0x6c3   :  { %8742 = vmatmul.mubr.msk.bf16.vlgmr.msra.gmra.mrb[108].mxu0 %vm3260_vm4, %v11575_v22 }
 0x6c4   :  { %8746 = vmatpush3.bf16.msra.mxu0 %v11110_v6  ;;  %8749 = vmatprep.mubr.msk.bf16.mxu0 %vm9260_vm1, %v11881_v42  ;;  %v9171_v6 = vld [vmem:[%s11857_s6 + $0x38] sm:$0xff]  }
 0x6c5   :  { %8747 = vmatprep.subr.bf16.mxu0 %v11881_v42 }
 0x6c8   :  { %8748 = vmatpush3.bf16.msra.mxu0 %v11120_v11  ;;  %v6488_v11 = vld [vmem:[%s11859_s10] sm:$0xf] }
 0x6c9   :  { %8753 = vmatprep.subr.bf16.mxu0 %v11881_v42 }
 0x6cf   :  { %8750 = vmatmul.mubr.msk.bf16.vlgmr.msra.gmra.mrb[108].mxu0 %vm3260_vm4, %v11256_v28 }
 0x6d0   :  { %8754 = vmatpush3.bf16.msra.mxu0 %v11133_v15  ;;  %8757 = vmatprep.mubr.msk.bf16.mxu0 %vm9260_vm1, %v11881_v42  ;;  %v6490_v15 = vsel %vm3199_vm0, %v6488_v11, 0 }
 0x6d1   :  { %8755 = vmatprep.subr.bf16.mxu0 %v11881_v42  ;;  %8818 = vmatpush3.bf16.msra.mxu1 %v6490_v15 }
 0x6d2   :  { %8823 = vmatprep.subr.bf16.mxu1 %v11881_v42 }
 0x6d4   :  { %8756 = vmatpush3.bf16.msra.mxu0 %v11143_v52  ;;  %v11887_v52 = vld [vmem:[#allocation5_spill] sm:$0xff] }
 0x6d5   :  { %8761 = vmatprep.subr.bf16.mxu0 %v11881_v42  ;;  %8820 = vmatmul.mubr.msk.bf16.vlgmr.msra.gmra.mrb[112].mxu1 %vm3195_vm2, %v11887_v52  ;;  %vm6671_vm2 = vcmp.lt.s32.totalorder %v6666_v43, 2 }
 0x6d6   :  { %8827 = vmatprep.mubr.msk.bf16.mxu1 %vm9260_vm1, %v11881_v42 }
 0x6db   :  { %8758 = vmatmul.mubr.msk.bf16.vlgmr.msra.gmra.mrb[108].mxu0 %vm3260_vm4, %v11280_v57  ;;  %v3182_v57 = vmul.f32 0.01, %v11319_v56 }
 0x6dc   :  { %8762 = vmatpush3.bf16.msra.mxu0 %v11159_v39  ;;  %8765 = vmatprep.mubr.msk.bf16.mxu0 %vm9260_vm1, %v11881_v42 }
 0x6dd   :  { %8763 = vmatprep.subr.bf16.mxu0 %v11881_v42  ;;  %v3183_v4 = vsel %vm3181_vm7, %v11319_v56, %v3182_v57 }
 0x6de   :  { %v3184_v27 = vpack.c.bf16 %v3183_v4, %v3183_v4 }
 0x6e0   :  { %8764 = vmatpush3.bf16.msra.mxu0 %v11169_v10 }
 0x6e1   :  { %8769 = vmatprep.subr.bf16.mxu0 %v11881_v42 }
 0x6e7   :  { %8766 = vmatmul.mubr.msk.bf16.vlgmr.msra.gmra.mrb[108].mxu0 %vm3260_vm4, %v11300_v26  ;;  %v6761_v26 = vld [vmem:[%s11861_s8] ss:$0 sm:$0xff] }
 0x6e8   :  { %8770 = vmatpush3.bf16.msra.mxu0 %v11182_v3  ;;  %8773 = vmatprep.mubr.msk.bf16.mxu0 %vm9260_vm1, %v11881_v42  ;;  %v3238_v56 = vadd.f32 %v6761_v26, %v11327_v17  ;;  %v9175_v17 = vld [vmem:[%s11862_s12 + $0x8] sm:$0xff]  }
 0x6e9   :  { %8771 = vmatprep.subr.bf16.mxu0 %v11881_v42 }
 0x6ec   :  { %8772 = vmatpush3.bf16.msra.mxu0 %v11192_v14 }
 0x6ed   :  { %8777 = vmatprep.subr.bf16.mxu0 %v11881_v42 }
 0x6f3   :  { %8774 = vmatmul.mubr.msk.bf16.vlgmr.msra.gmra.mrb[108].mxu0 %vm3260_vm4, %v11612_v47 }
 0x6f4   :  { %8778 = vmatpush3.bf16.msra.mxu0 %v11205_v8  ;;  %8781 = vmatprep.mubr.msk.bf16.mxu0 %vm9260_vm1, %v11881_v42 }
 0x6f5   :  { %8779 = vmatprep.subr.bf16.mxu0 %v11881_v42 }
 0x6f8   :  { %8780 = vmatpush3.bf16.msra.mxu0 %v11216_v45 }
 0x6f9   :  { %8785 = vmatprep.subr.bf16.mxu0 %v11881_v42 }
 0x6ff   :  { %8782 = vmatmul.mubr.msk.bf16.vlgmr.msra.gmra.mrb[108].mxu0 %vm3260_vm4, %v11432_v54 }
 0x700   :  { %8786 = vmatpush3.bf16.msra.mxu0 %v11231_v59  ;;  %8789 = vmatprep.mubr.msk.bf16.mxu0 %vm9260_vm1, %v11881_v42  ;;  %v9172_v59 = vld [vmem:[%s11860_s9] sm:$0xff]  }
 0x701   :  { %8787 = vmatprep.subr.bf16.mxu0 %v11881_v42  ;;  %8824 = vmatpush3.bf16.msra.mxu1 %v9172_v59 }
 0x702   :  { %8825 = vmatprep.subr.bf16.mxu1 %v11881_v42 }
 0x704   :  { %8788 = vmatpush3.bf16.msra.mxu0 %v11241_v16  ;;  %v9173_v16 = vld [vmem:[%s11860_s9 + $0x8] sm:$0xff]  }
 0x705   :  { %8793 = vmatprep.subr.bf16.mxu0 %v11881_v42  ;;  %8826 = vmatpush3.bf16.msra.mxu1 %v9173_v16 }
 0x706   :  { %8831 = vmatprep.subr.bf16.mxu1 %v11881_v42 }
 0x70b   :  { %8790 = vmatmul.mubr.msk.bf16.vlgmr.msra.gmra.mrb[108].mxu0 %vm3260_vm4, %v11445_v35 }
 0x70c   :  { %8794 = vmatpush3.bf16.msra.mxu0 %v11254_v19  ;;  %8797 = vmatprep.mubr.msk.bf16.mxu0 %vm9260_vm1, %v11881_v42 }
 0x70d   :  { %8795 = vmatprep.subr.bf16.mxu0 %v11881_v42 }
 0x710   :  { %8796 = vmatpush3.bf16.msra.mxu0 %v11264_v31 }
 0x711   :  { %8801 = vmatprep.subr.bf16.mxu0 %v11881_v42 }
 0x717   :  { %8798 = vmatmul.mubr.msk.bf16.vlgmr.msra.gmra.mrb[108].mxu0 %vm3260_vm4, %v11458_v29 }
 0x718   :  { %8802 = vmatpush3.bf16.msra.mxu0 %v11278_v18  ;;  %8805 = vmatprep.mubr.msk.bf16.mxu0 %vm9260_vm1, %v11881_v42  ;;  %v9170_v18 = vld [vmem:[%s11857_s6 + $0x30] sm:$0xff]  }
 0x719   :  { %8803 = vmatprep.subr.bf16.mxu0 %v11881_v42 }
 0x71c   :  { %8804 = vmatpush3.bf16.msra.mxu0 %v11290_v1 }
 0x71d   :  { %8809 = vmatprep.subr.bf16.mxu0 %v11881_v42 }
 0x723   :  { %8806 = vmatmul.mubr.msk.bf16.vlgmr.msra.gmra.mrb[108].mxu0 %vm3260_vm4, %v3184_v27 }
 0x724   :  { %8813 = vmatprep.mubr.msk.bf16.mxu0 %vm9260_vm1, %v11881_v42  ;;  %8810 = vmatpush3.bf16.msra.mxu0 %v9170_v18 }
 0x725   :  { %8811 = vmatprep.subr.bf16.mxu0 %v11881_v42 }
 0x728   :  { %8812 = vmatpush3.bf16.msra.mxu0 %v9171_v6 }
 0x7a8   :  { %v6526_v19 = vpop.f32.mrb[112].mxu1 }
 0x7a9   :  { %v8821_v28 = vpop.f32.mrb[113].mxu1 }
 0x7aa   :  { %v6529_v31 = vpop.f32.mrb[114].mxu1 }
 0x7ab   :  { %v8822_v1 = vpop.f32.mrb[115].mxu1 }
 0x7f6   :  { %v6408_v39 = vpop.f32.mrb[108].mxu0 }
 0x7f7   :  { %v8844_v10 = vadd.f32 %v11467_v49, %v6408_v39  ;;  %v8807_v3 = vpop.f32.mrb[109].mxu0 }
 0x7f8   :  { %v6411_v61 = vpop.f32.mrb[110].mxu0 }
 0x7f9   :  { %vm6415_vm8 = vcmp.ge.f32.partialorder %v8844_v10, 0.0  ;;  %v6416_v14 = vmul.f32 0.01, %v8844_v10  ;;  %v8808_v8 = vpop.f32.mrb[111].mxu0 }
 0x7fb   :  { %v6417_v33 = vsel %vm6415_vm8, %v8844_v10, %v6416_v14 }
 0x7fc   :  { %v6418_v45 = vpack.c.bf16 %v6417_v33, %v6417_v33 }
 0x7fe   :  { %8814 = vmatmul.mubr.msk.bf16.vlgmr.msra.gmra.mrb[100].mxu0 %vm3260_vm4, %v6418_v45 }
 0x8d1   :  { %v6473_v54 = vpop.f32.mrb[100].mxu0 }
 0x8d2   :  { %v8840_v35 = vadd.f32 %v6473_v54, %v3238_v56  ;;  %v8815_v29 = vpop.f32.mrb[101].mxu0 }
 0x8d3   :  { %v6476_v49 = vpop.f32.mrb[102].mxu0 }
 0x8d4   :  { %vm6480_vm0 = vcmp.ge.f32.partialorder %v8840_v35, 0.0  ;;  %v6481_v22 = vmul.f32 0.01, %v8840_v35  ;;  %v8816_v63 = vpop.f32.mrb[103].mxu0 }
 0x8d6   :  { %v6482_v58 = vsel %vm6480_vm0, %v8840_v35, %v6481_v22 }
 0x8d7   :  { %v6483_v47 = vpack.c.bf16 %v6482_v58, %v6482_v58 }
 0x8d9   :  { %8828 = vmatmul.mubr.msk.bf16.vlgmr.msra.gmra.mrb[116].mxu1 %vm3260_vm4, %v6483_v47 }
 0x8da   :  { %8835 = vmatprep.mubr.msk.bf16.mxu1 %vm9260_vm1, %v11881_v42  ;;  %8832 = vmatpush3.bf16.msra.mxu1 %v9174_v46 }
 0x8db   :  { %8833 = vmatprep.subr.bf16.mxu1 %v11881_v42  ;;  %v6949_v42 = vld [vmem:[%s11864_s13] ss:$0 sm:$0xff] }
 0x8de   :  { %8834 = vmatpush3.bf16.msra.mxu1 %v9175_v17 }
 0x9ac   :  { %v6581_v2 = vpop.f32.mrb[116].mxu1 }
 0x9ad   :  { %v6582_v21 = vadd.f32 %v6581_v2, %v6526_v19  ;;  %v8829_v12 = vpop.f32.mrb[117].mxu1 }
 0x9ae   :  { %v6584_v25 = vpop.f32.mrb[118].mxu1 }
 0x9af   :  { %v6594_v36 = vadd.f32 %v6948_v0, %v6582_v21  ;;  %v8830_v44 = vpop.f32.mrb[119].mxu1 }
 0x9b1   :  { %vm6595_vm1 = vcmp.ge.f32.partialorder %v6594_v36, 0.0  ;;  %v6596_v53 = vmul.f32 0.01, %v6594_v36 }
 0x9b3   :  { %v6597_v51 = vsel %vm6595_vm1, %v6594_v36, %v6596_v53 }
 0x9b4   :  { %v6598_v60 = vpack.c.bf16 %v6597_v51, %v6597_v51 }
 0x9b6   :  { %8836 = vmatmul.mubr.msk.bf16.vlgmr.msra.gmra.mrb[120].mxu1 %vm3260_vm4, %v6598_v60 }
 0xa89   :  { %v6659_v48 = vpop.f32.mrb[120].mxu1 }
 0xa8a   :  { %v6660_v38 = vadd.f32 %v6949_v42, %v6659_v48  ;;  %v8837_v23 = vpop.f32.mrb[121].mxu1 }
 0xa8b   :  { %v6662_v30 = vpop.f32.mrb[122].mxu1 }
 0xa8c   :  { %v6667_v62 = vmax.f32 %v6660_v38, -20.0  ;;  %v8838_v40 = vpop.f32.mrb[123].mxu1 }
 0xa8e   :  { %v6668_v24 = vmin.f32 %v6667_v62, 2.0 }
 0xa90   :  { %v6669_v5 = vmul.f32 1.442695, %v6668_v24 }
 0xa92   :  { %9176 = vpow2.f32 %v6669_v5 }
 0xa9c   :  { %v9177_v41 = vpop.eup %9176 }
 0xa9d   :  { %v6672_v50 = vsel %vm6671_vm2, %v6660_v38, %v9177_v41 }
 0xa9e   :  { %6674 = vst.msk [vmem:[%s11865_s14] sm:$0x3] %vm6673_vm9, %v6672_v50 }

</bundles_post_ra>
